<compile_context>
chip_gen: v5e
topology: v5e:2x2
jax: 0.10.0
libtpu: 0.0.40
codegen_flags: <defaults>
</compile_context>

<pallas_src>
import jax
import jax.numpy as jnp
from jax.experimental import pallas as pl
from jax.experimental.pallas import tpu as pltpu
import numpy as np


# ------------------------- host-side constant operators -------------------------

def _shift_matrices(H, W):
    """(9, M, M) f32. For tap t=(ky,kx): x_flat @ P[t] equals the zero-padded 3x3 shift of the
    (C, H, W) image flattened channel-major to (C, H*W)."""
    M = H * W
    P = np.zeros((9, M, M), np.float32)
    for ky in range(3):
        for kx in range(3):
            t = ky * 3 + kx
            dy, dx = ky - 1, kx - 1
            for y in range(H):
                ys = y + dy
                if ys < 0 or ys >= H:
                    continue
                for x in range(W):
                    xs = x + dx
                    if xs < 0 or xs >= W:
                        continue
                    P[t, ys * W + xs, y * W + x] = 1.0
    return P


def _pool_matrices(H, W):
    """(4, M, Mo) f32 corner-selection matrices; max over the four (f @ S[k]) == MaxPool2d(2)."""
    Ho, Wo = H // 2, W // 2
    M, Mo = H * W, Ho * Wo
    S = np.zeros((4, M, Mo), np.float32)
    for k, (dy, dx) in enumerate(((0, 0), (0, 1), (1, 0), (1, 1))):
        for yo in range(Ho):
            for xo in range(Wo):
                S[k, (2 * yo + dy) * W + (2 * xo + dx), yo * Wo + xo] = 1.0
    return S


# ------------------------------- fused kernel ---------------------------------

def _conv3x3_bias_relu(x, p_ref, w_ref, b_ref):
    """x: (Cin, M) channel-major activation (M = H*W in lanes).
    p_ref: (9, M, M) shift matrices; w_ref: (9, Cout, Cin); b_ref: (Cout, 1).
    Returns ReLU(conv3x3(x) + b) as (Cout, M) f32 (lane-dense, NCHW-flat)."""
    cout = w_ref.shape[1]
    m = x.shape[-1]
    acc = jnp.zeros((cout, m), jnp.float32)
    for t in range(9):  # static unroll over the 9 taps; everything stays in vregs/VMEM
        shifted = jnp.dot(x, p_ref[t], preferred_element_type=jnp.float32)        # (Cin, M)
        acc = acc + jnp.dot(w_ref[t], shifted, preferred_element_type=jnp.float32)  # (Cout, M)
    acc = acc + b_ref[...]            # (Cout, 1) broadcast along lanes
    return jnp.maximum(acc, 0.0)


def _maxpool2_cm(f, s_ref):
    """MaxPool2d(2) on a channel-major flat feature f (C, H*W) via four corner gathers."""
    c0 = jnp.dot(f, s_ref[0], preferred_element_type=jnp.float32)
    c1 = jnp.dot(f, s_ref[1], preferred_element_type=jnp.float32)
    c2 = jnp.dot(f, s_ref[2], preferred_element_type=jnp.float32)
    c3 = jnp.dot(f, s_ref[3], preferred_element_type=jnp.float32)
    return jnp.maximum(jnp.maximum(c0, c1), jnp.maximum(c2, c3))


def _make_encoder_kernel(n_blocks):
    def kernel(*refs):
        # refs = [x] + n_blocks * [P, S, w1, b1, w2, b2] + n_blocks * [ftr_out]
        x_ref = refs[0]
        out_refs = refs[1 + 6 * n_blocks:]
        x = x_ref[0]                                          # (C0, H0*W0)
        for b in range(n_blocks):
            p_ref, s_ref, w1_ref, b1_ref, w2_ref, b2_ref = refs[1 + 6 * b: 7 + 6 * b]
            a = _conv3x3_bias_relu(x, p_ref, w1_ref, b1_ref)  # relu(conv1(x))
            f = _conv3x3_bias_relu(a, p_ref, w2_ref, b2_ref)  # relu(conv2(.))
            out_refs[b][0] = f                                # pre-pool feature -> HBM
            if b + 1 < n_blocks:                              # final pool result is unused
                x = _maxpool2_cm(f, s_ref)
    return kernel


# --------------------------------- wrapper -------------------------------------

def encoder_forward(x_nchw, params):
    """params: list of (w1, b1, w2, b2) per Block, w in HWIO (3,3,Cin,Cout).
    Returns the list of pre-pool NCHW features, like the PyTorch Encoder."""
    N, C0, H0, W0 = x_nchw.shape
    n_blocks = len(params)

    inputs = [x_nchw.reshape(N, C0, H0 * W0)]
    in_specs = [pl.BlockSpec((1, C0, H0 * W0), lambda n: (n, 0, 0))]
    out_shapes, out_specs, out_dims = [], [], []

    H, W = H0, W0
    for (w1, b1, w2, b2) in params:
        cin, cout = w1.shape[2], w1.shape[3]
        M = H * W
        Ho, Wo = H // 2, W // 2
        Mo = Ho * Wo

        P = jnp.asarray(_shift_matrices(H, W))                 # (9, M, M) constant
        S = jnp.asarray(_pool_matrices(H, W))                  # (4, M, Mo) constant
        wt1 = jnp.transpose(w1, (0, 1, 3, 2)).reshape(9, cout, cin)   # tap-major (Cout, Cin)
        wt2 = jnp.transpose(w2, (0, 1, 3, 2)).reshape(9, cout, cout)

        inputs += [P, S, wt1, b1.reshape(cout, 1), wt2, b2.reshape(cout, 1)]
        in_specs += [
            pl.BlockSpec((9, M, M), lambda n: (0, 0, 0)),
            pl.BlockSpec((4, M, Mo), lambda n: (0, 0, 0)),
            pl.BlockSpec((9, cout, cin), lambda n: (0, 0, 0)),
            pl.BlockSpec((cout, 1), lambda n: (0, 0)),
            pl.BlockSpec((9, cout, cout), lambda n: (0, 0, 0)),
            pl.BlockSpec((cout, 1), lambda n: (0, 0)),
        ]
        out_shapes.append(jax.ShapeDtypeStruct((N, cout, M), jnp.float32))
        out_specs.append(pl.BlockSpec((1, cout, M), lambda n: (n, 0, 0)))
        out_dims.append((cout, H, W))
        H, W = Ho, Wo

    outs = pl.pallas_call(
        _make_encoder_kernel(n_blocks),
        out_shape=tuple(out_shapes),
        grid=(N,),
        in_specs=in_specs,
        out_specs=tuple(out_specs),
        compiler_params=pltpu.CompilerParams(dimension_semantics=("parallel",)),
    )(*inputs)
    if not isinstance(outs, (tuple, list)):
        outs = (outs,)

    # (N, C, H*W) is already NCHW-flat: reshape only, no transposes.
    return [o.reshape(N, c, h, w) for o, (c, h, w) in zip(outs, out_dims)]


# ----------------------------- Reference (plain JAX) -----------------------------

def _conv3x3_relu_ref(x, w, b):
    out = jax.lax.conv_general_dilated(
        x, w, window_strides=(1, 1), padding="SAME",
        dimension_numbers=("NHWC", "HWIO", "NHWC"),
        precision=jax.lax.Precision.HIGHEST)
    return jnp.maximum(out + b, 0.0)


def _encoder_ref(x_nchw, params):
    x = jnp.transpose(x_nchw, (0, 2, 3, 1))
    ftrs = []
    for (w1, b1, w2, b2) in params:
        x = _conv3x3_relu_ref(x, w1, b1)
        x = _conv3x3_relu_ref(x, w2, b2)
        ftrs.append(jnp.transpose(x, (0, 3, 1, 2)))
        N, H, W, C = x.shape
        x = jnp.max(x.reshape(N, H // 2, 2, W // 2, 2, C), axis=(2, 4))
    return ftrs


# ------------------------------- setup & main -----------------------------------

def init_params(key, chs):
    """Deterministic synthetic init (uniform +-1/sqrt(fan_in)), one (w1,b1,w2,b2) per Block."""
    params = []
    for i in range(len(chs) - 1):
        cin, cout = chs[i], chs[i + 1]
        key, k1, k2, k3, k4 = jax.random.split(key, 5)
        s1 = 1.0 / float(np.sqrt(cin * 9))
        s2 = 1.0 / float(np.sqrt(cout * 9))
        w1 = jax.random.uniform(k1, (3, 3, cin, cout), jnp.float32, -s1, s1)
        b1 = jax.random.uniform(k2, (cout,), jnp.float32, -s1, s1)
        w2 = jax.random.uniform(k3, (3, 3, cout, cout), jnp.float32, -s2, s2)
        b2 = jax.random.uniform(k4, (cout,), jnp.float32, -s2, s2)
        params.append((w1, b1, w2, b2))
    return params


if __name__ == "__main__":
    chs = (4, 8, 16)                    # Encoder([4, 8, 16]) -> two Blocks
    key = jax.random.PRNGKey(0)
    key, kx = jax.random.split(key)
    x = jax.random.normal(kx, (2, 4, 16, 16), jnp.float32)   # NCHW, like the PyTorch module
    params = init_params(key, chs)

    fwd = jax.jit(encoder_forward)
    ftrs = jax.block_until_ready(fwd(x, params))

    # Sanity check against a pure-JAX (HIGHEST-precision) reference. The fused kernel uses the
    # default MXU precision (bf16 multiplies, f32 accumulation), so tolerance is ~1e-2 relative.
    ftrs_ref = jax.block_until_ready(_encoder_ref(x, params))
    assert len(ftrs) == len(chs) - 1
    for got, ref in zip(ftrs, ftrs_ref):
        assert got.shape == ref.shape and got.dtype == ref.dtype
        np.testing.assert_allclose(np.asarray(got), np.asarray(ref), rtol=5e-2, atol=2e-2)

    print("KERNEL_OK")
</pallas_src>

<mosaic_0001>
module attributes {stable_mosaic.version = 11 : i64} {
  func.func @kernel(%arg0: i32, %arg1: memref<1x4x256xf32, #tpu.memory_space<vmem>>, %arg2: memref<9x256x256xf32, #tpu.memory_space<vmem>>, %arg3: memref<4x256x64xf32, #tpu.memory_space<vmem>>, %arg4: memref<9x8x4xf32, #tpu.memory_space<vmem>>, %arg5: memref<8x1xf32, #tpu.memory_space<vmem>>, %arg6: memref<9x8x8xf32, #tpu.memory_space<vmem>>, %arg7: memref<8x1xf32, #tpu.memory_space<vmem>>, %arg8: memref<9x64x64xf32, #tpu.memory_space<vmem>>, %arg9: memref<4x64x16xf32, #tpu.memory_space<vmem>>, %arg10: memref<9x16x8xf32, #tpu.memory_space<vmem>>, %arg11: memref<16x1xf32, #tpu.memory_space<vmem>>, %arg12: memref<9x16x16xf32, #tpu.memory_space<vmem>>, %arg13: memref<16x1xf32, #tpu.memory_space<vmem>>, %arg14: memref<1x8x256xf32, #tpu.memory_space<vmem>>, %arg15: memref<1x16x64xf32, #tpu.memory_space<vmem>>) attributes {dimension_semantics = [#tpu.dimension_semantics<parallel>], iteration_bounds = array<i64: 2>, scalar_prefetch = 0 : i64, scratch_operands = 0 : i64, tpu.core_type = #tpu.core_type<tc>, window_params = [{transform_indices = @transform_0, window_bounds = array<i64: 1, 4, 256>}, {pipeline_mode = #tpu.pipeline_mode<synchronous>, transform_indices = @transform_1, window_bounds = array<i64: 9, 256, 256>}, {pipeline_mode = #tpu.pipeline_mode<synchronous>, transform_indices = @transform_2, window_bounds = array<i64: 4, 256, 64>}, {pipeline_mode = #tpu.pipeline_mode<synchronous>, transform_indices = @transform_3, window_bounds = array<i64: 9, 8, 4>}, {pipeline_mode = #tpu.pipeline_mode<synchronous>, transform_indices = @transform_4, window_bounds = array<i64: 8, 1>}, {pipeline_mode = #tpu.pipeline_mode<synchronous>, transform_indices = @transform_5, window_bounds = array<i64: 9, 8, 8>}, {pipeline_mode = #tpu.pipeline_mode<synchronous>, transform_indices = @transform_6, window_bounds = array<i64: 8, 1>}, {pipeline_mode = #tpu.pipeline_mode<synchronous>, transform_indices = @transform_7, window_bounds = array<i64: 9, 64, 64>}, {pipeline_mode = #tpu.pipeline_mode<synchronous>, transform_indices = @transform_8, window_bounds = array<i64: 4, 64, 16>}, {pipeline_mode = #tpu.pipeline_mode<synchronous>, transform_indices = @transform_9, window_bounds = array<i64: 9, 16, 8>}, {pipeline_mode = #tpu.pipeline_mode<synchronous>, transform_indices = @transform_10, window_bounds = array<i64: 16, 1>}, {pipeline_mode = #tpu.pipeline_mode<synchronous>, transform_indices = @transform_11, window_bounds = array<i64: 9, 16, 16>}, {pipeline_mode = #tpu.pipeline_mode<synchronous>, transform_indices = @transform_12, window_bounds = array<i64: 16, 1>}, {transform_indices = @transform_13, window_bounds = array<i64: 1, 8, 256>}, {transform_indices = @transform_14, window_bounds = array<i64: 1, 16, 64>}]} {
    %c0 = arith.constant 0 : index
    %c0_0 = arith.constant 0 : index
    %c0_1 = arith.constant 0 : index
    %0 = vector.load %arg1[%c0, %c0_0, %c0_1] : memref<1x4x256xf32, #tpu.memory_space<vmem>>, vector<1x4x256xf32>
    %1 = vector.shape_cast %0 : vector<1x4x256xf32> to vector<4x256xf32>
    %cst = arith.constant 0.000000e+00 : f32
    %2 = vector.broadcast %cst : f32 to vector<8x256xf32>
    %c0_2 = arith.constant 0 : index
    %c0_3 = arith.constant 0 : index
    %c0_4 = arith.constant 0 : index
    %3 = vector.load %arg2[%c0_2, %c0_3, %c0_4] : memref<9x256x256xf32, #tpu.memory_space<vmem>>, vector<1x256x256xf32>
    %4 = vector.shape_cast %3 : vector<1x256x256xf32> to vector<256x256xf32>
    %cst_5 = arith.constant dense<0.000000e+00> : vector<4x256xf32>
    %5 = tpu.matmul %1, %4, %cst_5 {dimension_numbers = #tpu.dot_dimension_numbers<[1], [0], [0], [1], [0, 0, 1, 1], [], []>} : vector<4x256xf32>, vector<256x256xf32>, vector<4x256xf32> -> vector<4x256xf32>
    %c0_6 = arith.constant 0 : index
    %c0_7 = arith.constant 0 : index
    %c0_8 = arith.constant 0 : index
    %6 = vector.load %arg4[%c0_6, %c0_7, %c0_8] : memref<9x8x4xf32, #tpu.memory_space<vmem>>, vector<1x8x4xf32>
    %7 = vector.shape_cast %6 : vector<1x8x4xf32> to vector<8x4xf32>
    %cst_9 = arith.constant dense<0.000000e+00> : vector<8x256xf32>
    %8 = tpu.matmul %7, %5, %cst_9 {dimension_numbers = #tpu.dot_dimension_numbers<[1], [0], [0], [1], [0, 0, 1, 1], [], []>} : vector<8x4xf32>, vector<4x256xf32>, vector<8x256xf32> -> vector<8x256xf32>
    %9 = arith.addf %2, %8 : vector<8x256xf32>
    %c1 = arith.constant 1 : index
    %c0_10 = arith.constant 0 : index
    %c0_11 = arith.constant 0 : index
    %10 = vector.load %arg2[%c1, %c0_10, %c0_11] : memref<9x256x256xf32, #tpu.memory_space<vmem>>, vector<1x256x256xf32>
    %11 = vector.shape_cast %10 : vector<1x256x256xf32> to vector<256x256xf32>
    %cst_12 = arith.constant dense<0.000000e+00> : vector<4x256xf32>
    %12 = tpu.matmul %1, %11, %cst_12 {dimension_numbers = #tpu.dot_dimension_numbers<[1], [0], [0], [1], [0, 0, 1, 1], [], []>} : vector<4x256xf32>, vector<256x256xf32>, vector<4x256xf32> -> vector<4x256xf32>
    %c1_13 = arith.constant 1 : index
    %c0_14 = arith.constant 0 : index
    %c0_15 = arith.constant 0 : index
    %13 = vector.load %arg4[%c1_13, %c0_14, %c0_15] : memref<9x8x4xf32, #tpu.memory_space<vmem>>, vector<1x8x4xf32>
    %14 = vector.shape_cast %13 : vector<1x8x4xf32> to vector<8x4xf32>
    %cst_16 = arith.constant dense<0.000000e+00> : vector<8x256xf32>
    %15 = tpu.matmul %14, %12, %cst_16 {dimension_numbers = #tpu.dot_dimension_numbers<[1], [0], [0], [1], [0, 0, 1, 1], [], []>} : vector<8x4xf32>, vector<4x256xf32>, vector<8x256xf32> -> vector<8x256xf32>
    %16 = arith.addf %9, %15 : vector<8x256xf32>
    %c2 = arith.constant 2 : index
    %c0_17 = arith.constant 0 : index
    %c0_18 = arith.constant 0 : index
    %17 = vector.load %arg2[%c2, %c0_17, %c0_18] : memref<9x256x256xf32, #tpu.memory_space<vmem>>, vector<1x256x256xf32>
    %18 = vector.shape_cast %17 : vector<1x256x256xf32> to vector<256x256xf32>
    %cst_19 = arith.constant dense<0.000000e+00> : vector<4x256xf32>
    %19 = tpu.matmul %1, %18, %cst_19 {dimension_numbers = #tpu.dot_dimension_numbers<[1], [0], [0], [1], [0, 0, 1, 1], [], []>} : vector<4x256xf32>, vector<256x256xf32>, vector<4x256xf32> -> vector<4x256xf32>
    %c2_20 = arith.constant 2 : index
    %c0_21 = arith.constant 0 : index
    %c0_22 = arith.constant 0 : index
    %20 = vector.load %arg4[%c2_20, %c0_21, %c0_22] : memref<9x8x4xf32, #tpu.memory_space<vmem>>, vector<1x8x4xf32>
    %21 = vector.shape_cast %20 : vector<1x8x4xf32> to vector<8x4xf32>
    %cst_23 = arith.constant dense<0.000000e+00> : vector<8x256xf32>
    %22 = tpu.matmul %21, %19, %cst_23 {dimension_numbers = #tpu.dot_dimension_numbers<[1], [0], [0], [1], [0, 0, 1, 1], [], []>} : vector<8x4xf32>, vector<4x256xf32>, vector<8x256xf32> -> vector<8x256xf32>
    %23 = arith.addf %16, %22 : vector<8x256xf32>
    %c3 = arith.constant 3 : index
    %c0_24 = arith.constant 0 : index
    %c0_25 = arith.constant 0 : index
    %24 = vector.load %arg2[%c3, %c0_24, %c0_25] : memref<9x256x256xf32, #tpu.memory_space<vmem>>, vector<1x256x256xf32>
    %25 = vector.shape_cast %24 : vector<1x256x256xf32> to vector<256x256xf32>
    %cst_26 = arith.constant dense<0.000000e+00> : vector<4x256xf32>
    %26 = tpu.matmul %1, %25, %cst_26 {dimension_numbers = #tpu.dot_dimension_numbers<[1], [0], [0], [1], [0, 0, 1, 1], [], []>} : vector<4x256xf32>, vector<256x256xf32>, vector<4x256xf32> -> vector<4x256xf32>
    %c3_27 = arith.constant 3 : index
    %c0_28 = arith.constant 0 : index
    %c0_29 = arith.constant 0 : index
    %27 = vector.load %arg4[%c3_27, %c0_28, %c0_29] : memref<9x8x4xf32, #tpu.memory_space<vmem>>, vector<1x8x4xf32>
    %28 = vector.shape_cast %27 : vector<1x8x4xf32> to vector<8x4xf32>
    %cst_30 = arith.constant dense<0.000000e+00> : vector<8x256xf32>
    %29 = tpu.matmul %28, %26, %cst_30 {dimension_numbers = #tpu.dot_dimension_numbers<[1], [0], [0], [1], [0, 0, 1, 1], [], []>} : vector<8x4xf32>, vector<4x256xf32>, vector<8x256xf32> -> vector<8x256xf32>
    %30 = arith.addf %23, %29 : vector<8x256xf32>
    %c4 = arith.constant 4 : index
    %c0_31 = arith.constant 0 : index
    %c0_32 = arith.constant 0 : index
    %31 = vector.load %arg2[%c4, %c0_31, %c0_32] : memref<9x256x256xf32, #tpu.memory_space<vmem>>, vector<1x256x256xf32>
    %32 = vector.shape_cast %31 : vector<1x256x256xf32> to vector<256x256xf32>
    %cst_33 = arith.constant dense<0.000000e+00> : vector<4x256xf32>
    %33 = tpu.matmul %1, %32, %cst_33 {dimension_numbers = #tpu.dot_dimension_numbers<[1], [0], [0], [1], [0, 0, 1, 1], [], []>} : vector<4x256xf32>, vector<256x256xf32>, vector<4x256xf32> -> vector<4x256xf32>
    %c4_34 = arith.constant 4 : index
    %c0_35 = arith.constant 0 : index
    %c0_36 = arith.constant 0 : index
    %34 = vector.load %arg4[%c4_34, %c0_35, %c0_36] : memref<9x8x4xf32, #tpu.memory_space<vmem>>, vector<1x8x4xf32>
    %35 = vector.shape_cast %34 : vector<1x8x4xf32> to vector<8x4xf32>
    %cst_37 = arith.constant dense<0.000000e+00> : vector<8x256xf32>
    %36 = tpu.matmul %35, %33, %cst_37 {dimension_numbers = #tpu.dot_dimension_numbers<[1], [0], [0], [1], [0, 0, 1, 1], [], []>} : vector<8x4xf32>, vector<4x256xf32>, vector<8x256xf32> -> vector<8x256xf32>
    %37 = arith.addf %30, %36 : vector<8x256xf32>
    %c5 = arith.constant 5 : index
    %c0_38 = arith.constant 0 : index
    %c0_39 = arith.constant 0 : index
    %38 = vector.load %arg2[%c5, %c0_38, %c0_39] : memref<9x256x256xf32, #tpu.memory_space<vmem>>, vector<1x256x256xf32>
    %39 = vector.shape_cast %38 : vector<1x256x256xf32> to vector<256x256xf32>
    %cst_40 = arith.constant dense<0.000000e+00> : vector<4x256xf32>
    %40 = tpu.matmul %1, %39, %cst_40 {dimension_numbers = #tpu.dot_dimension_numbers<[1], [0], [0], [1], [0, 0, 1, 1], [], []>} : vector<4x256xf32>, vector<256x256xf32>, vector<4x256xf32> -> vector<4x256xf32>
    %c5_41 = arith.constant 5 : index
    %c0_42 = arith.constant 0 : index
    %c0_43 = arith.constant 0 : index
    %41 = vector.load %arg4[%c5_41, %c0_42, %c0_43] : memref<9x8x4xf32, #tpu.memory_space<vmem>>, vector<1x8x4xf32>
    %42 = vector.shape_cast %41 : vector<1x8x4xf32> to vector<8x4xf32>
    %cst_44 = arith.constant dense<0.000000e+00> : vector<8x256xf32>
    %43 = tpu.matmul %42, %40, %cst_44 {dimension_numbers = #tpu.dot_dimension_numbers<[1], [0], [0], [1], [0, 0, 1, 1], [], []>} : vector<8x4xf32>, vector<4x256xf32>, vector<8x256xf32> -> vector<8x256xf32>
    %44 = arith.addf %37, %43 : vector<8x256xf32>
    %c6 = arith.constant 6 : index
    %c0_45 = arith.constant 0 : index
    %c0_46 = arith.constant 0 : index
    %45 = vector.load %arg2[%c6, %c0_45, %c0_46] : memref<9x256x256xf32, #tpu.memory_space<vmem>>, vector<1x256x256xf32>
    %46 = vector.shape_cast %45 : vector<1x256x256xf32> to vector<256x256xf32>
    %cst_47 = arith.constant dense<0.000000e+00> : vector<4x256xf32>
    %47 = tpu.matmul %1, %46, %cst_47 {dimension_numbers = #tpu.dot_dimension_numbers<[1], [0], [0], [1], [0, 0, 1, 1], [], []>} : vector<4x256xf32>, vector<256x256xf32>, vector<4x256xf32> -> vector<4x256xf32>
    %c6_48 = arith.constant 6 : index
    %c0_49 = arith.constant 0 : index
    %c0_50 = arith.constant 0 : index
    %48 = vector.load %arg4[%c6_48, %c0_49, %c0_50] : memref<9x8x4xf32, #tpu.memory_space<vmem>>, vector<1x8x4xf32>
    %49 = vector.shape_cast %48 : vector<1x8x4xf32> to vector<8x4xf32>
    %cst_51 = arith.constant dense<0.000000e+00> : vector<8x256xf32>
    %50 = tpu.matmul %49, %47, %cst_51 {dimension_numbers = #tpu.dot_dimension_numbers<[1], [0], [0], [1], [0, 0, 1, 1], [], []>} : vector<8x4xf32>, vector<4x256xf32>, vector<8x256xf32> -> vector<8x256xf32>
    %51 = arith.addf %44, %50 : vector<8x256xf32>
    %c7 = arith.constant 7 : index
    %c0_52 = arith.constant 0 : index
    %c0_53 = arith.constant 0 : index
    %52 = vector.load %arg2[%c7, %c0_52, %c0_53] : memref<9x256x256xf32, #tpu.memory_space<vmem>>, vector<1x256x256xf32>
    %53 = vector.shape_cast %52 : vector<1x256x256xf32> to vector<256x256xf32>
    %cst_54 = arith.constant dense<0.000000e+00> : vector<4x256xf32>
    %54 = tpu.matmul %1, %53, %cst_54 {dimension_numbers = #tpu.dot_dimension_numbers<[1], [0], [0], [1], [0, 0, 1, 1], [], []>} : vector<4x256xf32>, vector<256x256xf32>, vector<4x256xf32> -> vector<4x256xf32>
    %c7_55 = arith.constant 7 : index
    %c0_56 = arith.constant 0 : index
    %c0_57 = arith.constant 0 : index
    %55 = vector.load %arg4[%c7_55, %c0_56, %c0_57] : memref<9x8x4xf32, #tpu.memory_space<vmem>>, vector<1x8x4xf32>
    %56 = vector.shape_cast %55 : vector<1x8x4xf32> to vector<8x4xf32>
    %cst_58 = arith.constant dense<0.000000e+00> : vector<8x256xf32>
    %57 = tpu.matmul %56, %54, %cst_58 {dimension_numbers = #tpu.dot_dimension_numbers<[1], [0], [0], [1], [0, 0, 1, 1], [], []>} : vector<8x4xf32>, vector<4x256xf32>, vector<8x256xf32> -> vector<8x256xf32>
    %58 = arith.addf %51, %57 : vector<8x256xf32>
    %c8 = arith.constant 8 : index
    %c0_59 = arith.constant 0 : index
    %c0_60 = arith.constant 0 : index
    %59 = vector.load %arg2[%c8, %c0_59, %c0_60] : memref<9x256x256xf32, #tpu.memory_space<vmem>>, vector<1x256x256xf32>
    %60 = vector.shape_cast %59 : vector<1x256x256xf32> to vector<256x256xf32>
    %cst_61 = arith.constant dense<0.000000e+00> : vector<4x256xf32>
    %61 = tpu.matmul %1, %60, %cst_61 {dimension_numbers = #tpu.dot_dimension_numbers<[1], [0], [0], [1], [0, 0, 1, 1], [], []>} : vector<4x256xf32>, vector<256x256xf32>, vector<4x256xf32> -> vector<4x256xf32>
    %c8_62 = arith.constant 8 : index
    %c0_63 = arith.constant 0 : index
    %c0_64 = arith.constant 0 : index
    %62 = vector.load %arg4[%c8_62, %c0_63, %c0_64] : memref<9x8x4xf32, #tpu.memory_space<vmem>>, vector<1x8x4xf32>
    %63 = vector.shape_cast %62 : vector<1x8x4xf32> to vector<8x4xf32>
    %cst_65 = arith.constant dense<0.000000e+00> : vector<8x256xf32>
    %64 = tpu.matmul %63, %61, %cst_65 {dimension_numbers = #tpu.dot_dimension_numbers<[1], [0], [0], [1], [0, 0, 1, 1], [], []>} : vector<8x4xf32>, vector<4x256xf32>, vector<8x256xf32> -> vector<8x256xf32>
    %65 = arith.addf %58, %64 : vector<8x256xf32>
    %c0_66 = arith.constant 0 : index
    %c0_67 = arith.constant 0 : index
    %66 = vector.load %arg5[%c0_66, %c0_67] : memref<8x1xf32, #tpu.memory_space<vmem>>, vector<8x1xf32>
    %67 = vector.broadcast %66 : vector<8x1xf32> to vector<8x256xf32>
    %68 = arith.addf %65, %67 : vector<8x256xf32>
    %cst_68 = arith.constant 0.000000e+00 : f32
    %69 = vector.broadcast %cst_68 : f32 to vector<8x256xf32>
    %70 = arith.maximumf %68, %69 : vector<8x256xf32>
    %cst_69 = arith.constant 0.000000e+00 : f32
    %71 = vector.broadcast %cst_69 : f32 to vector<8x256xf32>
    %c0_70 = arith.constant 0 : index
    %c0_71 = arith.constant 0 : index
    %c0_72 = arith.constant 0 : index
    %72 = vector.load %arg2[%c0_70, %c0_71, %c0_72] : memref<9x256x256xf32, #tpu.memory_space<vmem>>, vector<1x256x256xf32>
    %73 = vector.shape_cast %72 : vector<1x256x256xf32> to vector<256x256xf32>
    %cst_73 = arith.constant dense<0.000000e+00> : vector<8x256xf32>
    %74 = tpu.matmul %70, %73, %cst_73 {dimension_numbers = #tpu.dot_dimension_numbers<[1], [0], [0], [1], [0, 0, 1, 1], [], []>} : vector<8x256xf32>, vector<256x256xf32>, vector<8x256xf32> -> vector<8x256xf32>
    %c0_74 = arith.constant 0 : index
    %c0_75 = arith.constant 0 : index
    %c0_76 = arith.constant 0 : index
    %75 = vector.load %arg6[%c0_74, %c0_75, %c0_76] : memref<9x8x8xf32, #tpu.memory_space<vmem>>, vector<1x8x8xf32>
    %76 = vector.shape_cast %75 : vector<1x8x8xf32> to vector<8x8xf32>
    %cst_77 = arith.constant dense<0.000000e+00> : vector<8x256xf32>
    %77 = tpu.matmul %76, %74, %cst_77 {dimension_numbers = #tpu.dot_dimension_numbers<[1], [0], [0], [1], [0, 0, 1, 1], [], []>} : vector<8x8xf32>, vector<8x256xf32>, vector<8x256xf32> -> vector<8x256xf32>
    %78 = arith.addf %71, %77 : vector<8x256xf32>
    %c1_78 = arith.constant 1 : index
    %c0_79 = arith.constant 0 : index
    %c0_80 = arith.constant 0 : index
    %79 = vector.load %arg2[%c1_78, %c0_79, %c0_80] : memref<9x256x256xf32, #tpu.memory_space<vmem>>, vector<1x256x256xf32>
    %80 = vector.shape_cast %79 : vector<1x256x256xf32> to vector<256x256xf32>
    %cst_81 = arith.constant dense<0.000000e+00> : vector<8x256xf32>
    %81 = tpu.matmul %70, %80, %cst_81 {dimension_numbers = #tpu.dot_dimension_numbers<[1], [0], [0], [1], [0, 0, 1, 1], [], []>} : vector<8x256xf32>, vector<256x256xf32>, vector<8x256xf32> -> vector<8x256xf32>
    %c1_82 = arith.constant 1 : index
    %c0_83 = arith.constant 0 : index
    %c0_84 = arith.constant 0 : index
    %82 = vector.load %arg6[%c1_82, %c0_83, %c0_84] : memref<9x8x8xf32, #tpu.memory_space<vmem>>, vector<1x8x8xf32>
    %83 = vector.shape_cast %82 : vector<1x8x8xf32> to vector<8x8xf32>
    %cst_85 = arith.constant dense<0.000000e+00> : vector<8x256xf32>
    %84 = tpu.matmul %83, %81, %cst_85 {dimension_numbers = #tpu.dot_dimension_numbers<[1], [0], [0], [1], [0, 0, 1, 1], [], []>} : vector<8x8xf32>, vector<8x256xf32>, vector<8x256xf32> -> vector<8x256xf32>
    %85 = arith.addf %78, %84 : vector<8x256xf32>
    %c2_86 = arith.constant 2 : index
    %c0_87 = arith.constant 0 : index
    %c0_88 = arith.constant 0 : index
    %86 = vector.load %arg2[%c2_86, %c0_87, %c0_88] : memref<9x256x256xf32, #tpu.memory_space<vmem>>, vector<1x256x256xf32>
    %87 = vector.shape_cast %86 : vector<1x256x256xf32> to vector<256x256xf32>
    %cst_89 = arith.constant dense<0.000000e+00> : vector<8x256xf32>
    %88 = tpu.matmul %70, %87, %cst_89 {dimension_numbers = #tpu.dot_dimension_numbers<[1], [0], [0], [1], [0, 0, 1, 1], [], []>} : vector<8x256xf32>, vector<256x256xf32>, vector<8x256xf32> -> vector<8x256xf32>
    %c2_90 = arith.constant 2 : index
    %c0_91 = arith.constant 0 : index
    %c0_92 = arith.constant 0 : index
    %89 = vector.load %arg6[%c2_90, %c0_91, %c0_92] : memref<9x8x8xf32, #tpu.memory_space<vmem>>, vector<1x8x8xf32>
    %90 = vector.shape_cast %89 : vector<1x8x8xf32> to vector<8x8xf32>
    %cst_93 = arith.constant dense<0.000000e+00> : vector<8x256xf32>
    %91 = tpu.matmul %90, %88, %cst_93 {dimension_numbers = #tpu.dot_dimension_numbers<[1], [0], [0], [1], [0, 0, 1, 1], [], []>} : vector<8x8xf32>, vector<8x256xf32>, vector<8x256xf32> -> vector<8x256xf32>
    %92 = arith.addf %85, %91 : vector<8x256xf32>
    %c3_94 = arith.constant 3 : index
    %c0_95 = arith.constant 0 : index
    %c0_96 = arith.constant 0 : index
    %93 = vector.load %arg2[%c3_94, %c0_95, %c0_96] : memref<9x256x256xf32, #tpu.memory_space<vmem>>, vector<1x256x256xf32>
    %94 = vector.shape_cast %93 : vector<1x256x256xf32> to vector<256x256xf32>
    %cst_97 = arith.constant dense<0.000000e+00> : vector<8x256xf32>
    %95 = tpu.matmul %70, %94, %cst_97 {dimension_numbers = #tpu.dot_dimension_numbers<[1], [0], [0], [1], [0, 0, 1, 1], [], []>} : vector<8x256xf32>, vector<256x256xf32>, vector<8x256xf32> -> vector<8x256xf32>
    %c3_98 = arith.constant 3 : index
    %c0_99 = arith.constant 0 : index
    %c0_100 = arith.constant 0 : index
    %96 = vector.load %arg6[%c3_98, %c0_99, %c0_100] : memref<9x8x8xf32, #tpu.memory_space<vmem>>, vector<1x8x8xf32>
    %97 = vector.shape_cast %96 : vector<1x8x8xf32> to vector<8x8xf32>
    %cst_101 = arith.constant dense<0.000000e+00> : vector<8x256xf32>
    %98 = tpu.matmul %97, %95, %cst_101 {dimension_numbers = #tpu.dot_dimension_numbers<[1], [0], [0], [1], [0, 0, 1, 1], [], []>} : vector<8x8xf32>, vector<8x256xf32>, vector<8x256xf32> -> vector<8x256xf32>
    %99 = arith.addf %92, %98 : vector<8x256xf32>
    %c4_102 = arith.constant 4 : index
    %c0_103 = arith.constant 0 : index
    %c0_104 = arith.constant 0 : index
    %100 = vector.load %arg2[%c4_102, %c0_103, %c0_104] : memref<9x256x256xf32, #tpu.memory_space<vmem>>, vector<1x256x256xf32>
    %101 = vector.shape_cast %100 : vector<1x256x256xf32> to vector<256x256xf32>
    %cst_105 = arith.constant dense<0.000000e+00> : vector<8x256xf32>
    %102 = tpu.matmul %70, %101, %cst_105 {dimension_numbers = #tpu.dot_dimension_numbers<[1], [0], [0], [1], [0, 0, 1, 1], [], []>} : vector<8x256xf32>, vector<256x256xf32>, vector<8x256xf32> -> vector<8x256xf32>
    %c4_106 = arith.constant 4 : index
    %c0_107 = arith.constant 0 : index
    %c0_108 = arith.constant 0 : index
    %103 = vector.load %arg6[%c4_106, %c0_107, %c0_108] : memref<9x8x8xf32, #tpu.memory_space<vmem>>, vector<1x8x8xf32>
    %104 = vector.shape_cast %103 : vector<1x8x8xf32> to vector<8x8xf32>
    %cst_109 = arith.constant dense<0.000000e+00> : vector<8x256xf32>
    %105 = tpu.matmul %104, %102, %cst_109 {dimension_numbers = #tpu.dot_dimension_numbers<[1], [0], [0], [1], [0, 0, 1, 1], [], []>} : vector<8x8xf32>, vector<8x256xf32>, vector<8x256xf32> -> vector<8x256xf32>
    %106 = arith.addf %99, %105 : vector<8x256xf32>
    %c5_110 = arith.constant 5 : index
    %c0_111 = arith.constant 0 : index
    %c0_112 = arith.constant 0 : index
    %107 = vector.load %arg2[%c5_110, %c0_111, %c0_112] : memref<9x256x256xf32, #tpu.memory_space<vmem>>, vector<1x256x256xf32>
    %108 = vector.shape_cast %107 : vector<1x256x256xf32> to vector<256x256xf32>
    %cst_113 = arith.constant dense<0.000000e+00> : vector<8x256xf32>
    %109 = tpu.matmul %70, %108, %cst_113 {dimension_numbers = #tpu.dot_dimension_numbers<[1], [0], [0], [1], [0, 0, 1, 1], [], []>} : vector<8x256xf32>, vector<256x256xf32>, vector<8x256xf32> -> vector<8x256xf32>
    %c5_114 = arith.constant 5 : index
    %c0_115 = arith.constant 0 : index
    %c0_116 = arith.constant 0 : index
    %110 = vector.load %arg6[%c5_114, %c0_115, %c0_116] : memref<9x8x8xf32, #tpu.memory_space<vmem>>, vector<1x8x8xf32>
    %111 = vector.shape_cast %110 : vector<1x8x8xf32> to vector<8x8xf32>
    %cst_117 = arith.constant dense<0.000000e+00> : vector<8x256xf32>
    %112 = tpu.matmul %111, %109, %cst_117 {dimension_numbers = #tpu.dot_dimension_numbers<[1], [0], [0], [1], [0, 0, 1, 1], [], []>} : vector<8x8xf32>, vector<8x256xf32>, vector<8x256xf32> -> vector<8x256xf32>
    %113 = arith.addf %106, %112 : vector<8x256xf32>
    %c6_118 = arith.constant 6 : index
    %c0_119 = arith.constant 0 : index
    %c0_120 = arith.constant 0 : index
    %114 = vector.load %arg2[%c6_118, %c0_119, %c0_120] : memref<9x256x256xf32, #tpu.memory_space<vmem>>, vector<1x256x256xf32>
    %115 = vector.shape_cast %114 : vector<1x256x256xf32> to vector<256x256xf32>
    %cst_121 = arith.constant dense<0.000000e+00> : vector<8x256xf32>
    %116 = tpu.matmul %70, %115, %cst_121 {dimension_numbers = #tpu.dot_dimension_numbers<[1], [0], [0], [1], [0, 0, 1, 1], [], []>} : vector<8x256xf32>, vector<256x256xf32>, vector<8x256xf32> -> vector<8x256xf32>
    %c6_122 = arith.constant 6 : index
    %c0_123 = arith.constant 0 : index
    %c0_124 = arith.constant 0 : index
    %117 = vector.load %arg6[%c6_122, %c0_123, %c0_124] : memref<9x8x8xf32, #tpu.memory_space<vmem>>, vector<1x8x8xf32>
    %118 = vector.shape_cast %117 : vector<1x8x8xf32> to vector<8x8xf32>
    %cst_125 = arith.constant dense<0.000000e+00> : vector<8x256xf32>
    %119 = tpu.matmul %118, %116, %cst_125 {dimension_numbers = #tpu.dot_dimension_numbers<[1], [0], [0], [1], [0, 0, 1, 1], [], []>} : vector<8x8xf32>, vector<8x256xf32>, vector<8x256xf32> -> vector<8x256xf32>
    %120 = arith.addf %113, %119 : vector<8x256xf32>
    %c7_126 = arith.constant 7 : index
    %c0_127 = arith.constant 0 : index
    %c0_128 = arith.constant 0 : index
    %121 = vector.load %arg2[%c7_126, %c0_127, %c0_128] : memref<9x256x256xf32, #tpu.memory_space<vmem>>, vector<1x256x256xf32>
    %122 = vector.shape_cast %121 : vector<1x256x256xf32> to vector<256x256xf32>
    %cst_129 = arith.constant dense<0.000000e+00> : vector<8x256xf32>
    %123 = tpu.matmul %70, %122, %cst_129 {dimension_numbers = #tpu.dot_dimension_numbers<[1], [0], [0], [1], [0, 0, 1, 1], [], []>} : vector<8x256xf32>, vector<256x256xf32>, vector<8x256xf32> -> vector<8x256xf32>
    %c7_130 = arith.constant 7 : index
    %c0_131 = arith.constant 0 : index
    %c0_132 = arith.constant 0 : index
    %124 = vector.load %arg6[%c7_130, %c0_131, %c0_132] : memref<9x8x8xf32, #tpu.memory_space<vmem>>, vector<1x8x8xf32>
    %125 = vector.shape_cast %124 : vector<1x8x8xf32> to vector<8x8xf32>
    %cst_133 = arith.constant dense<0.000000e+00> : vector<8x256xf32>
    %126 = tpu.matmul %125, %123, %cst_133 {dimension_numbers = #tpu.dot_dimension_numbers<[1], [0], [0], [1], [0, 0, 1, 1], [], []>} : vector<8x8xf32>, vector<8x256xf32>, vector<8x256xf32> -> vector<8x256xf32>
    %127 = arith.addf %120, %126 : vector<8x256xf32>
    %c8_134 = arith.constant 8 : index
    %c0_135 = arith.constant 0 : index
    %c0_136 = arith.constant 0 : index
    %128 = vector.load %arg2[%c8_134, %c0_135, %c0_136] : memref<9x256x256xf32, #tpu.memory_space<vmem>>, vector<1x256x256xf32>
    %129 = vector.shape_cast %128 : vector<1x256x256xf32> to vector<256x256xf32>
    %cst_137 = arith.constant dense<0.000000e+00> : vector<8x256xf32>
    %130 = tpu.matmul %70, %129, %cst_137 {dimension_numbers = #tpu.dot_dimension_numbers<[1], [0], [0], [1], [0, 0, 1, 1], [], []>} : vector<8x256xf32>, vector<256x256xf32>, vector<8x256xf32> -> vector<8x256xf32>
    %c8_138 = arith.constant 8 : index
    %c0_139 = arith.constant 0 : index
    %c0_140 = arith.constant 0 : index
    %131 = vector.load %arg6[%c8_138, %c0_139, %c0_140] : memref<9x8x8xf32, #tpu.memory_space<vmem>>, vector<1x8x8xf32>
    %132 = vector.shape_cast %131 : vector<1x8x8xf32> to vector<8x8xf32>
    %cst_141 = arith.constant dense<0.000000e+00> : vector<8x256xf32>
    %133 = tpu.matmul %132, %130, %cst_141 {dimension_numbers = #tpu.dot_dimension_numbers<[1], [0], [0], [1], [0, 0, 1, 1], [], []>} : vector<8x8xf32>, vector<8x256xf32>, vector<8x256xf32> -> vector<8x256xf32>
    %134 = arith.addf %127, %133 : vector<8x256xf32>
    %c0_142 = arith.constant 0 : index
    %c0_143 = arith.constant 0 : index
    %135 = vector.load %arg7[%c0_142, %c0_143] : memref<8x1xf32, #tpu.memory_space<vmem>>, vector<8x1xf32>
    %136 = vector.broadcast %135 : vector<8x1xf32> to vector<8x256xf32>
    %137 = arith.addf %134, %136 : vector<8x256xf32>
    %cst_144 = arith.constant 0.000000e+00 : f32
    %138 = vector.broadcast %cst_144 : f32 to vector<8x256xf32>
    %139 = arith.maximumf %137, %138 : vector<8x256xf32>
    %c0_145 = arith.constant 0 : index
    %c0_146 = arith.constant 0 : index
    %c0_147 = arith.constant 0 : index
    %140 = vector.load %arg14[%c0_145, %c0_146, %c0_147] : memref<1x8x256xf32, #tpu.memory_space<vmem>>, vector<1x8x256xf32>
    %141 = vector.shape_cast %140 : vector<1x8x256xf32> to vector<8x256xf32>
    %142 = vector.shape_cast %139 : vector<8x256xf32> to vector<1x8x256xf32>
    tpu.vector_store %arg14[%c0_145, %c0_146, %c0_147], %142 {strides = array<i32>} : memref<1x8x256xf32, #tpu.memory_space<vmem>>, vector<1x8x256xf32>,
    %c0_148 = arith.constant 0 : index
    %c0_149 = arith.constant 0 : index
    %c0_150 = arith.constant 0 : index
    %143 = vector.load %arg3[%c0_148, %c0_149, %c0_150] : memref<4x256x64xf32, #tpu.memory_space<vmem>>, vector<1x256x64xf32>
    %144 = vector.shape_cast %143 : vector<1x256x64xf32> to vector<256x64xf32>
    %cst_151 = arith.constant dense<0.000000e+00> : vector<8x64xf32>
    %145 = tpu.matmul %139, %144, %cst_151 {dimension_numbers = #tpu.dot_dimension_numbers<[1], [0], [0], [1], [0, 0, 1, 1], [], []>} : vector<8x256xf32>, vector<256x64xf32>, vector<8x64xf32> -> vector<8x64xf32>
    %c1_152 = arith.constant 1 : index
    %c0_153 = arith.constant 0 : index
    %c0_154 = arith.constant 0 : index
    %146 = vector.load %arg3[%c1_152, %c0_153, %c0_154] : memref<4x256x64xf32, #tpu.memory_space<vmem>>, vector<1x256x64xf32>
    %147 = vector.shape_cast %146 : vector<1x256x64xf32> to vector<256x64xf32>
    %cst_155 = arith.constant dense<0.000000e+00> : vector<8x64xf32>
    %148 = tpu.matmul %139, %147, %cst_155 {dimension_numbers = #tpu.dot_dimension_numbers<[1], [0], [0], [1], [0, 0, 1, 1], [], []>} : vector<8x256xf32>, vector<256x64xf32>, vector<8x64xf32> -> vector<8x64xf32>
    %c2_156 = arith.constant 2 : index
    %c0_157 = arith.constant 0 : index
    %c0_158 = arith.constant 0 : index
    %149 = vector.load %arg3[%c2_156, %c0_157, %c0_158] : memref<4x256x64xf32, #tpu.memory_space<vmem>>, vector<1x256x64xf32>
    %150 = vector.shape_cast %149 : vector<1x256x64xf32> to vector<256x64xf32>
    %cst_159 = arith.constant dense<0.000000e+00> : vector<8x64xf32>
    %151 = tpu.matmul %139, %150, %cst_159 {dimension_numbers = #tpu.dot_dimension_numbers<[1], [0], [0], [1], [0, 0, 1, 1], [], []>} : vector<8x256xf32>, vector<256x64xf32>, vector<8x64xf32> -> vector<8x64xf32>
    %c3_160 = arith.constant 3 : index
    %c0_161 = arith.constant 0 : index
    %c0_162 = arith.constant 0 : index
    %152 = vector.load %arg3[%c3_160, %c0_161, %c0_162] : memref<4x256x64xf32, #tpu.memory_space<vmem>>, vector<1x256x64xf32>
    %153 = vector.shape_cast %152 : vector<1x256x64xf32> to vector<256x64xf32>
    %cst_163 = arith.constant dense<0.000000e+00> : vector<8x64xf32>
    %154 = tpu.matmul %139, %153, %cst_163 {dimension_numbers = #tpu.dot_dimension_numbers<[1], [0], [0], [1], [0, 0, 1, 1], [], []>} : vector<8x256xf32>, vector<256x64xf32>, vector<8x64xf32> -> vector<8x64xf32>
    %155 = arith.maximumf %145, %148 : vector<8x64xf32>
    %156 = arith.maximumf %151, %154 : vector<8x64xf32>
    %157 = arith.maximumf %155, %156 : vector<8x64xf32>
    %cst_164 = arith.constant 0.000000e+00 : f32
    %158 = vector.broadcast %cst_164 : f32 to vector<16x64xf32>
    %c0_165 = arith.constant 0 : index
    %c0_166 = arith.constant 0 : index
    %c0_167 = arith.constant 0 : index
    %159 = vector.load %arg8[%c0_165, %c0_166, %c0_167] : memref<9x64x64xf32, #tpu.memory_space<vmem>>, vector<1x64x64xf32>
    %160 = vector.shape_cast %159 : vector<1x64x64xf32> to vector<64x64xf32>
    %cst_168 = arith.constant dense<0.000000e+00> : vector<8x64xf32>
    %161 = tpu.matmul %157, %160, %cst_168 {dimension_numbers = #tpu.dot_dimension_numbers<[1], [0], [0], [1], [0, 0, 1, 1], [], []>} : vector<8x64xf32>, vector<64x64xf32>, vector<8x64xf32> -> vector<8x64xf32>
    %c0_169 = arith.constant 0 : index
    %c0_170 = arith.constant 0 : index
    %c0_171 = arith.constant 0 : index
    %162 = vector.load %arg10[%c0_169, %c0_170, %c0_171] : memref<9x16x8xf32, #tpu.memory_space<vmem>>, vector<1x16x8xf32>
    %163 = vector.shape_cast %162 : vector<1x16x8xf32> to vector<16x8xf32>
    %cst_172 = arith.constant dense<0.000000e+00> : vector<16x64xf32>
    %164 = tpu.matmul %163, %161, %cst_172 {dimension_numbers = #tpu.dot_dimension_numbers<[1], [0], [0], [1], [0, 0, 1, 1], [], []>} : vector<16x8xf32>, vector<8x64xf32>, vector<16x64xf32> -> vector<16x64xf32>
    %165 = arith.addf %158, %164 : vector<16x64xf32>
    %c1_173 = arith.constant 1 : index
    %c0_174 = arith.constant 0 : index
    %c0_175 = arith.constant 0 : index
    %166 = vector.load %arg8[%c1_173, %c0_174, %c0_175] : memref<9x64x64xf32, #tpu.memory_space<vmem>>, vector<1x64x64xf32>
    %167 = vector.shape_cast %166 : vector<1x64x64xf32> to vector<64x64xf32>
    %cst_176 = arith.constant dense<0.000000e+00> : vector<8x64xf32>
    %168 = tpu.matmul %157, %167, %cst_176 {dimension_numbers = #tpu.dot_dimension_numbers<[1], [0], [0], [1], [0, 0, 1, 1], [], []>} : vector<8x64xf32>, vector<64x64xf32>, vector<8x64xf32> -> vector<8x64xf32>
    %c1_177 = arith.constant 1 : index
    %c0_178 = arith.constant 0 : index
    %c0_179 = arith.constant 0 : index
    %169 = vector.load %arg10[%c1_177, %c0_178, %c0_179] : memref<9x16x8xf32, #tpu.memory_space<vmem>>, vector<1x16x8xf32>
    %170 = vector.shape_cast %169 : vector<1x16x8xf32> to vector<16x8xf32>
    %cst_180 = arith.constant dense<0.000000e+00> : vector<16x64xf32>
    %171 = tpu.matmul %170, %168, %cst_180 {dimension_numbers = #tpu.dot_dimension_numbers<[1], [0], [0], [1], [0, 0, 1, 1], [], []>} : vector<16x8xf32>, vector<8x64xf32>, vector<16x64xf32> -> vector<16x64xf32>
    %172 = arith.addf %165, %171 : vector<16x64xf32>
    %c2_181 = arith.constant 2 : index
    %c0_182 = arith.constant 0 : index
    %c0_183 = arith.constant 0 : index
    %173 = vector.load %arg8[%c2_181, %c0_182, %c0_183] : memref<9x64x64xf32, #tpu.memory_space<vmem>>, vector<1x64x64xf32>
    %174 = vector.shape_cast %173 : vector<1x64x64xf32> to vector<64x64xf32>
    %cst_184 = arith.constant dense<0.000000e+00> : vector<8x64xf32>
    %175 = tpu.matmul %157, %174, %cst_184 {dimension_numbers = #tpu.dot_dimension_numbers<[1], [0], [0], [1], [0, 0, 1, 1], [], []>} : vector<8x64xf32>, vector<64x64xf32>, vector<8x64xf32> -> vector<8x64xf32>
    %c2_185 = arith.constant 2 : index
    %c0_186 = arith.constant 0 : index
    %c0_187 = arith.constant 0 : index
    %176 = vector.load %arg10[%c2_185, %c0_186, %c0_187] : memref<9x16x8xf32, #tpu.memory_space<vmem>>, vector<1x16x8xf32>
    %177 = vector.shape_cast %176 : vector<1x16x8xf32> to vector<16x8xf32>
    %cst_188 = arith.constant dense<0.000000e+00> : vector<16x64xf32>
    %178 = tpu.matmul %177, %175, %cst_188 {dimension_numbers = #tpu.dot_dimension_numbers<[1], [0], [0], [1], [0, 0, 1, 1], [], []>} : vector<16x8xf32>, vector<8x64xf32>, vector<16x64xf32> -> vector<16x64xf32>
    %179 = arith.addf %172, %178 : vector<16x64xf32>
    %c3_189 = arith.constant 3 : index
    %c0_190 = arith.constant 0 : index
    %c0_191 = arith.constant 0 : index
    %180 = vector.load %arg8[%c3_189, %c0_190, %c0_191] : memref<9x64x64xf32, #tpu.memory_space<vmem>>, vector<1x64x64xf32>
    %181 = vector.shape_cast %180 : vector<1x64x64xf32> to vector<64x64xf32>
    %cst_192 = arith.constant dense<0.000000e+00> : vector<8x64xf32>
    %182 = tpu.matmul %157, %181, %cst_192 {dimension_numbers = #tpu.dot_dimension_numbers<[1], [0], [0], [1], [0, 0, 1, 1], [], []>} : vector<8x64xf32>, vector<64x64xf32>, vector<8x64xf32> -> vector<8x64xf32>
    %c3_193 = arith.constant 3 : index
    %c0_194 = arith.constant 0 : index
    %c0_195 = arith.constant 0 : index
    %183 = vector.load %arg10[%c3_193, %c0_194, %c0_195] : memref<9x16x8xf32, #tpu.memory_space<vmem>>, vector<1x16x8xf32>
    %184 = vector.shape_cast %183 : vector<1x16x8xf32> to vector<16x8xf32>
    %cst_196 = arith.constant dense<0.000000e+00> : vector<16x64xf32>
    %185 = tpu.matmul %184, %182, %cst_196 {dimension_numbers = #tpu.dot_dimension_numbers<[1], [0], [0], [1], [0, 0, 1, 1], [], []>} : vector<16x8xf32>, vector<8x64xf32>, vector<16x64xf32> -> vector<16x64xf32>
    %186 = arith.addf %179, %185 : vector<16x64xf32>
    %c4_197 = arith.constant 4 : index
    %c0_198 = arith.constant 0 : index
    %c0_199 = arith.constant 0 : index
    %187 = vector.load %arg8[%c4_197, %c0_198, %c0_199] : memref<9x64x64xf32, #tpu.memory_space<vmem>>, vector<1x64x64xf32>
    %188 = vector.shape_cast %187 : vector<1x64x64xf32> to vector<64x64xf32>
    %cst_200 = arith.constant dense<0.000000e+00> : vector<8x64xf32>
    %189 = tpu.matmul %157, %188, %cst_200 {dimension_numbers = #tpu.dot_dimension_numbers<[1], [0], [0], [1], [0, 0, 1, 1], [], []>} : vector<8x64xf32>, vector<64x64xf32>, vector<8x64xf32> -> vector<8x64xf32>
    %c4_201 = arith.constant 4 : index
    %c0_202 = arith.constant 0 : index
    %c0_203 = arith.constant 0 : index
    %190 = vector.load %arg10[%c4_201, %c0_202, %c0_203] : memref<9x16x8xf32, #tpu.memory_space<vmem>>, vector<1x16x8xf32>
    %191 = vector.shape_cast %190 : vector<1x16x8xf32> to vector<16x8xf32>
    %cst_204 = arith.constant dense<0.000000e+00> : vector<16x64xf32>
    %192 = tpu.matmul %191, %189, %cst_204 {dimension_numbers = #tpu.dot_dimension_numbers<[1], [0], [0], [1], [0, 0, 1, 1], [], []>} : vector<16x8xf32>, vector<8x64xf32>, vector<16x64xf32> -> vector<16x64xf32>
    %193 = arith.addf %186, %192 : vector<16x64xf32>
    %c5_205 = arith.constant 5 : index
    %c0_206 = arith.constant 0 : index
    %c0_207 = arith.constant 0 : index
    %194 = vector.load %arg8[%c5_205, %c0_206, %c0_207] : memref<9x64x64xf32, #tpu.memory_space<vmem>>, vector<1x64x64xf32>
    %195 = vector.shape_cast %194 : vector<1x64x64xf32> to vector<64x64xf32>
    %cst_208 = arith.constant dense<0.000000e+00> : vector<8x64xf32>
    %196 = tpu.matmul %157, %195, %cst_208 {dimension_numbers = #tpu.dot_dimension_numbers<[1], [0], [0], [1], [0, 0, 1, 1], [], []>} : vector<8x64xf32>, vector<64x64xf32>, vector<8x64xf32> -> vector<8x64xf32>
    %c5_209 = arith.constant 5 : index
    %c0_210 = arith.constant 0 : index
    %c0_211 = arith.constant 0 : index
    %197 = vector.load %arg10[%c5_209, %c0_210, %c0_211] : memref<9x16x8xf32, #tpu.memory_space<vmem>>, vector<1x16x8xf32>
    %198 = vector.shape_cast %197 : vector<1x16x8xf32> to vector<16x8xf32>
    %cst_212 = arith.constant dense<0.000000e+00> : vector<16x64xf32>
    %199 = tpu.matmul %198, %196, %cst_212 {dimension_numbers = #tpu.dot_dimension_numbers<[1], [0], [0], [1], [0, 0, 1, 1], [], []>} : vector<16x8xf32>, vector<8x64xf32>, vector<16x64xf32> -> vector<16x64xf32>
    %200 = arith.addf %193, %199 : vector<16x64xf32>
    %c6_213 = arith.constant 6 : index
    %c0_214 = arith.constant 0 : index
    %c0_215 = arith.constant 0 : index
    %201 = vector.load %arg8[%c6_213, %c0_214, %c0_215] : memref<9x64x64xf32, #tpu.memory_space<vmem>>, vector<1x64x64xf32>
    %202 = vector.shape_cast %201 : vector<1x64x64xf32> to vector<64x64xf32>
    %cst_216 = arith.constant dense<0.000000e+00> : vector<8x64xf32>
    %203 = tpu.matmul %157, %202, %cst_216 {dimension_numbers = #tpu.dot_dimension_numbers<[1], [0], [0], [1], [0, 0, 1, 1], [], []>} : vector<8x64xf32>, vector<64x64xf32>, vector<8x64xf32> -> vector<8x64xf32>
    %c6_217 = arith.constant 6 : index
    %c0_218 = arith.constant 0 : index
    %c0_219 = arith.constant 0 : index
    %204 = vector.load %arg10[%c6_217, %c0_218, %c0_219] : memref<9x16x8xf32, #tpu.memory_space<vmem>>, vector<1x16x8xf32>
    %205 = vector.shape_cast %204 : vector<1x16x8xf32> to vector<16x8xf32>
    %cst_220 = arith.constant dense<0.000000e+00> : vector<16x64xf32>
    %206 = tpu.matmul %205, %203, %cst_220 {dimension_numbers = #tpu.dot_dimension_numbers<[1], [0], [0], [1], [0, 0, 1, 1], [], []>} : vector<16x8xf32>, vector<8x64xf32>, vector<16x64xf32> -> vector<16x64xf32>
    %207 = arith.addf %200, %206 : vector<16x64xf32>
    %c7_221 = arith.constant 7 : index
    %c0_222 = arith.constant 0 : index
    %c0_223 = arith.constant 0 : index
    %208 = vector.load %arg8[%c7_221, %c0_222, %c0_223] : memref<9x64x64xf32, #tpu.memory_space<vmem>>, vector<1x64x64xf32>
    %209 = vector.shape_cast %208 : vector<1x64x64xf32> to vector<64x64xf32>
    %cst_224 = arith.constant dense<0.000000e+00> : vector<8x64xf32>
    %210 = tpu.matmul %157, %209, %cst_224 {dimension_numbers = #tpu.dot_dimension_numbers<[1], [0], [0], [1], [0, 0, 1, 1], [], []>} : vector<8x64xf32>, vector<64x64xf32>, vector<8x64xf32> -> vector<8x64xf32>
    %c7_225 = arith.constant 7 : index
    %c0_226 = arith.constant 0 : index
    %c0_227 = arith.constant 0 : index
    %211 = vector.load %arg10[%c7_225, %c0_226, %c0_227] : memref<9x16x8xf32, #tpu.memory_space<vmem>>, vector<1x16x8xf32>
    %212 = vector.shape_cast %211 : vector<1x16x8xf32> to vector<16x8xf32>
    %cst_228 = arith.constant dense<0.000000e+00> : vector<16x64xf32>
    %213 = tpu.matmul %212, %210, %cst_228 {dimension_numbers = #tpu.dot_dimension_numbers<[1], [0], [0], [1], [0, 0, 1, 1], [], []>} : vector<16x8xf32>, vector<8x64xf32>, vector<16x64xf32> -> vector<16x64xf32>
    %214 = arith.addf %207, %213 : vector<16x64xf32>
    %c8_229 = arith.constant 8 : index
    %c0_230 = arith.constant 0 : index
    %c0_231 = arith.constant 0 : index
    %215 = vector.load %arg8[%c8_229, %c0_230, %c0_231] : memref<9x64x64xf32, #tpu.memory_space<vmem>>, vector<1x64x64xf32>
    %216 = vector.shape_cast %215 : vector<1x64x64xf32> to vector<64x64xf32>
    %cst_232 = arith.constant dense<0.000000e+00> : vector<8x64xf32>
    %217 = tpu.matmul %157, %216, %cst_232 {dimension_numbers = #tpu.dot_dimension_numbers<[1], [0], [0], [1], [0, 0, 1, 1], [], []>} : vector<8x64xf32>, vector<64x64xf32>, vector<8x64xf32> -> vector<8x64xf32>
    %c8_233 = arith.constant 8 : index
    %c0_234 = arith.constant 0 : index
    %c0_235 = arith.constant 0 : index
    %218 = vector.load %arg10[%c8_233, %c0_234, %c0_235] : memref<9x16x8xf32, #tpu.memory_space<vmem>>, vector<1x16x8xf32>
    %219 = vector.shape_cast %218 : vector<1x16x8xf32> to vector<16x8xf32>
    %cst_236 = arith.constant dense<0.000000e+00> : vector<16x64xf32>
    %220 = tpu.matmul %219, %217, %cst_236 {dimension_numbers = #tpu.dot_dimension_numbers<[1], [0], [0], [1], [0, 0, 1, 1], [], []>} : vector<16x8xf32>, vector<8x64xf32>, vector<16x64xf32> -> vector<16x64xf32>
    %221 = arith.addf %214, %220 : vector<16x64xf32>
    %c0_237 = arith.constant 0 : index
    %c0_238 = arith.constant 0 : index
    %222 = vector.load %arg11[%c0_237, %c0_238] : memref<16x1xf32, #tpu.memory_space<vmem>>, vector<16x1xf32>
    %223 = vector.broadcast %222 : vector<16x1xf32> to vector<16x64xf32>
    %224 = arith.addf %221, %223 : vector<16x64xf32>
    %cst_239 = arith.constant 0.000000e+00 : f32
    %225 = vector.broadcast %cst_239 : f32 to vector<16x64xf32>
    %226 = arith.maximumf %224, %225 : vector<16x64xf32>
    %cst_240 = arith.constant 0.000000e+00 : f32
    %227 = vector.broadcast %cst_240 : f32 to vector<16x64xf32>
    %c0_241 = arith.constant 0 : index
    %c0_242 = arith.constant 0 : index
    %c0_243 = arith.constant 0 : index
    %228 = vector.load %arg8[%c0_241, %c0_242, %c0_243] : memref<9x64x64xf32, #tpu.memory_space<vmem>>, vector<1x64x64xf32>
    %229 = vector.shape_cast %228 : vector<1x64x64xf32> to vector<64x64xf32>
    %cst_244 = arith.constant dense<0.000000e+00> : vector<16x64xf32>
    %230 = tpu.matmul %226, %229, %cst_244 {dimension_numbers = #tpu.dot_dimension_numbers<[1], [0], [0], [1], [0, 0, 1, 1], [], []>} : vector<16x64xf32>, vector<64x64xf32>, vector<16x64xf32> -> vector<16x64xf32>
    %c0_245 = arith.constant 0 : index
    %c0_246 = arith.constant 0 : index
    %c0_247 = arith.constant 0 : index
    %231 = vector.load %arg12[%c0_245, %c0_246, %c0_247] : memref<9x16x16xf32, #tpu.memory_space<vmem>>, vector<1x16x16xf32>
    %232 = vector.shape_cast %231 : vector<1x16x16xf32> to vector<16x16xf32>
    %cst_248 = arith.constant dense<0.000000e+00> : vector<16x64xf32>
    %233 = tpu.matmul %232, %230, %cst_248 {dimension_numbers = #tpu.dot_dimension_numbers<[1], [0], [0], [1], [0, 0, 1, 1], [], []>} : vector<16x16xf32>, vector<16x64xf32>, vector<16x64xf32> -> vector<16x64xf32>
    %234 = arith.addf %227, %233 : vector<16x64xf32>
    %c1_249 = arith.constant 1 : index
    %c0_250 = arith.constant 0 : index
    %c0_251 = arith.constant 0 : index
    %235 = vector.load %arg8[%c1_249, %c0_250, %c0_251] : memref<9x64x64xf32, #tpu.memory_space<vmem>>, vector<1x64x64xf32>
    %236 = vector.shape_cast %235 : vector<1x64x64xf32> to vector<64x64xf32>
    %cst_252 = arith.constant dense<0.000000e+00> : vector<16x64xf32>
    %237 = tpu.matmul %226, %236, %cst_252 {dimension_numbers = #tpu.dot_dimension_numbers<[1], [0], [0], [1], [0, 0, 1, 1], [], []>} : vector<16x64xf32>, vector<64x64xf32>, vector<16x64xf32> -> vector<16x64xf32>
    %c1_253 = arith.constant 1 : index
    %c0_254 = arith.constant 0 : index
    %c0_255 = arith.constant 0 : index
    %238 = vector.load %arg12[%c1_253, %c0_254, %c0_255] : memref<9x16x16xf32, #tpu.memory_space<vmem>>, vector<1x16x16xf32>
    %239 = vector.shape_cast %238 : vector<1x16x16xf32> to vector<16x16xf32>
    %cst_256 = arith.constant dense<0.000000e+00> : vector<16x64xf32>
    %240 = tpu.matmul %239, %237, %cst_256 {dimension_numbers = #tpu.dot_dimension_numbers<[1], [0], [0], [1], [0, 0, 1, 1], [], []>} : vector<16x16xf32>, vector<16x64xf32>, vector<16x64xf32> -> vector<16x64xf32>
    %241 = arith.addf %234, %240 : vector<16x64xf32>
    %c2_257 = arith.constant 2 : index
    %c0_258 = arith.constant 0 : index
    %c0_259 = arith.constant 0 : index
    %242 = vector.load %arg8[%c2_257, %c0_258, %c0_259] : memref<9x64x64xf32, #tpu.memory_space<vmem>>, vector<1x64x64xf32>
    %243 = vector.shape_cast %242 : vector<1x64x64xf32> to vector<64x64xf32>
    %cst_260 = arith.constant dense<0.000000e+00> : vector<16x64xf32>
    %244 = tpu.matmul %226, %243, %cst_260 {dimension_numbers = #tpu.dot_dimension_numbers<[1], [0], [0], [1], [0, 0, 1, 1], [], []>} : vector<16x64xf32>, vector<64x64xf32>, vector<16x64xf32> -> vector<16x64xf32>
    %c2_261 = arith.constant 2 : index
    %c0_262 = arith.constant 0 : index
    %c0_263 = arith.constant 0 : index
    %245 = vector.load %arg12[%c2_261, %c0_262, %c0_263] : memref<9x16x16xf32, #tpu.memory_space<vmem>>, vector<1x16x16xf32>
    %246 = vector.shape_cast %245 : vector<1x16x16xf32> to vector<16x16xf32>
    %cst_264 = arith.constant dense<0.000000e+00> : vector<16x64xf32>
    %247 = tpu.matmul %246, %244, %cst_264 {dimension_numbers = #tpu.dot_dimension_numbers<[1], [0], [0], [1], [0, 0, 1, 1], [], []>} : vector<16x16xf32>, vector<16x64xf32>, vector<16x64xf32> -> vector<16x64xf32>
    %248 = arith.addf %241, %247 : vector<16x64xf32>
    %c3_265 = arith.constant 3 : index
    %c0_266 = arith.constant 0 : index
    %c0_267 = arith.constant 0 : index
    %249 = vector.load %arg8[%c3_265, %c0_266, %c0_267] : memref<9x64x64xf32, #tpu.memory_space<vmem>>, vector<1x64x64xf32>
    %250 = vector.shape_cast %249 : vector<1x64x64xf32> to vector<64x64xf32>
    %cst_268 = arith.constant dense<0.000000e+00> : vector<16x64xf32>
    %251 = tpu.matmul %226, %250, %cst_268 {dimension_numbers = #tpu.dot_dimension_numbers<[1], [0], [0], [1], [0, 0, 1, 1], [], []>} : vector<16x64xf32>, vector<64x64xf32>, vector<16x64xf32> -> vector<16x64xf32>
    %c3_269 = arith.constant 3 : index
    %c0_270 = arith.constant 0 : index
    %c0_271 = arith.constant 0 : index
    %252 = vector.load %arg12[%c3_269, %c0_270, %c0_271] : memref<9x16x16xf32, #tpu.memory_space<vmem>>, vector<1x16x16xf32>
    %253 = vector.shape_cast %252 : vector<1x16x16xf32> to vector<16x16xf32>
    %cst_272 = arith.constant dense<0.000000e+00> : vector<16x64xf32>
    %254 = tpu.matmul %253, %251, %cst_272 {dimension_numbers = #tpu.dot_dimension_numbers<[1], [0], [0], [1], [0, 0, 1, 1], [], []>} : vector<16x16xf32>, vector<16x64xf32>, vector<16x64xf32> -> vector<16x64xf32>
    %255 = arith.addf %248, %254 : vector<16x64xf32>
    %c4_273 = arith.constant 4 : index
    %c0_274 = arith.constant 0 : index
    %c0_275 = arith.constant 0 : index
    %256 = vector.load %arg8[%c4_273, %c0_274, %c0_275] : memref<9x64x64xf32, #tpu.memory_space<vmem>>, vector<1x64x64xf32>
    %257 = vector.shape_cast %256 : vector<1x64x64xf32> to vector<64x64xf32>
    %cst_276 = arith.constant dense<0.000000e+00> : vector<16x64xf32>
    %258 = tpu.matmul %226, %257, %cst_276 {dimension_numbers = #tpu.dot_dimension_numbers<[1], [0], [0], [1], [0, 0, 1, 1], [], []>} : vector<16x64xf32>, vector<64x64xf32>, vector<16x64xf32> -> vector<16x64xf32>
    %c4_277 = arith.constant 4 : index
    %c0_278 = arith.constant 0 : index
    %c0_279 = arith.constant 0 : index
    %259 = vector.load %arg12[%c4_277, %c0_278, %c0_279] : memref<9x16x16xf32, #tpu.memory_space<vmem>>, vector<1x16x16xf32>
    %260 = vector.shape_cast %259 : vector<1x16x16xf32> to vector<16x16xf32>
    %cst_280 = arith.constant dense<0.000000e+00> : vector<16x64xf32>
    %261 = tpu.matmul %260, %258, %cst_280 {dimension_numbers = #tpu.dot_dimension_numbers<[1], [0], [0], [1], [0, 0, 1, 1], [], []>} : vector<16x16xf32>, vector<16x64xf32>, vector<16x64xf32> -> vector<16x64xf32>
    %262 = arith.addf %255, %261 : vector<16x64xf32>
    %c5_281 = arith.constant 5 : index
    %c0_282 = arith.constant 0 : index
    %c0_283 = arith.constant 0 : index
    %263 = vector.load %arg8[%c5_281, %c0_282, %c0_283] : memref<9x64x64xf32, #tpu.memory_space<vmem>>, vector<1x64x64xf32>
    %264 = vector.shape_cast %263 : vector<1x64x64xf32> to vector<64x64xf32>
    %cst_284 = arith.constant dense<0.000000e+00> : vector<16x64xf32>
    %265 = tpu.matmul %226, %264, %cst_284 {dimension_numbers = #tpu.dot_dimension_numbers<[1], [0], [0], [1], [0, 0, 1, 1], [], []>} : vector<16x64xf32>, vector<64x64xf32>, vector<16x64xf32> -> vector<16x64xf32>
    %c5_285 = arith.constant 5 : index
    %c0_286 = arith.constant 0 : index
    %c0_287 = arith.constant 0 : index
    %266 = vector.load %arg12[%c5_285, %c0_286, %c0_287] : memref<9x16x16xf32, #tpu.memory_space<vmem>>, vector<1x16x16xf32>
    %267 = vector.shape_cast %266 : vector<1x16x16xf32> to vector<16x16xf32>
    %cst_288 = arith.constant dense<0.000000e+00> : vector<16x64xf32>
    %268 = tpu.matmul %267, %265, %cst_288 {dimension_numbers = #tpu.dot_dimension_numbers<[1], [0], [0], [1], [0, 0, 1, 1], [], []>} : vector<16x16xf32>, vector<16x64xf32>, vector<16x64xf32> -> vector<16x64xf32>
    %269 = arith.addf %262, %268 : vector<16x64xf32>
    %c6_289 = arith.constant 6 : index
    %c0_290 = arith.constant 0 : index
    %c0_291 = arith.constant 0 : index
    %270 = vector.load %arg8[%c6_289, %c0_290, %c0_291] : memref<9x64x64xf32, #tpu.memory_space<vmem>>, vector<1x64x64xf32>
    %271 = vector.shape_cast %270 : vector<1x64x64xf32> to vector<64x64xf32>
    %cst_292 = arith.constant dense<0.000000e+00> : vector<16x64xf32>
    %272 = tpu.matmul %226, %271, %cst_292 {dimension_numbers = #tpu.dot_dimension_numbers<[1], [0], [0], [1], [0, 0, 1, 1], [], []>} : vector<16x64xf32>, vector<64x64xf32>, vector<16x64xf32> -> vector<16x64xf32>
    %c6_293 = arith.constant 6 : index
    %c0_294 = arith.constant 0 : index
    %c0_295 = arith.constant 0 : index
    %273 = vector.load %arg12[%c6_293, %c0_294, %c0_295] : memref<9x16x16xf32, #tpu.memory_space<vmem>>, vector<1x16x16xf32>
    %274 = vector.shape_cast %273 : vector<1x16x16xf32> to vector<16x16xf32>
    %cst_296 = arith.constant dense<0.000000e+00> : vector<16x64xf32>
    %275 = tpu.matmul %274, %272, %cst_296 {dimension_numbers = #tpu.dot_dimension_numbers<[1], [0], [0], [1], [0, 0, 1, 1], [], []>} : vector<16x16xf32>, vector<16x64xf32>, vector<16x64xf32> -> vector<16x64xf32>
    %276 = arith.addf %269, %275 : vector<16x64xf32>
    %c7_297 = arith.constant 7 : index
    %c0_298 = arith.constant 0 : index
    %c0_299 = arith.constant 0 : index
    %277 = vector.load %arg8[%c7_297, %c0_298, %c0_299] : memref<9x64x64xf32, #tpu.memory_space<vmem>>, vector<1x64x64xf32>
    %278 = vector.shape_cast %277 : vector<1x64x64xf32> to vector<64x64xf32>
    %cst_300 = arith.constant dense<0.000000e+00> : vector<16x64xf32>
    %279 = tpu.matmul %226, %278, %cst_300 {dimension_numbers = #tpu.dot_dimension_numbers<[1], [0], [0], [1], [0, 0, 1, 1], [], []>} : vector<16x64xf32>, vector<64x64xf32>, vector<16x64xf32> -> vector<16x64xf32>
    %c7_301 = arith.constant 7 : index
    %c0_302 = arith.constant 0 : index
    %c0_303 = arith.constant 0 : index
    %280 = vector.load %arg12[%c7_301, %c0_302, %c0_303] : memref<9x16x16xf32, #tpu.memory_space<vmem>>, vector<1x16x16xf32>
    %281 = vector.shape_cast %280 : vector<1x16x16xf32> to vector<16x16xf32>
    %cst_304 = arith.constant dense<0.000000e+00> : vector<16x64xf32>
    %282 = tpu.matmul %281, %279, %cst_304 {dimension_numbers = #tpu.dot_dimension_numbers<[1], [0], [0], [1], [0, 0, 1, 1], [], []>} : vector<16x16xf32>, vector<16x64xf32>, vector<16x64xf32> -> vector<16x64xf32>
    %283 = arith.addf %276, %282 : vector<16x64xf32>
    %c8_305 = arith.constant 8 : index
    %c0_306 = arith.constant 0 : index
    %c0_307 = arith.constant 0 : index
    %284 = vector.load %arg8[%c8_305, %c0_306, %c0_307] : memref<9x64x64xf32, #tpu.memory_space<vmem>>, vector<1x64x64xf32>
    %285 = vector.shape_cast %284 : vector<1x64x64xf32> to vector<64x64xf32>
    %cst_308 = arith.constant dense<0.000000e+00> : vector<16x64xf32>
    %286 = tpu.matmul %226, %285, %cst_308 {dimension_numbers = #tpu.dot_dimension_numbers<[1], [0], [0], [1], [0, 0, 1, 1], [], []>} : vector<16x64xf32>, vector<64x64xf32>, vector<16x64xf32> -> vector<16x64xf32>
    %c8_309 = arith.constant 8 : index
    %c0_310 = arith.constant 0 : index
    %c0_311 = arith.constant 0 : index
    %287 = vector.load %arg12[%c8_309, %c0_310, %c0_311] : memref<9x16x16xf32, #tpu.memory_space<vmem>>, vector<1x16x16xf32>
    %288 = vector.shape_cast %287 : vector<1x16x16xf32> to vector<16x16xf32>
    %cst_312 = arith.constant dense<0.000000e+00> : vector<16x64xf32>
    %289 = tpu.matmul %288, %286, %cst_312 {dimension_numbers = #tpu.dot_dimension_numbers<[1], [0], [0], [1], [0, 0, 1, 1], [], []>} : vector<16x16xf32>, vector<16x64xf32>, vector<16x64xf32> -> vector<16x64xf32>
    %290 = arith.addf %283, %289 : vector<16x64xf32>
    %c0_313 = arith.constant 0 : index
    %c0_314 = arith.constant 0 : index
    %291 = vector.load %arg13[%c0_313, %c0_314] : memref<16x1xf32, #tpu.memory_space<vmem>>, vector<16x1xf32>
    %292 = vector.broadcast %291 : vector<16x1xf32> to vector<16x64xf32>
    %293 = arith.addf %290, %292 : vector<16x64xf32>
    %cst_315 = arith.constant 0.000000e+00 : f32
    %294 = vector.broadcast %cst_315 : f32 to vector<16x64xf32>
    %295 = arith.maximumf %293, %294 : vector<16x64xf32>
    %c0_316 = arith.constant 0 : index
    %c0_317 = arith.constant 0 : index
    %c0_318 = arith.constant 0 : index
    %296 = vector.load %arg15[%c0_316, %c0_317, %c0_318] : memref<1x16x64xf32, #tpu.memory_space<vmem>>, vector<1x16x64xf32>
    %297 = vector.shape_cast %296 : vector<1x16x64xf32> to vector<16x64xf32>
    %298 = vector.shape_cast %295 : vector<16x64xf32> to vector<1x16x64xf32>
    tpu.vector_store %arg15[%c0_316, %c0_317, %c0_318], %298 {strides = array<i32>} : memref<1x16x64xf32, #tpu.memory_space<vmem>>, vector<1x16x64xf32>,
    return
  }
  func.func @transform_0(%arg0: i32) -> (i32, i32, i32) {
    %c0_i32 = arith.constant 0 : i32
    %c0_i32_0 = arith.constant 0 : i32
    %c0_i32_1 = arith.constant 0 : i32
    return %arg0, %c0_i32, %c0_i32_0 : i32, i32, i32
  }
  func.func @transform_1(%arg0: i32) -> (i32, i32, i32) {
    %c0_i32 = arith.constant 0 : i32
    %c0_i32_0 = arith.constant 0 : i32
    %c0_i32_1 = arith.constant 0 : i32
    %c0_i32_2 = arith.constant 0 : i32
    return %c0_i32, %c0_i32_0, %c0_i32_1 : i32, i32, i32
  }
  func.func @transform_2(%arg0: i32) -> (i32, i32, i32) {
    %c0_i32 = arith.constant 0 : i32
    %c0_i32_0 = arith.constant 0 : i32
    %c0_i32_1 = arith.constant 0 : i32
    %c0_i32_2 = arith.constant 0 : i32
    return %c0_i32, %c0_i32_0, %c0_i32_1 : i32, i32, i32
  }
  func.func @transform_3(%arg0: i32) -> (i32, i32, i32) {
    %c0_i32 = arith.constant 0 : i32
    %c0_i32_0 = arith.constant 0 : i32
    %c0_i32_1 = arith.constant 0 : i32
    %c0_i32_2 = arith.constant 0 : i32
    return %c0_i32, %c0_i32_0, %c0_i32_1 : i32, i32, i32
  }
  func.func @transform_4(%arg0: i32) -> (i32, i32) {
    %c0_i32 = arith.constant 0 : i32
    %c0_i32_0 = arith.constant 0 : i32
    %c0_i32_1 = arith.constant 0 : i32
    return %c0_i32, %c0_i32_0 : i32, i32
  }
  func.func @transform_5(%arg0: i32) -> (i32, i32, i32) {
    %c0_i32 = arith.constant 0 : i32
    %c0_i32_0 = arith.constant 0 : i32
    %c0_i32_1 = arith.constant 0 : i32
    %c0_i32_2 = arith.constant 0 : i32
    return %c0_i32, %c0_i32_0, %c0_i32_1 : i32, i32, i32
  }
  func.func @transform_6(%arg0: i32) -> (i32, i32) {
    %c0_i32 = arith.constant 0 : i32
    %c0_i32_0 = arith.constant 0 : i32
    %c0_i32_1 = arith.constant 0 : i32
    return %c0_i32, %c0_i32_0 : i32, i32
  }
  func.func @transform_7(%arg0: i32) -> (i32, i32, i32) {
    %c0_i32 = arith.constant 0 : i32
    %c0_i32_0 = arith.constant 0 : i32
    %c0_i32_1 = arith.constant 0 : i32
    %c0_i32_2 = arith.constant 0 : i32
    return %c0_i32, %c0_i32_0, %c0_i32_1 : i32, i32, i32
  }
  func.func @transform_8(%arg0: i32) -> (i32, i32, i32) {
    %c0_i32 = arith.constant 0 : i32
    %c0_i32_0 = arith.constant 0 : i32
    %c0_i32_1 = arith.constant 0 : i32
    %c0_i32_2 = arith.constant 0 : i32
    return %c0_i32, %c0_i32_0, %c0_i32_1 : i32, i32, i32
  }
  func.func @transform_9(%arg0: i32) -> (i32, i32, i32) {
    %c0_i32 = arith.constant 0 : i32
    %c0_i32_0 = arith.constant 0 : i32
    %c0_i32_1 = arith.constant 0 : i32
    %c0_i32_2 = arith.constant 0 : i32
    return %c0_i32, %c0_i32_0, %c0_i32_1 : i32, i32, i32
  }
  func.func @transform_10(%arg0: i32) -> (i32, i32) {
    %c0_i32 = arith.constant 0 : i32
    %c0_i32_0 = arith.constant 0 : i32
    %c0_i32_1 = arith.constant 0 : i32
    return %c0_i32, %c0_i32_0 : i32, i32
  }
  func.func @transform_11(%arg0: i32) -> (i32, i32, i32) {
    %c0_i32 = arith.constant 0 : i32
    %c0_i32_0 = arith.constant 0 : i32
    %c0_i32_1 = arith.constant 0 : i32
    %c0_i32_2 = arith.constant 0 : i32
    return %c0_i32, %c0_i32_0, %c0_i32_1 : i32, i32, i32
  }
  func.func @transform_12(%arg0: i32) -> (i32, i32) {
    %c0_i32 = arith.constant 0 : i32
    %c0_i32_0 = arith.constant 0 : i32
    %c0_i32_1 = arith.constant 0 : i32
    return %c0_i32, %c0_i32_0 : i32, i32
  }
  func.func @transform_13(%arg0: i32) -> (i32, i32, i32) {
    %c0_i32 = arith.constant 0 : i32
    %c0_i32_0 = arith.constant 0 : i32
    %c0_i32_1 = arith.constant 0 : i32
    return %arg0, %c0_i32, %c0_i32_0 : i32, i32, i32
  }
  func.func @transform_14(%arg0: i32) -> (i32, i32, i32) {
    %c0_i32 = arith.constant 0 : i32
    %c0_i32_0 = arith.constant 0 : i32
    %c0_i32_1 = arith.constant 0 : i32
    return %arg0, %c0_i32, %c0_i32_0 : i32, i32, i32
  }
}

</mosaic_0001>

<bundles_post_ra>
// kernel: encoder_forward.1
= control target key start
LH: loop header
LB: loop body
LE: loop exit
PB: predicated region body
PF: predicated region fallthrough
CT: control target
= control target key end

     0   :  { %s7084_s0 = inlined_call_operand.vmem [shape: f32[2,4,256], index: 0, kind: input, shape index: {}]   ;;  %s7085_s1 = inlined_call_operand.hbm [shape: f32[9,256,256], index: 1, kind: input, shape index: {}]   ;;  %s7086_s2 = inlined_call_operand.hbm [shape: f32[4,256,64], index: 2, kind: input, shape index: {}]   ;;  %s7087_s3 = inlined_call_operand.vmem [shape: f32[9,8,4], index: 3, kind: input, shape index: {}]   ;;  %s7088_s4 = inlined_call_operand.vmem [shape: f32[8,1], index: 4, kind: input, shape index: {}]   ;;  %s7089_s5 = inlined_call_operand.vmem [shape: f32[9,8,8], index: 5, kind: input, shape index: {}]   ;;  %s7090_s6 = inlined_call_operand.vmem [shape: f32[8,1], index: 6, kind: input, shape index: {}]   ;;  %s7091_s7 = inlined_call_operand.hbm [shape: f32[9,64,64], index: 7, kind: input, shape index: {}]   ;;  %s7092_s8 = inlined_call_operand.hbm [shape: f32[4,64,16], index: 8, kind: input, shape index: {}]   ;;  %s7093_s9 = inlined_call_operand.vmem [shape: f32[9,16,8], index: 9, kind: input, shape index: {}]   ;;  %s7094_s10 = inlined_call_operand.vmem [shape: f32[16,1], index: 10, kind: input, shape index: {}]   ;;  %s7095_s11 = inlined_call_operand.vmem [shape: f32[9,16,16], index: 11, kind: input, shape index: {}]   ;;  %s7096_s12 = inlined_call_operand.vmem [shape: f32[16,1], index: 12, kind: input, shape index: {}]   ;;  %s7097_s13 = inlined_call_operand.vmem [shape: f32[2,8,256], index: 13, kind: output, shape index: {0}]   ;;  %s7098_s14 = inlined_call_operand.vmem [shape: f32[2,16,64], index: 14, kind: output, shape index: {1}]  }
   0x1   :  { %7109 = sst [smem:[#allocation22_spill]] %s7085_s1 }
   0x2   :  { %7110 = sst [smem:[#allocation23_spill]] %s7086_s2 }
   0x3   :  { %7111 = sst [smem:[#allocation24_spill]] %s7098_s14 }
   0x4   :  { %20 = vsyncpa [#allocation3], 0 }
   0x5   :  { %21 = vsyncpa [#allocation5], 0 }
   0x6   :  { %22 = vsyncpa [#allocation8], 0  ;;  %s6117_s29 = smov 0  }
   0x7 LB: > { %7112 = sst [smem:[#allocation12_spill]] %s6031_s29  ;;  %s6126_s17 = sadd.s32 4294967295, %s6031_s29   ;;  %s6031_s29 = sphi %s6117_s29, %s28_s29  }
   0x8   : > { %s7113_s2 = sld [smem:[#allocation23_spill]]  ;;  %p5073_p0 = scmp.ge.s32.totalorder %s6031_s29, 1 }
   0x9   : > { %p363_p1 = scmp.lt.s32.totalorder %s6031_s29, 3  ;;  %p5289_p2 = scmp.eq.s32.totalorder %s6126_s17, 0 }
   0xa   : > { %s6033_s19 = smov [#allocation4]   ;;  %s7115_s1 = sld [smem:[#allocation22_spill]] }
   0xb   : > { %p6131_p3 = pnand %p5073_p0, %p363_p1  ;;  %s390_s20 = sshll.u32 %s6033_s19, 4  ;;  %s391_s20 = int_to_ptr.vmem [resolvable:$true] %s390_s20 }
   0xc   : > { %s6034_s25 = smov [#allocation2]   ;;  %s6035_s27 = smov 128  }
   0xd   : > { %p5276_p4 = pneg %p6131_p3  ;;  %s376_s26 = sshll.u32 %s6034_s25, 4  ;;  %s377_s26 = int_to_ptr.vmem [resolvable:$true] %s376_s26 }
   0xe   : > { %s388_s16 = sshll.u32 %s7113_s2, 4  ;;  %s6036_s28 = smov 8   ;;  %s389_s16 = int_to_ptr.hbm [resolvable:$true] %s388_s16 }
   0xf   : > { %p6142_p5 = pnand %p5289_p2, %p5276_p4  ;;  %s414_s19 = sshll.u32 %s7091_s7, 4  ;;  %s415_s19 = int_to_ptr.hbm [resolvable:$true] %s414_s19 }
  0x10   : > { %s374_s23 = sshll.u32 %s7115_s1, 4  ;;  %s6037_s21 = smov 256   ;;  %s375_s23 = int_to_ptr.hbm [resolvable:$true] %s374_s23 }
  0x11   : > { %5282 = dma.hbm_to_vmem [thread:$0]  (!%p6142_p5), %s389_s16, 16384, %s391_s20, [#allocation5], %s6035_s27, %s6035_s27, %s6036_s28  }
  0x12   : > { %s6038_s22 = smov 16   ;;  %s6039_s1 = smov [#allocation6]  }
  0x13   : > { %5279 = dma.hbm_to_vmem [thread:$0]  (!%p6142_p5), %s375_s23, 73728, %s377_s26, [#allocation3], %s6037_s21, %s6037_s21, %s6038_s22  }
  0x14   : > { %s416_s2 = sshll.u32 %s6039_s1, 4  ;;  %s428_s25 = sshll.u32 %s7092_s8, 4  ;;  %s417_s2 = int_to_ptr.vmem [resolvable:$true] %s416_s2  ;;  %s429_s25 = int_to_ptr.hbm [resolvable:$true] %s428_s25 }
  0x15   : > { %5285 = dma.hbm_to_vmem [thread:$0]  (!%p6142_p5), %s415_s19, 9216, %s417_s2, [#allocation5], %s6035_s27, %s6035_s27, %s6036_s28  }
  0x16   : > { %s6040_s16 = smov [#allocation7]   ;;  %466 = sbr.rel (%p6131_p3) target bundleno = 4418 (0x1142), region = 72 }
  0x17   : > { %s430_s20 = sshll.u32 %s6040_s16, 4  ;;  %s431_s20 = int_to_ptr.vmem [resolvable:$true] %s430_s20 }
  0x18   : > { %5288 = dma.hbm_to_vmem [thread:$0]  (!%p6142_p5), %s429_s25, 4096, %s431_s20, [#allocation8], %s6035_s27, %s6035_s27, %s6036_s28  }
  0x1b   : > { %6018 = dma.done.wait (%p5289_p2), [#allocation3], 73728  }
  0x1c   : > { %6020 = vsyncadd (%p5289_p2), [#allocation3], 4294893568 }
  0x1d   : > { %6022 = dma.done.wait (%p5289_p2), [#allocation5], 25600  }
  0x1e   : > { %6024 = vsyncadd (%p5289_p2), [#allocation5], 4294941696 }
  0x1f   : > { %6026 = dma.done.wait (%p5289_p2), [#allocation8], 4096  }
  0x20   : > { %6028 = vsyncadd (%p5289_p2), [#allocation8], 4294963200  ;;  %v580_v0 = vld [vmem:[#allocation2 + $0xf8] sm:$0xff]  ;;  %v578_v2 = vld [vmem:[#allocation2 + $0xe8] sm:$0xff]  ;;  %p533_p6 = scmp.lt.s32.totalorder %s6126_s17, 1  ;;  %vm856_vm0 = vcmask 1043456  }
  0x21   : > { %v612_v1 = vld [vmem:[#allocation2 + $0x1f8] sm:$0xff]  ;;  %659 = vmatpush.msra.mxu2 %v580_v0  ;;  %v610_v3 = vld [vmem:[#allocation2 + $0x1e8] sm:$0xff]  ;;  %v579_v6 = vld [vmem:[#allocation2 + $0xf0] sm:$0xff]  ;;  %vm852_vm1 = vcmask 31744   ;;  %vm2546_vm2 = vcmask 64512   ;;  %vm3836_vm3 = vcmask 523264  }
  0x22   : > { %679 = vmatpush.msra.mxu3 %v612_v1  ;;  %v576_v4 = vld [vmem:[#allocation2 + $0xd8] sm:$0xff]  ;;  %v611_v7 = vld [vmem:[#allocation2 + $0x1f0] sm:$0xff]  ;;  %v577_v8 = vld [vmem:[#allocation2 + $0xe0] sm:$0xff]  ;;  %619 = vmatpush.msra.mxu0 %v579_v6  ;;  %s7138_s17 = smov (!%p533_p6, %s6126_s17), 1  ;;  %vm4466_vm4 = vcmask 130048   ;;  %s7135_s28 = sld [smem:[#allocation24_spill]] }
  0x23   : > { %v608_v5 = vld [vmem:[#allocation2 + $0x1d8] sm:$0xff]  ;;  %660 = vmatpush.msra.mxu2 %v578_v2  ;;  %v609_v9 = vld [vmem:[#allocation2 + $0x1e0] sm:$0xff]  ;;  %639 = vmatpush.msra.mxu1 %v611_v7  ;;  %v574_v10 = vld [vmem:[#allocation2 + $0xc8] sm:$0xff]  ;;  %s5257_s1 = sshll.u32 %s7138_s17, 3  ;;  %s5258_s27 = sshll.u32 %s7138_s17, 4 }
  0x24   : > { %680 = vmatpush.msra.mxu3 %v610_v3  ;;  %v606_v11 = vld [vmem:[#allocation2 + $0x1c8] sm:$0xff]  ;;  %v575_v12 = vld [vmem:[#allocation2 + $0xd0] sm:$0xff]  ;;  %620 = vmatpush.msra.mxu0 %v577_v8  ;;  %v572_v14 = vld [vmem:[#allocation2 + $0xb8] sm:$0xff]  ;;  %s537_s29 = scalar_lea.vmem %s7084_s0, %s5257_s1  ;;  %s6564_s15 = scalar_lea.vmem %s7097_s13, %s5258_s27 }
  0x25   : > { %661 = vmatpush.msra.mxu2 %v576_v4  ;;  %v607_v13 = vld [vmem:[#allocation2 + $0x1d0] sm:$0xff]  ;;  %640 = vmatpush.msra.mxu1 %v609_v9  ;;  %v604_v15 = vld [vmem:[#allocation2 + $0x1b8] sm:$0xff]  ;;  %v573_v16 = vld [vmem:[#allocation2 + $0xc0] sm:$0xff] }
  0x26   : > { %681 = vmatpush.msra.mxu3 %v608_v5  ;;  %v605_v17 = vld [vmem:[#allocation2 + $0x1c0] sm:$0xff]  ;;  %621 = vmatpush.msra.mxu0 %v575_v12  ;;  %v570_v18 = vld [vmem:[#allocation2 + $0xa8] sm:$0xff]  ;;  %v571_v20 = vld [vmem:[#allocation2 + $0xb0] sm:$0xff] }
  0x27   : > { %662 = vmatpush.msra.mxu2 %v574_v10  ;;  %641 = vmatpush.msra.mxu1 %v607_v13  ;;  %v602_v19 = vld [vmem:[#allocation2 + $0x1a8] sm:$0xff]  ;;  %v603_v21 = vld [vmem:[#allocation2 + $0x1b0] sm:$0xff]  ;;  %v568_v22 = vld [vmem:[#allocation2 + $0x98] sm:$0xff] }
  0x28   : > { %682 = vmatpush.msra.mxu3 %v606_v11  ;;  %622 = vmatpush.msra.mxu0 %v573_v16  ;;  %v600_v23 = vld [vmem:[#allocation2 + $0x198] sm:$0xff]  ;;  %v569_v24 = vld [vmem:[#allocation2 + $0xa0] sm:$0xff]  ;;  %v566_v26 = vld [vmem:[#allocation2 + $0x88] sm:$0xff]  ;;  %s547_s30 = scalar_lea.vmem %s7135_s28, %s5258_s27 }
  0x29   : > { %663 = vmatpush.msra.mxu2 %v572_v14  ;;  %642 = vmatpush.msra.mxu1 %v605_v17  ;;  %v601_v25 = vld [vmem:[#allocation2 + $0x1a0] sm:$0xff]  ;;  %v598_v27 = vld [vmem:[#allocation2 + $0x188] sm:$0xff]  ;;  %v567_v28 = vld [vmem:[#allocation2 + $0x90] sm:$0xff] }
  0x2a   : > { %683 = vmatpush.msra.mxu3 %v604_v15  ;;  %623 = vmatpush.msra.mxu0 %v571_v20  ;;  %v599_v29 = vld [vmem:[#allocation2 + $0x190] sm:$0xff]  ;;  %v564_v30 = vld [vmem:[#allocation2 + $0x78] sm:$0xff]  ;;  %v565_v32 = vld [vmem:[#allocation2 + $0x80] sm:$0xff] }
  0x2b   : > { %664 = vmatpush.msra.mxu2 %v570_v18  ;;  %643 = vmatpush.msra.mxu1 %v603_v21  ;;  %v596_v31 = vld [vmem:[#allocation2 + $0x178] sm:$0xff]  ;;  %v597_v33 = vld [vmem:[#allocation2 + $0x180] sm:$0xff]  ;;  %v562_v34 = vld [vmem:[#allocation2 + $0x68] sm:$0xff] }
  0x2c   : > { %684 = vmatpush.msra.mxu3 %v602_v19  ;;  %624 = vmatpush.msra.mxu0 %v569_v24  ;;  %v594_v35 = vld [vmem:[#allocation2 + $0x168] sm:$0xff]  ;;  %v563_v36 = vld [vmem:[#allocation2 + $0x70] sm:$0xff]  ;;  %v560_v38 = vld [vmem:[#allocation2 + $0x58] sm:$0xff] }
  0x2d   : > { %665 = vmatpush.msra.mxu2 %v568_v22  ;;  %644 = vmatpush.msra.mxu1 %v601_v25  ;;  %v595_v37 = vld [vmem:[#allocation2 + $0x170] sm:$0xff]  ;;  %v592_v39 = vld [vmem:[#allocation2 + $0x158] sm:$0xff]  ;;  %v561_v40 = vld [vmem:[#allocation2 + $0x60] sm:$0xff] }
  0x2e   : > { %685 = vmatpush.msra.mxu3 %v600_v23  ;;  %625 = vmatpush.msra.mxu0 %v567_v28  ;;  %v593_v41 = vld [vmem:[#allocation2 + $0x160] sm:$0xff]  ;;  %v6184_v42 = vld [vmem:[%s537_s29] sm:$0xff]  ;;  %v558_v43 = vld [vmem:[#allocation2 + $0x48] sm:$0xff] }
  0x2f   : > { %666 = vmatpush.msra.mxu2 %v566_v26  ;;  %645 = vmatpush.msra.mxu1 %v599_v29  ;;  %v590_v44 = vld [vmem:[#allocation2 + $0x148] sm:$0xff]  ;;  %614 = vst [vmem:[#allocation1] ss:$2 sm:$0xff] %v6184_v42  ;;  %v559_v45 = vld [vmem:[#allocation2 + $0x50] sm:$0xff]  ;;  %v556_v47 = vld [vmem:[#allocation2 + $0x38] sm:$0xff] }
  0x30   : > { %686 = vmatpush.msra.mxu3 %v598_v27  ;;  %626 = vmatpush.msra.mxu0 %v565_v32  ;;  %v591_v46 = vld [vmem:[#allocation2 + $0x150] sm:$0xff]  ;;  %v588_v48 = vld [vmem:[#allocation2 + $0x138] sm:$0xff]  ;;  %v557_v49 = vld [vmem:[#allocation2 + $0x40] sm:$0xff] }
  0x31   : > { %667 = vmatpush.msra.mxu2 %v564_v30  ;;  %646 = vmatpush.msra.mxu1 %v597_v33  ;;  %v589_v50 = vld [vmem:[#allocation2 + $0x140] sm:$0xff]  ;;  %v554_v51 = vld [vmem:[#allocation2 + $0x28] sm:$0xff]  ;;  %v552_v53 = vld [vmem:[#allocation2 + $0x18] sm:$0xff] }
  0x32   : > { %687 = vmatpush.msra.mxu3 %v596_v31  ;;  %627 = vmatpush.msra.mxu0 %v563_v36  ;;  %v586_v52 = vld [vmem:[#allocation2 + $0x128] sm:$0xff]  ;;  %v555_v54 = vld [vmem:[#allocation2 + $0x30] sm:$0xff]  ;;  %v584_v56 = vld [vmem:[#allocation2 + $0x118] sm:$0xff] }
  0x33   : > { %668 = vmatpush.msra.mxu2 %v562_v34  ;;  %647 = vmatpush.msra.mxu1 %v595_v37  ;;  %v587_v55 = vld [vmem:[#allocation2 + $0x130] sm:$0xff]  ;;  %v553_v57 = vld [vmem:[#allocation2 + $0x20] sm:$0xff]  ;;  %v550_v61 = vld [vmem:[#allocation2 + $0x8] sm:$0xff] }
  0x34   : > { %688 = vmatpush.msra.mxu3 %v594_v35  ;;  %628 = vmatpush.msra.mxu0 %v561_v40  ;;  %v585_v58 = vld [vmem:[#allocation2 + $0x120] sm:$0xff]  ;;  %v582_v62 = vld [vmem:[#allocation2 + $0x108] sm:$0xff]  ;;  %v732_v63 = vld [vmem:[#allocation2 + $0x2f8] sm:$0xff] }
  0x35   : > { %669 = vmatpush.msra.mxu2 %v560_v38  ;;  %648 = vmatpush.msra.mxu1 %v593_v41  ;;  %v764_v0 = vld [vmem:[#allocation2 + $0x3f8] sm:$0xff]  ;;  %v551_v1 = vld [vmem:[#allocation2 + $0x10] sm:$0xff]  ;;  %v730_v3 = vld [vmem:[#allocation2 + $0x2e8] sm:$0xff] }
  0x36   : > { %689 = vmatpush.msra.mxu3 %v592_v39  ;;  %629 = vmatpush.msra.mxu0 %v559_v45  ;;  %v615_v59 = vld.sshfl [vmem:[#allocation1] sm:$0xff pattern:$0x75316420]  ;;  %v616_v60 = vld.sshfl [vmem:[#allocation1 + $0x8] sm:$0xff pattern:$0x75316420] }
  0x37   : > { %670 = vmatpush.msra.mxu2 %v558_v43  ;;  %649 = vmatpush.msra.mxu1 %v591_v46  ;;  %765 = vst [vmem:[#allocation1] ss:$2 sm:$0xff] %v6184_v42  ;;  %v583_v2 = vld [vmem:[#allocation2 + $0x110] sm:$0xff]  ;;  %v762_v4 = vld [vmem:[#allocation2 + $0x3e8] sm:$0xff]  ;;  %v549_v5 = vld [vmem:[#allocation2] sm:$0xff] }
  0x38   : > { %690 = vmatpush.msra.mxu3 %v590_v44  ;;  %630 = vmatpush.msra.mxu0 %v557_v49  ;;  %v581_v6 = vld [vmem:[#allocation2 + $0x100] sm:$0xff]  ;;  %v728_v7 = vld [vmem:[#allocation2 + $0x2d8] sm:$0xff]  ;;  %v731_v9 = vld [vmem:[#allocation2 + $0x2f0] sm:$0xff] }
  0x39   : > { %671 = vmatpush.msra.mxu2 %v556_v47  ;;  %650 = vmatpush.msra.mxu1 %v589_v50  ;;  %v760_v8 = vld [vmem:[#allocation2 + $0x3d8] sm:$0xff]  ;;  %v763_v10 = vld [vmem:[#allocation2 + $0x3f0] sm:$0xff]  ;;  %v726_v11 = vld [vmem:[#allocation2 + $0x2c8] sm:$0xff] }
  0x3a   : > { %691 = vmatpush.msra.mxu3 %v588_v48  ;;  %631 = vmatpush.msra.mxu0 %v555_v54  ;;  %v758_v12 = vld [vmem:[#allocation2 + $0x3c8] sm:$0xff]  ;;  %v729_v13 = vld [vmem:[#allocation2 + $0x2e0] sm:$0xff]  ;;  %v724_v15 = vld [vmem:[#allocation2 + $0x2b8] sm:$0xff] }
  0x3b   : > { %672 = vmatpush.msra.mxu2 %v554_v51  ;;  %651 = vmatpush.msra.mxu1 %v587_v55  ;;  %v761_v14 = vld [vmem:[#allocation2 + $0x3e0] sm:$0xff]  ;;  %v756_v16 = vld [vmem:[#allocation2 + $0x3b8] sm:$0xff]  ;;  %v727_v17 = vld [vmem:[#allocation2 + $0x2d0] sm:$0xff] }
  0x3c   : > { %692 = vmatpush.msra.mxu3 %v586_v52  ;;  %632 = vmatpush.msra.mxu0 %v553_v57  ;;  %v759_v18 = vld [vmem:[#allocation2 + $0x3d0] sm:$0xff]  ;;  %v722_v19 = vld [vmem:[#allocation2 + $0x2a8] sm:$0xff]  ;;  %v725_v21 = vld [vmem:[#allocation2 + $0x2c0] sm:$0xff] }
  0x3d   : > { %673 = vmatpush.msra.mxu2 %v552_v53  ;;  %652 = vmatpush.msra.mxu1 %v585_v58  ;;  %v754_v20 = vld [vmem:[#allocation2 + $0x3a8] sm:$0xff]  ;;  %v757_v22 = vld [vmem:[#allocation2 + $0x3c0] sm:$0xff]  ;;  %v720_v25 = vld [vmem:[#allocation2 + $0x298] sm:$0xff] }
  0x3e   : > { %693 = vmatpush.msra.mxu3 %v584_v56  ;;  %633 = vmatpush.msra.mxu0 %v551_v1  ;;  %v6188_v23 = vld.sshfl [vmem:[#allocation1] sm:$0xff pattern:$0x75316420]  ;;  %v6190_v24 = vld.sshfl [vmem:[#allocation1 + $0x8] sm:$0xff pattern:$0x75316420] }
  0x3f   : > { %674 = vmatpush.msra.mxu2 %v550_v61  ;;  %653 = vmatpush.msra.mxu1 %v583_v2  ;;  %v752_v26 = vld [vmem:[#allocation2 + $0x398] sm:$0xff]  ;;  %1017 = vst [vmem:[#allocation1] ss:$2 sm:$0xff] %v6184_v42  ;;  %v723_v27 = vld [vmem:[#allocation2 + $0x2b0] sm:$0xff]  ;;  %v718_v29 = vld [vmem:[#allocation2 + $0x288] sm:$0xff] }
  0x40   : > { %694 = vmatpush.msra.mxu3 %v582_v62  ;;  %675 = vmatmul.f32.vlgmr.msra.gmra.mxu2 %v615_v59  ;;  %v755_v28 = vld [vmem:[#allocation2 + $0x3b0] sm:$0xff]  ;;  %v750_v30 = vld [vmem:[#allocation2 + $0x388] sm:$0xff]  ;;  %v721_v31 = vld [vmem:[#allocation2 + $0x2a0] sm:$0xff] }
  0x41   : > { %695 = vmatmul.f32.vlgmr.msra.gmra.mxu3 %v616_v60  ;;  %810 = vmatpush.msrb.mxu2 %v732_v63  ;;  %v753_v32 = vld [vmem:[#allocation2 + $0x3a0] sm:$0xff]  ;;  %v716_v33 = vld [vmem:[#allocation2 + $0x278] sm:$0xff]  ;;  %v719_v35 = vld [vmem:[#allocation2 + $0x290] sm:$0xff] }
  0x42   : > { %830 = vmatpush.msrb.mxu3 %v764_v0  ;;  %634 = vmatpush.msra.mxu0 %v549_v5  ;;  %v748_v34 = vld [vmem:[#allocation2 + $0x378] sm:$0xff]  ;;  %v751_v36 = vld [vmem:[#allocation2 + $0x390] sm:$0xff]  ;;  %v714_v37 = vld [vmem:[#allocation2 + $0x268] sm:$0xff] }
  0x43   : > { %811 = vmatpush.msrb.mxu2 %v730_v3  ;;  %654 = vmatpush.msra.mxu1 %v581_v6  ;;  %v746_v38 = vld [vmem:[#allocation2 + $0x368] sm:$0xff]  ;;  %v717_v39 = vld [vmem:[#allocation2 + $0x280] sm:$0xff]  ;;  %v712_v41 = vld [vmem:[#allocation2 + $0x258] sm:$0xff] }
  0x44   : > { %831 = vmatpush.msrb.mxu3 %v762_v4  ;;  %635 = vmatmul.f32.vlgmr.msra.gmra.mxu0 %v615_v59  ;;  %v749_v40 = vld [vmem:[#allocation2 + $0x380] sm:$0xff]  ;;  %v744_v43 = vld [vmem:[#allocation2 + $0x358] sm:$0xff]  ;;  %v715_v44 = vld [vmem:[#allocation2 + $0x270] sm:$0xff] }
  0x45   : > { %812 = vmatpush.msrb.mxu2 %v728_v7  ;;  %655 = vmatmul.f32.vlgmr.msra.gmra.mxu1 %v616_v60  ;;  %v747_v45 = vld [vmem:[#allocation2 + $0x370] sm:$0xff]  ;;  %v710_v46 = vld [vmem:[#allocation2 + $0x248] sm:$0xff]  ;;  %v713_v48 = vld [vmem:[#allocation2 + $0x260] sm:$0xff] }
  0x46   : > { %832 = vmatpush.msrb.mxu3 %v760_v8  ;;  %770 = vmatpush.msrb.mxu0 %v731_v9  ;;  %v742_v47 = vld [vmem:[#allocation2 + $0x348] sm:$0xff]  ;;  %v745_v49 = vld [vmem:[#allocation2 + $0x360] sm:$0xff]  ;;  %v708_v50 = vld [vmem:[#allocation2 + $0x238] sm:$0xff] }
  0x47   : > { %790 = vmatpush.msrb.mxu1 %v763_v10  ;;  %813 = vmatpush.msrb.mxu2 %v726_v11  ;;  %v740_v51 = vld [vmem:[#allocation2 + $0x338] sm:$0xff]  ;;  %v711_v52 = vld [vmem:[#allocation2 + $0x250] sm:$0xff]  ;;  %v706_v54 = vld [vmem:[#allocation2 + $0x228] sm:$0xff] }
  0x48   : > { %833 = vmatpush.msrb.mxu3 %v758_v12  ;;  %771 = vmatpush.msrb.mxu0 %v729_v13  ;;  %v743_v53 = vld [vmem:[#allocation2 + $0x350] sm:$0xff]  ;;  %v738_v55 = vld [vmem:[#allocation2 + $0x328] sm:$0xff]  ;;  %v709_v56 = vld [vmem:[#allocation2 + $0x240] sm:$0xff] }
  0x49   : > { %791 = vmatpush.msrb.mxu1 %v761_v14  ;;  %814 = vmatpush.msrb.mxu2 %v724_v15  ;;  %v741_v57 = vld [vmem:[#allocation2 + $0x340] sm:$0xff]  ;;  %v704_v58 = vld [vmem:[#allocation2 + $0x218] sm:$0xff]  ;;  %v707_v60 = vld [vmem:[#allocation2 + $0x230] sm:$0xff] }
  0x4a   : > { %834 = vmatpush.msrb.mxu3 %v756_v16  ;;  %772 = vmatpush.msrb.mxu0 %v727_v17  ;;  %v736_v59 = vld [vmem:[#allocation2 + $0x318] sm:$0xff]  ;;  %v739_v61 = vld [vmem:[#allocation2 + $0x330] sm:$0xff]  ;;  %v702_v62 = vld [vmem:[#allocation2 + $0x208] sm:$0xff] }
  0x4b   : > { %792 = vmatpush.msrb.mxu1 %v759_v18  ;;  %815 = vmatpush.msrb.mxu2 %v722_v19  ;;  %v734_v63 = vld [vmem:[#allocation2 + $0x308] sm:$0xff]  ;;  %v705_v0 = vld [vmem:[#allocation2 + $0x220] sm:$0xff]  ;;  %v703_v2 = vld [vmem:[#allocation2 + $0x210] sm:$0xff] }
  0x4c   : > { %835 = vmatpush.msrb.mxu3 %v754_v20  ;;  %773 = vmatpush.msrb.mxu0 %v725_v21  ;;  %v737_v1 = vld [vmem:[#allocation2 + $0x320] sm:$0xff]  ;;  %v735_v3 = vld [vmem:[#allocation2 + $0x310] sm:$0xff]  ;;  %v984_v11 = vld [vmem:[#allocation2 + $0x4f8] sm:$0xff] }
  0x4d   : > { %793 = vmatpush.msrb.mxu1 %v757_v22  ;;  %816 = vmatpush.msrb.mxu2 %v720_v25  ;;  %v701_v4 = vld [vmem:[#allocation2 + $0x200] sm:$0xff]  ;;  %v1016_v13 = vld [vmem:[#allocation2 + $0x5f8] sm:$0xff]  ;;  %v982_v15 = vld [vmem:[#allocation2 + $0x4e8] sm:$0xff] }
  0x4e   : > { %836 = vmatpush.msrb.mxu3 %v752_v26  ;;  %774 = vmatpush.msrb.mxu0 %v723_v27  ;;  %v733_v5 = vld [vmem:[#allocation2 + $0x300] sm:$0xff]  ;;  %v699_v14 = vld [vmem:[%s7087_s3] sm:$0xff]  ;;  %v1014_v16 = vld [vmem:[#allocation2 + $0x5e8] sm:$0xff] }
  0x4f   : > { %794 = vmatpush.msrb.mxu1 %v755_v28  ;;  %817 = vmatpush.msrb.mxu2 %v718_v29  ;;  %v980_v17 = vld [vmem:[#allocation2 + $0x4d8] sm:$0xff]  ;;  %v6206_v20 = vld.sshfl [vmem:[#allocation1 + $0x8] sm:$0xff pattern:$0x75316420]  ;;  %v978_v21 = vld [vmem:[#allocation2 + $0x4c8] sm:$0xff] }
  0x50   : > { %837 = vmatpush.msrb.mxu3 %v750_v30  ;;  %775 = vmatpush.msrb.mxu0 %v721_v31  ;;  %v1012_v18 = vld [vmem:[#allocation2 + $0x5d8] sm:$0xff]  ;;  %v1010_v22 = vld [vmem:[#allocation2 + $0x5c8] sm:$0xff] }
  0x51   : > { %795 = vmatpush.msrb.mxu1 %v753_v32  ;;  %818 = vmatpush.msrb.mxu2 %v716_v33  ;;  %v6204_v19 = vld.sshfl [vmem:[#allocation1] sm:$0xff pattern:$0x75316420]  ;;  %v974_v25 = vld [vmem:[#allocation2 + $0x4a8] sm:$0xff] }
  0x52   : > { %838 = vmatpush.msrb.mxu3 %v748_v34  ;;  %776 = vmatpush.msrb.mxu0 %v719_v35  ;;  %1220 = vst [vmem:[#allocation1] ss:$2 sm:$0xff] %v6184_v42  ;;  %v1006_v26 = vld [vmem:[#allocation2 + $0x5a8] sm:$0xff]  ;;  %v972_v27 = vld [vmem:[#allocation2 + $0x498] sm:$0xff] }
  0x53   : > { %796 = vmatpush.msrb.mxu1 %v751_v36  ;;  %819 = vmatpush.msrb.mxu2 %v714_v37  ;;  %v1004_v28 = vld [vmem:[#allocation2 + $0x598] sm:$0xff]  ;;  %v970_v29 = vld [vmem:[#allocation2 + $0x488] sm:$0xff] }
  0x54   : > { %839 = vmatpush.msrb.mxu3 %v746_v38  ;;  %777 = vmatpush.msrb.mxu0 %v717_v39  ;;  %v1002_v30 = vld [vmem:[#allocation2 + $0x588] sm:$0xff]  ;;  %v968_v31 = vld [vmem:[#allocation2 + $0x478] sm:$0xff] }
  0x55   : > { %797 = vmatpush.msrb.mxu1 %v749_v40  ;;  %820 = vmatpush.msrb.mxu2 %v712_v41  ;;  %v1000_v32 = vld [vmem:[#allocation2 + $0x578] sm:$0xff]  ;;  %v966_v33 = vld [vmem:[#allocation2 + $0x468] sm:$0xff] }
  0x56   : > { %840 = vmatpush.msrb.mxu3 %v744_v43  ;;  %778 = vmatpush.msrb.mxu0 %v715_v44  ;;  %v998_v34 = vld [vmem:[#allocation2 + $0x568] sm:$0xff]  ;;  %v964_v35 = vld [vmem:[#allocation2 + $0x458] sm:$0xff] }
  0x57   : > { %798 = vmatpush.msrb.mxu1 %v747_v45  ;;  %821 = vmatpush.msrb.mxu2 %v710_v46  ;;  %v996_v36 = vld [vmem:[#allocation2 + $0x558] sm:$0xff]  ;;  %v962_v37 = vld [vmem:[#allocation2 + $0x448] sm:$0xff] }
  0x58   : > { %841 = vmatpush.msrb.mxu3 %v742_v47  ;;  %779 = vmatpush.msrb.mxu0 %v713_v48  ;;  %v994_v38 = vld [vmem:[#allocation2 + $0x548] sm:$0xff]  ;;  %v960_v39 = vld [vmem:[#allocation2 + $0x438] sm:$0xff] }
  0x59   : > { %799 = vmatpush.msrb.mxu1 %v745_v49  ;;  %822 = vmatpush.msrb.mxu2 %v708_v50  ;;  %v992_v40 = vld [vmem:[#allocation2 + $0x538] sm:$0xff]  ;;  %v958_v41 = vld [vmem:[#allocation2 + $0x428] sm:$0xff] }
  0x5a   : > { %842 = vmatpush.msrb.mxu3 %v740_v51  ;;  %780 = vmatpush.msrb.mxu0 %v711_v52  ;;  %v990_v43 = vld [vmem:[#allocation2 + $0x528] sm:$0xff]  ;;  %v956_v44 = vld [vmem:[#allocation2 + $0x418] sm:$0xff] }
  0x5b   : > { %800 = vmatpush.msrb.mxu1 %v743_v53  ;;  %823 = vmatpush.msrb.mxu2 %v706_v54  ;;  %v988_v45 = vld [vmem:[#allocation2 + $0x518] sm:$0xff]  ;;  %v954_v46 = vld [vmem:[#allocation2 + $0x408] sm:$0xff]  ;;  %v983_v53 = vld [vmem:[#allocation2 + $0x4f0] sm:$0xff] }
  0x5c   : > { %843 = vmatpush.msrb.mxu3 %v738_v55  ;;  %781 = vmatpush.msrb.mxu0 %v709_v56  ;;  %v986_v47 = vld [vmem:[#allocation2 + $0x508] sm:$0xff]  ;;  %v1015_v55 = vld [vmem:[#allocation2 + $0x5f0] sm:$0xff] }
  0x5d   : > { %801 = vmatpush.msrb.mxu1 %v741_v57  ;;  %824 = vmatpush.msrb.mxu2 %v704_v58  ;;  %v1186_v56 = vld [vmem:[#allocation2 + $0x6f0] sm:$0xff]  ;;  %v981_v58 = vld [vmem:[#allocation2 + $0x4e0] sm:$0xff] }
  0x5e   : > { %844 = vmatpush.msrb.mxu3 %v736_v59  ;;  %782 = vmatpush.msrb.mxu0 %v707_v60  ;;  %v1218_v57 = vld [vmem:[#allocation2 + $0x7f0] sm:$0xff]  ;;  %v1013_v59 = vld [vmem:[#allocation2 + $0x5e0] sm:$0xff] }
  0x5f   : > { %802 = vmatpush.msrb.mxu1 %v739_v61  ;;  %825 = vmatpush.msrb.mxu2 %v702_v62  ;;  %v1184_v60 = vld [vmem:[#allocation2 + $0x6e0] sm:$0xff]  ;;  %v979_v62 = vld [vmem:[#allocation2 + $0x4d0] sm:$0xff] }
  0x60   : > { %845 = vmatpush.msrb.mxu3 %v734_v63  ;;  %826 = vmatmul.f32.vlgmr.msrb.gmra.mxu2 %v6188_v23  ;;  %v1216_v61 = vld [vmem:[#allocation2 + $0x7e0] sm:$0xff]  ;;  %v6213_v63 = vld.sshfl [vmem:[#allocation1] sm:$0xff pattern:$0x75316420] }
  0x61   : > { %846 = vmatmul.f32.vlgmr.msrb.gmra.mxu3 %v6190_v24  ;;  %783 = vmatpush.msrb.mxu0 %v705_v0  ;;  %v6215_v0 = vld.sshfl [vmem:[#allocation1 + $0x8] sm:$0xff pattern:$0x75316420] }
  0x62   : > { %803 = vmatpush.msrb.mxu1 %v737_v1  ;;  %v1011_v1 = vld [vmem:[#allocation2 + $0x5d0] sm:$0xff]  ;;  %1423 = vst [vmem:[#allocation1] ss:$2 sm:$0xff] %v6184_v42 }
  0x63   : > { %784 = vmatpush.msrb.mxu0 %v703_v2  ;;  %v1182_v2 = vld [vmem:[#allocation2 + $0x6d0] sm:$0xff] }
  0x64   : > { %804 = vmatpush.msrb.mxu1 %v735_v3  ;;  %v1214_v3 = vld [vmem:[#allocation2 + $0x7d0] sm:$0xff] }
  0x65   : > { %785 = vmatpush.msrb.mxu0 %v701_v4  ;;  %v977_v4 = vld [vmem:[#allocation2 + $0x4c0] sm:$0xff] }
  0x66   : > { %805 = vmatpush.msrb.mxu1 %v733_v5  ;;  %786 = vmatmul.f32.vlgmr.msrb.gmra.mxu0 %v6188_v23  ;;  %v976_v23 = vld [vmem:[#allocation2 + $0x4b8] sm:$0xff]  ;;  %v1009_v5 = vld [vmem:[#allocation2 + $0x5c0] sm:$0xff] }
  0x67   : > { %806 = vmatmul.f32.vlgmr.msrb.gmra.mxu1 %v6190_v24  ;;  %v1008_v24 = vld [vmem:[#allocation2 + $0x5b8] sm:$0xff] }
  0xc1   : > { %v636_v6 = vpop.f32.mrf.mxu0 }
  0xc2   : > { %v656_v7 = vpop.f32.mrf.mxu1 }
  0xc3   : > { %v657_v8 = vadd.f32 %v656_v7, %v636_v6  ;;  %v676_v9 = vpop.f32.mrf.mxu2  ;;  %v1180_v6 = vld [vmem:[#allocation2 + $0x6c0] sm:$0xff] }
  0xc4   : > { %v696_v10 = vpop.f32.mrf.mxu3  ;;  %v1212_v7 = vld [vmem:[#allocation2 + $0x7c0] sm:$0xff] }
  0xc5   : > { %v697_v12 = vadd.f32 %v696_v10, %v676_v9  ;;  %5095 = vmatpush.msk.msra.mxu2 %vm856_vm0, %v657_v8  ;;  %v975_v8 = vld [vmem:[#allocation2 + $0x4b0] sm:$0xff] }
  0xc6   : > { %5096 = vmatmul.msk.f32.vlgmr.msra.gmra.mxu2 %vm852_vm1, %v699_v14  ;;  %v1007_v9 = vld [vmem:[#allocation2 + $0x5b0] sm:$0xff] }
  0xc7   : > { %5097 = vmatpush.msk.msra.mxu3 %vm856_vm0, %v697_v12  ;;  %1062 = vmatpush.msrb.mxu2 %v984_v11  ;;  %v1178_v10 = vld [vmem:[#allocation2 + $0x6b0] sm:$0xff]  ;;  %v973_v12 = vld [vmem:[#allocation2 + $0x4a0] sm:$0xff] }
  0xc8   : > { %5098 = vmatmul.msk.f32.vlgmr.msra.gmra.mxu3 %vm852_vm1, %v699_v14  ;;  %v1210_v11 = vld [vmem:[#allocation2 + $0x7b0] sm:$0xff]  ;;  %v1176_v14 = vld [vmem:[#allocation2 + $0x6a0] sm:$0xff] }
  0xc9   : > { %1082 = vmatpush.msrb.mxu3 %v1016_v13  ;;  %1063 = vmatpush.msrb.mxu2 %v982_v15  ;;  %v1005_v13 = vld [vmem:[#allocation2 + $0x5a0] sm:$0xff] }
  0xca   : > { %v1208_v15 = vld [vmem:[#allocation2 + $0x7a0] sm:$0xff] }
  0xcb   : > { %1083 = vmatpush.msrb.mxu3 %v1014_v16  ;;  %1064 = vmatpush.msrb.mxu2 %v980_v17  ;;  %v971_v16 = vld [vmem:[#allocation2 + $0x490] sm:$0xff] }
  0xcc   : > { %v1003_v17 = vld [vmem:[#allocation2 + $0x590] sm:$0xff] }
  0xcd   : > { %1084 = vmatpush.msrb.mxu3 %v1012_v18  ;;  %1065 = vmatpush.msrb.mxu2 %v978_v21  ;;  %v1174_v18 = vld [vmem:[#allocation2 + $0x690] sm:$0xff] }
  0xce   : > { %v1206_v21 = vld [vmem:[#allocation2 + $0x790] sm:$0xff] }
  0xcf   : > { %1085 = vmatpush.msrb.mxu3 %v1010_v22  ;;  %1066 = vmatpush.msrb.mxu2 %v976_v23  ;;  %v969_v22 = vld [vmem:[#allocation2 + $0x480] sm:$0xff] }
  0xd0   : > { %v1001_v23 = vld [vmem:[#allocation2 + $0x580] sm:$0xff] }
  0xd1   : > { %1086 = vmatpush.msrb.mxu3 %v1008_v24  ;;  %1067 = vmatpush.msrb.mxu2 %v974_v25  ;;  %v1172_v24 = vld [vmem:[#allocation2 + $0x680] sm:$0xff] }
  0xd2   : > { %v1204_v25 = vld [vmem:[#allocation2 + $0x780] sm:$0xff] }
  0xd3   : > { %1087 = vmatpush.msrb.mxu3 %v1006_v26  ;;  %1068 = vmatpush.msrb.mxu2 %v972_v27  ;;  %v967_v26 = vld [vmem:[#allocation2 + $0x470] sm:$0xff] }
  0xd4   : > { %v999_v27 = vld [vmem:[#allocation2 + $0x570] sm:$0xff] }
  0xd5   : > { %1088 = vmatpush.msrb.mxu3 %v1004_v28  ;;  %1069 = vmatpush.msrb.mxu2 %v970_v29  ;;  %v1170_v28 = vld [vmem:[#allocation2 + $0x670] sm:$0xff] }
  0xd6   : > { %v1202_v29 = vld [vmem:[#allocation2 + $0x770] sm:$0xff] }
  0xd7   : > { %1089 = vmatpush.msrb.mxu3 %v1002_v30  ;;  %1070 = vmatpush.msrb.mxu2 %v968_v31  ;;  %v965_v30 = vld [vmem:[#allocation2 + $0x460] sm:$0xff] }
  0xd8   : > { %v997_v31 = vld [vmem:[#allocation2 + $0x560] sm:$0xff] }
  0xd9   : > { %1090 = vmatpush.msrb.mxu3 %v1000_v32  ;;  %1071 = vmatpush.msrb.mxu2 %v966_v33  ;;  %v1168_v32 = vld [vmem:[#allocation2 + $0x660] sm:$0xff] }
  0xda   : > { %v1200_v33 = vld [vmem:[#allocation2 + $0x760] sm:$0xff] }
  0xdb   : > { %1091 = vmatpush.msrb.mxu3 %v998_v34  ;;  %1072 = vmatpush.msrb.mxu2 %v964_v35  ;;  %v963_v34 = vld [vmem:[#allocation2 + $0x450] sm:$0xff] }
  0xdc   : > { %v995_v35 = vld [vmem:[#allocation2 + $0x550] sm:$0xff] }
  0xdd   : > { %1092 = vmatpush.msrb.mxu3 %v996_v36  ;;  %1073 = vmatpush.msrb.mxu2 %v962_v37  ;;  %v1166_v36 = vld [vmem:[#allocation2 + $0x650] sm:$0xff] }
  0xde   : > { %v1198_v37 = vld [vmem:[#allocation2 + $0x750] sm:$0xff] }
  0xdf   : > { %1093 = vmatpush.msrb.mxu3 %v994_v38  ;;  %1074 = vmatpush.msrb.mxu2 %v960_v39  ;;  %v961_v38 = vld [vmem:[#allocation2 + $0x440] sm:$0xff] }
  0xe0   : > { %v993_v39 = vld [vmem:[#allocation2 + $0x540] sm:$0xff] }
  0xe1   : > { %1094 = vmatpush.msrb.mxu3 %v992_v40  ;;  %1075 = vmatpush.msrb.mxu2 %v958_v41  ;;  %v1164_v40 = vld [vmem:[#allocation2 + $0x640] sm:$0xff] }
  0xe2   : > { %v1196_v41 = vld [vmem:[#allocation2 + $0x740] sm:$0xff] }
  0xe3   : > { %1095 = vmatpush.msrb.mxu3 %v990_v43  ;;  %1076 = vmatpush.msrb.mxu2 %v956_v44  ;;  %v787_v48 = vpop.f32.mrf.mxu0  ;;  %v827_v51 = vpop.f32.mrf.mxu2  ;;  %v5090_v43 = vld [vmem:[%s7087_s3 + $0x8] sm:$0xff]  ;;  %v959_v44 = vld [vmem:[#allocation2 + $0x430] sm:$0xff] }
  0xe4   : > { %v807_v49 = vpop.f32.mrf.mxu1  ;;  %v847_v52 = vpop.f32.mrf.mxu3 }
  0xe5   : > { %1096 = vmatpush.msrb.mxu3 %v988_v45  ;;  %v808_v50 = vadd.f32 %v807_v49, %v787_v48  ;;  %1077 = vmatpush.msrb.mxu2 %v954_v46  ;;  %v848_v54 = vadd.f32 %v847_v52, %v827_v51  ;;  %v991_v45 = vld [vmem:[#allocation2 + $0x530] sm:$0xff]  ;;  %v957_v48 = vld [vmem:[#allocation2 + $0x420] sm:$0xff] }
  0xe6   : > { %1078 = vmatmul.f32.vlgmr.msrb.gmra.mxu2 %v6204_v19  ;;  %v1162_v46 = vld [vmem:[#allocation2 + $0x630] sm:$0xff]  ;;  %v989_v49 = vld [vmem:[#allocation2 + $0x520] sm:$0xff] }
  0xe7   : > { %1097 = vmatpush.msrb.mxu3 %v986_v47  ;;  %5091 = vmatpush.msk.msra.mxu0 %vm856_vm0, %v808_v50  ;;  %v1194_v47 = vld [vmem:[#allocation2 + $0x730] sm:$0xff]  ;;  %v1160_v50 = vld [vmem:[#allocation2 + $0x620] sm:$0xff] }
  0xe8   : > { %1098 = vmatmul.f32.vlgmr.msrb.gmra.mxu3 %v6206_v20  ;;  %5093 = vmatpush.msk.msra.mxu1 %vm856_vm0, %v848_v54  ;;  %v1192_v51 = vld [vmem:[#allocation2 + $0x720] sm:$0xff]  ;;  %v955_v52 = vld [vmem:[#allocation2 + $0x410] sm:$0xff] }
  0xe9   : > { %1022 = vmatpush.msrb.mxu0 %v983_v53  ;;  %1225 = vmatpush.msra.mxu2 %v1186_v56  ;;  %v987_v53 = vld [vmem:[#allocation2 + $0x510] sm:$0xff]  ;;  %v953_v56 = vld [vmem:[#allocation2 + $0x400] sm:$0xff] }
  0xea   : > { %1042 = vmatpush.msrb.mxu1 %v1015_v55  ;;  %1245 = vmatpush.msra.mxu3 %v1218_v57  ;;  %v1158_v54 = vld [vmem:[#allocation2 + $0x610] sm:$0xff]  ;;  %v985_v57 = vld [vmem:[#allocation2 + $0x500] sm:$0xff] }
  0xeb   : > { %1023 = vmatpush.msrb.mxu0 %v981_v58  ;;  %1226 = vmatpush.msra.mxu2 %v1184_v60  ;;  %v1190_v55 = vld [vmem:[#allocation2 + $0x710] sm:$0xff]  ;;  %v1156_v58 = vld [vmem:[#allocation2 + $0x600] sm:$0xff] }
  0xec   : > { %1043 = vmatpush.msrb.mxu1 %v1013_v59  ;;  %1246 = vmatpush.msra.mxu3 %v1216_v61  ;;  %v1188_v59 = vld [vmem:[#allocation2 + $0x700] sm:$0xff] }
  0xed   : > { %1024 = vmatpush.msrb.mxu0 %v979_v62  ;;  %1227 = vmatpush.msra.mxu2 %v1182_v2 }
  0xee   : > { %1044 = vmatpush.msrb.mxu1 %v1011_v1  ;;  %1247 = vmatpush.msra.mxu3 %v1214_v3  ;;  %v5099_v3 = vld [vmem:[%s7087_s3 + $0x10] sm:$0xff] }
  0xef   : > { %1025 = vmatpush.msrb.mxu0 %v977_v4  ;;  %1228 = vmatpush.msra.mxu2 %v1180_v6  ;;  %v1219_v4 = vld [vmem:[#allocation2 + $0x7f8] sm:$0xff] }
  0xf0   : > { %1045 = vmatpush.msrb.mxu1 %v1009_v5  ;;  %1248 = vmatpush.msra.mxu3 %v1212_v7  ;;  %v1213_v5 = vld [vmem:[#allocation2 + $0x7c8] sm:$0xff]  ;;  %v1211_v6 = vld [vmem:[#allocation2 + $0x7b8] sm:$0xff] }
  0xf1   : > { %1026 = vmatpush.msrb.mxu0 %v975_v8  ;;  %1229 = vmatpush.msra.mxu2 %v1178_v10  ;;  %v1209_v7 = vld [vmem:[#allocation2 + $0x7a8] sm:$0xff]  ;;  %v1207_v8 = vld [vmem:[#allocation2 + $0x798] sm:$0xff] }
  0xf2   : > { %1046 = vmatpush.msrb.mxu1 %v1007_v9  ;;  %1249 = vmatpush.msra.mxu3 %v1210_v11  ;;  %v1205_v9 = vld [vmem:[#allocation2 + $0x788] sm:$0xff]  ;;  %v1203_v10 = vld [vmem:[#allocation2 + $0x778] sm:$0xff] }
  0xf3   : > { %1027 = vmatpush.msrb.mxu0 %v973_v12  ;;  %1230 = vmatpush.msra.mxu2 %v1176_v14  ;;  %v1199_v14 = vld [vmem:[#allocation2 + $0x758] sm:$0xff] }
  0xf4   : > { %1047 = vmatpush.msrb.mxu1 %v1005_v13  ;;  %1250 = vmatpush.msra.mxu3 %v1208_v15  ;;  %v1201_v13 = vld [vmem:[#allocation2 + $0x768] sm:$0xff] }
  0xf5   : > { %1028 = vmatpush.msrb.mxu0 %v971_v16  ;;  %1231 = vmatpush.msra.mxu2 %v1174_v18  ;;  %v1197_v15 = vld [vmem:[#allocation2 + $0x748] sm:$0xff]  ;;  %v1195_v16 = vld [vmem:[#allocation2 + $0x738] sm:$0xff] }
  0xf6   : > { %1048 = vmatpush.msrb.mxu1 %v1003_v17  ;;  %1251 = vmatpush.msra.mxu3 %v1206_v21  ;;  %v1193_v18 = vld [vmem:[#allocation2 + $0x728] sm:$0xff] }
  0xf7   : > { %1029 = vmatpush.msrb.mxu0 %v969_v22  ;;  %1232 = vmatpush.msra.mxu2 %v1172_v24  ;;  %v1187_v24 = vld [vmem:[#allocation2 + $0x6f8] sm:$0xff] }
  0xf8   : > { %1049 = vmatpush.msrb.mxu1 %v1001_v23  ;;  %1252 = vmatpush.msra.mxu3 %v1204_v25  ;;  %v1191_v23 = vld [vmem:[#allocation2 + $0x718] sm:$0xff]  ;;  %v1189_v25 = vld [vmem:[#allocation2 + $0x708] sm:$0xff] }
  0xf9   : > { %1030 = vmatpush.msrb.mxu0 %v967_v26  ;;  %1233 = vmatpush.msra.mxu2 %v1170_v28  ;;  %v1185_v26 = vld [vmem:[#allocation2 + $0x6e8] sm:$0xff] }
  0xfa   : > { %1050 = vmatpush.msrb.mxu1 %v999_v27  ;;  %1253 = vmatpush.msra.mxu3 %v1202_v29  ;;  %v1421_v27 = vld [vmem:[#allocation2 + $0x9f0] sm:$0xff]  ;;  %v1183_v29 = vld [vmem:[#allocation2 + $0x6d8] sm:$0xff] }
  0xfb   : > { %1031 = vmatpush.msrb.mxu0 %v965_v30  ;;  %1234 = vmatpush.msra.mxu2 %v1168_v32 }
  0xfc   : > { %1051 = vmatpush.msrb.mxu1 %v997_v31  ;;  %1254 = vmatpush.msra.mxu3 %v1200_v33  ;;  %v1419_v31 = vld [vmem:[#allocation2 + $0x9e0] sm:$0xff]  ;;  %v1181_v33 = vld [vmem:[#allocation2 + $0x6c8] sm:$0xff] }
  0xfd   : > { %1032 = vmatpush.msrb.mxu0 %v963_v34  ;;  %1235 = vmatpush.msra.mxu2 %v1166_v36  ;;  %v6246_v34 = vld [vmem:[%s7087_s3 + $0x18] sm:$0xff]  ;;  %v1179_v36 = vld [vmem:[#allocation2 + $0x6b8] sm:$0xff] }
  0xfe   : > { %1052 = vmatpush.msrb.mxu1 %v995_v35  ;;  %1255 = vmatpush.msra.mxu3 %v1198_v37  ;;  %v1417_v35 = vld [vmem:[#allocation2 + $0x9d0] sm:$0xff]  ;;  %v1177_v37 = vld [vmem:[#allocation2 + $0x6a8] sm:$0xff] }
  0xff   : > { %1033 = vmatpush.msrb.mxu0 %v961_v38  ;;  %1236 = vmatpush.msra.mxu2 %v1164_v40  ;;  %v1413_v38 = vld [vmem:[#allocation2 + $0x9b0] sm:$0xff]  ;;  %v1411_v40 = vld [vmem:[#allocation2 + $0x9a0] sm:$0xff] }
 0x100   : > { %1053 = vmatpush.msrb.mxu1 %v993_v39  ;;  %1256 = vmatpush.msra.mxu3 %v1196_v41  ;;  %v1175_v39 = vld [vmem:[#allocation2 + $0x698] sm:$0xff]  ;;  %v1173_v41 = vld [vmem:[#allocation2 + $0x688] sm:$0xff] }
 0x101   : > { %5092 = vmatmul.msk.f32.vlgmr.msra.gmra.mxu0 %vm852_vm1, %v5090_v43  ;;  %5094 = vmatmul.msk.f32.vlgmr.msra.gmra.mxu1 %vm852_vm1, %v5090_v43  ;;  %v1409_v43 = vld [vmem:[#allocation2 + $0x990] sm:$0xff] }
 0x102   : > { %1034 = vmatpush.msrb.mxu0 %v959_v44  ;;  %1054 = vmatpush.msrb.mxu1 %v991_v45  ;;  %v1171_v44 = vld [vmem:[#allocation2 + $0x678] sm:$0xff]  ;;  %v1407_v45 = vld [vmem:[#allocation2 + $0x980] sm:$0xff] }
 0x103   : > { %1237 = vmatpush.msra.mxu2 %v1162_v46  ;;  %1257 = vmatpush.msra.mxu3 %v1194_v47  ;;  %v1169_v46 = vld [vmem:[#allocation2 + $0x668] sm:$0xff]  ;;  %v1405_v47 = vld [vmem:[#allocation2 + $0x970] sm:$0xff] }
 0x104   : > { %1035 = vmatpush.msrb.mxu0 %v957_v48  ;;  %1055 = vmatpush.msrb.mxu1 %v989_v49  ;;  %v1167_v48 = vld [vmem:[#allocation2 + $0x658] sm:$0xff]  ;;  %v1403_v49 = vld [vmem:[#allocation2 + $0x960] sm:$0xff] }
 0x105   : > { %1238 = vmatpush.msra.mxu2 %v1160_v50  ;;  %1258 = vmatpush.msra.mxu3 %v1192_v51  ;;  %v1165_v50 = vld [vmem:[#allocation2 + $0x648] sm:$0xff]  ;;  %v1401_v51 = vld [vmem:[#allocation2 + $0x950] sm:$0xff] }
 0x106   : > { %1036 = vmatpush.msrb.mxu0 %v955_v52  ;;  %1056 = vmatpush.msrb.mxu1 %v987_v53  ;;  %v1163_v52 = vld [vmem:[#allocation2 + $0x638] sm:$0xff]  ;;  %v1399_v53 = vld [vmem:[#allocation2 + $0x940] sm:$0xff] }
 0x107   : > { %1239 = vmatpush.msra.mxu2 %v1158_v54  ;;  %1259 = vmatpush.msra.mxu3 %v1190_v55  ;;  %v1161_v54 = vld [vmem:[#allocation2 + $0x628] sm:$0xff]  ;;  %v1397_v55 = vld [vmem:[#allocation2 + $0x930] sm:$0xff] }
 0x108   : > { %1037 = vmatpush.msrb.mxu0 %v953_v56  ;;  %1057 = vmatpush.msrb.mxu1 %v985_v57  ;;  %v1159_v56 = vld [vmem:[#allocation2 + $0x618] sm:$0xff]  ;;  %v1395_v57 = vld [vmem:[#allocation2 + $0x920] sm:$0xff] }
 0x109   : > { %1240 = vmatpush.msra.mxu2 %v1156_v58  ;;  %1260 = vmatpush.msra.mxu3 %v1188_v59  ;;  %v1157_v58 = vld [vmem:[#allocation2 + $0x608] sm:$0xff]  ;;  %v1393_v59 = vld [vmem:[#allocation2 + $0x910] sm:$0xff] }
 0x10a   : > { %1038 = vmatmul.f32.vlgmr.msrb.gmra.mxu0 %v6204_v19  ;;  %1058 = vmatmul.f32.vlgmr.msrb.gmra.mxu1 %v6206_v20  ;;  %v1217_v19 = vld [vmem:[#allocation2 + $0x7e8] sm:$0xff]  ;;  %v1215_v20 = vld [vmem:[#allocation2 + $0x7d8] sm:$0xff] }
 0x10b   : > { %1241 = vmatmul.f32.vlgmr.msra.gmra.mxu2 %v6213_v63  ;;  %1261 = vmatmul.f32.vlgmr.msra.gmra.mxu3 %v6215_v0 }
 0x149   : > { %v6227_v60 = vpop.f32.mrf.mxu2 }
 0x14b   : > { %v6229_v61 = vpop.f32.mrf.mxu3 }
 0x169   : > { %v1079_v62 = vpop.f32.mrf.mxu2 }
 0x16b   : > { %v1099_v1 = vpop.f32.mrf.mxu3 }
 0x16c   : > { %v1100_v2 = vadd.f32 %v1099_v1, %v1079_v62  ;;  %v1389_v62 = vld [vmem:[#allocation2 + $0x8f0] sm:$0xff]  ;;  %v1391_v1 = vld [vmem:[#allocation2 + $0x900] sm:$0xff] }
 0x16e   : > { %5102 = vmatpush.msk.msra.mxu1 %vm856_vm0, %v1100_v2  ;;  %v6251_v2 = vld.sshfl [vmem:[#allocation1] sm:$0xff pattern:$0x75316420] }
 0x16f   : > { %5103 = vmatmul.msk.f32.vlgmr.msra.gmra.mxu1 %vm852_vm1, %v5099_v3 }
 0x170   : > { %1285 = vmatpush.msrb.mxu1 %v1219_v4  ;;  %v1387_v4 = vld [vmem:[#allocation2 + $0x8e0] sm:$0xff] }
 0x172   : > { %1286 = vmatpush.msrb.mxu1 %v1217_v19  ;;  %v1385_v19 = vld [vmem:[#allocation2 + $0x8d0] sm:$0xff] }
 0x174   : > { %1287 = vmatpush.msrb.mxu1 %v1215_v20  ;;  %v1383_v20 = vld [vmem:[#allocation2 + $0x8c0] sm:$0xff] }
 0x176   : > { %1288 = vmatpush.msrb.mxu1 %v1213_v5  ;;  %v1381_v5 = vld [vmem:[#allocation2 + $0x8b0] sm:$0xff] }
 0x178   : > { %1289 = vmatpush.msrb.mxu1 %v1211_v6  ;;  %v1379_v6 = vld [vmem:[#allocation2 + $0x8a0] sm:$0xff] }
 0x17a   : > { %1290 = vmatpush.msrb.mxu1 %v1209_v7  ;;  %v1377_v7 = vld [vmem:[#allocation2 + $0x890] sm:$0xff] }
 0x17c   : > { %1291 = vmatpush.msrb.mxu1 %v1207_v8  ;;  %v1375_v8 = vld [vmem:[#allocation2 + $0x880] sm:$0xff] }
 0x17e   : > { %v6236_v11 = vpop.f32.mrf.mxu0  ;;  %1292 = vmatpush.msrb.mxu1 %v1205_v9  ;;  %v6238_v12 = vpop.f32.mrf.mxu1  ;;  %v1371_v9 = vld [vmem:[#allocation2 + $0x860] sm:$0xff] }
 0x180   : > { %1293 = vmatpush.msrb.mxu1 %v1203_v10  ;;  %v1369_v10 = vld [vmem:[#allocation2 + $0x850] sm:$0xff] }
 0x182   : > { %1294 = vmatpush.msrb.mxu1 %v1201_v13  ;;  %v1367_v13 = vld [vmem:[#allocation2 + $0x840] sm:$0xff] }
 0x184   : > { %1295 = vmatpush.msrb.mxu1 %v1199_v14  ;;  %v1365_v14 = vld [vmem:[#allocation2 + $0x830] sm:$0xff] }
 0x186   : > { %1296 = vmatpush.msrb.mxu1 %v1197_v15  ;;  %v1363_v15 = vld [vmem:[#allocation2 + $0x820] sm:$0xff] }
 0x187   : > { %v1039_v17 = vpop.f32.mrf.mxu0  ;;  %v1059_v21 = vpop.f32.mrf.mxu1 }
 0x188   : > { %1297 = vmatpush.msrb.mxu1 %v1195_v16  ;;  %v1060_v22 = vadd.f32 %v1059_v21, %v1039_v17  ;;  %v1361_v16 = vld [vmem:[#allocation2 + $0x810] sm:$0xff]  ;;  %v1359_v17 = vld [vmem:[#allocation2 + $0x800] sm:$0xff]  ;;  %v1388_v21 = vld [vmem:[#allocation2 + $0x8e8] sm:$0xff] }
 0x18a   : > { %1298 = vmatpush.msrb.mxu1 %v1193_v18  ;;  %5100 = vmatpush.msk.msra.mxu0 %vm856_vm0, %v1060_v22  ;;  %v1390_v18 = vld [vmem:[#allocation2 + $0x8f8] sm:$0xff] }
 0x18b   : > { %5101 = vmatmul.msk.f32.vlgmr.msra.gmra.mxu0 %vm852_vm1, %v5099_v3  ;;  %v6253_v3 = vld.sshfl [vmem:[#allocation1 + $0x8] sm:$0xff pattern:$0x75316420]  ;;  %v1386_v22 = vld [vmem:[#allocation2 + $0x8d8] sm:$0xff] }
 0x18c   : > { %1299 = vmatpush.msrb.mxu1 %v1191_v23  ;;  %1265 = vmatpush.msrb.mxu0 %v1187_v24  ;;  %1626 = vst [vmem:[#allocation1] ss:$2 sm:$0xff] %v6184_v42  ;;  %v1384_v23 = vld [vmem:[#allocation2 + $0x8c8] sm:$0xff]  ;;  %v1382_v24 = vld [vmem:[#allocation2 + $0x8b8] sm:$0xff] }
 0x18e   : > { %v1242_v28 = vpop.f32.mrf.mxu2  ;;  %1300 = vmatpush.msrb.mxu1 %v1189_v25  ;;  %v1262_v30 = vpop.f32.mrf.mxu3  ;;  %1266 = vmatpush.msrb.mxu0 %v1185_v26  ;;  %v1380_v25 = vld [vmem:[#allocation2 + $0x8a8] sm:$0xff]  ;;  %v1378_v26 = vld [vmem:[#allocation2 + $0x898] sm:$0xff] }
 0x18f   : > { %1301 = vmatmul.f32.vlgmr.msrb.gmra.mxu1 %v6215_v0  ;;  %v1263_v32 = vadd.f32 %v1262_v30, %v1242_v28  ;;  %v1415_v0 = vld [vmem:[#allocation2 + $0x9c0] sm:$0xff]  ;;  %v1374_v28 = vld [vmem:[#allocation2 + $0x878] sm:$0xff] }
 0x190   : > { %1448 = vmatpush.msra.mxu1 %v1421_v27  ;;  %1267 = vmatpush.msrb.mxu0 %v1183_v29  ;;  %v1376_v27 = vld [vmem:[#allocation2 + $0x888] sm:$0xff] }
 0x191   : > { %5105 = vmatpush.msk.msrb.mxu2 %vm856_vm0, %v1263_v32  ;;  %v1372_v29 = vld [vmem:[#allocation2 + $0x868] sm:$0xff] }
 0x192   : > { %1449 = vmatpush.msra.mxu1 %v1419_v31  ;;  %1268 = vmatpush.msrb.mxu0 %v1181_v33  ;;  %v1370_v31 = vld [vmem:[#allocation2 + $0x858] sm:$0xff]  ;;  %v1368_v33 = vld [vmem:[#allocation2 + $0x848] sm:$0xff] }
 0x193   : > { %5106 = vmatmul.msk.f32.vlgmr.msrb.gmra.mxu2 %vm852_vm1, %v6246_v34 }
 0x194   : > { %1450 = vmatpush.msra.mxu1 %v1417_v35  ;;  %1269 = vmatpush.msrb.mxu0 %v1179_v36  ;;  %v1366_v35 = vld [vmem:[#allocation2 + $0x838] sm:$0xff]  ;;  %v1364_v36 = vld [vmem:[#allocation2 + $0x828] sm:$0xff] }
 0x195   : > { %1468 = vmatpush.msra.mxu2 %v1390_v18  ;;  %v6273_v18 = vld.sshfl [vmem:[#allocation1] sm:$0xff pattern:$0x75316420] }
 0x196   : > { %1451 = vmatpush.msra.mxu1 %v1415_v0  ;;  %1270 = vmatpush.msrb.mxu0 %v1177_v37 }
 0x197   : > { %1469 = vmatpush.msra.mxu2 %v1388_v21  ;;  %v6275_v21 = vld.sshfl [vmem:[#allocation1 + $0x8] sm:$0xff pattern:$0x75316420] }
 0x198   : > { %1452 = vmatpush.msra.mxu1 %v1413_v38  ;;  %1271 = vmatpush.msrb.mxu0 %v1175_v39  ;;  %v1362_v38 = vld [vmem:[#allocation2 + $0x818] sm:$0xff]  ;;  %1829 = vst [vmem:[#allocation1] ss:$2 sm:$0xff] %v6184_v42 }
 0x199   : > { %1470 = vmatpush.msra.mxu2 %v1386_v22  ;;  %v1622_v22 = vld [vmem:[#allocation2 + $0xbe0] sm:$0xff] }
 0x19a   : > { %1453 = vmatpush.msra.mxu1 %v1411_v40  ;;  %1272 = vmatpush.msrb.mxu0 %v1173_v41  ;;  %v1360_v40 = vld [vmem:[#allocation2 + $0x808] sm:$0xff]  ;;  %v1422_v41 = vld [vmem:[#allocation2 + $0x9f8] sm:$0xff] }
 0x19b   : > { %1471 = vmatpush.msra.mxu2 %v1384_v23  ;;  %v1620_v23 = vld [vmem:[#allocation2 + $0xbd0] sm:$0xff] }
 0x19c   : > { %1454 = vmatpush.msra.mxu1 %v1409_v43  ;;  %1273 = vmatpush.msrb.mxu0 %v1171_v44  ;;  %v1592_v43 = vld [vmem:[#allocation2 + $0xaf0] sm:$0xff]  ;;  %v1420_v44 = vld [vmem:[#allocation2 + $0x9e8] sm:$0xff] }
 0x19d   : > { %1472 = vmatpush.msra.mxu2 %v1382_v24  ;;  %v1618_v24 = vld [vmem:[#allocation2 + $0xbc0] sm:$0xff] }
 0x19e   : > { %1455 = vmatpush.msra.mxu1 %v1407_v45  ;;  %1274 = vmatpush.msrb.mxu0 %v1169_v46  ;;  %v1590_v45 = vld [vmem:[#allocation2 + $0xae0] sm:$0xff]  ;;  %v1418_v46 = vld [vmem:[#allocation2 + $0x9d8] sm:$0xff] }
 0x19f   : > { %1473 = vmatpush.msra.mxu2 %v1380_v25  ;;  %v1616_v25 = vld [vmem:[#allocation2 + $0xbb0] sm:$0xff] }
 0x1a0   : > { %1456 = vmatpush.msra.mxu1 %v1405_v47  ;;  %1275 = vmatpush.msrb.mxu0 %v1167_v48  ;;  %v1588_v47 = vld [vmem:[#allocation2 + $0xad0] sm:$0xff]  ;;  %v1416_v48 = vld [vmem:[#allocation2 + $0x9c8] sm:$0xff] }
 0x1a1   : > { %1474 = vmatpush.msra.mxu2 %v1378_v26  ;;  %v1614_v26 = vld [vmem:[#allocation2 + $0xba0] sm:$0xff] }
 0x1a2   : > { %1457 = vmatpush.msra.mxu1 %v1403_v49  ;;  %1276 = vmatpush.msrb.mxu0 %v1165_v50  ;;  %v1586_v49 = vld [vmem:[#allocation2 + $0xac0] sm:$0xff]  ;;  %v1414_v50 = vld [vmem:[#allocation2 + $0x9b8] sm:$0xff] }
 0x1a3   : > { %1475 = vmatpush.msra.mxu2 %v1376_v27  ;;  %v1612_v27 = vld [vmem:[#allocation2 + $0xb90] sm:$0xff] }
 0x1a4   : > { %1458 = vmatpush.msra.mxu1 %v1401_v51  ;;  %1277 = vmatpush.msrb.mxu0 %v1163_v52  ;;  %v1584_v51 = vld [vmem:[#allocation2 + $0xab0] sm:$0xff]  ;;  %v1412_v52 = vld [vmem:[#allocation2 + $0x9a8] sm:$0xff] }
 0x1a5   : > { %1476 = vmatpush.msra.mxu2 %v1374_v28  ;;  %v1608_v28 = vld [vmem:[#allocation2 + $0xb70] sm:$0xff] }
 0x1a6   : > { %1459 = vmatpush.msra.mxu1 %v1399_v53  ;;  %1278 = vmatpush.msrb.mxu0 %v1161_v54  ;;  %v1410_v53 = vld [vmem:[#allocation2 + $0x998] sm:$0xff]  ;;  %v1580_v54 = vld [vmem:[#allocation2 + $0xa90] sm:$0xff] }
 0x1a7   : > { %1477 = vmatpush.msra.mxu2 %v1372_v29  ;;  %v1606_v29 = vld [vmem:[#allocation2 + $0xb60] sm:$0xff] }
 0x1a8   : > { %1460 = vmatpush.msra.mxu1 %v1397_v55  ;;  %1279 = vmatpush.msrb.mxu0 %v1159_v56  ;;  %v1408_v55 = vld [vmem:[#allocation2 + $0x988] sm:$0xff]  ;;  %v1578_v56 = vld [vmem:[#allocation2 + $0xa80] sm:$0xff] }
 0x1a9   : > { %1478 = vmatpush.msra.mxu2 %v1370_v31  ;;  %v1604_v31 = vld [vmem:[#allocation2 + $0xb50] sm:$0xff] }
 0x1aa   : > { %1461 = vmatpush.msra.mxu1 %v1395_v57  ;;  %1280 = vmatpush.msrb.mxu0 %v1157_v58  ;;  %v1406_v57 = vld [vmem:[#allocation2 + $0x978] sm:$0xff]  ;;  %v1576_v58 = vld [vmem:[#allocation2 + $0xa70] sm:$0xff] }
 0x1ab   : > { %1281 = vmatmul.f32.vlgmr.msrb.gmra.mxu0 %v6213_v63  ;;  %v1373_v63 = vld [vmem:[#allocation2 + $0x870] sm:$0xff]  ;;  %1479 = vmatpush.msra.mxu2 %v1368_v33  ;;  %v1602_v33 = vld [vmem:[#allocation2 + $0xb40] sm:$0xff] }
 0x1ac   : > { %1462 = vmatpush.msra.mxu1 %v1393_v59  ;;  %1428 = vmatpush.msra.mxu0 %v1389_v62  ;;  %v1404_v59 = vld [vmem:[#allocation2 + $0x968] sm:$0xff]  ;;  %v1574_v62 = vld [vmem:[#allocation2 + $0xa60] sm:$0xff] }
 0x1ad   : > { %1480 = vmatpush.msra.mxu2 %v1366_v35  ;;  %v1600_v35 = vld [vmem:[#allocation2 + $0xb30] sm:$0xff] }
 0x1ae   : > { %1463 = vmatpush.msra.mxu1 %v1391_v1  ;;  %1429 = vmatpush.msra.mxu0 %v1387_v4  ;;  %v1402_v1 = vld [vmem:[#allocation2 + $0x958] sm:$0xff]  ;;  %v1400_v4 = vld [vmem:[#allocation2 + $0x948] sm:$0xff] }
 0x1af   : > { %1464 = vmatmul.f32.vlgmr.msra.gmra.mxu1 %v6253_v3  ;;  %1481 = vmatpush.msra.mxu2 %v1364_v36  ;;  %v1598_v36 = vld [vmem:[#allocation2 + $0xb20] sm:$0xff] }
 0x1b0   : > { %1430 = vmatpush.msra.mxu0 %v1385_v19  ;;  %v1570_v19 = vld [vmem:[#allocation2 + $0xa40] sm:$0xff] }
 0x1b1   : > { %1482 = vmatpush.msra.mxu2 %v1362_v38  ;;  %v1593_v38 = vld [vmem:[#allocation2 + $0xaf8] sm:$0xff] }
 0x1b2   : > { %1431 = vmatpush.msra.mxu0 %v1383_v20  ;;  %v1398_v20 = vld [vmem:[#allocation2 + $0x938] sm:$0xff] }
 0x1b3   : > { %1483 = vmatpush.msra.mxu2 %v1360_v40  ;;  %v1589_v40 = vld [vmem:[#allocation2 + $0xad8] sm:$0xff] }
 0x1b4   : > { %1432 = vmatpush.msra.mxu0 %v1381_v5  ;;  %1484 = vmatmul.f32.vlgmr.msra.gmra.mxu2 %v6251_v2  ;;  %v1568_v5 = vld [vmem:[#allocation2 + $0xa30] sm:$0xff] }
 0x1b5   : > { %1631 = vmatpush.msrb.mxu2 %v1592_v43  ;;  %v1585_v43 = vld [vmem:[#allocation2 + $0xab8] sm:$0xff] }
 0x1b6   : > { %1433 = vmatpush.msra.mxu0 %v1379_v6  ;;  %v1396_v6 = vld [vmem:[#allocation2 + $0x928] sm:$0xff] }
 0x1b7   : > { %1632 = vmatpush.msrb.mxu2 %v1590_v45  ;;  %v1581_v45 = vld [vmem:[#allocation2 + $0xa98] sm:$0xff] }
 0x1b8   : > { %1434 = vmatpush.msra.mxu0 %v1377_v7  ;;  %v1566_v7 = vld [vmem:[#allocation2 + $0xa20] sm:$0xff] }
 0x1b9   : > { %1633 = vmatpush.msrb.mxu2 %v1588_v47  ;;  %v1577_v47 = vld [vmem:[#allocation2 + $0xa78] sm:$0xff] }
 0x1ba   : > { %1435 = vmatpush.msra.mxu0 %v1375_v8 }
 0x1bb   : > { %1634 = vmatpush.msrb.mxu2 %v1586_v49 }
 0x1bc   : > { %1436 = vmatpush.msra.mxu0 %v1373_v63  ;;  %v1394_v63 = vld [vmem:[#allocation2 + $0x918] sm:$0xff] }
 0x1bd   : > { %1635 = vmatpush.msrb.mxu2 %v1584_v51 }
 0x1be   : > { %1437 = vmatpush.msra.mxu0 %v1371_v9  ;;  %v1564_v9 = vld [vmem:[#allocation2 + $0xa10] sm:$0xff] }
 0x1c0   : > { %1438 = vmatpush.msra.mxu0 %v1369_v10 }
 0x1c2   : > { %1439 = vmatpush.msra.mxu0 %v1367_v13  ;;  %v1392_v13 = vld [vmem:[#allocation2 + $0x908] sm:$0xff] }
 0x1c4   : > { %1440 = vmatpush.msra.mxu0 %v1365_v14 }
 0x1c6   : > { %1441 = vmatpush.msra.mxu0 %v1363_v15  ;;  %v6270_v15 = vld [vmem:[%s7087_s3 + $0x20] sm:$0xff] }
 0x1c8   : > { %1442 = vmatpush.msra.mxu0 %v1361_v16  ;;  %v1624_v16 = vld [vmem:[#allocation2 + $0xbf0] sm:$0xff] }
 0x1ca   : > { %1443 = vmatpush.msra.mxu0 %v1359_v17  ;;  %v1562_v17 = vld [vmem:[#allocation2 + $0xa00] sm:$0xff] }
 0x1cb   : > { %1444 = vmatmul.f32.vlgmr.msra.gmra.mxu0 %v6251_v2  ;;  %v1572_v2 = vld [vmem:[#allocation2 + $0xa50] sm:$0xff] }
 0x1ec   : > { %v6259_v30 = vpop.f32.mrf.mxu1 }
 0x208   : > { %v6261_v32 = vpop.f32.mrf.mxu0 }
 0x20c   : > { %v1302_v0 = vpop.f32.mrf.mxu1 }
 0x216   : > { %v6283_v49 = vpop.f32.mrf.mxu2 }
 0x228   : > { %v1282_v37 = vpop.f32.mrf.mxu0 }
 0x229   : > { %v1303_v39 = vadd.f32 %v1302_v0, %v1282_v37  ;;  %v1596_v0 = vld [vmem:[#allocation2 + $0xb10] sm:$0xff]  ;;  %v1594_v37 = vld [vmem:[#allocation2 + $0xb00] sm:$0xff] }
 0x22b   : > { %5107 = vmatpush.msk.msrb.mxu3 %vm856_vm0, %v1303_v39  ;;  %v1591_v39 = vld [vmem:[#allocation2 + $0xae8] sm:$0xff] }
 0x22c   : > { %5108 = vmatmul.msk.f32.vlgmr.msrb.gmra.mxu3 %vm852_vm1, %v6246_v34  ;;  %v1582_v34 = vld [vmem:[#allocation2 + $0xaa0] sm:$0xff]  ;;  %v1465_v8 = vpop.f32.mrf.mxu1 }
 0x22d   : > { %1488 = vmatpush.msra.mxu3 %v1422_v41  ;;  %1636 = vmatpush.msrb.mxu2 %v1582_v34  ;;  %v1587_v41 = vld [vmem:[#allocation2 + $0xac8] sm:$0xff]  ;;  %v1569_v34 = vld [vmem:[#allocation2 + $0xa38] sm:$0xff] }
 0x22f   : > { %1489 = vmatpush.msra.mxu3 %v1420_v44  ;;  %1637 = vmatpush.msrb.mxu2 %v1580_v54  ;;  %v1583_v44 = vld [vmem:[#allocation2 + $0xaa8] sm:$0xff] }
 0x231   : > { %1490 = vmatpush.msra.mxu3 %v1418_v46  ;;  %1638 = vmatpush.msrb.mxu2 %v1578_v56  ;;  %v1579_v46 = vld [vmem:[#allocation2 + $0xa88] sm:$0xff]  ;;  %v1565_v56 = vld [vmem:[#allocation2 + $0xa18] sm:$0xff] }
 0x233   : > { %1491 = vmatpush.msra.mxu3 %v1416_v48  ;;  %1639 = vmatpush.msrb.mxu2 %v1576_v58  ;;  %v1575_v48 = vld [vmem:[#allocation2 + $0xa68] sm:$0xff] }
 0x234   : > { %v1563_v58 = vld [vmem:[#allocation2 + $0xa08] sm:$0xff] }
 0x235   : > { %1492 = vmatpush.msra.mxu3 %v1414_v50  ;;  %1640 = vmatpush.msrb.mxu2 %v1574_v62  ;;  %v1573_v50 = vld [vmem:[#allocation2 + $0xa58] sm:$0xff]  ;;  %v1795_v62 = vld [vmem:[#allocation2 + $0xcf0] sm:$0xff] }
 0x237   : > { %1493 = vmatpush.msra.mxu3 %v1412_v52  ;;  %1641 = vmatpush.msrb.mxu2 %v1572_v2  ;;  %v1571_v52 = vld [vmem:[#allocation2 + $0xa48] sm:$0xff]  ;;  %v1485_v54 = vpop.f32.mrf.mxu2  ;;  %v1793_v2 = vld [vmem:[#allocation2 + $0xce0] sm:$0xff] }
 0x239   : > { %1494 = vmatpush.msra.mxu3 %v1410_v53  ;;  %1642 = vmatpush.msrb.mxu2 %v1570_v19  ;;  %v1567_v53 = vld [vmem:[#allocation2 + $0xa28] sm:$0xff]  ;;  %v1791_v19 = vld [vmem:[#allocation2 + $0xcd0] sm:$0xff] }
 0x23b   : > { %1495 = vmatpush.msra.mxu3 %v1408_v55  ;;  %1643 = vmatpush.msrb.mxu2 %v1568_v5  ;;  %v1789_v5 = vld [vmem:[#allocation2 + $0xcc0] sm:$0xff] }
 0x23d   : > { %1496 = vmatpush.msra.mxu3 %v1406_v57  ;;  %1644 = vmatpush.msrb.mxu2 %v1566_v7  ;;  %v1787_v7 = vld [vmem:[#allocation2 + $0xcb0] sm:$0xff] }
 0x23f   : > { %1497 = vmatpush.msra.mxu3 %v1404_v59  ;;  %1645 = vmatpush.msrb.mxu2 %v1564_v9  ;;  %v1625_v59 = vld [vmem:[#allocation2 + $0xbf8] sm:$0xff] }
 0x240   : > { %v1613_v9 = vld [vmem:[#allocation2 + $0xb98] sm:$0xff] }
 0x241   : > { %1498 = vmatpush.msra.mxu3 %v1402_v1  ;;  %1646 = vmatpush.msrb.mxu2 %v1562_v17  ;;  %v1623_v1 = vld [vmem:[#allocation2 + $0xbe8] sm:$0xff] }
 0x242   : > { %1647 = vmatmul.f32.vlgmr.msrb.gmra.mxu2 %v6273_v18  ;;  %v1607_v17 = vld [vmem:[#allocation2 + $0xb68] sm:$0xff] }
 0x243   : > { %1499 = vmatpush.msra.mxu3 %v1400_v4  ;;  %v1621_v4 = vld [vmem:[#allocation2 + $0xbd8] sm:$0xff] }
 0x245   : > { %1500 = vmatpush.msra.mxu3 %v1398_v20  ;;  %v1619_v20 = vld [vmem:[#allocation2 + $0xbc8] sm:$0xff] }
 0x247   : > { %1501 = vmatpush.msra.mxu3 %v1396_v6  ;;  %v1617_v6 = vld [vmem:[#allocation2 + $0xbb8] sm:$0xff] }
 0x248   : > { %v1445_v10 = vpop.f32.mrf.mxu0 }
 0x249   : > { %v1466_v14 = vadd.f32 %v1465_v8, %v1445_v10  ;;  %1502 = vmatpush.msra.mxu3 %v1394_v63  ;;  %v1615_v8 = vld [vmem:[#allocation2 + $0xba8] sm:$0xff]  ;;  %v1785_v63 = vld [vmem:[#allocation2 + $0xca0] sm:$0xff]  ;;  %v1783_v10 = vld [vmem:[#allocation2 + $0xc90] sm:$0xff] }
 0x24b   : > { %1503 = vmatpush.msra.mxu3 %v1392_v13  ;;  %5110 = vmatpush.msk.msrb.mxu0 %vm856_vm0, %v1466_v14  ;;  %v1611_v13 = vld [vmem:[#allocation2 + $0xb88] sm:$0xff]  ;;  %v1781_v14 = vld [vmem:[#allocation2 + $0xc80] sm:$0xff] }
 0x24c   : > { %1504 = vmatmul.f32.vlgmr.msra.gmra.mxu3 %v6253_v3  ;;  %5111 = vmatmul.msk.f32.vlgmr.msrb.gmra.mxu0 %vm852_vm1, %v6270_v15  ;;  %v1610_v3 = vld [vmem:[#allocation2 + $0xb80] sm:$0xff] }
 0x24d   : > { %1651 = vmatpush.msrb.mxu3 %v1624_v16  ;;  %1671 = vmatpush.msra.mxu0 %v1593_v38  ;;  %v1779_v16 = vld [vmem:[#allocation2 + $0xc70] sm:$0xff] }
 0x24e   : > { %v1827_v38 = vld [vmem:[#allocation2 + $0xdf0] sm:$0xff] }
 0x24f   : > { %1652 = vmatpush.msrb.mxu3 %v1622_v22  ;;  %1672 = vmatpush.msra.mxu0 %v1591_v39  ;;  %v1605_v22 = vld [vmem:[#allocation2 + $0xb58] sm:$0xff]  ;;  %v1765_v39 = vld [vmem:[#allocation2 + $0xc00] sm:$0xff] }
 0x251   : > { %1653 = vmatpush.msrb.mxu3 %v1620_v23  ;;  %1673 = vmatpush.msra.mxu0 %v1589_v40  ;;  %v1775_v23 = vld [vmem:[#allocation2 + $0xc50] sm:$0xff]  ;;  %v6297_v40 = vld.sshfl [vmem:[#allocation1] sm:$0xff pattern:$0x75316420] }
 0x253   : > { %1654 = vmatpush.msrb.mxu3 %v1618_v24  ;;  %1674 = vmatpush.msra.mxu0 %v1587_v41  ;;  %v1603_v24 = vld [vmem:[#allocation2 + $0xb48] sm:$0xff]  ;;  %v6299_v41 = vld.sshfl [vmem:[#allocation1 + $0x8] sm:$0xff pattern:$0x75316420] }
 0x254   : > { %2032 = vst [vmem:[#allocation1] ss:$2 sm:$0xff] %v6184_v42 }
 0x255   : > { %1655 = vmatpush.msrb.mxu3 %v1616_v25  ;;  %1675 = vmatpush.msra.mxu0 %v1585_v43  ;;  %v1773_v25 = vld [vmem:[#allocation2 + $0xc40] sm:$0xff] }
 0x256   : > { %v1825_v43 = vld [vmem:[#allocation2 + $0xde0] sm:$0xff] }
 0x257   : > { %1656 = vmatpush.msrb.mxu3 %v1614_v26  ;;  %1676 = vmatpush.msra.mxu0 %v1583_v44  ;;  %v1601_v26 = vld [vmem:[#allocation2 + $0xb38] sm:$0xff]  ;;  %v1823_v44 = vld [vmem:[#allocation2 + $0xdd0] sm:$0xff] }
 0x259   : > { %1657 = vmatpush.msrb.mxu3 %v1612_v27  ;;  %1677 = vmatpush.msra.mxu0 %v1581_v45  ;;  %v1771_v27 = vld [vmem:[#allocation2 + $0xc30] sm:$0xff]  ;;  %v1821_v45 = vld [vmem:[#allocation2 + $0xdc0] sm:$0xff] }
 0x25b   : > { %1658 = vmatpush.msrb.mxu3 %v1610_v3  ;;  %1678 = vmatpush.msra.mxu0 %v1579_v46  ;;  %v1599_v3 = vld [vmem:[#allocation2 + $0xb28] sm:$0xff]  ;;  %v1819_v46 = vld [vmem:[#allocation2 + $0xdb0] sm:$0xff] }
 0x25d   : > { %1659 = vmatpush.msrb.mxu3 %v1608_v28  ;;  %1679 = vmatpush.msra.mxu0 %v1577_v47  ;;  %v1769_v28 = vld [vmem:[#allocation2 + $0xc20] sm:$0xff] }
 0x25e   : > { %v1817_v47 = vld [vmem:[#allocation2 + $0xda0] sm:$0xff] }
 0x25f   : > { %1660 = vmatpush.msrb.mxu3 %v1606_v29  ;;  %1680 = vmatpush.msra.mxu0 %v1575_v48  ;;  %v1815_v48 = vld [vmem:[#allocation2 + $0xd90] sm:$0xff] }
 0x261   : > { %1661 = vmatpush.msrb.mxu3 %v1604_v31  ;;  %1681 = vmatpush.msra.mxu0 %v1573_v50  ;;  %v1597_v31 = vld [vmem:[#allocation2 + $0xb18] sm:$0xff]  ;;  %v1811_v50 = vld [vmem:[#allocation2 + $0xd70] sm:$0xff] }
 0x263   : > { %1662 = vmatpush.msrb.mxu3 %v1602_v33  ;;  %1682 = vmatpush.msra.mxu0 %v1571_v52  ;;  %v1767_v33 = vld [vmem:[#allocation2 + $0xc10] sm:$0xff]  ;;  %v1809_v52 = vld [vmem:[#allocation2 + $0xd60] sm:$0xff] }
 0x265   : > { %1663 = vmatpush.msrb.mxu3 %v1600_v35  ;;  %1683 = vmatpush.msra.mxu0 %v1569_v34  ;;  %v1807_v34 = vld [vmem:[#allocation2 + $0xd50] sm:$0xff] }
 0x267   : > { %1664 = vmatpush.msrb.mxu3 %v1598_v36  ;;  %1684 = vmatpush.msra.mxu0 %v1567_v53  ;;  %v1595_v36 = vld [vmem:[#allocation2 + $0xb08] sm:$0xff]  ;;  %v1805_v53 = vld [vmem:[#allocation2 + $0xd40] sm:$0xff] }
 0x269   : > { %1665 = vmatpush.msrb.mxu3 %v1596_v0  ;;  %1685 = vmatpush.msra.mxu0 %v1565_v56  ;;  %v1799_v56 = vld [vmem:[#allocation2 + $0xd10] sm:$0xff] }
 0x26b   : > { %1666 = vmatpush.msrb.mxu3 %v1594_v37  ;;  %1686 = vmatpush.msra.mxu0 %v1563_v58  ;;  %v6294_v37 = vld [vmem:[%s7087_s3 + $0x28] sm:$0xff]  ;;  %v1796_v58 = vld [vmem:[#allocation2 + $0xcf8] sm:$0xff] }
 0x26c   : > { %1667 = vmatmul.f32.vlgmr.msrb.gmra.mxu3 %v6275_v21  ;;  %1687 = vmatmul.f32.vlgmr.msra.gmra.mxu0 %v6273_v18  ;;  %v1777_v18 = vld [vmem:[#allocation2 + $0xc60] sm:$0xff] }
 0x26d   : > { %1834 = vmatpush.msrb.mxu0 %v1795_v62  ;;  %v1792_v62 = vld [vmem:[#allocation2 + $0xcd8] sm:$0xff] }
 0x26f   : > { %1835 = vmatpush.msrb.mxu0 %v1793_v2  ;;  %v1788_v2 = vld [vmem:[#allocation2 + $0xcb8] sm:$0xff] }
 0x271   : > { %1836 = vmatpush.msrb.mxu0 %v1791_v19  ;;  %v1784_v19 = vld [vmem:[#allocation2 + $0xc98] sm:$0xff] }
 0x273   : > { %1837 = vmatpush.msrb.mxu0 %v1789_v5  ;;  %v1780_v5 = vld [vmem:[#allocation2 + $0xc78] sm:$0xff] }
 0x275   : > { %1838 = vmatpush.msrb.mxu0 %v1787_v7 }
 0x277   : > { %1839 = vmatpush.msrb.mxu0 %v1785_v63 }
 0x279   : > { %1840 = vmatpush.msrb.mxu0 %v1783_v10  ;;  %v1772_v10 = vld [vmem:[#allocation2 + $0xc38] sm:$0xff] }
 0x27b   : > { %1841 = vmatpush.msrb.mxu0 %v1781_v14 }
 0x27d   : > { %1842 = vmatpush.msrb.mxu0 %v1779_v16  ;;  %v1768_v16 = vld [vmem:[#allocation2 + $0xc18] sm:$0xff] }
 0x27f   : > { %1843 = vmatpush.msrb.mxu0 %v1777_v18  ;;  %v1766_v18 = vld [vmem:[#allocation2 + $0xc08] sm:$0xff] }
 0x281   : > { %1844 = vmatpush.msrb.mxu0 %v1775_v23  ;;  %v1998_v23 = vld [vmem:[#allocation2 + $0xef0] sm:$0xff] }
 0x283   : > { %1845 = vmatpush.msrb.mxu0 %v1773_v25  ;;  %v1996_v25 = vld [vmem:[#allocation2 + $0xee0] sm:$0xff] }
 0x285   : > { %1846 = vmatpush.msrb.mxu0 %v1771_v27  ;;  %v1994_v27 = vld [vmem:[#allocation2 + $0xed0] sm:$0xff] }
 0x287   : > { %1847 = vmatpush.msrb.mxu0 %v1769_v28  ;;  %v1992_v28 = vld [vmem:[#allocation2 + $0xec0] sm:$0xff] }
 0x289   : > { %1848 = vmatpush.msrb.mxu0 %v1767_v33  ;;  %v1818_v33 = vld [vmem:[#allocation2 + $0xda8] sm:$0xff] }
 0x28b   : > { %1849 = vmatpush.msrb.mxu0 %v1765_v39  ;;  %v1812_v39 = vld [vmem:[#allocation2 + $0xd78] sm:$0xff] }
 0x28c   : > { %1850 = vmatmul.f32.vlgmr.msrb.gmra.mxu0 %v6297_v40 }
 0x2af   : > { %v6285_v51 = vpop.f32.mrf.mxu3 }
 0x2c5   : > { %v1648_v29 = vpop.f32.mrf.mxu2 }
 0x2c9   : > { %v6307_v7 = vpop.f32.mrf.mxu0 }
 0x2cf   : > { %v1505_v55 = vpop.f32.mrf.mxu3 }
 0x2d0   : > { %v1506_v57 = vadd.f32 %v1505_v55, %v1485_v54  ;;  %v1803_v54 = vld [vmem:[#allocation2 + $0xd30] sm:$0xff]  ;;  %v1801_v55 = vld [vmem:[#allocation2 + $0xd20] sm:$0xff] }
 0x2d2   : > { %5112 = vmatpush.msk.msrb.mxu1 %vm856_vm0, %v1506_v57  ;;  %v1797_v57 = vld [vmem:[#allocation2 + $0xd00] sm:$0xff] }
 0x2d3   : > { %5113 = vmatmul.msk.f32.vlgmr.msrb.gmra.mxu1 %vm852_vm1, %v6270_v15  ;;  %v1609_v15 = vld [vmem:[#allocation2 + $0xb78] sm:$0xff] }
 0x2d4   : > { %1691 = vmatpush.msra.mxu1 %v1625_v59  ;;  %v1794_v59 = vld [vmem:[#allocation2 + $0xce8] sm:$0xff] }
 0x2d6   : > { %1692 = vmatpush.msra.mxu1 %v1623_v1  ;;  %v1790_v1 = vld [vmem:[#allocation2 + $0xcc8] sm:$0xff] }
 0x2d8   : > { %1693 = vmatpush.msra.mxu1 %v1621_v4  ;;  %v1786_v4 = vld [vmem:[#allocation2 + $0xca8] sm:$0xff] }
 0x2da   : > { %1694 = vmatpush.msra.mxu1 %v1619_v20  ;;  %v1782_v20 = vld [vmem:[#allocation2 + $0xc88] sm:$0xff] }
 0x2dc   : > { %1695 = vmatpush.msra.mxu1 %v1617_v6  ;;  %v1778_v6 = vld [vmem:[#allocation2 + $0xc68] sm:$0xff] }
 0x2de   : > { %1696 = vmatpush.msra.mxu1 %v1615_v8  ;;  %v1776_v8 = vld [vmem:[#allocation2 + $0xc58] sm:$0xff] }
 0x2e0   : > { %1697 = vmatpush.msra.mxu1 %v1613_v9  ;;  %v1774_v9 = vld [vmem:[#allocation2 + $0xc48] sm:$0xff] }
 0x2e2   : > { %1698 = vmatpush.msra.mxu1 %v1611_v13  ;;  %v1770_v13 = vld [vmem:[#allocation2 + $0xc28] sm:$0xff] }
 0x2e4   : > { %1699 = vmatpush.msra.mxu1 %v1609_v15 }
 0x2e6   : > { %1700 = vmatpush.msra.mxu1 %v1607_v17 }
 0x2e8   : > { %1701 = vmatpush.msra.mxu1 %v1605_v22  ;;  %v1828_v22 = vld [vmem:[#allocation2 + $0xdf8] sm:$0xff] }
 0x2e9   : > { %v1688_v14 = vpop.f32.mrf.mxu0 }
 0x2ea   : > { %1702 = vmatpush.msra.mxu1 %v1603_v24  ;;  %v1826_v24 = vld [vmem:[#allocation2 + $0xde8] sm:$0xff] }
 0x2ec   : > { %1703 = vmatpush.msra.mxu1 %v1601_v26  ;;  %v1824_v26 = vld [vmem:[#allocation2 + $0xdd8] sm:$0xff] }
 0x2ee   : > { %1704 = vmatpush.msra.mxu1 %v1599_v3  ;;  %v1822_v3 = vld [vmem:[#allocation2 + $0xdc8] sm:$0xff] }
 0x2ef   : > { %v1668_v35 = vpop.f32.mrf.mxu3 }
 0x2f0   : > { %v1669_v0 = vadd.f32 %v1668_v35, %v1648_v29  ;;  %1705 = vmatpush.msra.mxu1 %v1597_v31  ;;  %v1820_v29 = vld [vmem:[#allocation2 + $0xdb8] sm:$0xff]  ;;  %v1990_v31 = vld [vmem:[#allocation2 + $0xeb0] sm:$0xff]  ;;  %v1988_v35 = vld [vmem:[#allocation2 + $0xea0] sm:$0xff] }
 0x2f2   : > { %1706 = vmatpush.msra.mxu1 %v1595_v36  ;;  %5115 = vmatpush.msk.msra.mxu2 %vm856_vm0, %v1669_v0  ;;  %v1816_v36 = vld [vmem:[#allocation2 + $0xd98] sm:$0xff]  ;;  %v1986_v0 = vld [vmem:[#allocation2 + $0xe90] sm:$0xff] }
 0x2f3   : > { %1707 = vmatmul.f32.vlgmr.msra.gmra.mxu1 %v6275_v21  ;;  %5116 = vmatmul.msk.f32.vlgmr.msra.gmra.mxu2 %vm852_vm1, %v6294_v37  ;;  %v1813_v21 = vld [vmem:[#allocation2 + $0xd80] sm:$0xff] }
 0x2f4   : > { %1854 = vmatpush.msrb.mxu1 %v1827_v38  ;;  %1874 = vmatpush.msrb.mxu2 %v1796_v58  ;;  %v1984_v38 = vld [vmem:[#allocation2 + $0xe80] sm:$0xff] }
 0x2f6   : > { %1855 = vmatpush.msrb.mxu1 %v1825_v43  ;;  %1875 = vmatpush.msrb.mxu2 %v1794_v59  ;;  %v1810_v43 = vld [vmem:[#allocation2 + $0xd68] sm:$0xff] }
 0x2f7   : > { %v6318_v59 = vld [vmem:[%s7087_s3 + $0x30] sm:$0xff] }
 0x2f8   : > { %1856 = vmatpush.msrb.mxu1 %v1823_v44  ;;  %1876 = vmatpush.msrb.mxu2 %v1792_v62  ;;  %v1980_v44 = vld [vmem:[#allocation2 + $0xe60] sm:$0xff]  ;;  %v2030_v62 = vld [vmem:[#allocation2 + $0xff0] sm:$0xff] }
 0x2fa   : > { %1857 = vmatpush.msrb.mxu1 %v1821_v45  ;;  %1877 = vmatpush.msrb.mxu2 %v1790_v1  ;;  %v1808_v45 = vld [vmem:[#allocation2 + $0xd58] sm:$0xff]  ;;  %v1968_v1 = vld [vmem:[#allocation2 + $0xe00] sm:$0xff] }
 0x2fc   : > { %1858 = vmatpush.msrb.mxu1 %v1819_v46  ;;  %1878 = vmatpush.msrb.mxu2 %v1788_v2  ;;  %v1978_v46 = vld [vmem:[#allocation2 + $0xe50] sm:$0xff]  ;;  %v6321_v2 = vld.sshfl [vmem:[#allocation1] sm:$0xff pattern:$0x75316420] }
 0x2fe   : > { %1859 = vmatpush.msrb.mxu1 %v1817_v47  ;;  %1879 = vmatpush.msrb.mxu2 %v1786_v4  ;;  %v1806_v47 = vld [vmem:[#allocation2 + $0xd48] sm:$0xff]  ;;  %v6323_v4 = vld.sshfl [vmem:[#allocation1 + $0x8] sm:$0xff pattern:$0x75316420] }
 0x2ff   : > { %2235 = vst [vmem:[#allocation1] ss:$2 sm:$0xff] %v6184_v42  ;;  %v2010_v42 = vld [vmem:[#allocation2 + $0xf50] sm:$0xff] }
 0x300   : > { %1860 = vmatpush.msrb.mxu1 %v1815_v48  ;;  %1880 = vmatpush.msrb.mxu2 %v1784_v19  ;;  %v1976_v48 = vld [vmem:[#allocation2 + $0xe40] sm:$0xff] }
 0x301   : > { %v2028_v19 = vld [vmem:[#allocation2 + $0xfe0] sm:$0xff] }
 0x302   : > { %1861 = vmatpush.msrb.mxu1 %v1813_v21  ;;  %1881 = vmatpush.msrb.mxu2 %v1782_v20  ;;  %v1804_v21 = vld [vmem:[#allocation2 + $0xd38] sm:$0xff]  ;;  %v2026_v20 = vld [vmem:[#allocation2 + $0xfd0] sm:$0xff] }
 0x304   : > { %1862 = vmatpush.msrb.mxu1 %v1811_v50  ;;  %1882 = vmatpush.msrb.mxu2 %v1780_v5  ;;  %v1974_v50 = vld [vmem:[#allocation2 + $0xe30] sm:$0xff]  ;;  %v2024_v5 = vld [vmem:[#allocation2 + $0xfc0] sm:$0xff] }
 0x306   : > { %1863 = vmatpush.msrb.mxu1 %v1809_v52  ;;  %1883 = vmatpush.msrb.mxu2 %v1778_v6  ;;  %v1802_v52 = vld [vmem:[#allocation2 + $0xd28] sm:$0xff]  ;;  %v2022_v6 = vld [vmem:[#allocation2 + $0xfb0] sm:$0xff] }
 0x308   : > { %1864 = vmatpush.msrb.mxu1 %v1807_v34  ;;  %1884 = vmatpush.msrb.mxu2 %v1776_v8  ;;  %v1972_v34 = vld [vmem:[#allocation2 + $0xe20] sm:$0xff] }
 0x309   : > { %v2020_v8 = vld [vmem:[#allocation2 + $0xfa0] sm:$0xff] }
 0x30a   : > { %1865 = vmatpush.msrb.mxu1 %v1805_v53  ;;  %1885 = vmatpush.msrb.mxu2 %v1774_v9  ;;  %v1851_v53 = vpop.f32.mrf.mxu0  ;;  %v2018_v9 = vld [vmem:[#allocation2 + $0xf90] sm:$0xff] }
 0x30c   : > { %1866 = vmatpush.msrb.mxu1 %v1803_v54  ;;  %1886 = vmatpush.msrb.mxu2 %v1772_v10  ;;  %v1800_v54 = vld [vmem:[#allocation2 + $0xd18] sm:$0xff]  ;;  %v2014_v10 = vld [vmem:[#allocation2 + $0xf70] sm:$0xff] }
 0x30e   : > { %1867 = vmatpush.msrb.mxu1 %v1801_v55  ;;  %1887 = vmatpush.msrb.mxu2 %v1770_v13  ;;  %v1970_v55 = vld [vmem:[#allocation2 + $0xe10] sm:$0xff]  ;;  %v2012_v13 = vld [vmem:[#allocation2 + $0xf60] sm:$0xff] }
 0x310   : > { %1868 = vmatpush.msrb.mxu1 %v1799_v56  ;;  %1888 = vmatpush.msrb.mxu2 %v1768_v16  ;;  %v2004_v16 = vld [vmem:[#allocation2 + $0xf20] sm:$0xff] }
 0x312   : > { %1869 = vmatpush.msrb.mxu1 %v1797_v57  ;;  %1889 = vmatpush.msrb.mxu2 %v1766_v18  ;;  %v1798_v57 = vld [vmem:[#allocation2 + $0xd08] sm:$0xff]  ;;  %v2000_v18 = vld [vmem:[#allocation2 + $0xf00] sm:$0xff] }
 0x313   : > { %1870 = vmatmul.f32.vlgmr.msrb.gmra.mxu1 %v6299_v41  ;;  %1890 = vmatmul.f32.vlgmr.msrb.gmra.mxu2 %v6297_v40  ;;  %v1982_v40 = vld [vmem:[#allocation2 + $0xe70] sm:$0xff] }
 0x314   : > { %2037 = vmatpush.msra.mxu2 %v1998_v23  ;;  %v1997_v23 = vld [vmem:[#allocation2 + $0xee8] sm:$0xff] }
 0x316   : > { %2038 = vmatpush.msra.mxu2 %v1996_v25  ;;  %v1993_v25 = vld [vmem:[#allocation2 + $0xec8] sm:$0xff] }
 0x318   : > { %2039 = vmatpush.msra.mxu2 %v1994_v27  ;;  %v1989_v27 = vld [vmem:[#allocation2 + $0xea8] sm:$0xff] }
 0x31a   : > { %2040 = vmatpush.msra.mxu2 %v1992_v28  ;;  %v1985_v28 = vld [vmem:[#allocation2 + $0xe88] sm:$0xff] }
 0x31c   : > { %2041 = vmatpush.msra.mxu2 %v1990_v31  ;;  %v1981_v31 = vld [vmem:[#allocation2 + $0xe68] sm:$0xff] }
 0x31e   : > { %2042 = vmatpush.msra.mxu2 %v1988_v35  ;;  %v1979_v35 = vld [vmem:[#allocation2 + $0xe58] sm:$0xff] }
 0x320   : > { %2043 = vmatpush.msra.mxu2 %v1986_v0  ;;  %v1977_v0 = vld [vmem:[#allocation2 + $0xe48] sm:$0xff] }
 0x322   : > { %2044 = vmatpush.msra.mxu2 %v1984_v38  ;;  %v1973_v38 = vld [vmem:[#allocation2 + $0xe28] sm:$0xff] }
 0x324   : > { %2045 = vmatpush.msra.mxu2 %v1982_v40 }
 0x326   : > { %2046 = vmatpush.msra.mxu2 %v1980_v44 }
 0x328   : > { %2047 = vmatpush.msra.mxu2 %v1978_v46  ;;  %v2031_v46 = vld [vmem:[#allocation2 + $0xff8] sm:$0xff] }
 0x32a   : > { %2048 = vmatpush.msra.mxu2 %v1976_v48  ;;  %v2029_v48 = vld [vmem:[#allocation2 + $0xfe8] sm:$0xff] }
 0x32c   : > { %2049 = vmatpush.msra.mxu2 %v1974_v50  ;;  %v2027_v50 = vld [vmem:[#allocation2 + $0xfd8] sm:$0xff] }
 0x32e   : > { %2050 = vmatpush.msra.mxu2 %v1972_v34  ;;  %v2025_v34 = vld [vmem:[#allocation2 + $0xfc8] sm:$0xff] }
 0x330   : > { %2051 = vmatpush.msra.mxu2 %v1970_v55  ;;  %v2193_v55 = vld [vmem:[#allocation2 + $0x10b0] sm:$0xff] }
 0x332   : > { %2052 = vmatpush.msra.mxu2 %v1968_v1  ;;  %v2187_v1 = vld [vmem:[#allocation2 + $0x1080] sm:$0xff] }
 0x333   : > { %2053 = vmatmul.f32.vlgmr.msra.gmra.mxu2 %v6321_v2 }
 0x350   : > { %v6309_v63 = vpop.f32.mrf.mxu1 }
 0x370   : > { %v1708_v15 = vpop.f32.mrf.mxu1 }
 0x371   : > { %v1709_v17 = vadd.f32 %v1708_v15, %v1688_v14  ;;  %v2008_v14 = vld [vmem:[#allocation2 + $0xf40] sm:$0xff]  ;;  %v2006_v15 = vld [vmem:[#allocation2 + $0xf30] sm:$0xff] }
 0x373   : > { %5117 = vmatpush.msk.msra.mxu3 %vm856_vm0, %v1709_v17  ;;  %v2002_v17 = vld [vmem:[#allocation2 + $0xf10] sm:$0xff] }
 0x374   : > { %5118 = vmatmul.msk.f32.vlgmr.msra.gmra.mxu3 %vm852_vm1, %v6294_v37  ;;  %v1814_v37 = vld [vmem:[#allocation2 + $0xd88] sm:$0xff] }
 0x375   : > { %1894 = vmatpush.msrb.mxu3 %v1828_v22  ;;  %v1999_v22 = vld [vmem:[#allocation2 + $0xef8] sm:$0xff] }
 0x377   : > { %1895 = vmatpush.msrb.mxu3 %v1826_v24  ;;  %v1995_v24 = vld [vmem:[#allocation2 + $0xed8] sm:$0xff] }
 0x379   : > { %1896 = vmatpush.msrb.mxu3 %v1824_v26  ;;  %v1991_v26 = vld [vmem:[#allocation2 + $0xeb8] sm:$0xff] }
 0x37b   : > { %1897 = vmatpush.msrb.mxu3 %v1822_v3  ;;  %v1987_v3 = vld [vmem:[#allocation2 + $0xe98] sm:$0xff] }
 0x37d   : > { %1898 = vmatpush.msrb.mxu3 %v1820_v29  ;;  %v1983_v29 = vld [vmem:[#allocation2 + $0xe78] sm:$0xff] }
 0x37f   : > { %1899 = vmatpush.msrb.mxu3 %v1818_v33  ;;  %v6331_v33 = vpop.f32.mrf.mxu2 }
 0x381   : > { %1900 = vmatpush.msrb.mxu3 %v1816_v36 }
 0x383   : > { %1901 = vmatpush.msrb.mxu3 %v1814_v37  ;;  %v1975_v37 = vld [vmem:[#allocation2 + $0xe38] sm:$0xff] }
 0x385   : > { %1902 = vmatpush.msrb.mxu3 %v1812_v39 }
 0x387   : > { %1903 = vmatpush.msrb.mxu3 %v1810_v43  ;;  %v1971_v43 = vld [vmem:[#allocation2 + $0xe18] sm:$0xff] }
 0x389   : > { %1904 = vmatpush.msrb.mxu3 %v1808_v45  ;;  %v1969_v45 = vld [vmem:[#allocation2 + $0xe08] sm:$0xff] }
 0x38b   : > { %1905 = vmatpush.msrb.mxu3 %v1806_v47  ;;  %v2201_v47 = vld [vmem:[#allocation2 + $0x10f0] sm:$0xff] }
 0x38d   : > { %1906 = vmatpush.msrb.mxu3 %v1804_v21  ;;  %v2199_v21 = vld [vmem:[#allocation2 + $0x10e0] sm:$0xff] }
 0x38f   : > { %1907 = vmatpush.msrb.mxu3 %v1802_v52  ;;  %v2197_v52 = vld [vmem:[#allocation2 + $0x10d0] sm:$0xff] }
 0x390   : > { %v1871_v56 = vpop.f32.mrf.mxu1 }
 0x391   : > { %v1872_v58 = vadd.f32 %v1871_v56, %v1851_v53  ;;  %1908 = vmatpush.msrb.mxu3 %v1800_v54  ;;  %v2195_v53 = vld [vmem:[#allocation2 + $0x10c0] sm:$0xff]  ;;  %v2023_v54 = vld [vmem:[#allocation2 + $0xfb8] sm:$0xff]  ;;  %v2021_v56 = vld [vmem:[#allocation2 + $0xfa8] sm:$0xff] }
 0x393   : > { %1909 = vmatpush.msrb.mxu3 %v1798_v57  ;;  %5120 = vmatpush.msk.msra.mxu0 %vm856_vm0, %v1872_v58  ;;  %v2191_v57 = vld [vmem:[#allocation2 + $0x10a0] sm:$0xff]  ;;  %v2019_v58 = vld [vmem:[#allocation2 + $0xf98] sm:$0xff] }
 0x394   : > { %1910 = vmatmul.f32.vlgmr.msrb.gmra.mxu3 %v6299_v41  ;;  %5121 = vmatmul.msk.f32.vlgmr.msra.gmra.mxu0 %vm852_vm1, %v6318_v59  ;;  %v2016_v41 = vld [vmem:[#allocation2 + $0xf80] sm:$0xff] }
 0x395   : > { %2057 = vmatpush.msra.mxu3 %v2030_v62  ;;  %2077 = vmatpush.msrb.mxu0 %v1999_v22  ;;  %v2017_v62 = vld [vmem:[#allocation2 + $0xf88] sm:$0xff] }
 0x396   : > { %v1891_v39 = vpop.f32.mrf.mxu2  ;;  %v2001_v22 = vld [vmem:[#allocation2 + $0xf08] sm:$0xff] }
 0x397   : > { %2058 = vmatpush.msra.mxu3 %v2028_v19  ;;  %2078 = vmatpush.msrb.mxu0 %v1997_v23  ;;  %v2185_v19 = vld [vmem:[#allocation2 + $0x1070] sm:$0xff] }
 0x399   : > { %2059 = vmatpush.msra.mxu3 %v2026_v20  ;;  %2079 = vmatpush.msrb.mxu0 %v1995_v24  ;;  %v2013_v20 = vld [vmem:[#allocation2 + $0xf68] sm:$0xff]  ;;  %v6342_v24 = vld [vmem:[%s7087_s3 + $0x38] sm:$0xff] }
 0x39b   : > { %2060 = vmatpush.msra.mxu3 %v2024_v5  ;;  %2080 = vmatpush.msrb.mxu0 %v1993_v25  ;;  %v2183_v5 = vld [vmem:[#allocation2 + $0x1060] sm:$0xff]  ;;  %v2233_v25 = vld [vmem:[#allocation2 + $0x11f0] sm:$0xff] }
 0x39d   : > { %2061 = vmatpush.msra.mxu3 %v2022_v6  ;;  %2081 = vmatpush.msrb.mxu0 %v1991_v26  ;;  %v2011_v6 = vld [vmem:[#allocation2 + $0xf58] sm:$0xff]  ;;  %v2171_v26 = vld [vmem:[#allocation2 + $0x1000] sm:$0xff] }
 0x39f   : > { %2062 = vmatpush.msra.mxu3 %v2020_v8  ;;  %2082 = vmatpush.msrb.mxu0 %v1989_v27  ;;  %v2181_v8 = vld [vmem:[#allocation2 + $0x1050] sm:$0xff]  ;;  %v6345_v27 = vld.sshfl [vmem:[#allocation1] sm:$0xff pattern:$0x75316420] }
 0x3a1   : > { %2063 = vmatpush.msra.mxu3 %v2018_v9  ;;  %2083 = vmatpush.msrb.mxu0 %v1987_v3  ;;  %v2009_v9 = vld [vmem:[#allocation2 + $0xf48] sm:$0xff]  ;;  %v2231_v3 = vld [vmem:[#allocation2 + $0x11e0] sm:$0xff] }
 0x3a3   : > { %2064 = vmatpush.msra.mxu3 %v2016_v41  ;;  %2084 = vmatpush.msrb.mxu0 %v1985_v28  ;;  %v2179_v41 = vld [vmem:[#allocation2 + $0x1040] sm:$0xff]  ;;  %v2229_v28 = vld [vmem:[#allocation2 + $0x11d0] sm:$0xff] }
 0x3a5   : > { %2065 = vmatpush.msra.mxu3 %v2014_v10  ;;  %2085 = vmatpush.msrb.mxu0 %v1983_v29  ;;  %v2007_v10 = vld [vmem:[#allocation2 + $0xf38] sm:$0xff]  ;;  %v2227_v29 = vld [vmem:[#allocation2 + $0x11c0] sm:$0xff] }
 0x3a7   : > { %2066 = vmatpush.msra.mxu3 %v2012_v13  ;;  %2086 = vmatpush.msrb.mxu0 %v1981_v31  ;;  %v2177_v13 = vld [vmem:[#allocation2 + $0x1030] sm:$0xff] }
 0x3a8   : > { %v2225_v31 = vld [vmem:[#allocation2 + $0x11b0] sm:$0xff] }
 0x3a9   : > { %2067 = vmatpush.msra.mxu3 %v2010_v42  ;;  %2087 = vmatpush.msrb.mxu0 %v1979_v35  ;;  %v2005_v42 = vld [vmem:[#allocation2 + $0xf28] sm:$0xff]  ;;  %v2223_v35 = vld [vmem:[#allocation2 + $0x11a0] sm:$0xff] }
 0x3ab   : > { %2068 = vmatpush.msra.mxu3 %v2008_v14  ;;  %2088 = vmatpush.msrb.mxu0 %v1977_v0  ;;  %v2175_v14 = vld [vmem:[#allocation2 + $0x1020] sm:$0xff]  ;;  %v2221_v0 = vld [vmem:[#allocation2 + $0x1190] sm:$0xff] }
 0x3ad   : > { %2069 = vmatpush.msra.mxu3 %v2006_v15  ;;  %2089 = vmatpush.msrb.mxu0 %v1975_v37  ;;  %v2219_v37 = vld [vmem:[#allocation2 + $0x1180] sm:$0xff] }
 0x3af   : > { %2070 = vmatpush.msra.mxu3 %v2004_v16  ;;  %2090 = vmatpush.msrb.mxu0 %v1973_v38  ;;  %v2003_v16 = vld [vmem:[#allocation2 + $0xf18] sm:$0xff]  ;;  %v2215_v38 = vld [vmem:[#allocation2 + $0x1160] sm:$0xff] }
 0x3b1   : > { %2071 = vmatpush.msra.mxu3 %v2002_v17  ;;  %2091 = vmatpush.msrb.mxu0 %v1971_v43  ;;  %v2173_v17 = vld [vmem:[#allocation2 + $0x1010] sm:$0xff] }
 0x3b2   : > { %v2209_v43 = vld [vmem:[#allocation2 + $0x1130] sm:$0xff] }
 0x3b3   : > { %2072 = vmatpush.msra.mxu3 %v2000_v18  ;;  %2092 = vmatpush.msrb.mxu0 %v1969_v45  ;;  %v2205_v45 = vld [vmem:[#allocation2 + $0x1110] sm:$0xff] }
 0x3b4   : > { %2073 = vmatmul.f32.vlgmr.msra.gmra.mxu3 %v6323_v4  ;;  %2093 = vmatmul.f32.vlgmr.msrb.gmra.mxu0 %v6321_v2  ;;  %v2015_v2 = vld [vmem:[#allocation2 + $0xf78] sm:$0xff] }
 0x3b5   : > { %2240 = vmatpush.msra.mxu0 %v2201_v47  ;;  %v6351_v47 = vld.sshfl [vmem:[#allocation1 + $0x8] sm:$0xff pattern:$0x75316420] }
 0x3b6   : > { %v2054_v15 = vpop.f32.mrf.mxu2 }
 0x3b7   : > { %2241 = vmatpush.msra.mxu0 %v2199_v21  ;;  %v2200_v21 = vld [vmem:[#allocation2 + $0x10e8] sm:$0xff] }
 0x3b9   : > { %2242 = vmatpush.msra.mxu0 %v2197_v52  ;;  %v2196_v52 = vld [vmem:[#allocation2 + $0x10c8] sm:$0xff] }
 0x3bb   : > { %2243 = vmatpush.msra.mxu0 %v2195_v53  ;;  %v2192_v53 = vld [vmem:[#allocation2 + $0x10a8] sm:$0xff] }
 0x3bd   : > { %2244 = vmatpush.msra.mxu0 %v2193_v55  ;;  %v2188_v55 = vld [vmem:[#allocation2 + $0x1088] sm:$0xff] }
 0x3bf   : > { %2245 = vmatpush.msra.mxu0 %v2191_v57  ;;  %v2184_v57 = vld [vmem:[#allocation2 + $0x1068] sm:$0xff] }
 0x3f7   : > { %v6333_v36 = vpop.f32.mrf.mxu3 }
 0x417   : > { %v1911_v40 = vpop.f32.mrf.mxu3 }
 0x418   : > { %v1912_v44 = vadd.f32 %v1911_v40, %v1891_v39  ;;  %v2213_v39 = vld [vmem:[#allocation2 + $0x1150] sm:$0xff]  ;;  %v2211_v40 = vld [vmem:[#allocation2 + $0x1140] sm:$0xff] }
 0x41a   : > { %5122 = vmatpush.msk.msra.mxu1 %vm856_vm0, %v1912_v44  ;;  %v2207_v44 = vld [vmem:[#allocation2 + $0x1120] sm:$0xff] }
 0x41b   : > { %5123 = vmatmul.msk.f32.vlgmr.msra.gmra.mxu1 %vm852_vm1, %v6318_v59  ;;  %v2189_v59 = vld [vmem:[#allocation2 + $0x1090] sm:$0xff] }
 0x41c   : > { %2097 = vmatpush.msrb.mxu1 %v2031_v46  ;;  %2246 = vmatpush.msra.mxu0 %v2189_v59  ;;  %v2203_v46 = vld [vmem:[#allocation2 + $0x1100] sm:$0xff]  ;;  %v2182_v59 = vld [vmem:[#allocation2 + $0x1058] sm:$0xff] }
 0x41e   : > { %2098 = vmatpush.msrb.mxu1 %v2029_v48  ;;  %2247 = vmatpush.msra.mxu0 %v2187_v1  ;;  %v2202_v48 = vld [vmem:[#allocation2 + $0x10f8] sm:$0xff]  ;;  %v2180_v1 = vld [vmem:[#allocation2 + $0x1048] sm:$0xff] }
 0x420   : > { %2099 = vmatpush.msrb.mxu1 %v2027_v50  ;;  %2248 = vmatpush.msra.mxu0 %v2185_v19  ;;  %v2198_v50 = vld [vmem:[#allocation2 + $0x10d8] sm:$0xff]  ;;  %v2176_v19 = vld [vmem:[#allocation2 + $0x1028] sm:$0xff] }
 0x422   : > { %2100 = vmatpush.msrb.mxu1 %v2025_v34  ;;  %2249 = vmatpush.msra.mxu0 %v2183_v5  ;;  %v2194_v34 = vld [vmem:[#allocation2 + $0x10b8] sm:$0xff] }
 0x424   : > { %2101 = vmatpush.msrb.mxu1 %v2023_v54  ;;  %2250 = vmatpush.msra.mxu0 %v2181_v8  ;;  %v2190_v54 = vld [vmem:[#allocation2 + $0x1098] sm:$0xff] }
 0x426   : > { %2102 = vmatpush.msrb.mxu1 %v2021_v56  ;;  %2251 = vmatpush.msra.mxu0 %v2179_v41  ;;  %v2186_v56 = vld [vmem:[#allocation2 + $0x1078] sm:$0xff] }
 0x427   : > { %v2234_v41 = vld [vmem:[#allocation2 + $0x11f8] sm:$0xff] }
 0x428   : > { %2103 = vmatpush.msrb.mxu1 %v2019_v58  ;;  %2252 = vmatpush.msra.mxu0 %v2177_v13  ;;  %v6354_v58 = vpop.f32.mrf.mxu0  ;;  %v2373_v13 = vld [vmem:[%s7088_s4] sm:$0xff] }
 0x42a   : > { %2104 = vmatpush.msrb.mxu1 %v2017_v62  ;;  %2253 = vmatpush.msra.mxu0 %v2175_v14  ;;  %v2230_v14 = vld [vmem:[#allocation2 + $0x11d8] sm:$0xff] }
 0x42c   : > { %2105 = vmatpush.msrb.mxu1 %v2015_v2  ;;  %2254 = vmatpush.msra.mxu0 %v2173_v17  ;;  %v2178_v2 = vld [vmem:[#allocation2 + $0x1038] sm:$0xff]  ;;  %v5318_v17 = vld [vmem:[#allocation2 + $0xe0] sm:$0xff] }
 0x42e   : > { %2106 = vmatpush.msrb.mxu1 %v2013_v20  ;;  %2255 = vmatpush.msra.mxu0 %v2171_v26  ;;  %v5321_v26 = vld [vmem:[#allocation2 + $0xb0] sm:$0xff] }
 0x42f   : > { %2256 = vmatmul.f32.vlgmr.msra.gmra.mxu0 %v6345_v27 }
 0x430   : > { %2107 = vmatpush.msrb.mxu1 %v2011_v6  ;;  %v2174_v6 = vld [vmem:[#allocation2 + $0x1018] sm:$0xff] }
 0x431   : > { %v2094_v20 = vpop.f32.mrf.mxu0 }
 0x432   : > { %2108 = vmatpush.msrb.mxu1 %v2009_v9  ;;  %v2172_v9 = vld [vmem:[#allocation2 + $0x1008] sm:$0xff] }
 0x434   : > { %2109 = vmatpush.msrb.mxu1 %v2007_v10  ;;  %v2232_v10 = vld [vmem:[#allocation2 + $0x11e8] sm:$0xff] }
 0x436   : > { %2110 = vmatpush.msrb.mxu1 %v2005_v42  ;;  %v6041_v42 = vmov 0  }
 0x437   : > { %v2074_v18 = vpop.f32.mrf.mxu3  ;;  %5314 = vset.pattern.permute.xlu0 %v6041_v42  ;;  %5315 = vset.pattern.permute.xlu1 %v6041_v42 }
 0x438   : > { %v2075_v23 = vadd.f32 %v2074_v18, %v2054_v15  ;;  %2111 = vmatpush.msrb.mxu1 %v2003_v16  ;;  %2376 = vperm.xlu0 %5314, %v2373_v13   ;;  %v5317_v15 = vld [vmem:[#allocation2 + $0xf0] sm:$0xff]  ;;  %v2228_v16 = vld [vmem:[#allocation2 + $0x11c8] sm:$0xff]  ;;  %v2226_v18 = vld [vmem:[#allocation2 + $0x11b8] sm:$0xff] }
 0x439   : > { %5316 = vset.pattern.permute.xlu2 %v6041_v42  ;;  %v5347_v13 = vld [vmem:[#allocation2 + $0x1b0] sm:$0xff]  ;;  %v5348_v42 = vld [vmem:[#allocation2 + $0xa8] sm:$0xff] }
 0x43a   : > { %2112 = vmatpush.msrb.mxu1 %v2001_v22  ;;  %5125 = vmatpush.msk.msrb.mxu2 %vm856_vm0, %v2075_v23  ;;  %v5319_v22 = vld [vmem:[#allocation2 + $0xd0] sm:$0xff]  ;;  %v2224_v23 = vld [vmem:[#allocation2 + $0x11a8] sm:$0xff] }
 0x43b   : > { %2113 = vmatmul.f32.vlgmr.msrb.gmra.mxu1 %v6323_v4  ;;  %5126 = vmatmul.msk.f32.vlgmr.msrb.gmra.mxu2 %vm852_vm1, %v6342_v24  ;;  %v2217_v4 = vld [vmem:[#allocation2 + $0x1170] sm:$0xff] }
 0x43c   : > { %2260 = vmatpush.msra.mxu1 %v2233_v25  ;;  %2280 = vmatpush.msra.mxu2 %v2202_v48  ;;  %v2222_v25 = vld [vmem:[#allocation2 + $0x1198] sm:$0xff]  ;;  %v5329_v48 = vld [vmem:[#allocation2 + $0x30] sm:$0xff] }
 0x43e   : > { %2261 = vmatpush.msra.mxu1 %v2231_v3  ;;  %2281 = vmatpush.msra.mxu2 %v2200_v21  ;;  %v5322_v3 = vld [vmem:[#allocation2 + $0xa0] sm:$0xff] }
 0x440   : > { %2262 = vmatpush.msra.mxu1 %v2229_v28  ;;  %2282 = vmatpush.msra.mxu2 %v2198_v50  ;;  %v2218_v28 = vld [vmem:[#allocation2 + $0x1178] sm:$0xff]  ;;  %v2204_v50 = vld [vmem:[#allocation2 + $0x1108] sm:$0xff] }
 0x442   : > { %2263 = vmatpush.msra.mxu1 %v2227_v29  ;;  %2283 = vmatpush.msra.mxu2 %v2196_v52  ;;  %v5323_v29 = vld [vmem:[#allocation2 + $0x90] sm:$0xff]  ;;  %v5330_v52 = vld [vmem:[#allocation2 + $0x20] sm:$0xff] }
 0x444   : > { %2264 = vmatpush.msra.mxu1 %v2225_v31  ;;  %2284 = vmatpush.msra.mxu2 %v2194_v34  ;;  %v2216_v31 = vld [vmem:[#allocation2 + $0x1168] sm:$0xff] }
 0x446   : > { %2265 = vmatpush.msra.mxu1 %v2223_v35  ;;  %2285 = vmatpush.msra.mxu2 %v2192_v53  ;;  %v5324_v35 = vld [vmem:[#allocation2 + $0x80] sm:$0xff]  ;;  %v6368_v53 = vld [vmem:[%s7087_s3 + $0x40] sm:$0xff] }
 0x448   : > { %2266 = vmatpush.msra.mxu1 %v2221_v0  ;;  %2286 = vmatpush.msra.mxu2 %v2190_v54  ;;  %v2214_v0 = vld [vmem:[#allocation2 + $0x1158] sm:$0xff]  ;;  %v5331_v54 = vld [vmem:[#allocation2 + $0x10] sm:$0xff] }
 0x44a   : > { %2267 = vmatpush.msra.mxu1 %v2219_v37  ;;  %2287 = vmatpush.msra.mxu2 %v2188_v55  ;;  %v5325_v37 = vld [vmem:[#allocation2 + $0x70] sm:$0xff]  ;;  %v5332_v55 = vld [vmem:[#allocation2 + $0xf8] sm:$0xff] }
 0x44c   : > { %2268 = vmatpush.msra.mxu1 %v2217_v4  ;;  %2288 = vmatpush.msra.mxu2 %v2186_v56  ;;  %v2212_v4 = vld [vmem:[#allocation2 + $0x1148] sm:$0xff]  ;;  %v5333_v56 = vld [vmem:[#allocation2] sm:$0xff] }
 0x44e   : > { %2269 = vmatpush.msra.mxu1 %v2215_v38  ;;  %2289 = vmatpush.msra.mxu2 %v2184_v57  ;;  %v5326_v38 = vld [vmem:[#allocation2 + $0x60] sm:$0xff]  ;;  %v5334_v57 = vld [vmem:[#allocation2 + $0x2f0] sm:$0xff] }
 0x450   : > { %2270 = vmatpush.msra.mxu1 %v2213_v39  ;;  %2290 = vmatpush.msra.mxu2 %v2182_v59  ;;  %v2210_v39 = vld [vmem:[#allocation2 + $0x1138] sm:$0xff]  ;;  %v5335_v59 = vld [vmem:[#allocation2 + $0x1f0] sm:$0xff] }
 0x452   : > { %2271 = vmatpush.msra.mxu1 %v2211_v40  ;;  %2291 = vmatpush.msra.mxu2 %v2180_v1  ;;  %v5327_v40 = vld [vmem:[#allocation2 + $0x50] sm:$0xff]  ;;  %v5336_v1 = vld [vmem:[#allocation2 + $0xe8] sm:$0xff] }
 0x454   : > { %2272 = vmatpush.msra.mxu1 %v2209_v43  ;;  %2292 = vmatpush.msra.mxu2 %v2178_v2  ;;  %v2208_v43 = vld [vmem:[#allocation2 + $0x1128] sm:$0xff]  ;;  %v5337_v2 = vld [vmem:[#allocation2 + $0x2e0] sm:$0xff] }
 0x456   : > { %2273 = vmatpush.msra.mxu1 %v2207_v44  ;;  %2293 = vmatpush.msra.mxu2 %v2176_v19  ;;  %v5328_v44 = vld [vmem:[#allocation2 + $0x40] sm:$0xff] }
 0x457   : > { %v5338_v19 = vld [vmem:[#allocation2 + $0x1e0] sm:$0xff] }
 0x458   : > { %2274 = vmatpush.msra.mxu1 %v2205_v45  ;;  %2294 = vmatpush.msra.mxu2 %v2174_v6  ;;  %v5342_v6 = vld [vmem:[#allocation2 + $0xc8] sm:$0xff] }
 0x45a   : > { %2275 = vmatpush.msra.mxu1 %v2203_v46  ;;  %2295 = vmatpush.msra.mxu2 %v2172_v9  ;;  %v2206_v46 = vld [vmem:[#allocation2 + $0x1118] sm:$0xff]  ;;  %v5344_v9 = vld [vmem:[#allocation2 + $0x1c0] sm:$0xff] }
 0x45b   : > { %2276 = vmatmul.f32.vlgmr.msra.gmra.mxu1 %v6351_v47  ;;  %2296 = vmatmul.f32.vlgmr.msra.gmra.mxu2 %v6345_v27  ;;  %v2220_v27 = vld [vmem:[#allocation2 + $0x1188] sm:$0xff] }
 0x45c   : > { %2383 = vmatpush.msrb.mxu2 %v5317_v15  ;;  %v5350_v15 = vld [vmem:[#allocation2 + $0x1a0] sm:$0xff] }
 0x45e   : > { %2384 = vmatpush.msrb.mxu2 %v5318_v17  ;;  %v5352_v17 = vld [vmem:[#allocation2 + $0x290] sm:$0xff] }
 0x460   : > { %2385 = vmatpush.msrb.mxu2 %v5319_v22  ;;  %v5354_v22 = vld [vmem:[#allocation2 + $0x88] sm:$0xff] }
 0x498   : > { %v6356_v62 = vpop.f32.mrf.mxu1 }
 0x4ac   : > { %v2257_v45 = vpop.f32.mrf.mxu0 }
 0x4b8   : > { %v2114_v5 = vpop.f32.mrf.mxu1 }
 0x4b9   : > { %v2115_v8 = vadd.f32 %v2114_v5, %v2094_v20  ;;  %v5339_v20 = vld [vmem:[#allocation2 + $0xd8] sm:$0xff]  ;;  %v5341_v5 = vld [vmem:[#allocation2 + $0x1d0] sm:$0xff] }
 0x4bb   : > { %5127 = vmatpush.msk.msrb.mxu3 %vm856_vm0, %v2115_v8  ;;  %v5343_v8 = vld [vmem:[#allocation2 + $0x2c0] sm:$0xff] }
 0x4bc   : > { %5128 = vmatmul.msk.f32.vlgmr.msrb.gmra.mxu3 %vm852_vm1, %v6342_v24  ;;  %v5320_v24 = vld [vmem:[#allocation2 + $0xc0] sm:$0xff] }
 0x4bd   : > { %2300 = vmatpush.msra.mxu3 %v2234_v41  ;;  %2386 = vmatpush.msrb.mxu2 %v5320_v24  ;;  %v5345_v41 = vld [vmem:[#allocation2 + $0xb8] sm:$0xff]  ;;  %v5356_v24 = vld [vmem:[#allocation2 + $0x180] sm:$0xff] }
 0x4bf   : > { %2301 = vmatpush.msra.mxu3 %v2232_v10  ;;  %2387 = vmatpush.msrb.mxu2 %v5321_v26  ;;  %v5346_v10 = vld [vmem:[#allocation2 + $0x2b0] sm:$0xff] }
 0x4c0   : > { %v5358_v26 = vld [vmem:[#allocation2 + $0x270] sm:$0xff] }
 0x4c1   : > { %2302 = vmatpush.msra.mxu3 %v2230_v14  ;;  %2388 = vmatpush.msrb.mxu2 %v5322_v3  ;;  %v5349_v14 = vld [vmem:[#allocation2 + $0x2a0] sm:$0xff]  ;;  %v5360_v3 = vld [vmem:[#allocation2 + $0x68] sm:$0xff] }
 0x4c3   : > { %2303 = vmatpush.msra.mxu3 %v2228_v16  ;;  %2389 = vmatpush.msrb.mxu2 %v5323_v29  ;;  %v5351_v16 = vld [vmem:[#allocation2 + $0x98] sm:$0xff]  ;;  %v5362_v29 = vld [vmem:[#allocation2 + $0x160] sm:$0xff] }
 0x4c5   : > { %2304 = vmatpush.msra.mxu3 %v2226_v18  ;;  %2390 = vmatpush.msrb.mxu2 %v5324_v35  ;;  %v5353_v18 = vld [vmem:[#allocation2 + $0x190] sm:$0xff] }
 0x4c6   : > { %v5364_v35 = vld [vmem:[#allocation2 + $0x250] sm:$0xff] }
 0x4c7   : > { %2305 = vmatpush.msra.mxu3 %v2224_v23  ;;  %2391 = vmatpush.msrb.mxu2 %v5325_v37  ;;  %v5355_v23 = vld [vmem:[#allocation2 + $0x280] sm:$0xff]  ;;  %v5366_v37 = vld [vmem:[#allocation2 + $0x48] sm:$0xff] }
 0x4c9   : > { %2306 = vmatpush.msra.mxu3 %v2222_v25  ;;  %2392 = vmatpush.msrb.mxu2 %v5326_v38  ;;  %v5357_v25 = vld [vmem:[#allocation2 + $0x78] sm:$0xff]  ;;  %v5368_v38 = vld [vmem:[#allocation2 + $0x140] sm:$0xff] }
 0x4cb   : > { %2307 = vmatpush.msra.mxu3 %v2220_v27  ;;  %2393 = vmatpush.msrb.mxu2 %v5327_v40  ;;  %v5359_v27 = vld [vmem:[#allocation2 + $0x170] sm:$0xff] }
 0x4cc   : > { %v5370_v40 = vld [vmem:[#allocation2 + $0x230] sm:$0xff] }
 0x4cd   : > { %2308 = vmatpush.msra.mxu3 %v2218_v28  ;;  %2394 = vmatpush.msrb.mxu2 %v5328_v44  ;;  %v5361_v28 = vld [vmem:[#allocation2 + $0x260] sm:$0xff]  ;;  %v5372_v44 = vld [vmem:[#allocation2 + $0x28] sm:$0xff] }
 0x4cf   : > { %2309 = vmatpush.msra.mxu3 %v2216_v31  ;;  %2395 = vmatpush.msrb.mxu2 %v5329_v48  ;;  %v5363_v31 = vld [vmem:[#allocation2 + $0x58] sm:$0xff] }
 0x4d0   : > { %v5375_v48 = vld [vmem:[#allocation2 + $0x18] sm:$0xff] }
 0x4d1   : > { %2310 = vmatpush.msra.mxu3 %v2214_v0  ;;  %2396 = vmatpush.msrb.mxu2 %v5330_v52  ;;  %v5365_v0 = vld [vmem:[#allocation2 + $0x150] sm:$0xff]  ;;  %v5378_v52 = vld [vmem:[#allocation2 + $0x8] sm:$0xff] }
 0x4d3   : > { %2311 = vmatpush.msra.mxu3 %v2212_v4  ;;  %2397 = vmatpush.msrb.mxu2 %v5331_v54  ;;  %v5367_v4 = vld [vmem:[#allocation2 + $0x240] sm:$0xff] }
 0x4d4   : > { %v5380_v54 = vld [vmem:[#allocation2 + $0x200] sm:$0xff] }
 0x4d5   : > { %2312 = vmatpush.msra.mxu3 %v2210_v39  ;;  %2398 = vmatpush.msrb.mxu2 %v5333_v56  ;;  %v5369_v39 = vld [vmem:[#allocation2 + $0x38] sm:$0xff]  ;;  %v5382_v56 = vld [vmem:[#allocation2 + $0x2e8] sm:$0xff] }
 0x4d7   : > { %2313 = vmatpush.msra.mxu3 %v2208_v43  ;;  %2464 = vmatpush.msra.mxu2 %v5334_v57  ;;  %v5371_v43 = vld [vmem:[#allocation2 + $0x130] sm:$0xff] }
 0x4d8   : > { %v2277_v21 = vpop.f32.mrf.mxu1  ;;  %v5383_v57 = vld [vmem:[#allocation2 + $0x3f0] sm:$0xff] }
 0x4d9   : > { %v2278_v34 = vadd.f32 %v2277_v21, %v2257_v45  ;;  %2314 = vmatpush.msra.mxu3 %v2206_v46  ;;  %2465 = vmatpush.msra.mxu2 %v5337_v2  ;;  %v5373_v45 = vld [vmem:[#allocation2 + $0x220] sm:$0xff]  ;;  %v5376_v21 = vld [vmem:[#allocation2 + $0x210] sm:$0xff]  ;;  %v5386_v2 = vld [vmem:[#allocation2 + $0x2c8] sm:$0xff] }
 0x4da   : > { %v5374_v46 = vld [vmem:[#allocation2 + $0x120] sm:$0xff] }
 0x4db   : > { %2315 = vmatpush.msra.mxu3 %v2204_v50  ;;  %5130 = vmatpush.msk.msrb.mxu0 %vm856_vm0, %v2278_v34  ;;  %v5377_v50 = vld [vmem:[#allocation2 + $0x110] sm:$0xff]  ;;  %v5379_v34 = vld [vmem:[#allocation2 + $0x2f8] sm:$0xff] }
 0x4dc   : > { %2316 = vmatmul.f32.vlgmr.msra.gmra.mxu3 %v6351_v47  ;;  %5131 = vmatmul.msk.f32.vlgmr.msrb.gmra.mxu0 %vm852_vm1, %v6368_v53  ;;  %v5340_v47 = vld [vmem:[#allocation2 + $0x2d0] sm:$0xff] }
 0x4dd   : > { %2423 = vmatpush.msra.mxu0 %v5332_v55  ;;  %2403 = vmatpush.msrb.mxu3 %v5335_v59  ;;  %v5381_v55 = vld [vmem:[#allocation2 + $0x100] sm:$0xff]  ;;  %v5384_v59 = vld [vmem:[#allocation2 + $0x2d8] sm:$0xff] }
 0x4de   : > { %2466 = vmatpush.msra.mxu2 %v5340_v47  ;;  %v5389_v47 = vld [vmem:[#allocation2 + $0x3c0] sm:$0xff] }
 0x4df   : > { %2424 = vmatpush.msra.mxu0 %v5336_v1  ;;  %2404 = vmatpush.msrb.mxu3 %v5338_v19  ;;  %v5385_v1 = vld [vmem:[#allocation2 + $0x3e0] sm:$0xff]  ;;  %v5387_v19 = vld [vmem:[#allocation2 + $0x3d0] sm:$0xff] }
 0x4e0   : > { %2467 = vmatpush.msra.mxu2 %v5343_v8  ;;  %v5392_v8 = vld [vmem:[#allocation2 + $0x298] sm:$0xff] }
 0x4e1   : > { %2425 = vmatpush.msra.mxu0 %v5339_v20  ;;  %2405 = vmatpush.msrb.mxu3 %v5341_v5  ;;  %v5388_v20 = vld [vmem:[#allocation2 + $0x2b8] sm:$0xff]  ;;  %v5390_v5 = vld [vmem:[#allocation2 + $0x2a8] sm:$0xff] }
 0x4e2   : > { %2468 = vmatpush.msra.mxu2 %v5346_v10  ;;  %v5395_v10 = vld [vmem:[#allocation2 + $0x390] sm:$0xff] }
 0x4e3   : > { %2426 = vmatpush.msra.mxu0 %v5342_v6  ;;  %2406 = vmatpush.msrb.mxu3 %v5344_v9  ;;  %v5391_v6 = vld [vmem:[#allocation2 + $0x3b0] sm:$0xff]  ;;  %v5393_v9 = vld [vmem:[#allocation2 + $0x3a0] sm:$0xff] }
 0x4e4   : > { %2469 = vmatpush.msra.mxu2 %v5349_v14  ;;  %v5398_v14 = vld [vmem:[#allocation2 + $0x268] sm:$0xff] }
 0x4e5   : > { %2427 = vmatpush.msra.mxu0 %v5345_v41  ;;  %2407 = vmatpush.msrb.mxu3 %v5347_v13  ;;  %v5394_v41 = vld [vmem:[#allocation2 + $0x288] sm:$0xff]  ;;  %v5396_v13 = vld [vmem:[#allocation2 + $0x278] sm:$0xff] }
 0x4e6   : > { %2470 = vmatpush.msra.mxu2 %v5352_v17  ;;  %v5401_v17 = vld [vmem:[#allocation2 + $0x360] sm:$0xff] }
 0x4e7   : > { %2428 = vmatpush.msra.mxu0 %v5348_v42  ;;  %2408 = vmatpush.msrb.mxu3 %v5350_v15  ;;  %v5397_v42 = vld [vmem:[#allocation2 + $0x380] sm:$0xff]  ;;  %v5399_v15 = vld [vmem:[#allocation2 + $0x370] sm:$0xff] }
 0x4e8   : > { %2471 = vmatpush.msra.mxu2 %v5355_v23  ;;  %v5404_v23 = vld [vmem:[#allocation2 + $0x238] sm:$0xff] }
 0x4e9   : > { %2429 = vmatpush.msra.mxu0 %v5351_v16  ;;  %2409 = vmatpush.msrb.mxu3 %v5353_v18  ;;  %v5400_v16 = vld [vmem:[#allocation2 + $0x258] sm:$0xff]  ;;  %v5402_v18 = vld [vmem:[#allocation2 + $0x248] sm:$0xff] }
 0x4ea   : > { %2472 = vmatpush.msra.mxu2 %v5358_v26  ;;  %v5407_v26 = vld [vmem:[#allocation2 + $0x330] sm:$0xff] }
 0x4eb   : > { %2430 = vmatpush.msra.mxu0 %v5354_v22  ;;  %2410 = vmatpush.msrb.mxu3 %v5356_v24  ;;  %v5403_v22 = vld [vmem:[#allocation2 + $0x350] sm:$0xff]  ;;  %v5405_v24 = vld [vmem:[#allocation2 + $0x340] sm:$0xff] }
 0x4ec   : > { %2473 = vmatpush.msra.mxu2 %v5361_v28  ;;  %v5410_v28 = vld [vmem:[#allocation2 + $0x208] sm:$0xff] }
 0x4ed   : > { %2431 = vmatpush.msra.mxu0 %v5357_v25  ;;  %2411 = vmatpush.msrb.mxu3 %v5359_v27  ;;  %v5406_v25 = vld [vmem:[#allocation2 + $0x228] sm:$0xff]  ;;  %v5408_v27 = vld [vmem:[#allocation2 + $0x218] sm:$0xff] }
 0x4ee   : > { %2474 = vmatpush.msra.mxu2 %v5364_v35  ;;  %v3522_v35 = vld [vmem:[%s7090_s6] sm:$0xff] }
 0x4ef   : > { %2432 = vmatpush.msra.mxu0 %v5360_v3  ;;  %2412 = vmatpush.msrb.mxu3 %v5362_v29  ;;  %v5409_v3 = vld [vmem:[#allocation2 + $0x320] sm:$0xff]  ;;  %v5411_v29 = vld [vmem:[#allocation2 + $0x310] sm:$0xff] }
 0x4f0   : > { %2475 = vmatpush.msra.mxu2 %v5367_v4  ;;  %3525 = vperm.xlu0 %5314, %v3522_v35  }
 0x4f1   : > { %2433 = vmatpush.msra.mxu0 %v5363_v31  ;;  %2413 = vmatpush.msrb.mxu3 %v5365_v0  ;;  %v5412_v31 = vld [vmem:[#allocation2 + $0x300] sm:$0xff]  ;;  %v930_v0 = vadd.f32 %v6227_v60, %v6236_v11 }
 0x4f2   : > { %2476 = vmatpush.msra.mxu2 %v5370_v40  ;;  %v2145_v40 = vpop.f32.mrf.mxu2 }
 0x4f3   : > { %2434 = vmatpush.msra.mxu0 %v5366_v37  ;;  %2414 = vmatpush.msrb.mxu3 %v5368_v38  ;;  %v1153_v37 = vadd.f32 %v6261_v32, %v930_v0 }
 0x4f4   : > { %2477 = vmatpush.msra.mxu2 %v5373_v45 }
 0x4f5   : > { %2435 = vmatpush.msra.mxu0 %v5369_v39  ;;  %2415 = vmatpush.msrb.mxu3 %v5371_v43  ;;  %v1356_v4 = vadd.f32 %v6283_v49, %v1153_v37 }
 0x4f6   : > { %2478 = vmatpush.msra.mxu2 %v5376_v21 }
 0x4f7   : > { %2436 = vmatpush.msra.mxu0 %v5372_v44  ;;  %2416 = vmatpush.msrb.mxu3 %v5374_v46  ;;  %v1559_v38 = vadd.f32 %v6307_v7, %v1356_v4  ;;  %v5413_v7 = vld [vmem:[#allocation2 + $0x1f8] sm:$0xff] }
 0x4f8   : > { %2479 = vmatpush.msra.mxu2 %v5380_v54  ;;  %v5418_v54 = vld [vmem:[#allocation2 + $0x1a8] sm:$0xff] }
 0x4f9   : > { %2437 = vmatpush.msra.mxu0 %v5375_v48  ;;  %2417 = vmatpush.msrb.mxu3 %v5377_v50  ;;  %v1762_v39 = vadd.f32 %v6331_v33, %v1559_v38  ;;  %v6386_v48 = vpop.permute.xlu0 %2376  ;;  %v5414_v33 = vld [vmem:[#allocation2 + $0x1e8] sm:$0xff] }
 0x4fa   : > { %v2297_v11 = vpop.f32.mrf.mxu2  ;;  %v5446_v38 = vld [vmem:[#allocation2 + $0x5e8] sm:$0xff] }
 0x4fb   : > { %2438 = vmatpush.msra.mxu0 %v5378_v52  ;;  %2418 = vmatpush.msrb.mxu3 %v5381_v55  ;;  %v1965_v43 = vadd.f32 %v6354_v58, %v1762_v39  ;;  %v5415_v58 = vld [vmem:[#allocation2 + $0x1d8] sm:$0xff]  ;;  %v5416_v52 = vld [vmem:[#allocation2 + $0x1c8] sm:$0xff] }
 0x4fc   : > { %v5419_v55 = vld [vmem:[#allocation2 + $0x198] sm:$0xff] }
 0x4fd   : > { %2504 = vmatpush.msrb.mxu0 %v5379_v34  ;;  %2484 = vmatpush.msra.mxu3 %v5383_v57  ;;  %v2168_v45 = vadd.f32 %v2145_v40, %v1965_v43  ;;  %v5417_v34 = vld [vmem:[#allocation2 + $0x1b8] sm:$0xff]  ;;  %v5422_v57 = vld [vmem:[#allocation2 + $0x168] sm:$0xff] }
 0x4ff   : > { %2505 = vmatpush.msrb.mxu0 %v5382_v56  ;;  %2485 = vmatpush.msra.mxu3 %v5385_v1  ;;  %v5420_v56 = vld [vmem:[#allocation2 + $0x188] sm:$0xff] }
 0x500   : > { %v5424_v1 = vld [vmem:[#allocation2 + $0x148] sm:$0xff] }
 0x501   : > { %2506 = vmatpush.msrb.mxu0 %v5384_v59  ;;  %2486 = vmatpush.msra.mxu3 %v5387_v19  ;;  %v5423_v59 = vld [vmem:[#allocation2 + $0x158] sm:$0xff]  ;;  %v5426_v19 = vld [vmem:[#allocation2 + $0x128] sm:$0xff] }
 0x503   : > { %2507 = vmatpush.msrb.mxu0 %v5386_v2  ;;  %2487 = vmatpush.msra.mxu3 %v5389_v47  ;;  %v5425_v2 = vld [vmem:[#allocation2 + $0x138] sm:$0xff]  ;;  %v5428_v47 = vld [vmem:[#allocation2 + $0x108] sm:$0xff] }
 0x505   : > { %2508 = vmatpush.msrb.mxu0 %v5388_v20  ;;  %2488 = vmatpush.msra.mxu3 %v5391_v6  ;;  %v5427_v20 = vld [vmem:[#allocation2 + $0x118] sm:$0xff]  ;;  %v5430_v6 = vld [vmem:[#allocation2 + $0x3e8] sm:$0xff] }
 0x507   : > { %2509 = vmatpush.msrb.mxu0 %v5390_v5  ;;  %2489 = vmatpush.msra.mxu3 %v5393_v9  ;;  %v5429_v5 = vld [vmem:[#allocation2 + $0x3f8] sm:$0xff]  ;;  %v5432_v9 = vld [vmem:[#allocation2 + $0x3c8] sm:$0xff] }
 0x509   : > { %2510 = vmatpush.msrb.mxu0 %v5392_v8  ;;  %2490 = vmatpush.msra.mxu3 %v5395_v10  ;;  %v5431_v8 = vld [vmem:[#allocation2 + $0x3d8] sm:$0xff]  ;;  %v5434_v10 = vld [vmem:[#allocation2 + $0x3a8] sm:$0xff] }
 0x50b   : > { %2511 = vmatpush.msrb.mxu0 %v5394_v41  ;;  %2491 = vmatpush.msra.mxu3 %v5397_v42  ;;  %v5433_v41 = vld [vmem:[#allocation2 + $0x3b8] sm:$0xff]  ;;  %v5436_v42 = vld [vmem:[#allocation2 + $0x388] sm:$0xff] }
 0x50d   : > { %2512 = vmatpush.msrb.mxu0 %v5396_v13  ;;  %2492 = vmatpush.msra.mxu3 %v5399_v15  ;;  %v5435_v13 = vld [vmem:[#allocation2 + $0x398] sm:$0xff]  ;;  %v5438_v15 = vld [vmem:[#allocation2 + $0x368] sm:$0xff] }
 0x50f   : > { %2513 = vmatpush.msrb.mxu0 %v5398_v14  ;;  %2493 = vmatpush.msra.mxu3 %v5401_v17  ;;  %v5437_v14 = vld [vmem:[#allocation2 + $0x378] sm:$0xff]  ;;  %v5440_v17 = vld [vmem:[#allocation2 + $0x348] sm:$0xff] }
 0x511   : > { %2514 = vmatpush.msrb.mxu0 %v5400_v16  ;;  %2494 = vmatpush.msra.mxu3 %v5403_v22  ;;  %v5439_v16 = vld [vmem:[#allocation2 + $0x358] sm:$0xff]  ;;  %v5442_v22 = vld [vmem:[#allocation2 + $0x328] sm:$0xff] }
 0x513   : > { %2515 = vmatpush.msrb.mxu0 %v5402_v18  ;;  %2495 = vmatpush.msra.mxu3 %v5405_v24  ;;  %v5441_v18 = vld [vmem:[#allocation2 + $0x338] sm:$0xff]  ;;  %v5444_v24 = vld [vmem:[#allocation2 + $0x308] sm:$0xff] }
 0x515   : > { %2516 = vmatpush.msrb.mxu0 %v5404_v23  ;;  %2496 = vmatpush.msra.mxu3 %v5407_v26  ;;  %v5443_v23 = vld [vmem:[#allocation2 + $0x318] sm:$0xff] }
 0x517   : > { %2517 = vmatpush.msrb.mxu0 %v5406_v25  ;;  %2497 = vmatpush.msra.mxu3 %v5409_v3  ;;  %v950_v25 = vadd.f32 %v6229_v61, %v6238_v12 }
 0x519   : > { %2518 = vmatpush.msrb.mxu0 %v5408_v27  ;;  %2498 = vmatpush.msra.mxu3 %v5411_v29  ;;  %v1154_v26 = vadd.f32 %v6259_v30, %v950_v25  ;;  %v5483_v25 = vld [vmem:[#allocation2 + $0x490] sm:$0xff] }
 0x51b   : > { %2519 = vmatpush.msrb.mxu0 %v5410_v28  ;;  %2499 = vmatpush.msra.mxu3 %v5412_v31  ;;  %v1357_v27 = vadd.f32 %v6285_v51, %v1154_v26  ;;  %v2463_v51 = vld [vmem:[%s7089_s5] sm:$0xff]  ;;  %v5484_v26 = vld [vmem:[#allocation2 + $0x560] sm:$0xff] }
 0x51d   : > { %v1560_v3 = vadd.f32 %v6309_v63, %v1357_v27  ;;  %v5485_v27 = vld [vmem:[#allocation2 + $0x458] sm:$0xff] }
 0x51f   : > { %v1763_v28 = vadd.f32 %v6333_v36, %v1560_v3  ;;  %v5445_v36 = vld [vmem:[#allocation2 + $0x5f8] sm:$0xff]  ;;  %v5486_v3 = vld [vmem:[#allocation2 + $0x528] sm:$0xff] }
 0x521   : > { %v1966_v29 = vadd.f32 %v6356_v62, %v1763_v28  ;;  %v5487_v28 = vld [vmem:[#allocation2 + $0x480] sm:$0xff] }
 0x53f   : > { %v6384_v44 = vpop.f32.mrf.mxu3 }
 0x540   : > { %v2169_v31 = vadd.f32 %v6384_v44, %v1966_v29  ;;  %v5447_v44 = vld [vmem:[#allocation2 + $0x5d8] sm:$0xff]  ;;  %v5488_v29 = vld [vmem:[#allocation2 + $0x550] sm:$0xff] }
 0x559   : > { %v2348_v46 = vpop.f32.mrf.mxu0 }
 0x55a   : > { %v2371_v21 = vadd.f32 %v2348_v46, %v2168_v45  ;;  %v5448_v46 = vld [vmem:[#allocation2 + $0x4f8] sm:$0xff] }
 0x55c   : > { %v2379_v60 = vadd.f32 %v6386_v48, %v2371_v21  ;;  %v6420_v21 = vld [vmem:[%s7089_s5 + $0x8] sm:$0xff] }
 0x55e   : > { %v6389_v32 = vmax.f32 %v2379_v60, 0.0  ;;  %v5450_v60 = vld [vmem:[#allocation2 + $0x5f0] sm:$0xff] }
 0x55f   : > { %v2317_v49 = vpop.f32.mrf.mxu3 }
 0x560   : > { %v2318_v50 = vadd.f32 %v2317_v49, %v2297_v11  ;;  %2399 = vmatmul.f32.vlgmr.msrb.gmra.mxu2 %v6389_v32  ;;  %2439 = vmatmul.f32.vlgmr.msra.gmra.mxu0 %v6389_v32  ;;  %v5451_v11 = vld [vmem:[#allocation2 + $0x4e8] sm:$0xff]  ;;  %v5452_v49 = vld [vmem:[#allocation2 + $0x5b8] sm:$0xff] }
 0x562   : > { %5132 = vmatpush.msk.msrb.mxu1 %vm856_vm0, %v2318_v50 }
 0x563   : > { %5133 = vmatmul.msk.f32.vlgmr.msrb.gmra.mxu1 %vm852_vm1, %v6368_v53  ;;  %v5421_v53 = vld [vmem:[#allocation2 + $0x178] sm:$0xff] }
 0x564   : > { %2443 = vmatpush.msra.mxu1 %v5413_v7 }
 0x566   : > { %2444 = vmatpush.msra.mxu1 %v5414_v33  ;;  %v5453_v33 = vld [vmem:[#allocation2 + $0x5e0] sm:$0xff] }
 0x568   : > { %2480 = vmatmul.f32.vlgmr.msra.gmra.mxu2 %v6389_v32  ;;  %2520 = vmatmul.f32.vlgmr.msrb.gmra.mxu0 %v6389_v32 }
 0x569   : > { %2445 = vmatpush.msra.mxu1 %v5415_v58  ;;  %v5454_v58 = vld [vmem:[#allocation2 + $0x4d8] sm:$0xff] }
 0x56b   : > { %2446 = vmatpush.msra.mxu1 %v5416_v52 }
 0x56d   : > { %2447 = vmatpush.msra.mxu1 %v5417_v34  ;;  %v5455_v34 = vld [vmem:[#allocation2 + $0x5a8] sm:$0xff] }
 0x56f   : > { %2448 = vmatpush.msra.mxu1 %v5418_v54  ;;  %v5456_v54 = vld [vmem:[#allocation2 + $0x5d0] sm:$0xff] }
 0x571   : > { %2449 = vmatpush.msra.mxu1 %v5419_v55  ;;  %v5457_v55 = vld [vmem:[#allocation2 + $0x4c8] sm:$0xff] }
 0x573   : > { %2450 = vmatpush.msra.mxu1 %v5420_v56  ;;  %v5458_v56 = vld [vmem:[#allocation2 + $0x598] sm:$0xff] }
 0x575   : > { %2451 = vmatpush.msra.mxu1 %v5421_v53  ;;  %v5459_v53 = vld [vmem:[#allocation2 + $0x4f0] sm:$0xff] }
 0x577   : > { %2452 = vmatpush.msra.mxu1 %v5422_v57  ;;  %v5460_v57 = vld [vmem:[#allocation2 + $0x5c0] sm:$0xff] }
 0x579   : > { %2453 = vmatpush.msra.mxu1 %v5423_v59  ;;  %v5461_v59 = vld [vmem:[#allocation2 + $0x4b8] sm:$0xff] }
 0x57b   : > { %2454 = vmatpush.msra.mxu1 %v5424_v1  ;;  %v5462_v1 = vld [vmem:[#allocation2 + $0x588] sm:$0xff] }
 0x57d   : > { %2455 = vmatpush.msra.mxu1 %v5425_v2  ;;  %v5463_v2 = vld [vmem:[#allocation2 + $0x4e0] sm:$0xff] }
 0x57f   : > { %2456 = vmatpush.msra.mxu1 %v5426_v19  ;;  %v5464_v19 = vld [vmem:[#allocation2 + $0x5b0] sm:$0xff] }
 0x581   : > { %2457 = vmatpush.msra.mxu1 %v5427_v20  ;;  %v5465_v20 = vld [vmem:[#allocation2 + $0x4a8] sm:$0xff] }
 0x583   : > { %2458 = vmatpush.msra.mxu1 %v5428_v47  ;;  %v5466_v47 = vld [vmem:[#allocation2 + $0x578] sm:$0xff] }
 0x585   : > { %2524 = vmatpush.msrb.mxu1 %v5429_v5  ;;  %v5467_v5 = vld [vmem:[#allocation2 + $0x4d0] sm:$0xff] }
 0x587   : > { %2525 = vmatpush.msrb.mxu1 %v5430_v6  ;;  %v5468_v6 = vld [vmem:[#allocation2 + $0x5a0] sm:$0xff] }
 0x589   : > { %2526 = vmatpush.msrb.mxu1 %v5431_v8  ;;  %v5469_v8 = vld [vmem:[#allocation2 + $0x498] sm:$0xff] }
 0x58b   : > { %2527 = vmatpush.msrb.mxu1 %v5432_v9  ;;  %v5470_v9 = vld [vmem:[#allocation2 + $0x568] sm:$0xff] }
 0x58d   : > { %2528 = vmatpush.msrb.mxu1 %v5433_v41  ;;  %v5471_v41 = vld [vmem:[#allocation2 + $0x4c0] sm:$0xff] }
 0x58f   : > { %2529 = vmatpush.msrb.mxu1 %v5434_v10  ;;  %v5472_v10 = vld [vmem:[#allocation2 + $0x590] sm:$0xff] }
 0x591   : > { %2530 = vmatpush.msrb.mxu1 %v5435_v13  ;;  %v5473_v13 = vld [vmem:[#allocation2 + $0x488] sm:$0xff] }
 0x593   : > { %2531 = vmatpush.msrb.mxu1 %v5436_v42  ;;  %v5474_v42 = vld [vmem:[#allocation2 + $0x558] sm:$0xff] }
 0x595   : > { %2532 = vmatpush.msrb.mxu1 %v5437_v14  ;;  %v5475_v14 = vld [vmem:[#allocation2 + $0x4b0] sm:$0xff] }
 0x597   : > { %2533 = vmatpush.msrb.mxu1 %v5438_v15  ;;  %v5476_v15 = vld [vmem:[#allocation2 + $0x580] sm:$0xff] }
 0x599   : > { %2534 = vmatpush.msrb.mxu1 %v5439_v16  ;;  %v5477_v16 = vld [vmem:[#allocation2 + $0x478] sm:$0xff] }
 0x59b   : > { %2535 = vmatpush.msrb.mxu1 %v5440_v17  ;;  %v5478_v17 = vld [vmem:[#allocation2 + $0x548] sm:$0xff] }
 0x59d   : > { %2536 = vmatpush.msrb.mxu1 %v5441_v18  ;;  %v5479_v18 = vld [vmem:[#allocation2 + $0x4a0] sm:$0xff] }
 0x59f   : > { %2537 = vmatpush.msrb.mxu1 %v5442_v22  ;;  %v5480_v22 = vld [vmem:[#allocation2 + $0x570] sm:$0xff] }
 0x5a1   : > { %2538 = vmatpush.msrb.mxu1 %v5443_v23  ;;  %v5481_v23 = vld [vmem:[#allocation2 + $0x468] sm:$0xff] }
 0x5a3   : > { %2539 = vmatpush.msrb.mxu1 %v5444_v24  ;;  %v5482_v24 = vld [vmem:[#allocation2 + $0x538] sm:$0xff] }
 0x5dd   : > { %v2440_v61 = vpop.f32.mrf.mxu0 }
 0x5e0   : > { %v2368_v35 = vpop.f32.mrf.mxu1 }
 0x5e1   : > { %v2372_v0 = vadd.f32 %v2368_v35, %v2169_v31  ;;  %v5489_v31 = vld [vmem:[#allocation2 + $0x448] sm:$0xff]  ;;  %v5490_v35 = vld [vmem:[#allocation2 + $0x518] sm:$0xff] }
 0x5e3   : > { %v2380_v37 = vadd.f32 %v6386_v48, %v2372_v0  ;;  %v2400_v63 = vpop.f32.mrf.mxu2  ;;  %v5449_v48 = vld [vmem:[#allocation2 + $0x5c8] sm:$0xff]  ;;  %v5491_v0 = vld [vmem:[#allocation2 + $0x470] sm:$0xff] }
 0x5e5   : > { %v6407_v4 = vmax.f32 %v2380_v37, 0.0  ;;  %v2521_v40 = vpop.f32.mrf.mxu0  ;;  %v5492_v37 = vld [vmem:[#allocation2 + $0x540] sm:$0xff] }
 0x5e7   : > { %2419 = vmatmul.f32.vlgmr.msrb.gmra.mxu3 %v6407_v4  ;;  %2459 = vmatmul.f32.vlgmr.msra.gmra.mxu1 %v6407_v4 }
 0x5eb   : > { %v2481_v50 = vpop.f32.mrf.mxu2 }
 0x5ef   : > { %2500 = vmatmul.f32.vlgmr.msra.gmra.mxu3 %v6407_v4  ;;  %2540 = vmatmul.f32.vlgmr.msrb.gmra.mxu1 %v6407_v4 }
 0x664   : > { %v2460_v12 = vpop.f32.mrf.mxu1 }
 0x665   : > { %v2461_v30 = vadd.f32 %v2460_v12, %v2440_v61  ;;  %v5493_v61 = vld [vmem:[#allocation2 + $0x438] sm:$0xff]  ;;  %v5494_v12 = vld [vmem:[#allocation2 + $0x508] sm:$0xff] }
 0x667   : > { %2628 = vmatpush.msra.mxu1 %v2461_v30  ;;  %v5495_v30 = vld [vmem:[#allocation2 + $0x460] sm:$0xff] }
 0x668   : > { %5138 = vmatmul.msk.f32.vlgmr.msra.gmra.mxu1 %vm2546_vm2, %v2463_v51 }
 0x669   : > { %2693 = vmatpush.msrb.mxu1 %v5445_v36  ;;  %v5498_v36 = vld [vmem:[#allocation2 + $0x428] sm:$0xff] }
 0x66a   : > { %v2420_v62 = vpop.f32.mrf.mxu3 }
 0x66b   : > { %2694 = vmatpush.msrb.mxu1 %v5446_v38  ;;  %v2421_v39 = vadd.f32 %v2420_v62, %v2400_v63  ;;  %v5497_v63 = vld [vmem:[#allocation2 + $0x530] sm:$0xff]  ;;  %v5500_v38 = vld [vmem:[#allocation2 + $0x7e0] sm:$0xff] }
 0x66c   : > { %v2541_v43 = vpop.f32.mrf.mxu1  ;;  %v5499_v62 = vld [vmem:[#allocation2 + $0x450] sm:$0xff] }
 0x66d   : > { %2695 = vmatpush.msrb.mxu1 %v5447_v44  ;;  %v2542_v45 = vadd.f32 %v2541_v43, %v2521_v40  ;;  %2608 = vmatpush.msra.mxu0 %v2421_v39  ;;  %v5501_v39 = vld [vmem:[#allocation2 + $0x520] sm:$0xff]  ;;  %v5502_v40 = vld [vmem:[#allocation2 + $0x418] sm:$0xff]  ;;  %v5504_v44 = vld [vmem:[#allocation2 + $0x7d0] sm:$0xff] }
 0x66e   : > { %5137 = vmatmul.msk.f32.vlgmr.msra.gmra.mxu0 %vm2546_vm2, %v2463_v51  ;;  %v5496_v51 = vld [vmem:[#allocation2 + $0x7f0] sm:$0xff]  ;;  %v5503_v43 = vld [vmem:[#allocation2 + $0x440] sm:$0xff] }
 0x66f   : > { %2673 = vmatpush.msrb.mxu0 %v5448_v46  ;;  %2696 = vmatpush.msrb.mxu1 %v5449_v48  ;;  %v5506_v46 = vld [vmem:[#allocation2 + $0x408] sm:$0xff]  ;;  %v5507_v48 = vld [vmem:[#allocation2 + $0x7c0] sm:$0xff] }
 0x670   : > { %2585 = vmatpush.msrb.mxu3 %v2542_v45  ;;  %v5505_v45 = vld [vmem:[#allocation2 + $0x510] sm:$0xff] }
 0x671   : > { %2674 = vmatpush.msrb.mxu0 %v5451_v11  ;;  %2697 = vmatpush.msrb.mxu1 %v5452_v49  ;;  %v5509_v11 = vld [vmem:[#allocation2 + $0x430] sm:$0xff]  ;;  %v5510_v49 = vld [vmem:[#allocation2 + $0x500] sm:$0xff] }
 0x672   : > { %2653 = vmatpush.msra.mxu3 %v5450_v60  ;;  %v2501_v7 = vpop.f32.mrf.mxu3  ;;  %v5508_v60 = vld [vmem:[#allocation2 + $0x6f0] sm:$0xff] }
 0x673   : > { %5136 = vmatmul.msk.f32.vlgmr.msrb.gmra.mxu3 %vm2546_vm2, %v6420_v21  ;;  %2675 = vmatpush.msrb.mxu0 %v5454_v58  ;;  %v2502_v52 = vadd.f32 %v2501_v7, %v2481_v50  ;;  %v5511_v50 = vld [vmem:[#allocation2 + $0x7b0] sm:$0xff]  ;;  %v5512_v7 = vld [vmem:[#allocation2 + $0x6e0] sm:$0xff] }
 0x674   : > { %2654 = vmatpush.msra.mxu3 %v5453_v33  ;;  %2698 = vmatpush.msrb.mxu1 %v5455_v34  ;;  %v5513_v33 = vld [vmem:[#allocation2 + $0x420] sm:$0xff]  ;;  %v5517_v34 = vld [vmem:[#allocation2 + $0x790] sm:$0xff] }
 0x675   : > { %2676 = vmatpush.msrb.mxu0 %v5457_v55  ;;  %2565 = vmatpush.msrb.mxu2 %v2502_v52  ;;  %v5514_v58 = vld [vmem:[#allocation2 + $0x7a0] sm:$0xff]  ;;  %v5516_v52 = vld [vmem:[#allocation2 + $0x410] sm:$0xff] }
 0x676   : > { %2655 = vmatpush.msra.mxu3 %v5456_v54  ;;  %2699 = vmatpush.msrb.mxu1 %v5458_v56  ;;  %v5518_v54 = vld [vmem:[#allocation2 + $0x6c0] sm:$0xff] }
 0x677   : > { %2633 = vmatpush.msra.mxu2 %v5459_v53  ;;  %2677 = vmatpush.msrb.mxu0 %v5461_v59  ;;  %v5519_v55 = vld [vmem:[#allocation2 + $0x400] sm:$0xff]  ;;  %v5521_v53 = vld [vmem:[#allocation2 + $0x6b0] sm:$0xff] }
 0x678   : > { %2656 = vmatpush.msra.mxu3 %v5460_v57  ;;  %2700 = vmatpush.msrb.mxu1 %v5462_v1  ;;  %v5520_v56 = vld [vmem:[#allocation2 + $0x780] sm:$0xff]  ;;  %v5522_v57 = vld [vmem:[#allocation2 + $0x770] sm:$0xff] }
 0x679   : > { %2634 = vmatpush.msra.mxu2 %v5463_v2  ;;  %2678 = vmatpush.msrb.mxu0 %v5465_v20  ;;  %v5523_v59 = vld [vmem:[#allocation2 + $0x6a0] sm:$0xff]  ;;  %v5525_v2 = vld [vmem:[#allocation2 + $0x690] sm:$0xff] }
 0x67a   : > { %2657 = vmatpush.msra.mxu3 %v5464_v19  ;;  %2701 = vmatpush.msrb.mxu1 %v5466_v47  ;;  %v5524_v1 = vld [vmem:[#allocation2 + $0x760] sm:$0xff]  ;;  %v5526_v19 = vld [vmem:[#allocation2 + $0x750] sm:$0xff] }
 0x67b   : > { %2635 = vmatpush.msra.mxu2 %v5467_v5  ;;  %2679 = vmatpush.msrb.mxu0 %v5469_v8  ;;  %v5527_v20 = vld [vmem:[#allocation2 + $0x680] sm:$0xff]  ;;  %v5529_v5 = vld [vmem:[#allocation2 + $0x670] sm:$0xff] }
 0x67c   : > { %2658 = vmatpush.msra.mxu3 %v5468_v6  ;;  %2702 = vmatpush.msrb.mxu1 %v5470_v9  ;;  %v5528_v47 = vld [vmem:[#allocation2 + $0x740] sm:$0xff]  ;;  %v5530_v6 = vld [vmem:[#allocation2 + $0x730] sm:$0xff] }
 0x67d   : > { %2636 = vmatpush.msra.mxu2 %v5471_v41  ;;  %2680 = vmatpush.msrb.mxu0 %v5473_v13  ;;  %v5531_v8 = vld [vmem:[#allocation2 + $0x660] sm:$0xff]  ;;  %v5533_v41 = vld [vmem:[#allocation2 + $0x650] sm:$0xff] }
 0x67e   : > { %2659 = vmatpush.msra.mxu3 %v5472_v10  ;;  %2703 = vmatpush.msrb.mxu1 %v5474_v42  ;;  %v5532_v9 = vld [vmem:[#allocation2 + $0x720] sm:$0xff]  ;;  %v5534_v10 = vld [vmem:[#allocation2 + $0x710] sm:$0xff] }
 0x67f   : > { %2637 = vmatpush.msra.mxu2 %v5475_v14  ;;  %2681 = vmatpush.msrb.mxu0 %v5477_v16  ;;  %v5535_v13 = vld [vmem:[#allocation2 + $0x640] sm:$0xff]  ;;  %v5537_v14 = vld [vmem:[#allocation2 + $0x630] sm:$0xff] }
 0x680   : > { %2660 = vmatpush.msra.mxu3 %v5476_v15  ;;  %2704 = vmatpush.msrb.mxu1 %v5478_v17  ;;  %v5536_v42 = vld [vmem:[#allocation2 + $0x700] sm:$0xff]  ;;  %v5539_v16 = vld [vmem:[#allocation2 + $0x610] sm:$0xff] }
 0x681   : > { %2638 = vmatpush.msra.mxu2 %v5479_v18  ;;  %2682 = vmatpush.msrb.mxu0 %v5481_v23  ;;  %v5538_v15 = vld [vmem:[#allocation2 + $0x620] sm:$0xff] }
 0x682   : > { %2661 = vmatpush.msra.mxu3 %v5480_v22  ;;  %2705 = vmatpush.msrb.mxu1 %v5482_v24  ;;  %v5540_v17 = vld [vmem:[#allocation2 + $0x600] sm:$0xff] }
 0x683   : > { %2639 = vmatpush.msra.mxu2 %v5483_v25  ;;  %2683 = vmatpush.msrb.mxu0 %v5485_v27 }
 0x684   : > { %2662 = vmatpush.msra.mxu3 %v5484_v26  ;;  %2706 = vmatpush.msrb.mxu1 %v5486_v3  ;;  %v5139_v26 = vld [vmem:[%s7089_s5 + $0x10] sm:$0xff]  ;;  %v5541_v3 = vld [vmem:[#allocation2 + $0x7f8] sm:$0xff] }
 0x685   : > { %2640 = vmatpush.msra.mxu2 %v5487_v28  ;;  %2684 = vmatpush.msrb.mxu0 %v5489_v31  ;;  %v5543_v31 = vld [vmem:[#allocation2 + $0x7d8] sm:$0xff] }
 0x686   : > { %2663 = vmatpush.msra.mxu3 %v5488_v29  ;;  %2707 = vmatpush.msrb.mxu1 %v5490_v35  ;;  %v5542_v29 = vld [vmem:[#allocation2 + $0x7e8] sm:$0xff] }
 0x687   : > { %2641 = vmatpush.msra.mxu2 %v5491_v0  ;;  %2685 = vmatpush.msrb.mxu0 %v5493_v61  ;;  %v5544_v35 = vld [vmem:[#allocation2 + $0x7c8] sm:$0xff]  ;;  %v5545_v0 = vld [vmem:[#allocation2 + $0x7b8] sm:$0xff] }
 0x688   : > { %2664 = vmatpush.msra.mxu3 %v5492_v37  ;;  %2708 = vmatpush.msrb.mxu1 %v5494_v12  ;;  %v5546_v12 = vld [vmem:[#allocation2 + $0x7a8] sm:$0xff] }
 0x689   : > { %2709 = vmatmul.f32.vlgmr.msrb.gmra.mxu1 %v6407_v4  ;;  %2642 = vmatpush.msra.mxu2 %v5495_v30 }
 0x68a   : > { %2780 = vmatpush.msra.mxu1 %v5496_v51  ;;  %2665 = vmatpush.msra.mxu3 %v5497_v63  ;;  %v5547_v51 = vld [vmem:[#allocation2 + $0x798] sm:$0xff]  ;;  %v5548_v63 = vld [vmem:[#allocation2 + $0x788] sm:$0xff] }
 0x68b   : > { %2686 = vmatpush.msrb.mxu0 %v5498_v36  ;;  %2643 = vmatpush.msra.mxu2 %v5499_v62  ;;  %v5549_v36 = vld [vmem:[#allocation2 + $0x6f8] sm:$0xff] }
 0x68c   : > { %2781 = vmatpush.msra.mxu1 %v5500_v38  ;;  %2666 = vmatpush.msra.mxu3 %v5501_v39  ;;  %v5550_v62 = vld [vmem:[#allocation2 + $0x778] sm:$0xff]  ;;  %v5551_v38 = vld [vmem:[#allocation2 + $0x6e8] sm:$0xff] }
 0x68d   : > { %2687 = vmatpush.msrb.mxu0 %v5502_v40  ;;  %2644 = vmatpush.msra.mxu2 %v5503_v43  ;;  %v5552_v39 = vld [vmem:[#allocation2 + $0x768] sm:$0xff]  ;;  %v5553_v40 = vld [vmem:[#allocation2 + $0x6d8] sm:$0xff] }
 0x68e   : > { %2782 = vmatpush.msra.mxu1 %v5504_v44  ;;  %2667 = vmatpush.msra.mxu3 %v5505_v45  ;;  %v5554_v43 = vld [vmem:[#allocation2 + $0x758] sm:$0xff]  ;;  %v5555_v44 = vld [vmem:[#allocation2 + $0x6c8] sm:$0xff] }
 0x68f   : > { %2688 = vmatpush.msrb.mxu0 %v5506_v46  ;;  %5135 = vmatmul.msk.f32.vlgmr.msrb.gmra.mxu2 %vm2546_vm2, %v6420_v21  ;;  %v5515_v21 = vld [vmem:[#allocation2 + $0x6d0] sm:$0xff]  ;;  %v5556_v45 = vld [vmem:[#allocation2 + $0x748] sm:$0xff]  ;;  %v5557_v46 = vld [vmem:[#allocation2 + $0x6b8] sm:$0xff] }
 0x690   : > { %2689 = vmatmul.f32.vlgmr.msrb.gmra.mxu0 %v6389_v32  ;;  %2783 = vmatpush.msra.mxu1 %v5507_v48  ;;  %v5558_v48 = vld [vmem:[#allocation2 + $0x738] sm:$0xff] }
 0x691   : > { %2760 = vmatpush.msra.mxu0 %v5508_v60  ;;  %2645 = vmatpush.msra.mxu2 %v5509_v11  ;;  %v5559_v60 = vld [vmem:[#allocation2 + $0x6a8] sm:$0xff] }
 0x692   : > { %2668 = vmatpush.msra.mxu3 %v5510_v49  ;;  %2784 = vmatpush.msra.mxu1 %v5511_v50  ;;  %v5560_v11 = vld [vmem:[#allocation2 + $0x728] sm:$0xff]  ;;  %v5561_v50 = vld [vmem:[#allocation2 + $0x698] sm:$0xff] }
 0x693   : > { %2669 = vmatmul.f32.vlgmr.msra.gmra.mxu3 %v6407_v4  ;;  %2761 = vmatpush.msra.mxu0 %v5512_v7 }
 0x694   : > { %2646 = vmatpush.msra.mxu2 %v5513_v33  ;;  %2785 = vmatpush.msra.mxu1 %v5514_v58  ;;  %v5562_v58 = vld [vmem:[#allocation2 + $0x718] sm:$0xff] }
 0x695   : > { %2762 = vmatpush.msra.mxu0 %v5515_v21  ;;  %v5563_v21 = vld [vmem:[#allocation2 + $0x688] sm:$0xff] }
 0x696   : > { %2647 = vmatpush.msra.mxu2 %v5516_v52  ;;  %2786 = vmatpush.msra.mxu1 %v5517_v34  ;;  %v6449_v52 = vld [vmem:[%s7089_s5 + $0x18] sm:$0xff]  ;;  %v5564_v34 = vld [vmem:[#allocation2 + $0x708] sm:$0xff] }
 0x697   : > { %2763 = vmatpush.msra.mxu0 %v5518_v54  ;;  %v5565_v54 = vld [vmem:[#allocation2 + $0x678] sm:$0xff] }
 0x698   : > { %2648 = vmatpush.msra.mxu2 %v5519_v55  ;;  %2787 = vmatpush.msra.mxu1 %v5520_v56  ;;  %v5566_v55 = vld [vmem:[#allocation2 + $0x9f0] sm:$0xff]  ;;  %v5567_v56 = vld [vmem:[#allocation2 + $0x8f8] sm:$0xff] }
 0x699   : > { %2649 = vmatmul.f32.vlgmr.msra.gmra.mxu2 %v6389_v32  ;;  %2764 = vmatpush.msra.mxu0 %v5521_v53  ;;  %v5568_v53 = vld [vmem:[#allocation2 + $0x668] sm:$0xff] }
 0x69a   : > { %2788 = vmatpush.msra.mxu1 %v5522_v57  ;;  %v5569_v57 = vld [vmem:[#allocation2 + $0x9e0] sm:$0xff] }
 0x69b   : > { %2765 = vmatpush.msra.mxu0 %v5523_v59  ;;  %v5570_v59 = vld [vmem:[#allocation2 + $0x8e8] sm:$0xff] }
 0x69c   : > { %2789 = vmatpush.msra.mxu1 %v5524_v1  ;;  %v5571_v1 = vld [vmem:[#allocation2 + $0x658] sm:$0xff] }
 0x69d   : > { %2766 = vmatpush.msra.mxu0 %v5525_v2  ;;  %v5572_v2 = vld [vmem:[#allocation2 + $0x9d0] sm:$0xff] }
 0x69e   : > { %2790 = vmatpush.msra.mxu1 %v5526_v19  ;;  %v5573_v19 = vld [vmem:[#allocation2 + $0x8d8] sm:$0xff] }
 0x69f   : > { %2767 = vmatpush.msra.mxu0 %v5527_v20  ;;  %v5574_v20 = vld [vmem:[#allocation2 + $0x648] sm:$0xff] }
 0x6a0   : > { %2791 = vmatpush.msra.mxu1 %v5528_v47  ;;  %v5575_v47 = vld [vmem:[#allocation2 + $0x9c0] sm:$0xff] }
 0x6a1   : > { %2768 = vmatpush.msra.mxu0 %v5529_v5  ;;  %v5576_v5 = vld [vmem:[#allocation2 + $0x8c8] sm:$0xff] }
 0x6a2   : > { %2792 = vmatpush.msra.mxu1 %v5530_v6  ;;  %v5577_v6 = vld [vmem:[#allocation2 + $0x638] sm:$0xff] }
 0x6a3   : > { %2769 = vmatpush.msra.mxu0 %v5531_v8  ;;  %v5578_v8 = vld [vmem:[#allocation2 + $0x9b0] sm:$0xff] }
 0x6a4   : > { %2793 = vmatpush.msra.mxu1 %v5532_v9  ;;  %v5579_v9 = vld [vmem:[#allocation2 + $0x8b8] sm:$0xff] }
 0x6a5   : > { %2770 = vmatpush.msra.mxu0 %v5533_v41  ;;  %v5580_v41 = vld [vmem:[#allocation2 + $0x628] sm:$0xff] }
 0x6a6   : > { %2794 = vmatpush.msra.mxu1 %v5534_v10  ;;  %v5581_v10 = vld [vmem:[#allocation2 + $0x9a0] sm:$0xff] }
 0x6a7   : > { %2771 = vmatpush.msra.mxu0 %v5535_v13  ;;  %v5582_v13 = vld [vmem:[#allocation2 + $0x8a8] sm:$0xff] }
 0x6a8   : > { %2795 = vmatpush.msra.mxu1 %v5536_v42  ;;  %v5583_v42 = vld [vmem:[#allocation2 + $0x618] sm:$0xff] }
 0x6a9   : > { %2772 = vmatpush.msra.mxu0 %v5537_v14  ;;  %2796 = vmatmul.f32.vlgmr.msra.gmra.mxu1 %v6407_v4  ;;  %v5584_v14 = vld [vmem:[#allocation2 + $0x990] sm:$0xff] }
 0x6ab   : > { %2773 = vmatpush.msra.mxu0 %v5538_v15  ;;  %v5585_v15 = vld [vmem:[#allocation2 + $0x898] sm:$0xff] }
 0x6ad   : > { %2774 = vmatpush.msra.mxu0 %v5539_v16  ;;  %v5586_v16 = vld [vmem:[#allocation2 + $0x608] sm:$0xff] }
 0x6af   : > { %2775 = vmatpush.msra.mxu0 %v5540_v17  ;;  %v5587_v17 = vld [vmem:[#allocation2 + $0x980] sm:$0xff] }
 0x6b0   : > { %2776 = vmatmul.f32.vlgmr.msra.gmra.mxu0 %v6389_v32 }
 0x6e5   : > { %v6433_v18 = vpop.f32.mrf.mxu1 }
 0x6eb   : > { %v6435_v22 = vpop.f32.mrf.mxu0 }
 0x6f6   : > { %v6441_v27 = vpop.f32.mrf.mxu3 }
 0x706   : > { %v2710_v23 = vpop.f32.mrf.mxu1 }
 0x70d   : > { %v2690_v24 = vpop.f32.mrf.mxu0 }
 0x70e   : > { %v2711_v25 = vadd.f32 %v2710_v23, %v2690_v24  ;;  %v5588_v23 = vld [vmem:[#allocation2 + $0x8f0] sm:$0xff]  ;;  %v5589_v24 = vld [vmem:[#allocation2 + $0x888] sm:$0xff] }
 0x710   : > { %2753 = vmatpush.msrb.mxu3 %v2711_v25  ;;  %v5590_v25 = vld [vmem:[#allocation2 + $0x970] sm:$0xff] }
 0x711   : > { %5141 = vmatmul.msk.f32.vlgmr.msrb.gmra.mxu3 %vm2546_vm2, %v5139_v26 }
 0x712   : > { %2820 = vmatpush.msra.mxu3 %v5541_v3  ;;  %v6443_v28 = vpop.f32.mrf.mxu2  ;;  %v5592_v3 = vld [vmem:[#allocation2 + $0x878] sm:$0xff] }
 0x714   : > { %2821 = vmatpush.msra.mxu3 %v5542_v29  ;;  %v5593_v29 = vld [vmem:[#allocation2 + $0x960] sm:$0xff] }
 0x716   : > { %2822 = vmatpush.msra.mxu3 %v5543_v31  ;;  %v2670_v37 = vpop.f32.mrf.mxu3  ;;  %v5594_v31 = vld [vmem:[#allocation2 + $0x8d0] sm:$0xff] }
 0x718   : > { %2823 = vmatpush.msra.mxu3 %v5544_v35  ;;  %v5595_v35 = vld [vmem:[#allocation2 + $0x868] sm:$0xff] }
 0x71a   : > { %2824 = vmatpush.msra.mxu3 %v5545_v0  ;;  %v5596_v0 = vld [vmem:[#allocation2 + $0x950] sm:$0xff] }
 0x71c   : > { %v2650_v61 = vpop.f32.mrf.mxu2  ;;  %2825 = vmatpush.msra.mxu3 %v5546_v12  ;;  %v5599_v12 = vld [vmem:[#allocation2 + $0x940] sm:$0xff] }
 0x71d   : > { %v2671_v30 = vadd.f32 %v2670_v37, %v2650_v61  ;;  %v5597_v37 = vld [vmem:[#allocation2 + $0x8c0] sm:$0xff]  ;;  %v5598_v61 = vld [vmem:[#allocation2 + $0x858] sm:$0xff] }
 0x71e   : > { %2826 = vmatpush.msra.mxu3 %v5547_v51  ;;  %v5601_v51 = vld [vmem:[#allocation2 + $0x848] sm:$0xff] }
 0x71f   : > { %2733 = vmatpush.msrb.mxu2 %v2671_v30  ;;  %v5600_v30 = vld [vmem:[#allocation2 + $0x8b0] sm:$0xff] }
 0x720   : > { %5140 = vmatmul.msk.f32.vlgmr.msrb.gmra.mxu2 %vm2546_vm2, %v5139_v26  ;;  %2827 = vmatpush.msra.mxu3 %v5548_v63  ;;  %v5591_v26 = vld [vmem:[#allocation2 + $0x8e0] sm:$0xff]  ;;  %v5602_v63 = vld [vmem:[#allocation2 + $0x930] sm:$0xff] }
 0x721   : > { %2800 = vmatpush.msra.mxu2 %v5549_v36  ;;  %v5603_v36 = vld [vmem:[#allocation2 + $0x8a0] sm:$0xff] }
 0x722   : > { %2828 = vmatpush.msra.mxu3 %v5550_v62  ;;  %v5604_v62 = vld [vmem:[#allocation2 + $0x838] sm:$0xff] }
 0x723   : > { %2801 = vmatpush.msra.mxu2 %v5551_v38  ;;  %v5605_v38 = vld [vmem:[#allocation2 + $0x920] sm:$0xff] }
 0x724   : > { %2829 = vmatpush.msra.mxu3 %v5552_v39  ;;  %v5606_v39 = vld [vmem:[#allocation2 + $0x890] sm:$0xff] }
 0x725   : > { %2802 = vmatpush.msra.mxu2 %v5553_v40  ;;  %v5607_v40 = vld [vmem:[#allocation2 + $0x828] sm:$0xff] }
 0x726   : > { %2830 = vmatpush.msra.mxu3 %v5554_v43  ;;  %v2797_v49 = vpop.f32.mrf.mxu1  ;;  %v5608_v43 = vld [vmem:[#allocation2 + $0x910] sm:$0xff] }
 0x727   : > { %2803 = vmatpush.msra.mxu2 %v5555_v44  ;;  %v5609_v44 = vld [vmem:[#allocation2 + $0x880] sm:$0xff] }
 0x728   : > { %2831 = vmatpush.msra.mxu3 %v5556_v45  ;;  %v5610_v45 = vld [vmem:[#allocation2 + $0x818] sm:$0xff] }
 0x729   : > { %2804 = vmatpush.msra.mxu2 %v5557_v46  ;;  %v5611_v46 = vld [vmem:[#allocation2 + $0x900] sm:$0xff] }
 0x72a   : > { %2832 = vmatpush.msra.mxu3 %v5558_v48  ;;  %v5612_v48 = vld [vmem:[#allocation2 + $0x870] sm:$0xff] }
 0x72b   : > { %2805 = vmatpush.msra.mxu2 %v5559_v60  ;;  %v5613_v60 = vld [vmem:[#allocation2 + $0x808] sm:$0xff] }
 0x72c   : > { %2833 = vmatpush.msra.mxu3 %v5560_v11  ;;  %v5614_v11 = vld [vmem:[#allocation2 + $0xaf0] sm:$0xff] }
 0x72d   : > { %2806 = vmatpush.msra.mxu2 %v5561_v50  ;;  %v2777_v7 = vpop.f32.mrf.mxu0  ;;  %v5616_v50 = vld [vmem:[#allocation2 + $0xae0] sm:$0xff] }
 0x72e   : > { %v2798_v33 = vadd.f32 %v2797_v49, %v2777_v7  ;;  %2834 = vmatpush.msra.mxu3 %v5562_v58  ;;  %v5615_v49 = vld [vmem:[#allocation2 + $0x860] sm:$0xff]  ;;  %v5617_v7 = vld [vmem:[#allocation2 + $0x850] sm:$0xff] }
 0x72f   : > { %2807 = vmatpush.msra.mxu2 %v5563_v21  ;;  %v5619_v58 = vld [vmem:[#allocation2 + $0x840] sm:$0xff] }
 0x730   : > { %2835 = vmatpush.msra.mxu3 %v5564_v34  ;;  %2860 = vmatpush.msrb.mxu0 %v2798_v33  ;;  %v5618_v33 = vld [vmem:[#allocation2 + $0xad0] sm:$0xff]  ;;  %v5620_v21 = vld [vmem:[#allocation2 + $0xac0] sm:$0xff] }
 0x731   : > { %2808 = vmatpush.msra.mxu2 %v5565_v54  ;;  %2836 = vmatmul.f32.vlgmr.msra.gmra.mxu3 %v6407_v4  ;;  %v5621_v34 = vld [vmem:[#allocation2 + $0x830] sm:$0xff] }
 0x732   : > { %5143 = vmatmul.msk.f32.vlgmr.msrb.gmra.mxu0 %vm2546_vm2, %v6449_v52  ;;  %2907 = vmatpush.msrb.mxu3 %v5566_v55  ;;  %v5622_v54 = vld [vmem:[#allocation2 + $0xab0] sm:$0xff]  ;;  %v5623_v55 = vld [vmem:[#allocation2 + $0x820] sm:$0xff] }
 0x733   : > { %2927 = vmatpush.msra.mxu0 %v5567_v56  ;;  %2809 = vmatpush.msra.mxu2 %v5568_v53  ;;  %v5624_v56 = vld [vmem:[#allocation2 + $0xaa0] sm:$0xff]  ;;  %v5625_v53 = vld [vmem:[#allocation2 + $0x810] sm:$0xff] }
 0x734   : > { %2908 = vmatpush.msrb.mxu3 %v5569_v57  ;;  %v5626_v57 = vld [vmem:[#allocation2 + $0xa90] sm:$0xff] }
 0x735   : > { %2928 = vmatpush.msra.mxu0 %v5570_v59  ;;  %2810 = vmatpush.msra.mxu2 %v5571_v1  ;;  %v5627_v59 = vld [vmem:[#allocation2 + $0x800] sm:$0xff] }
 0x736   : > { %2909 = vmatpush.msrb.mxu3 %v5572_v2  ;;  %v5628_v1 = vld [vmem:[#allocation2 + $0xa80] sm:$0xff]  ;;  %v5629_v2 = vld [vmem:[#allocation2 + $0xa70] sm:$0xff] }
 0x737   : > { %2929 = vmatpush.msra.mxu0 %v5573_v19  ;;  %2811 = vmatpush.msra.mxu2 %v5574_v20  ;;  %v5630_v19 = vld [vmem:[#allocation2 + $0xa60] sm:$0xff]  ;;  %v5631_v20 = vld [vmem:[#allocation2 + $0xa50] sm:$0xff] }
 0x738   : > { %2910 = vmatpush.msrb.mxu3 %v5575_v47  ;;  %v5632_v47 = vld [vmem:[#allocation2 + $0xa40] sm:$0xff] }
 0x739   : > { %2930 = vmatpush.msra.mxu0 %v5576_v5  ;;  %2812 = vmatpush.msra.mxu2 %v5577_v6  ;;  %v5633_v5 = vld [vmem:[#allocation2 + $0xa30] sm:$0xff]  ;;  %v5634_v6 = vld [vmem:[#allocation2 + $0xa20] sm:$0xff] }
 0x73a   : > { %2911 = vmatpush.msrb.mxu3 %v5578_v8  ;;  %v5635_v8 = vld [vmem:[#allocation2 + $0xa10] sm:$0xff] }
 0x73b   : > { %2931 = vmatpush.msra.mxu0 %v5579_v9  ;;  %2813 = vmatpush.msra.mxu2 %v5580_v41  ;;  %v5636_v9 = vld [vmem:[#allocation2 + $0xa00] sm:$0xff] }
 0x73c   : > { %2912 = vmatpush.msrb.mxu3 %v5581_v10 }
 0x73d   : > { %2932 = vmatpush.msra.mxu0 %v5582_v13  ;;  %2814 = vmatpush.msra.mxu2 %v5583_v42 }
 0x73e   : > { %2913 = vmatpush.msrb.mxu3 %v5584_v14 }
 0x73f   : > { %2933 = vmatpush.msra.mxu0 %v5585_v15  ;;  %2815 = vmatpush.msra.mxu2 %v5586_v16  ;;  %v5637_v15 = vld [vmem:[#allocation2 + $0x9f8] sm:$0xff]  ;;  %v5638_v16 = vld [vmem:[#allocation2 + $0x9e8] sm:$0xff] }
 0x740   : > { %2816 = vmatmul.f32.vlgmr.msra.gmra.mxu2 %v6389_v32  ;;  %2914 = vmatpush.msrb.mxu3 %v5587_v17  ;;  %v5639_v17 = vld [vmem:[#allocation2 + $0x9d8] sm:$0xff] }
 0x741   : > { %2887 = vmatpush.msrb.mxu2 %v5588_v23  ;;  %2934 = vmatpush.msra.mxu0 %v5589_v24  ;;  %v5640_v23 = vld [vmem:[#allocation2 + $0x9c8] sm:$0xff]  ;;  %v5641_v24 = vld [vmem:[#allocation2 + $0x9b8] sm:$0xff] }
 0x742   : > { %2915 = vmatpush.msrb.mxu3 %v5590_v25  ;;  %v5642_v25 = vld [vmem:[#allocation2 + $0x9a8] sm:$0xff] }
 0x743   : > { %2888 = vmatpush.msrb.mxu2 %v5591_v26  ;;  %2935 = vmatpush.msra.mxu0 %v5592_v3  ;;  %v5643_v26 = vld [vmem:[#allocation2 + $0x998] sm:$0xff]  ;;  %v5644_v3 = vld [vmem:[#allocation2 + $0x988] sm:$0xff] }
 0x744   : > { %2916 = vmatpush.msrb.mxu3 %v5593_v29  ;;  %v5645_v29 = vld [vmem:[#allocation2 + $0x978] sm:$0xff] }
 0x745   : > { %2889 = vmatpush.msrb.mxu2 %v5594_v31  ;;  %2936 = vmatpush.msra.mxu0 %v5595_v35  ;;  %v5646_v31 = vld [vmem:[#allocation2 + $0x968] sm:$0xff] }
 0x746   : > { %2917 = vmatpush.msrb.mxu3 %v5596_v0  ;;  %v5648_v35 = vld [vmem:[#allocation2 + $0x948] sm:$0xff]  ;;  %v5649_v0 = vld [vmem:[#allocation2 + $0x938] sm:$0xff] }
 0x747   : > { %2890 = vmatpush.msrb.mxu2 %v5597_v37  ;;  %2937 = vmatpush.msra.mxu0 %v5598_v61  ;;  %v5650_v37 = vld [vmem:[#allocation2 + $0x928] sm:$0xff] }
 0x748   : > { %2918 = vmatpush.msrb.mxu3 %v5599_v12 }
 0x749   : > { %2891 = vmatpush.msrb.mxu2 %v5600_v30  ;;  %2938 = vmatpush.msra.mxu0 %v5601_v51  ;;  %v5651_v51 = vld [vmem:[#allocation2 + $0x918] sm:$0xff] }
 0x74a   : > { %2919 = vmatpush.msrb.mxu3 %v5602_v63  ;;  %v6468_v63 = vld [vmem:[%s7089_s5 + $0x20] sm:$0xff] }
 0x74b   : > { %2892 = vmatpush.msrb.mxu2 %v5603_v36  ;;  %2939 = vmatpush.msra.mxu0 %v5604_v62  ;;  %v5652_v36 = vld [vmem:[#allocation2 + $0x908] sm:$0xff]  ;;  %v5653_v62 = vld [vmem:[#allocation2 + $0xbf0] sm:$0xff] }
 0x74c   : > { %2920 = vmatpush.msrb.mxu3 %v5605_v38  ;;  %v5654_v38 = vld [vmem:[#allocation2 + $0xaf8] sm:$0xff] }
 0x74d   : > { %2893 = vmatpush.msrb.mxu2 %v5606_v39  ;;  %2940 = vmatpush.msra.mxu0 %v5607_v40  ;;  %v5655_v39 = vld [vmem:[#allocation2 + $0xbe0] sm:$0xff]  ;;  %v5656_v40 = vld [vmem:[#allocation2 + $0xae8] sm:$0xff] }
 0x74e   : > { %2921 = vmatpush.msrb.mxu3 %v5608_v43  ;;  %v5657_v43 = vld [vmem:[#allocation2 + $0xbd0] sm:$0xff] }
 0x74f   : > { %2894 = vmatpush.msrb.mxu2 %v5609_v44  ;;  %2941 = vmatpush.msra.mxu0 %v5610_v45  ;;  %v5658_v44 = vld [vmem:[#allocation2 + $0xad8] sm:$0xff]  ;;  %v5659_v45 = vld [vmem:[#allocation2 + $0xbc0] sm:$0xff] }
 0x750   : > { %2922 = vmatpush.msrb.mxu3 %v5611_v46  ;;  %v5660_v46 = vld [vmem:[#allocation2 + $0xac8] sm:$0xff] }
 0x751   : > { %2895 = vmatpush.msrb.mxu2 %v5612_v48  ;;  %2942 = vmatpush.msra.mxu0 %v5613_v60  ;;  %v5661_v48 = vld [vmem:[#allocation2 + $0xbb0] sm:$0xff]  ;;  %v5662_v60 = vld [vmem:[#allocation2 + $0xab8] sm:$0xff] }
 0x752   : > { %2923 = vmatmul.f32.vlgmr.msrb.gmra.mxu3 %v6407_v4  ;;  %2943 = vmatmul.f32.vlgmr.msra.gmra.mxu0 %v6389_v32 }
 0x753   : > { %3014 = vmatpush.msrb.mxu0 %v5614_v11  ;;  %2896 = vmatpush.msrb.mxu2 %v5615_v49  ;;  %v5663_v11 = vld [vmem:[#allocation2 + $0xba0] sm:$0xff]  ;;  %v5664_v49 = vld [vmem:[#allocation2 + $0xaa8] sm:$0xff] }
 0x755   : > { %3015 = vmatpush.msrb.mxu0 %v5616_v50  ;;  %2897 = vmatpush.msrb.mxu2 %v5617_v7  ;;  %v5665_v50 = vld [vmem:[#allocation2 + $0xb90] sm:$0xff]  ;;  %v5666_v7 = vld [vmem:[#allocation2 + $0xa98] sm:$0xff] }
 0x757   : > { %3016 = vmatpush.msrb.mxu0 %v5618_v33  ;;  %2898 = vmatpush.msrb.mxu2 %v5619_v58  ;;  %v5667_v33 = vld [vmem:[#allocation2 + $0xb80] sm:$0xff]  ;;  %v5668_v58 = vld [vmem:[#allocation2 + $0xa88] sm:$0xff] }
 0x759   : > { %3017 = vmatpush.msrb.mxu0 %v5620_v21  ;;  %2899 = vmatpush.msrb.mxu2 %v5621_v34  ;;  %v5669_v21 = vld [vmem:[#allocation2 + $0xb70] sm:$0xff]  ;;  %v5670_v34 = vld [vmem:[#allocation2 + $0xa78] sm:$0xff] }
 0x75b   : > { %3018 = vmatpush.msrb.mxu0 %v5622_v54  ;;  %2900 = vmatpush.msrb.mxu2 %v5623_v55  ;;  %v5671_v54 = vld [vmem:[#allocation2 + $0xb60] sm:$0xff]  ;;  %v5672_v55 = vld [vmem:[#allocation2 + $0xa68] sm:$0xff] }
 0x75d   : > { %3019 = vmatpush.msrb.mxu0 %v5624_v56  ;;  %2901 = vmatpush.msrb.mxu2 %v5625_v53  ;;  %v5673_v56 = vld [vmem:[#allocation2 + $0xb50] sm:$0xff]  ;;  %v5674_v53 = vld [vmem:[#allocation2 + $0xa58] sm:$0xff] }
 0x75f   : > { %3020 = vmatpush.msrb.mxu0 %v5626_v57  ;;  %2902 = vmatpush.msrb.mxu2 %v5627_v59  ;;  %v5675_v57 = vld [vmem:[#allocation2 + $0xb40] sm:$0xff]  ;;  %v5676_v59 = vld [vmem:[#allocation2 + $0xa48] sm:$0xff] }
 0x760   : > { %2903 = vmatmul.f32.vlgmr.msrb.gmra.mxu2 %v6389_v32 }
 0x761   : > { %3021 = vmatpush.msrb.mxu0 %v5628_v1  ;;  %v5677_v1 = vld [vmem:[#allocation2 + $0xb30] sm:$0xff] }
 0x763   : > { %3022 = vmatpush.msrb.mxu0 %v5629_v2  ;;  %v5678_v2 = vld [vmem:[#allocation2 + $0xa38] sm:$0xff] }
 0x765   : > { %3023 = vmatpush.msrb.mxu0 %v5630_v19  ;;  %v5679_v19 = vld [vmem:[#allocation2 + $0xb20] sm:$0xff] }
 0x767   : > { %3024 = vmatpush.msrb.mxu0 %v5631_v20  ;;  %v5680_v20 = vld [vmem:[#allocation2 + $0xa28] sm:$0xff] }
 0x769   : > { %3025 = vmatpush.msrb.mxu0 %v5632_v47  ;;  %v5681_v47 = vld [vmem:[#allocation2 + $0xb10] sm:$0xff] }
 0x76b   : > { %3026 = vmatpush.msrb.mxu0 %v5633_v5  ;;  %v5682_v5 = vld [vmem:[#allocation2 + $0xa18] sm:$0xff] }
 0x76d   : > { %3027 = vmatpush.msrb.mxu0 %v5634_v6  ;;  %v5683_v6 = vld [vmem:[#allocation2 + $0xb00] sm:$0xff] }
 0x76f   : > { %3028 = vmatpush.msrb.mxu0 %v5635_v8  ;;  %v5684_v8 = vld [vmem:[#allocation2 + $0xa08] sm:$0xff] }
 0x771   : > { %3029 = vmatpush.msrb.mxu0 %v5636_v9  ;;  %v5685_v9 = vld [vmem:[#allocation2 + $0xcf0] sm:$0xff] }
 0x772   : > { %3030 = vmatmul.f32.vlgmr.msrb.gmra.mxu0 %v6389_v32 }
 0x794   : > { %v6459_v41 = vpop.f32.mrf.mxu3 }
 0x7a3   : > { %v6461_v10 = vpop.f32.mrf.mxu2 }
 0x7b4   : > { %v2837_v13 = vpop.f32.mrf.mxu3 }
 0x7c3   : > { %v2817_v42 = vpop.f32.mrf.mxu2 }
 0x7c4   : > { %v2838_v14 = vadd.f32 %v2837_v13, %v2817_v42  ;;  %v5686_v13 = vld [vmem:[#allocation2 + $0xce0] sm:$0xff]  ;;  %v5687_v42 = vld [vmem:[#allocation2 + $0xcd0] sm:$0xff] }
 0x7c6   : > { %2880 = vmatpush.msrb.mxu1 %v2838_v14  ;;  %v5688_v14 = vld [vmem:[#allocation2 + $0xcc0] sm:$0xff] }
 0x7c7   : > { %5144 = vmatmul.msk.f32.vlgmr.msrb.gmra.mxu1 %vm2546_vm2, %v6449_v52  ;;  %v5647_v52 = vld [vmem:[#allocation2 + $0x958] sm:$0xff] }
 0x7c8   : > { %2947 = vmatpush.msra.mxu1 %v5637_v15  ;;  %v5689_v15 = vld [vmem:[#allocation2 + $0xcb0] sm:$0xff] }
 0x7ca   : > { %2948 = vmatpush.msra.mxu1 %v5638_v16  ;;  %v5690_v16 = vld [vmem:[#allocation2 + $0xca0] sm:$0xff] }
 0x7cc   : > { %2949 = vmatpush.msra.mxu1 %v5639_v17  ;;  %v5691_v17 = vld [vmem:[#allocation2 + $0xc90] sm:$0xff] }
 0x7ce   : > { %2950 = vmatpush.msra.mxu1 %v5640_v23  ;;  %v5692_v23 = vld [vmem:[#allocation2 + $0xc80] sm:$0xff] }
 0x7d0   : > { %2951 = vmatpush.msra.mxu1 %v5641_v24  ;;  %v5693_v24 = vld [vmem:[#allocation2 + $0xc70] sm:$0xff] }
 0x7d2   : > { %2952 = vmatpush.msra.mxu1 %v5642_v25  ;;  %v5694_v25 = vld [vmem:[#allocation2 + $0xc60] sm:$0xff] }
 0x7d4   : > { %2953 = vmatpush.msra.mxu1 %v5643_v26  ;;  %v5695_v26 = vld [vmem:[#allocation2 + $0xc50] sm:$0xff] }
 0x7d5   : > { %v2924_v61 = vpop.f32.mrf.mxu3 }
 0x7d6   : > { %2954 = vmatpush.msra.mxu1 %v5644_v3  ;;  %v5696_v3 = vld [vmem:[#allocation2 + $0xc40] sm:$0xff] }
 0x7d8   : > { %2955 = vmatpush.msra.mxu1 %v5645_v29  ;;  %v5697_v29 = vld [vmem:[#allocation2 + $0xc30] sm:$0xff] }
 0x7da   : > { %2956 = vmatpush.msra.mxu1 %v5646_v31  ;;  %v5698_v31 = vld [vmem:[#allocation2 + $0xc20] sm:$0xff] }
 0x7dc   : > { %2957 = vmatpush.msra.mxu1 %v5647_v52  ;;  %v5699_v52 = vld [vmem:[#allocation2 + $0xc10] sm:$0xff] }
 0x7de   : > { %2958 = vmatpush.msra.mxu1 %v5648_v35  ;;  %v5700_v35 = vld [vmem:[#allocation2 + $0xc00] sm:$0xff] }
 0x7e0   : > { %2959 = vmatpush.msra.mxu1 %v5649_v0  ;;  %v6476_v0 = vpop.f32.mrf.mxu0 }
 0x7e2   : > { %2960 = vmatpush.msra.mxu1 %v5650_v37 }
 0x7e3   : > { %v2904_v12 = vpop.f32.mrf.mxu2 }
 0x7e4   : > { %v2925_v30 = vadd.f32 %v2924_v61, %v2904_v12  ;;  %2961 = vmatpush.msra.mxu1 %v5651_v51  ;;  %v5701_v51 = vld [vmem:[#allocation2 + $0xbf8] sm:$0xff] }
 0x7e6   : > { %2962 = vmatpush.msra.mxu1 %v5652_v36  ;;  %2987 = vmatpush.msra.mxu2 %v2925_v30  ;;  %v5702_v36 = vld [vmem:[#allocation2 + $0xbe8] sm:$0xff] }
 0x7e7   : > { %2963 = vmatmul.f32.vlgmr.msra.gmra.mxu1 %v6407_v4  ;;  %5146 = vmatmul.msk.f32.vlgmr.msra.gmra.mxu2 %vm2546_vm2, %v6468_v63 }
 0x7e8   : > { %3034 = vmatpush.msrb.mxu1 %v5653_v62  ;;  %3054 = vmatpush.msrb.mxu2 %v5654_v38  ;;  %v2944_v61 = vpop.f32.mrf.mxu0  ;;  %v5703_v62 = vld [vmem:[#allocation2 + $0xbd8] sm:$0xff]  ;;  %v5704_v38 = vld [vmem:[#allocation2 + $0xbc8] sm:$0xff] }
 0x7ea   : > { %3035 = vmatpush.msrb.mxu1 %v5655_v39  ;;  %3055 = vmatpush.msrb.mxu2 %v5656_v40  ;;  %v5705_v39 = vld [vmem:[#allocation2 + $0xbb8] sm:$0xff]  ;;  %v5706_v40 = vld [vmem:[#allocation2 + $0xba8] sm:$0xff] }
 0x7ec   : > { %3036 = vmatpush.msrb.mxu1 %v5657_v43  ;;  %3056 = vmatpush.msrb.mxu2 %v5658_v44  ;;  %v5707_v43 = vld [vmem:[#allocation2 + $0xb98] sm:$0xff]  ;;  %v5708_v44 = vld [vmem:[#allocation2 + $0xb88] sm:$0xff] }
 0x7ee   : > { %3037 = vmatpush.msrb.mxu1 %v5659_v45  ;;  %3057 = vmatpush.msrb.mxu2 %v5660_v46  ;;  %v5709_v45 = vld [vmem:[#allocation2 + $0xb78] sm:$0xff]  ;;  %v5710_v46 = vld [vmem:[#allocation2 + $0xb68] sm:$0xff] }
 0x7f0   : > { %3038 = vmatpush.msrb.mxu1 %v5661_v48  ;;  %3058 = vmatpush.msrb.mxu2 %v5662_v60  ;;  %v5712_v48 = vld [vmem:[#allocation2 + $0xb48] sm:$0xff]  ;;  %v5713_v60 = vld [vmem:[#allocation2 + $0xb38] sm:$0xff] }
 0x7f2   : > { %3039 = vmatpush.msrb.mxu1 %v5663_v11  ;;  %3059 = vmatpush.msrb.mxu2 %v5664_v49  ;;  %v5714_v11 = vld [vmem:[#allocation2 + $0xb28] sm:$0xff]  ;;  %v3031_v49 = vpop.f32.mrf.mxu0 }
 0x7f4   : > { %3040 = vmatpush.msrb.mxu1 %v5665_v50  ;;  %3060 = vmatpush.msrb.mxu2 %v5666_v7 }
 0x7f6   : > { %3041 = vmatpush.msrb.mxu1 %v5667_v33  ;;  %3061 = vmatpush.msrb.mxu2 %v5668_v58  ;;  %v5715_v33 = vld [vmem:[#allocation2 + $0xb18] sm:$0xff]  ;;  %v6485_v58 = vld [vmem:[%s7089_s5 + $0x28] sm:$0xff] }
 0x7f8   : > { %3042 = vmatpush.msrb.mxu1 %v5669_v21  ;;  %3062 = vmatpush.msrb.mxu2 %v5670_v34  ;;  %v5716_v21 = vld [vmem:[#allocation2 + $0xb08] sm:$0xff]  ;;  %v5717_v34 = vld [vmem:[#allocation2 + $0xdf0] sm:$0xff] }
 0x7fa   : > { %3043 = vmatpush.msrb.mxu1 %v5671_v54  ;;  %3063 = vmatpush.msrb.mxu2 %v5672_v55  ;;  %v5718_v54 = vld [vmem:[#allocation2 + $0xcf8] sm:$0xff]  ;;  %v5719_v55 = vld [vmem:[#allocation2 + $0xde0] sm:$0xff] }
 0x7fc   : > { %3044 = vmatpush.msrb.mxu1 %v5673_v56  ;;  %3064 = vmatpush.msrb.mxu2 %v5674_v53  ;;  %v5720_v56 = vld [vmem:[#allocation2 + $0xce8] sm:$0xff]  ;;  %v5721_v53 = vld [vmem:[#allocation2 + $0xdd0] sm:$0xff] }
 0x7fe   : > { %3045 = vmatpush.msrb.mxu1 %v5675_v57  ;;  %3065 = vmatpush.msrb.mxu2 %v5676_v59  ;;  %v5722_v57 = vld [vmem:[#allocation2 + $0xcd8] sm:$0xff]  ;;  %v5723_v59 = vld [vmem:[#allocation2 + $0xdc0] sm:$0xff] }
 0x800   : > { %3046 = vmatpush.msrb.mxu1 %v5677_v1  ;;  %3066 = vmatpush.msrb.mxu2 %v5678_v2  ;;  %v5724_v1 = vld [vmem:[#allocation2 + $0xcc8] sm:$0xff]  ;;  %v5725_v2 = vld [vmem:[#allocation2 + $0xdb0] sm:$0xff] }
 0x802   : > { %3047 = vmatpush.msrb.mxu1 %v5679_v19  ;;  %3067 = vmatpush.msrb.mxu2 %v5680_v20  ;;  %v5726_v19 = vld [vmem:[#allocation2 + $0xcb8] sm:$0xff]  ;;  %v5727_v20 = vld [vmem:[#allocation2 + $0xda0] sm:$0xff] }
 0x804   : > { %3048 = vmatpush.msrb.mxu1 %v5681_v47  ;;  %3068 = vmatpush.msrb.mxu2 %v5682_v5  ;;  %v5728_v47 = vld [vmem:[#allocation2 + $0xca8] sm:$0xff]  ;;  %v5729_v5 = vld [vmem:[#allocation2 + $0xd90] sm:$0xff] }
 0x806   : > { %3049 = vmatpush.msrb.mxu1 %v5683_v6  ;;  %3069 = vmatpush.msrb.mxu2 %v5684_v8  ;;  %v5730_v6 = vld [vmem:[#allocation2 + $0xc98] sm:$0xff]  ;;  %v5731_v8 = vld [vmem:[#allocation2 + $0xd80] sm:$0xff] }
 0x807   : > { %3050 = vmatmul.f32.vlgmr.msrb.gmra.mxu1 %v6407_v4  ;;  %3070 = vmatmul.f32.vlgmr.msrb.gmra.mxu2 %v6389_v32 }
 0x808   : > { %3141 = vmatpush.msra.mxu2 %v5685_v9  ;;  %v5732_v9 = vld [vmem:[#allocation2 + $0xc88] sm:$0xff] }
 0x80a   : > { %3142 = vmatpush.msra.mxu2 %v5686_v13  ;;  %v5733_v13 = vld [vmem:[#allocation2 + $0xd70] sm:$0xff] }
 0x80c   : > { %3143 = vmatpush.msra.mxu2 %v5687_v42  ;;  %v5734_v42 = vld [vmem:[#allocation2 + $0xc78] sm:$0xff] }
 0x80e   : > { %3144 = vmatpush.msra.mxu2 %v5688_v14  ;;  %v5735_v14 = vld [vmem:[#allocation2 + $0xd60] sm:$0xff] }
 0x810   : > { %3145 = vmatpush.msra.mxu2 %v5689_v15  ;;  %v5736_v15 = vld [vmem:[#allocation2 + $0xc68] sm:$0xff] }
 0x812   : > { %3146 = vmatpush.msra.mxu2 %v5690_v16  ;;  %v5737_v16 = vld [vmem:[#allocation2 + $0xd50] sm:$0xff] }
 0x814   : > { %3147 = vmatpush.msra.mxu2 %v5691_v17  ;;  %v5738_v17 = vld [vmem:[#allocation2 + $0xc58] sm:$0xff] }
 0x816   : > { %3148 = vmatpush.msra.mxu2 %v5692_v23  ;;  %v5739_v23 = vld [vmem:[#allocation2 + $0xd40] sm:$0xff] }
 0x818   : > { %3149 = vmatpush.msra.mxu2 %v5693_v24  ;;  %v5740_v24 = vld [vmem:[#allocation2 + $0xc48] sm:$0xff] }
 0x81a   : > { %3150 = vmatpush.msra.mxu2 %v5694_v25  ;;  %v5741_v25 = vld [vmem:[#allocation2 + $0xd30] sm:$0xff] }
 0x81c   : > { %3151 = vmatpush.msra.mxu2 %v5695_v26  ;;  %v5742_v26 = vld [vmem:[#allocation2 + $0xc38] sm:$0xff] }
 0x81e   : > { %3152 = vmatpush.msra.mxu2 %v5696_v3  ;;  %v5743_v3 = vld [vmem:[#allocation2 + $0xd20] sm:$0xff] }
 0x820   : > { %3153 = vmatpush.msra.mxu2 %v5697_v29  ;;  %v5744_v29 = vld [vmem:[#allocation2 + $0xc28] sm:$0xff] }
 0x822   : > { %3154 = vmatpush.msra.mxu2 %v5698_v31  ;;  %v5745_v31 = vld [vmem:[#allocation2 + $0xd10] sm:$0xff] }
 0x824   : > { %3155 = vmatpush.msra.mxu2 %v5699_v52  ;;  %v5746_v52 = vld [vmem:[#allocation2 + $0xc18] sm:$0xff] }
 0x826   : > { %3156 = vmatpush.msra.mxu2 %v5700_v35  ;;  %v5747_v35 = vld [vmem:[#allocation2 + $0xd00] sm:$0xff] }
 0x827   : > { %3157 = vmatmul.f32.vlgmr.msra.gmra.mxu2 %v6389_v32 }
 0x844   : > { %v6478_v37 = vpop.f32.mrf.mxu1 }
 0x864   : > { %v2964_v12 = vpop.f32.mrf.mxu1 }
 0x865   : > { %v2965_v30 = vadd.f32 %v2964_v12, %v2944_v61  ;;  %v5748_v61 = vld [vmem:[#allocation2 + $0xc08] sm:$0xff]  ;;  %v5749_v12 = vld [vmem:[#allocation2 + $0xef0] sm:$0xff] }
 0x867   : > { %3007 = vmatpush.msra.mxu3 %v2965_v30  ;;  %v5750_v30 = vld [vmem:[#allocation2 + $0xee0] sm:$0xff] }
 0x868   : > { %5147 = vmatmul.msk.f32.vlgmr.msra.gmra.mxu3 %vm2546_vm2, %v6468_v63  ;;  %v5711_v63 = vld [vmem:[#allocation2 + $0xb58] sm:$0xff] }
 0x869   : > { %3074 = vmatpush.msrb.mxu3 %v5701_v51  ;;  %v5751_v51 = vld [vmem:[#allocation2 + $0xed0] sm:$0xff] }
 0x86b   : > { %3075 = vmatpush.msrb.mxu3 %v5702_v36  ;;  %v5752_v36 = vld [vmem:[#allocation2 + $0xec0] sm:$0xff] }
 0x86d   : > { %3076 = vmatpush.msrb.mxu3 %v5703_v62  ;;  %v5753_v62 = vld [vmem:[#allocation2 + $0xeb0] sm:$0xff] }
 0x86f   : > { %3077 = vmatpush.msrb.mxu3 %v5704_v38  ;;  %v5754_v38 = vld [vmem:[#allocation2 + $0xea0] sm:$0xff] }
 0x871   : > { %3078 = vmatpush.msrb.mxu3 %v5705_v39  ;;  %v5755_v39 = vld [vmem:[#allocation2 + $0xe90] sm:$0xff] }
 0x873   : > { %3079 = vmatpush.msrb.mxu3 %v5706_v40  ;;  %v5756_v40 = vld [vmem:[#allocation2 + $0xe80] sm:$0xff] }
 0x875   : > { %3080 = vmatpush.msrb.mxu3 %v5707_v43  ;;  %v5757_v43 = vld [vmem:[#allocation2 + $0xe70] sm:$0xff] }
 0x877   : > { %3081 = vmatpush.msrb.mxu3 %v5708_v44  ;;  %v5758_v44 = vld [vmem:[#allocation2 + $0xe60] sm:$0xff] }
 0x879   : > { %3082 = vmatpush.msrb.mxu3 %v5709_v45  ;;  %v5759_v45 = vld [vmem:[#allocation2 + $0xe50] sm:$0xff] }
 0x87b   : > { %3083 = vmatpush.msrb.mxu3 %v5710_v46  ;;  %v5760_v46 = vld [vmem:[#allocation2 + $0xe40] sm:$0xff] }
 0x87d   : > { %3084 = vmatpush.msrb.mxu3 %v5711_v63  ;;  %v5761_v63 = vld [vmem:[#allocation2 + $0xe30] sm:$0xff] }
 0x87f   : > { %3085 = vmatpush.msrb.mxu3 %v5712_v48  ;;  %v5762_v48 = vld [vmem:[#allocation2 + $0xe20] sm:$0xff] }
 0x881   : > { %3086 = vmatpush.msrb.mxu3 %v5713_v60  ;;  %v5763_v60 = vld [vmem:[#allocation2 + $0xe10] sm:$0xff] }
 0x883   : > { %3087 = vmatpush.msrb.mxu3 %v5714_v11  ;;  %v5764_v11 = vld [vmem:[#allocation2 + $0xe00] sm:$0xff] }
 0x884   : > { %v3051_v50 = vpop.f32.mrf.mxu1 }
 0x885   : > { %v3052_v7 = vadd.f32 %v3051_v50, %v3031_v49  ;;  %3088 = vmatpush.msrb.mxu3 %v5715_v33  ;;  %v6493_v49 = vpop.f32.mrf.mxu2 }
 0x887   : > { %3089 = vmatpush.msrb.mxu3 %v5716_v21  ;;  %3114 = vmatpush.msra.mxu0 %v3052_v7 }
 0x888   : > { %3090 = vmatmul.f32.vlgmr.msrb.gmra.mxu3 %v6407_v4  ;;  %5149 = vmatmul.msk.f32.vlgmr.msra.gmra.mxu0 %vm2546_vm2, %v6485_v58 }
 0x889   : > { %3161 = vmatpush.msra.mxu3 %v5717_v34  ;;  %3181 = vmatpush.msrb.mxu0 %v5718_v54  ;;  %v5765_v34 = vld [vmem:[#allocation2 + $0xdf8] sm:$0xff]  ;;  %v5766_v54 = vld [vmem:[#allocation2 + $0xde8] sm:$0xff] }
 0x88b   : > { %3162 = vmatpush.msra.mxu3 %v5719_v55  ;;  %3182 = vmatpush.msrb.mxu0 %v5720_v56  ;;  %v5767_v55 = vld [vmem:[#allocation2 + $0xdd8] sm:$0xff]  ;;  %v5768_v56 = vld [vmem:[#allocation2 + $0xdc8] sm:$0xff] }
 0x88d   : > { %3163 = vmatpush.msra.mxu3 %v5721_v53  ;;  %3183 = vmatpush.msrb.mxu0 %v5722_v57  ;;  %v3071_v7 = vpop.f32.mrf.mxu2  ;;  %v5769_v53 = vld [vmem:[#allocation2 + $0xdb8] sm:$0xff]  ;;  %v5770_v57 = vld [vmem:[#allocation2 + $0xda8] sm:$0xff] }
 0x88f   : > { %3164 = vmatpush.msra.mxu3 %v5723_v59  ;;  %3184 = vmatpush.msrb.mxu0 %v5724_v1  ;;  %v5771_v59 = vld [vmem:[#allocation2 + $0xd98] sm:$0xff]  ;;  %v5772_v1 = vld [vmem:[#allocation2 + $0xd88] sm:$0xff] }
 0x891   : > { %3165 = vmatpush.msra.mxu3 %v5725_v2  ;;  %3185 = vmatpush.msrb.mxu0 %v5726_v19  ;;  %v5773_v2 = vld [vmem:[#allocation2 + $0xd78] sm:$0xff]  ;;  %v5774_v19 = vld [vmem:[#allocation2 + $0xd68] sm:$0xff] }
 0x893   : > { %3166 = vmatpush.msra.mxu3 %v5727_v20  ;;  %3186 = vmatpush.msrb.mxu0 %v5728_v47  ;;  %v5776_v20 = vld [vmem:[#allocation2 + $0xd48] sm:$0xff]  ;;  %v5777_v47 = vld [vmem:[#allocation2 + $0xd38] sm:$0xff] }
 0x895   : > { %3167 = vmatpush.msra.mxu3 %v5729_v5  ;;  %3187 = vmatpush.msrb.mxu0 %v5730_v6  ;;  %v5778_v5 = vld [vmem:[#allocation2 + $0xd28] sm:$0xff] }
 0x897   : > { %3168 = vmatpush.msra.mxu3 %v5731_v8  ;;  %3188 = vmatpush.msrb.mxu0 %v5732_v9 }
 0x899   : > { %3169 = vmatpush.msra.mxu3 %v5733_v13  ;;  %3189 = vmatpush.msrb.mxu0 %v5734_v42  ;;  %v5779_v13 = vld [vmem:[#allocation2 + $0xd18] sm:$0xff]  ;;  %v6502_v42 = vld [vmem:[%s7089_s5 + $0x30] sm:$0xff] }
 0x89b   : > { %3170 = vmatpush.msra.mxu3 %v5735_v14  ;;  %3190 = vmatpush.msrb.mxu0 %v5736_v15  ;;  %v5780_v14 = vld [vmem:[#allocation2 + $0xd08] sm:$0xff]  ;;  %v5781_v15 = vld [vmem:[#allocation2 + $0xff0] sm:$0xff] }
 0x89d   : > { %3171 = vmatpush.msra.mxu3 %v5737_v16  ;;  %3191 = vmatpush.msrb.mxu0 %v5738_v17  ;;  %v5782_v16 = vld [vmem:[#allocation2 + $0xef8] sm:$0xff]  ;;  %v5783_v17 = vld [vmem:[#allocation2 + $0xfe0] sm:$0xff] }
 0x89f   : > { %3172 = vmatpush.msra.mxu3 %v5739_v23  ;;  %3192 = vmatpush.msrb.mxu0 %v5740_v24  ;;  %v5784_v23 = vld [vmem:[#allocation2 + $0xee8] sm:$0xff]  ;;  %v5785_v24 = vld [vmem:[#allocation2 + $0xfd0] sm:$0xff] }
 0x8a1   : > { %3173 = vmatpush.msra.mxu3 %v5741_v25  ;;  %3193 = vmatpush.msrb.mxu0 %v5742_v26  ;;  %v5786_v25 = vld [vmem:[#allocation2 + $0xed8] sm:$0xff]  ;;  %v5787_v26 = vld [vmem:[#allocation2 + $0xfc0] sm:$0xff] }
 0x8a3   : > { %3174 = vmatpush.msra.mxu3 %v5743_v3  ;;  %3194 = vmatpush.msrb.mxu0 %v5744_v29  ;;  %v5788_v3 = vld [vmem:[#allocation2 + $0xec8] sm:$0xff]  ;;  %v5789_v29 = vld [vmem:[#allocation2 + $0xfb0] sm:$0xff] }
 0x8a5   : > { %3175 = vmatpush.msra.mxu3 %v5745_v31  ;;  %3195 = vmatpush.msrb.mxu0 %v5746_v52  ;;  %v5790_v31 = vld [vmem:[#allocation2 + $0xeb8] sm:$0xff]  ;;  %v5791_v52 = vld [vmem:[#allocation2 + $0xfa0] sm:$0xff] }
 0x8a7   : > { %3176 = vmatpush.msra.mxu3 %v5747_v35  ;;  %3196 = vmatpush.msrb.mxu0 %v5748_v61  ;;  %v5792_v35 = vld [vmem:[#allocation2 + $0xea8] sm:$0xff]  ;;  %v5793_v61 = vld [vmem:[#allocation2 + $0xf90] sm:$0xff] }
 0x8a8   : > { %3177 = vmatmul.f32.vlgmr.msra.gmra.mxu3 %v6407_v4  ;;  %3197 = vmatmul.f32.vlgmr.msrb.gmra.mxu0 %v6389_v32 }
 0x8a9   : > { %3268 = vmatpush.msra.mxu0 %v5749_v12  ;;  %v5794_v12 = vld [vmem:[#allocation2 + $0xe98] sm:$0xff] }
 0x8aa   : > { %v3158_v6 = vpop.f32.mrf.mxu2 }
 0x8ab   : > { %3269 = vmatpush.msra.mxu0 %v5750_v30  ;;  %v5795_v30 = vld [vmem:[#allocation2 + $0xf80] sm:$0xff] }
 0x8ad   : > { %3270 = vmatpush.msra.mxu0 %v5751_v51  ;;  %v5796_v51 = vld [vmem:[#allocation2 + $0xe88] sm:$0xff] }
 0x8af   : > { %3271 = vmatpush.msra.mxu0 %v5752_v36  ;;  %v5797_v36 = vld [vmem:[#allocation2 + $0xf70] sm:$0xff] }
 0x8b1   : > { %3272 = vmatpush.msra.mxu0 %v5753_v62  ;;  %v5798_v62 = vld [vmem:[#allocation2 + $0xe78] sm:$0xff] }
 0x8b3   : > { %3273 = vmatpush.msra.mxu0 %v5754_v38  ;;  %v5799_v38 = vld [vmem:[#allocation2 + $0xf60] sm:$0xff] }
 0x8b5   : > { %3274 = vmatpush.msra.mxu0 %v5755_v39  ;;  %v5800_v39 = vld [vmem:[#allocation2 + $0xe68] sm:$0xff] }
 0x8b7   : > { %3275 = vmatpush.msra.mxu0 %v5756_v40  ;;  %v5801_v40 = vld [vmem:[#allocation2 + $0xf50] sm:$0xff] }
 0x8b9   : > { %3276 = vmatpush.msra.mxu0 %v5757_v43  ;;  %v5802_v43 = vld [vmem:[#allocation2 + $0xe58] sm:$0xff] }
 0x8bb   : > { %3277 = vmatpush.msra.mxu0 %v5758_v44  ;;  %v5803_v44 = vld [vmem:[#allocation2 + $0xf40] sm:$0xff] }
 0x8bd   : > { %3278 = vmatpush.msra.mxu0 %v5759_v45  ;;  %v5804_v45 = vld [vmem:[#allocation2 + $0xe48] sm:$0xff] }
 0x8bf   : > { %3279 = vmatpush.msra.mxu0 %v5760_v46  ;;  %v5805_v46 = vld [vmem:[#allocation2 + $0xf30] sm:$0xff] }
 0x8c1   : > { %3280 = vmatpush.msra.mxu0 %v5761_v63  ;;  %v5806_v63 = vld [vmem:[#allocation2 + $0xe38] sm:$0xff] }
 0x8c3   : > { %3281 = vmatpush.msra.mxu0 %v5762_v48  ;;  %v5807_v48 = vld [vmem:[#allocation2 + $0xf20] sm:$0xff] }
 0x8c5   : > { %3282 = vmatpush.msra.mxu0 %v5763_v60  ;;  %v5808_v60 = vld [vmem:[#allocation2 + $0xe28] sm:$0xff] }
 0x8c7   : > { %3283 = vmatpush.msra.mxu0 %v5764_v11  ;;  %v5809_v11 = vld [vmem:[#allocation2 + $0xf10] sm:$0xff] }
 0x8c8   : > { %3284 = vmatmul.f32.vlgmr.msra.gmra.mxu0 %v6389_v32 }
 0x8eb   : > { %v6495_v50 = vpop.f32.mrf.mxu3 }
 0x90b   : > { %v3091_v33 = vpop.f32.mrf.mxu3 }
 0x90c   : > { %v3092_v21 = vadd.f32 %v3091_v33, %v3071_v7  ;;  %v5810_v7 = vld [vmem:[#allocation2 + $0xe18] sm:$0xff]  ;;  %v5811_v33 = vld [vmem:[#allocation2 + $0xf00] sm:$0xff] }
 0x90e   : > { %3134 = vmatpush.msra.mxu1 %v3092_v21  ;;  %v5812_v21 = vld [vmem:[#allocation2 + $0xe08] sm:$0xff] }
 0x90f   : > { %5150 = vmatmul.msk.f32.vlgmr.msra.gmra.mxu1 %vm2546_vm2, %v6485_v58  ;;  %v5775_v58 = vld [vmem:[#allocation2 + $0xd58] sm:$0xff] }
 0x910   : > { %3201 = vmatpush.msrb.mxu1 %v5765_v34  ;;  %v5813_v34 = vld [vmem:[#allocation2 + $0x10f0] sm:$0xff] }
 0x912   : > { %3202 = vmatpush.msrb.mxu1 %v5766_v54  ;;  %v5814_v54 = vld [vmem:[#allocation2 + $0x10e0] sm:$0xff] }
 0x914   : > { %3203 = vmatpush.msrb.mxu1 %v5767_v55  ;;  %v5815_v55 = vld [vmem:[#allocation2 + $0x10d0] sm:$0xff] }
 0x916   : > { %3204 = vmatpush.msrb.mxu1 %v5768_v56  ;;  %v5816_v56 = vld [vmem:[#allocation2 + $0x10c0] sm:$0xff] }
 0x918   : > { %3205 = vmatpush.msrb.mxu1 %v5769_v53  ;;  %v5817_v53 = vld [vmem:[#allocation2 + $0x10b0] sm:$0xff] }
 0x91a   : > { %3206 = vmatpush.msrb.mxu1 %v5770_v57  ;;  %v5818_v57 = vld [vmem:[#allocation2 + $0x10a0] sm:$0xff] }
 0x91c   : > { %3207 = vmatpush.msrb.mxu1 %v5771_v59  ;;  %v5819_v59 = vld [vmem:[#allocation2 + $0x1090] sm:$0xff] }
 0x91e   : > { %3208 = vmatpush.msrb.mxu1 %v5772_v1  ;;  %v5820_v1 = vld [vmem:[#allocation2 + $0x1080] sm:$0xff] }
 0x920   : > { %3209 = vmatpush.msrb.mxu1 %v5773_v2  ;;  %v5821_v2 = vld [vmem:[#allocation2 + $0x1070] sm:$0xff] }
 0x922   : > { %3210 = vmatpush.msrb.mxu1 %v5774_v19  ;;  %v5822_v19 = vld [vmem:[#allocation2 + $0x1060] sm:$0xff] }
 0x924   : > { %3211 = vmatpush.msrb.mxu1 %v5775_v58  ;;  %v5823_v58 = vld [vmem:[#allocation2 + $0x1050] sm:$0xff] }
 0x926   : > { %3212 = vmatpush.msrb.mxu1 %v5776_v20  ;;  %v5824_v20 = vld [vmem:[#allocation2 + $0x1040] sm:$0xff] }
 0x928   : > { %3213 = vmatpush.msrb.mxu1 %v5777_v47  ;;  %v5825_v47 = vld [vmem:[#allocation2 + $0x1030] sm:$0xff] }
 0x92a   : > { %3214 = vmatpush.msrb.mxu1 %v5778_v5  ;;  %v5826_v5 = vld [vmem:[#allocation2 + $0x1020] sm:$0xff] }
 0x92b   : > { %v3178_v8 = vpop.f32.mrf.mxu3 }
 0x92c   : > { %v3179_v9 = vadd.f32 %v3178_v8, %v3158_v6  ;;  %3215 = vmatpush.msrb.mxu1 %v5779_v13  ;;  %v5827_v6 = vld [vmem:[#allocation2 + $0x1010] sm:$0xff]  ;;  %v5828_v8 = vld [vmem:[#allocation2 + $0x1000] sm:$0xff] }
 0x92e   : > { %3216 = vmatpush.msrb.mxu1 %v5780_v14  ;;  %3241 = vmatpush.msrb.mxu2 %v3179_v9  ;;  %v3116_v9 = vpop.f32.mrf.mxu0  ;;  %v2611_v14 = vadd.f32 %v6435_v22, %v6443_v28  ;;  %v5830_v22 = vld [vmem:[#allocation2 + $0xfe8] sm:$0xff]  ;;  %v5831_v28 = vld [vmem:[#allocation2 + $0xfd8] sm:$0xff] }
 0x92f   : > { %3217 = vmatmul.f32.vlgmr.msrb.gmra.mxu1 %v6407_v4  ;;  %5152 = vmatmul.msk.f32.vlgmr.msrb.gmra.mxu2 %vm2546_vm2, %v6502_v42 }
 0x930   : > { %3288 = vmatpush.msra.mxu1 %v5781_v15  ;;  %3308 = vmatpush.msra.mxu2 %v5782_v16  ;;  %v2758_v15 = vadd.f32 %v6461_v10, %v2611_v14  ;;  %v5832_v10 = vld [vmem:[#allocation2 + $0xfc8] sm:$0xff]  ;;  %v5871_v14 = vld [vmem:[#allocation2 + $0x1120] sm:$0xff] }
 0x932   : > { %3289 = vmatpush.msra.mxu1 %v5783_v17  ;;  %3309 = vmatpush.msra.mxu2 %v5784_v23  ;;  %v2885_v23 = vadd.f32 %v6476_v0, %v2758_v15  ;;  %v5833_v0 = vld [vmem:[#allocation2 + $0xfb8] sm:$0xff]  ;;  %v5872_v15 = vld [vmem:[#allocation2 + $0x1028] sm:$0xff] }
 0x934   : > { %3290 = vmatpush.msra.mxu1 %v5785_v24  ;;  %3310 = vmatpush.msra.mxu2 %v5786_v25  ;;  %v3012_v25 = vadd.f32 %v6493_v49, %v2885_v23  ;;  %v5835_v49 = vld [vmem:[#allocation2 + $0xf98] sm:$0xff]  ;;  %v5875_v23 = vld [vmem:[#allocation2 + $0x1100] sm:$0xff] }
 0x936   : > { %3291 = vmatpush.msra.mxu1 %v5787_v26  ;;  %3311 = vmatpush.msra.mxu2 %v5788_v3  ;;  %v3198_v16 = vpop.f32.mrf.mxu0  ;;  %v3139_v26 = vadd.f32 %v3116_v9, %v3012_v25  ;;  %v5829_v3 = vld [vmem:[#allocation2 + $0xff8] sm:$0xff]  ;;  %v2631_v25 = vadd.f32 %v6433_v18, %v6441_v27  ;;  %v3548_v27 = vld [vmem:[#allocation4 + $0x70] sm:$0xff] }
 0x937   : > { %v5870_v9 = vld [vmem:[#allocation2 + $0x1038] sm:$0xff] }
 0x938   : > { %3292 = vmatpush.msra.mxu1 %v5789_v29  ;;  %3312 = vmatpush.msra.mxu2 %v5790_v31  ;;  %v5877_v18 = vld [vmem:[#allocation2 + $0x11f8] sm:$0xff] }
 0x93a   : > { %3293 = vmatpush.msra.mxu1 %v5791_v52  ;;  %3313 = vmatpush.msra.mxu2 %v5792_v35  ;;  %v5834_v52 = vld [vmem:[#allocation2 + $0xfa8] sm:$0xff] }
 0x93b   : > { %v5836_v35 = vld [vmem:[#allocation2 + $0xf88] sm:$0xff] }
 0x93c   : > { %3294 = vmatpush.msra.mxu1 %v5793_v61  ;;  %3314 = vmatpush.msra.mxu2 %v5794_v12  ;;  %v5838_v61 = vld [vmem:[#allocation2 + $0xf68] sm:$0xff]  ;;  %v5839_v12 = vld [vmem:[#allocation2 + $0xf58] sm:$0xff] }
 0x93e   : > { %3295 = vmatpush.msra.mxu1 %v5795_v30  ;;  %3315 = vmatpush.msra.mxu2 %v5796_v51  ;;  %v5840_v30 = vld [vmem:[#allocation2 + $0xf48] sm:$0xff]  ;;  %v5841_v51 = vld [vmem:[#allocation2 + $0xf38] sm:$0xff] }
 0x940   : > { %3296 = vmatpush.msra.mxu1 %v5797_v36  ;;  %3316 = vmatpush.msra.mxu2 %v5798_v62  ;;  %v5842_v36 = vld [vmem:[#allocation2 + $0xf28] sm:$0xff] }
 0x942   : > { %3297 = vmatpush.msra.mxu1 %v5799_v38  ;;  %3317 = vmatpush.msra.mxu2 %v5800_v39 }
 0x944   : > { %3298 = vmatpush.msra.mxu1 %v5801_v40  ;;  %3318 = vmatpush.msra.mxu2 %v5802_v43  ;;  %v5843_v40 = vld [vmem:[#allocation2 + $0xf18] sm:$0xff]  ;;  %v6524_v43 = vld [vmem:[%s7089_s5 + $0x38] sm:$0xff] }
 0x945   : > { %v3285_v62 = vpop.f32.mrf.mxu0 }
 0x946   : > { %3299 = vmatpush.msra.mxu1 %v5803_v44  ;;  %3319 = vmatpush.msra.mxu2 %v5804_v45  ;;  %v5844_v44 = vld [vmem:[#allocation2 + $0xf08] sm:$0xff]  ;;  %v5845_v45 = vld [vmem:[#allocation2 + $0x11f0] sm:$0xff] }
 0x948   : > { %3300 = vmatpush.msra.mxu1 %v5805_v46  ;;  %3320 = vmatpush.msra.mxu2 %v5806_v63  ;;  %v5846_v46 = vld [vmem:[#allocation2 + $0x10f8] sm:$0xff]  ;;  %v5847_v63 = vld [vmem:[#allocation2 + $0x11e0] sm:$0xff] }
 0x94a   : > { %3301 = vmatpush.msra.mxu1 %v5807_v48  ;;  %3321 = vmatpush.msra.mxu2 %v5808_v60  ;;  %v5848_v48 = vld [vmem:[#allocation2 + $0x10e8] sm:$0xff]  ;;  %v5849_v60 = vld [vmem:[#allocation2 + $0x11d0] sm:$0xff] }
 0x94c   : > { %3302 = vmatpush.msra.mxu1 %v5809_v11  ;;  %3322 = vmatpush.msra.mxu2 %v5810_v7  ;;  %v5850_v11 = vld [vmem:[#allocation2 + $0x10d8] sm:$0xff]  ;;  %v5851_v7 = vld [vmem:[#allocation2 + $0x11c0] sm:$0xff] }
 0x94e   : > { %3303 = vmatpush.msra.mxu1 %v5811_v33  ;;  %3323 = vmatpush.msra.mxu2 %v5812_v21  ;;  %v5852_v33 = vld [vmem:[#allocation2 + $0x10c8] sm:$0xff]  ;;  %v5853_v21 = vld [vmem:[#allocation2 + $0x11b0] sm:$0xff] }
 0x94f   : > { %3304 = vmatmul.f32.vlgmr.msra.gmra.mxu1 %v6407_v4  ;;  %3324 = vmatmul.f32.vlgmr.msra.gmra.mxu2 %v6389_v32 }
 0x950   : > { %3395 = vmatpush.msrb.mxu2 %v5813_v34  ;;  %v5854_v34 = vld [vmem:[#allocation2 + $0x10b8] sm:$0xff] }
 0x952   : > { %3396 = vmatpush.msrb.mxu2 %v5814_v54  ;;  %v5855_v54 = vld [vmem:[#allocation2 + $0x11a0] sm:$0xff] }
 0x954   : > { %3397 = vmatpush.msrb.mxu2 %v5815_v55  ;;  %v5856_v55 = vld [vmem:[#allocation2 + $0x10a8] sm:$0xff] }
 0x956   : > { %3398 = vmatpush.msrb.mxu2 %v5816_v56  ;;  %v5857_v56 = vld [vmem:[#allocation2 + $0x1190] sm:$0xff] }
 0x958   : > { %3399 = vmatpush.msrb.mxu2 %v5817_v53  ;;  %v5858_v53 = vld [vmem:[#allocation2 + $0x1098] sm:$0xff] }
 0x95a   : > { %3400 = vmatpush.msrb.mxu2 %v5818_v57  ;;  %v5859_v57 = vld [vmem:[#allocation2 + $0x1180] sm:$0xff] }
 0x95c   : > { %3401 = vmatpush.msrb.mxu2 %v5819_v59  ;;  %v5860_v59 = vld [vmem:[#allocation2 + $0x1088] sm:$0xff] }
 0x95e   : > { %3402 = vmatpush.msrb.mxu2 %v5820_v1  ;;  %v5861_v1 = vld [vmem:[#allocation2 + $0x1170] sm:$0xff] }
 0x960   : > { %3403 = vmatpush.msrb.mxu2 %v5821_v2  ;;  %v5862_v2 = vld [vmem:[#allocation2 + $0x1078] sm:$0xff] }
 0x962   : > { %3404 = vmatpush.msrb.mxu2 %v5822_v19  ;;  %v5863_v19 = vld [vmem:[#allocation2 + $0x1160] sm:$0xff] }
 0x964   : > { %3405 = vmatpush.msrb.mxu2 %v5823_v58  ;;  %v5864_v58 = vld [vmem:[#allocation2 + $0x1068] sm:$0xff] }
 0x966   : > { %3406 = vmatpush.msrb.mxu2 %v5824_v20  ;;  %v5865_v20 = vld [vmem:[#allocation2 + $0x1150] sm:$0xff] }
 0x968   : > { %3407 = vmatpush.msrb.mxu2 %v5825_v47  ;;  %v5866_v47 = vld [vmem:[#allocation2 + $0x1058] sm:$0xff] }
 0x96a   : > { %3408 = vmatpush.msrb.mxu2 %v5826_v5  ;;  %v5867_v5 = vld [vmem:[#allocation2 + $0x1140] sm:$0xff] }
 0x96c   : > { %3409 = vmatpush.msrb.mxu2 %v5827_v6  ;;  %v5868_v6 = vld [vmem:[#allocation2 + $0x1048] sm:$0xff] }
 0x96e   : > { %3410 = vmatpush.msrb.mxu2 %v5828_v8  ;;  %v5869_v8 = vld [vmem:[#allocation2 + $0x1130] sm:$0xff] }
 0x96f   : > { %3411 = vmatmul.f32.vlgmr.msrb.gmra.mxu2 %v6389_v32 }
 0x98c   : > { %v6510_v13 = vpop.f32.mrf.mxu1 }
 0x9ac   : > { %v3218_v17 = vpop.f32.mrf.mxu1 }
 0x9ad   : > { %v3219_v24 = vadd.f32 %v3218_v17, %v3198_v16  ;;  %v5873_v16 = vld [vmem:[#allocation2 + $0x1110] sm:$0xff]  ;;  %v5874_v17 = vld [vmem:[#allocation2 + $0x1018] sm:$0xff] }
 0x9af   : > { %3261 = vmatpush.msrb.mxu3 %v3219_v24  ;;  %v5876_v24 = vld [vmem:[#allocation2 + $0x1008] sm:$0xff] }
 0x9b0   : > { %5153 = vmatmul.msk.f32.vlgmr.msrb.gmra.mxu3 %vm2546_vm2, %v6502_v42  ;;  %v5837_v42 = vld [vmem:[#allocation2 + $0xf78] sm:$0xff] }
 0x9b1   : > { %3328 = vmatpush.msra.mxu3 %v5829_v3 }
 0x9b2   : > { %v3243_v29 = vpop.f32.mrf.mxu2 }
 0x9b3   : > { %v6519_v31 = vadd.f32 %v3243_v29, %v3139_v26  ;;  %3329 = vmatpush.msra.mxu3 %v5830_v22  ;;  %v2759_v26 = vadd.f32 %v6459_v41, %v2631_v25  ;;  %v5878_v41 = vld [vmem:[#allocation2 + $0x11e8] sm:$0xff]  ;;  %v3768_v25 = vld [vmem:[#allocation4 + $0x378] sm:$0xff] }
 0x9b5   : > { %3330 = vmatpush.msra.mxu3 %v5831_v28  ;;  %v2886_v3 = vadd.f32 %v6478_v37, %v2759_v26  ;;  %v3547_v37 = vld [vmem:[#allocation4 + $0x68] sm:$0xff]  ;;  %v3694_v26 = vld [vmem:[#allocation4 + $0x270] sm:$0xff] }
 0x9b7   : > { %3331 = vmatpush.msra.mxu3 %v5832_v10  ;;  %v3013_v29 = vadd.f32 %v6495_v50, %v2886_v3  ;;  %v5879_v50 = vld [vmem:[#allocation2 + $0x11d8] sm:$0xff]  ;;  %v3767_v3 = vld [vmem:[#allocation4 + $0x370] sm:$0xff] }
 0x9b9   : > { %3332 = vmatpush.msra.mxu3 %v5833_v0  ;;  %v3140_v22 = vadd.f32 %v6510_v13, %v3013_v29  ;;  %v3546_v13 = vld [vmem:[#allocation4 + $0x60] sm:$0xff]  ;;  %v3693_v29 = vld [vmem:[#allocation4 + $0x268] sm:$0xff] }
 0x9bb   : > { %3333 = vmatpush.msra.mxu3 %v5834_v52 }
 0x9bd   : > { %3334 = vmatpush.msra.mxu3 %v5835_v49 }
 0x9bf   : > { %3335 = vmatpush.msra.mxu3 %v5836_v35  ;;  %v5880_v35 = vld [vmem:[#allocation2 + $0x11c8] sm:$0xff] }
 0x9c1   : > { %3336 = vmatpush.msra.mxu3 %v5837_v42  ;;  %v3545_v42 = vld [vmem:[#allocation4 + $0x58] sm:$0xff] }
 0x9c3   : > { %3337 = vmatpush.msra.mxu3 %v5838_v61  ;;  %v5881_v61 = vld [vmem:[#allocation2 + $0x11b8] sm:$0xff] }
 0x9c5   : > { %3338 = vmatpush.msra.mxu3 %v5839_v12  ;;  %v5882_v12 = vld [vmem:[#allocation2 + $0x11a8] sm:$0xff] }
 0x9c7   : > { %3339 = vmatpush.msra.mxu3 %v5840_v30  ;;  %v5883_v30 = vld [vmem:[#allocation2 + $0x1198] sm:$0xff] }
 0x9c9   : > { %3340 = vmatpush.msra.mxu3 %v5841_v51  ;;  %v5884_v51 = vld [vmem:[#allocation2 + $0x1188] sm:$0xff] }
 0x9cb   : > { %3341 = vmatpush.msra.mxu3 %v5842_v36  ;;  %v5885_v36 = vld [vmem:[#allocation2 + $0x1178] sm:$0xff] }
 0x9cc   : > { %v3305_v38 = vpop.f32.mrf.mxu1 }
 0x9cd   : > { %v3306_v39 = vadd.f32 %v3305_v38, %v3285_v62  ;;  %3342 = vmatpush.msra.mxu3 %v5843_v40  ;;  %v5886_v62 = vld [vmem:[#allocation2 + $0x1168] sm:$0xff]  ;;  %v5887_v38 = vld [vmem:[#allocation2 + $0x1158] sm:$0xff] }
 0x9ce   : > { %v5889_v40 = vld [vmem:[#allocation2 + $0x1138] sm:$0xff] }
 0x9cf   : > { %3343 = vmatpush.msra.mxu3 %v5844_v44  ;;  %3368 = vmatpush.msrb.mxu0 %v3306_v39  ;;  %v5888_v39 = vld [vmem:[#allocation2 + $0x1148] sm:$0xff] }
 0x9d0   : > { %3344 = vmatmul.f32.vlgmr.msra.gmra.mxu3 %v6407_v4  ;;  %5155 = vmatmul.msk.f32.vlgmr.msrb.gmra.mxu0 %vm2546_vm2, %v6524_v43 }
 0x9d1   : > { %3415 = vmatpush.msrb.mxu3 %v5845_v45  ;;  %3435 = vmatpush.msra.mxu0 %v5846_v46 }
 0x9d2   : > { %v3325_v0 = vpop.f32.mrf.mxu2 }
 0x9d3   : > { %3416 = vmatpush.msrb.mxu3 %v5847_v63  ;;  %3436 = vmatpush.msra.mxu0 %v5848_v48  ;;  %v5891_v63 = vld [vmem:[#allocation2 + $0x1118] sm:$0xff] }
 0x9d4   : > { %v6544_v48 = vld [vmem:[%s7089_s5 + $0x40] sm:$0xff] }
 0x9d5   : > { %3417 = vmatpush.msrb.mxu3 %v5849_v60  ;;  %3437 = vmatpush.msra.mxu0 %v5850_v11  ;;  %v3622_v60 = vld [vmem:[#allocation4 + $0x178] sm:$0xff]  ;;  %v5892_v11 = vld [vmem:[#allocation2 + $0x1108] sm:$0xff] }
 0x9d7   : > { %3418 = vmatpush.msrb.mxu3 %v5851_v7  ;;  %3438 = vmatpush.msra.mxu0 %v5852_v33  ;;  %v3621_v7 = vld [vmem:[#allocation4 + $0x170] sm:$0xff]  ;;  %v3620_v33 = vld [vmem:[#allocation4 + $0x168] sm:$0xff] }
 0x9d9   : > { %3419 = vmatpush.msrb.mxu3 %v5853_v21  ;;  %3439 = vmatpush.msra.mxu0 %v5854_v34  ;;  %v3619_v21 = vld [vmem:[#allocation4 + $0x160] sm:$0xff]  ;;  %v3618_v34 = vld [vmem:[#allocation4 + $0x158] sm:$0xff] }
 0x9db   : > { %3420 = vmatpush.msrb.mxu3 %v5855_v54  ;;  %3440 = vmatpush.msra.mxu0 %v5856_v55  ;;  %v3544_v54 = vld [vmem:[#allocation4 + $0x50] sm:$0xff] }
 0x9dc   : > { %v3617_v55 = vld [vmem:[#allocation4 + $0x150] sm:$0xff] }
 0x9dd   : > { %3421 = vmatpush.msrb.mxu3 %v5857_v56  ;;  %3441 = vmatpush.msra.mxu0 %v5858_v53  ;;  %v3543_v56 = vld [vmem:[#allocation4 + $0x48] sm:$0xff] }
 0x9de   : > { %v3616_v53 = vld [vmem:[#allocation4 + $0x148] sm:$0xff] }
 0x9df   : > { %3422 = vmatpush.msrb.mxu3 %v5859_v57  ;;  %3442 = vmatpush.msra.mxu0 %v5860_v59  ;;  %v3542_v57 = vld [vmem:[#allocation4 + $0x40] sm:$0xff]  ;;  %v3541_v59 = vld [vmem:[#allocation4 + $0x38] sm:$0xff] }
 0x9e1   : > { %3423 = vmatpush.msrb.mxu3 %v5861_v1  ;;  %3443 = vmatpush.msra.mxu0 %v5862_v2  ;;  %v3614_v1 = vld [vmem:[#allocation4 + $0x138] sm:$0xff]  ;;  %v3540_v2 = vld [vmem:[#allocation4 + $0x30] sm:$0xff] }
 0x9e3   : > { %3424 = vmatpush.msrb.mxu3 %v5863_v19  ;;  %3444 = vmatpush.msra.mxu0 %v5864_v58  ;;  %v3613_v19 = vld [vmem:[#allocation4 + $0x130] sm:$0xff]  ;;  %v3539_v58 = vld [vmem:[#allocation4 + $0x28] sm:$0xff] }
 0x9e5   : > { %3425 = vmatpush.msrb.mxu3 %v5865_v20  ;;  %3445 = vmatpush.msra.mxu0 %v5866_v47  ;;  %v3612_v20 = vld [vmem:[#allocation4 + $0x128] sm:$0xff]  ;;  %v3538_v47 = vld [vmem:[#allocation4 + $0x20] sm:$0xff] }
 0x9e7   : > { %3426 = vmatpush.msrb.mxu3 %v5867_v5  ;;  %3446 = vmatpush.msra.mxu0 %v5868_v6  ;;  %v3611_v5 = vld [vmem:[#allocation4 + $0x120] sm:$0xff]  ;;  %v3537_v6 = vld [vmem:[#allocation4 + $0x18] sm:$0xff] }
 0x9e9   : > { %3427 = vmatpush.msrb.mxu3 %v5869_v8  ;;  %3447 = vmatpush.msra.mxu0 %v5870_v9  ;;  %v3610_v8 = vld [vmem:[#allocation4 + $0x118] sm:$0xff]  ;;  %v3536_v9 = vld [vmem:[#allocation4 + $0x10] sm:$0xff] }
 0x9eb   : > { %3428 = vmatpush.msrb.mxu3 %v5871_v14  ;;  %3448 = vmatpush.msra.mxu0 %v5872_v15  ;;  %v3609_v14 = vld [vmem:[#allocation4 + $0x110] sm:$0xff]  ;;  %v3535_v15 = vld [vmem:[#allocation4 + $0x8] sm:$0xff] }
 0x9ed   : > { %3429 = vmatpush.msrb.mxu3 %v5873_v16  ;;  %3449 = vmatpush.msra.mxu0 %v5874_v17  ;;  %v3608_v16 = vld [vmem:[#allocation4 + $0x108] sm:$0xff]  ;;  %v3534_v17 = vld [vmem:[#allocation4] sm:$0xff] }
 0x9ef   : > { %3430 = vmatpush.msrb.mxu3 %v5875_v23  ;;  %3450 = vmatpush.msra.mxu0 %v5876_v24  ;;  %v3607_v23 = vld [vmem:[#allocation4 + $0x100] sm:$0xff]  ;;  %v3695_v24 = vld [vmem:[#allocation4 + $0x278] sm:$0xff] }
 0x9f0   : > { %3431 = vmatmul.f32.vlgmr.msrb.gmra.mxu3 %v6407_v4  ;;  %3451 = vmatmul.f32.vlgmr.msra.gmra.mxu0 %v6389_v32  ;;  %v3549_v32 = vld [vmem:[#allocation4 + $0x78] sm:$0xff] }
 0x9f1   : > { %3566 = vmatpush.msrb.mxu0 %v3549_v32  ;;  %v3690_v32 = vld [vmem:[#allocation4 + $0x250] sm:$0xff] }
 0x9f2   : > { %v3412_v44 = vpop.f32.mrf.mxu2 }
 0x9f3   : > { %3567 = vmatpush.msrb.mxu0 %v3548_v27 }
 0x9f5   : > { %3568 = vmatpush.msrb.mxu0 %v3547_v37  ;;  %v3689_v37 = vld [vmem:[#allocation4 + $0x248] sm:$0xff] }
 0x9f7   : > { %3569 = vmatpush.msrb.mxu0 %v3546_v13  ;;  %v3688_v13 = vld [vmem:[#allocation4 + $0x240] sm:$0xff] }
 0x9f9   : > { %3570 = vmatpush.msrb.mxu0 %v3545_v42  ;;  %v3687_v42 = vld [vmem:[#allocation4 + $0x238] sm:$0xff] }
 0x9fb   : > { %3571 = vmatpush.msrb.mxu0 %v3544_v54  ;;  %v3560_v54 = vld [vmem:[#allocation4 + $0xd0] sm:$0xff] }
 0x9fd   : > { %3572 = vmatpush.msrb.mxu0 %v3543_v56 }
 0x9ff   : > { %3573 = vmatpush.msrb.mxu0 %v3542_v57 }
 0xa01   : > { %3574 = vmatpush.msrb.mxu0 %v3541_v59  ;;  %v3638_v59 = vld [vmem:[#allocation4 + $0x1f8] sm:$0xff] }
 0xa03   : > { %3575 = vmatpush.msrb.mxu0 %v3540_v2  ;;  %v3637_v2 = vld [vmem:[#allocation4 + $0x1f0] sm:$0xff] }
 0xa05   : > { %3576 = vmatpush.msrb.mxu0 %v3539_v58  ;;  %v3556_v58 = vld [vmem:[#allocation4 + $0xb0] sm:$0xff] }
 0xa07   : > { %3577 = vmatpush.msrb.mxu0 %v3538_v47  ;;  %v3636_v47 = vld [vmem:[#allocation4 + $0x1e8] sm:$0xff] }
 0xa09   : > { %3578 = vmatpush.msrb.mxu0 %v3537_v6  ;;  %v3555_v6 = vld [vmem:[#allocation4 + $0xa8] sm:$0xff] }
 0xa0b   : > { %3579 = vmatpush.msrb.mxu0 %v3536_v9  ;;  %v3635_v9 = vld [vmem:[#allocation4 + $0x1e0] sm:$0xff] }
 0xa0d   : > { %3580 = vmatpush.msrb.mxu0 %v3535_v15  ;;  %v3634_v15 = vld [vmem:[#allocation4 + $0x1d8] sm:$0xff] }
 0xa0f   : > { %3581 = vmatpush.msrb.mxu0 %v3534_v17  ;;  %v3633_v17 = vld [vmem:[#allocation4 + $0x1d0] sm:$0xff] }
 0xa11   : > { %3712 = vmatpush.msra.mxu0 %v3695_v24  ;;  %v3632_v24 = vld [vmem:[#allocation4 + $0x1c8] sm:$0xff] }
 0xa13   : > { %3713 = vmatpush.msra.mxu0 %v3694_v26  ;;  %v3631_v26 = vld [vmem:[#allocation4 + $0x1c0] sm:$0xff] }
 0xa15   : > { %3714 = vmatpush.msra.mxu0 %v3693_v29  ;;  %v3630_v29 = vld [vmem:[#allocation4 + $0x1b8] sm:$0xff] }
 0xa33   : > { %v3263_v28 = vpop.f32.mrf.mxu3 }
 0xa34   : > { %v6537_v10 = vadd.f32 %v3263_v28, %v3140_v22  ;;  %v3766_v22 = vld [vmem:[#allocation4 + $0x368] sm:$0xff]  ;;  %v3692_v28 = vld [vmem:[#allocation4 + $0x260] sm:$0xff] }
 0xa35   : > { %3715 = vmatpush.msra.mxu0 %v3692_v28  ;;  %v3629_v28 = vld [vmem:[#allocation4 + $0x1b0] sm:$0xff] }
 0xa53   : > { %v3345_v52 = vpop.f32.mrf.mxu3 }
 0xa54   : > { %v3346_v49 = vadd.f32 %v3345_v52, %v3325_v0  ;;  %v3765_v0 = vld [vmem:[#allocation4 + $0x360] sm:$0xff]  ;;  %v3691_v52 = vld [vmem:[#allocation4 + $0x258] sm:$0xff] }
 0xa55   : > { %3716 = vmatpush.msra.mxu0 %v3691_v52  ;;  %v3628_v52 = vld [vmem:[#allocation4 + $0x1a8] sm:$0xff] }
 0xa56   : > { %3388 = vmatpush.msrb.mxu1 %v3346_v49  ;;  %v3764_v49 = vld [vmem:[#allocation4 + $0x358] sm:$0xff] }
 0xa57   : > { %5156 = vmatmul.msk.f32.vlgmr.msrb.gmra.mxu1 %vm2546_vm2, %v6524_v43  ;;  %v5890_v43 = vld [vmem:[#allocation2 + $0x1128] sm:$0xff]  ;;  %3717 = vmatpush.msra.mxu0 %v3690_v32  ;;  %v3627_v32 = vld [vmem:[#allocation4 + $0x1a0] sm:$0xff] }
 0xa58   : > { %3455 = vmatpush.msra.mxu1 %v5877_v18  ;;  %v3763_v18 = vld [vmem:[#allocation4 + $0x350] sm:$0xff] }
 0xa59   : > { %3718 = vmatpush.msra.mxu0 %v3689_v37  ;;  %v3707_v37 = vld [vmem:[#allocation4 + $0x2d8] sm:$0xff] }
 0xa5a   : > { %3456 = vmatpush.msra.mxu1 %v5878_v41 }
 0xa5b   : > { %3719 = vmatpush.msra.mxu0 %v3688_v13  ;;  %v3706_v13 = vld [vmem:[#allocation4 + $0x2d0] sm:$0xff] }
 0xa5c   : > { %3457 = vmatpush.msra.mxu1 %v5879_v50  ;;  %v3762_v50 = vld [vmem:[#allocation4 + $0x348] sm:$0xff] }
 0xa5d   : > { %3720 = vmatpush.msra.mxu0 %v3687_v42  ;;  %v3705_v42 = vld [vmem:[#allocation4 + $0x2c8] sm:$0xff] }
 0xa5e   : > { %3458 = vmatpush.msra.mxu1 %v5880_v35  ;;  %v3761_v35 = vld [vmem:[#allocation4 + $0x340] sm:$0xff] }
 0xa60   : > { %3459 = vmatpush.msra.mxu1 %v5881_v61  ;;  %v3760_v61 = vld [vmem:[#allocation4 + $0x338] sm:$0xff] }
 0xa62   : > { %3460 = vmatpush.msra.mxu1 %v5882_v12  ;;  %v3686_v12 = vld [vmem:[#allocation4 + $0x230] sm:$0xff] }
 0xa63   : > { %3721 = vmatpush.msra.mxu0 %v3686_v12  ;;  %v3704_v12 = vld [vmem:[#allocation4 + $0x2c0] sm:$0xff] }
 0xa64   : > { %3461 = vmatpush.msra.mxu1 %v5883_v30  ;;  %v3759_v30 = vld [vmem:[#allocation4 + $0x330] sm:$0xff] }
 0xa66   : > { %3462 = vmatpush.msra.mxu1 %v5884_v51  ;;  %v3685_v51 = vld [vmem:[#allocation4 + $0x228] sm:$0xff] }
 0xa67   : > { %3722 = vmatpush.msra.mxu0 %v3685_v51  ;;  %v3783_v51 = vld [vmem:[#allocation4 + $0x3f0] sm:$0xff] }
 0xa68   : > { %3463 = vmatpush.msra.mxu1 %v5885_v36  ;;  %v3758_v36 = vld [vmem:[#allocation4 + $0x328] sm:$0xff] }
 0xa6a   : > { %3464 = vmatpush.msra.mxu1 %v5886_v62  ;;  %v3757_v62 = vld [vmem:[#allocation4 + $0x320] sm:$0xff] }
 0xa6c   : > { %3465 = vmatpush.msra.mxu1 %v5887_v38  ;;  %v3683_v38 = vld [vmem:[#allocation4 + $0x218] sm:$0xff] }
 0xa6e   : > { %3466 = vmatpush.msra.mxu1 %v5888_v39  ;;  %v3756_v39 = vld [vmem:[#allocation4 + $0x318] sm:$0xff] }
 0xa70   : > { %3467 = vmatpush.msra.mxu1 %v5889_v40  ;;  %v3682_v40 = vld [vmem:[#allocation4 + $0x210] sm:$0xff] }
 0xa72   : > { %3468 = vmatpush.msra.mxu1 %v5890_v43  ;;  %v3755_v43 = vld [vmem:[#allocation4 + $0x310] sm:$0xff] }
 0xa73   : > { %v3432_v45 = vpop.f32.mrf.mxu3 }
 0xa74   : > { %v3433_v46 = vadd.f32 %v3432_v45, %v3412_v44  ;;  %3469 = vmatpush.msra.mxu1 %v5891_v63  ;;  %v3681_v44 = vld [vmem:[#allocation4 + $0x208] sm:$0xff]  ;;  %v3753_v63 = vld [vmem:[#allocation4 + $0x300] sm:$0xff] }
 0xa75   : > { %v3754_v45 = vld [vmem:[#allocation4 + $0x308] sm:$0xff] }
 0xa76   : > { %3470 = vmatpush.msra.mxu1 %v5892_v11  ;;  %3495 = vmatpush.msra.mxu2 %v3433_v46  ;;  %v3680_v46 = vld [vmem:[#allocation4 + $0x200] sm:$0xff]  ;;  %v3564_v11 = vld [vmem:[#allocation4 + $0xf0] sm:$0xff] }
 0xa77   : > { %3471 = vmatmul.f32.vlgmr.msra.gmra.mxu1 %v6407_v4  ;;  %5158 = vmatmul.msk.f32.vlgmr.msra.gmra.mxu2 %vm2546_vm2, %v6544_v48  ;;  %v3615_v4 = vld [vmem:[#allocation4 + $0x140] sm:$0xff] }
 0xa78   : > { %3639 = vmatpush.msrb.mxu2 %v3622_v60  ;;  %v3565_v60 = vld [vmem:[#allocation4 + $0xf8] sm:$0xff] }
 0xa79   : > { %3586 = vmatpush.msrb.mxu1 %v3565_v60  ;;  %v3774_v60 = vld [vmem:[#allocation4 + $0x3a8] sm:$0xff] }
 0xa7a   : > { %3640 = vmatpush.msrb.mxu2 %v3621_v7  ;;  %v3563_v7 = vld [vmem:[#allocation4 + $0xe8] sm:$0xff] }
 0xa7b   : > { %3587 = vmatpush.msrb.mxu1 %v3564_v11  ;;  %v3700_v11 = vld [vmem:[#allocation4 + $0x2a0] sm:$0xff] }
 0xa7c   : > { %3641 = vmatpush.msrb.mxu2 %v3620_v33  ;;  %v3370_v33 = vpop.f32.mrf.mxu0 }
 0xa7d   : > { %3588 = vmatpush.msrb.mxu1 %v3563_v7  ;;  %v3773_v7 = vld [vmem:[#allocation4 + $0x3a0] sm:$0xff] }
 0xa7e   : > { %3642 = vmatpush.msrb.mxu2 %v3619_v21  ;;  %v3562_v21 = vld [vmem:[#allocation4 + $0xe0] sm:$0xff] }
 0xa7f   : > { %3589 = vmatpush.msrb.mxu1 %v3562_v21  ;;  %v3772_v21 = vld [vmem:[#allocation4 + $0x398] sm:$0xff] }
 0xa80   : > { %3643 = vmatpush.msrb.mxu2 %v3618_v34  ;;  %v3561_v34 = vld [vmem:[#allocation4 + $0xd8] sm:$0xff] }
 0xa81   : > { %3590 = vmatpush.msrb.mxu1 %v3561_v34  ;;  %v3698_v34 = vld [vmem:[#allocation4 + $0x290] sm:$0xff] }
 0xa82   : > { %3644 = vmatpush.msrb.mxu2 %v3617_v55  ;;  %v3559_v55 = vld [vmem:[#allocation4 + $0xc8] sm:$0xff] }
 0xa83   : > { %3591 = vmatpush.msrb.mxu1 %v3560_v54  ;;  %v3771_v54 = vld [vmem:[#allocation4 + $0x390] sm:$0xff] }
 0xa84   : > { %3645 = vmatpush.msrb.mxu2 %v3616_v53  ;;  %v3452_v56 = vpop.f32.mrf.mxu0 }
 0xa85   : > { %3592 = vmatpush.msrb.mxu1 %v3559_v55  ;;  %v3697_v55 = vld [vmem:[#allocation4 + $0x288] sm:$0xff] }
 0xa86   : > { %3646 = vmatpush.msrb.mxu2 %v3615_v4  ;;  %v3558_v4 = vld [vmem:[#allocation4 + $0xc0] sm:$0xff] }
 0xa87   : > { %3593 = vmatpush.msrb.mxu1 %v3558_v4 }
 0xa88   : > { %3647 = vmatpush.msrb.mxu2 %v3614_v1  ;;  %v3557_v1 = vld [vmem:[#allocation4 + $0xb8] sm:$0xff] }
 0xa89   : > { %3594 = vmatpush.msrb.mxu1 %v3557_v1 }
 0xa8a   : > { %3648 = vmatpush.msrb.mxu2 %v3613_v19  ;;  %v3393_v19 = vadd.f32 %v3370_v33, %v6519_v31  ;;  %v3699_v33 = vld [vmem:[#allocation4 + $0x298] sm:$0xff] }
 0xa8b   : > { %3595 = vmatpush.msrb.mxu1 %v3556_v58  ;;  %v6572_v58 = vld [vmem:[#allocation6 + $0x78] sm:$0xff] }
 0xa8c   : > { %3649 = vmatpush.msrb.mxu2 %v3612_v20 }
 0xa8d   : > { %3596 = vmatpush.msrb.mxu1 %v3555_v6  ;;  %v6586_v6 = vld [vmem:[#allocation6 + $0x20] sm:$0xff] }
 0xa8e   : > { %3650 = vmatpush.msrb.mxu2 %v3611_v5 }
 0xa90   : > { %3651 = vmatpush.msrb.mxu2 %v3610_v8  ;;  %v6556_v8 = vpop.permute.xlu0 %3525 }
 0xa92   : > { %3652 = vmatpush.msrb.mxu2 %v3609_v14  ;;  %v3554_v14 = vld [vmem:[#allocation4 + $0xa0] sm:$0xff] }
 0xa93   : > { %3597 = vmatpush.msrb.mxu1 %v3554_v14  ;;  %v6600_v14 = vld [vmem:[#allocation6 + $0x10] sm:$0xff] }
 0xa94   : > { %3653 = vmatpush.msrb.mxu2 %v3608_v16  ;;  %v3553_v16 = vld [vmem:[#allocation4 + $0x98] sm:$0xff] }
 0xa95   : > { %3598 = vmatpush.msrb.mxu1 %v3553_v16  ;;  %v6608_v16 = vld [vmem:[#allocation6 + $0x48] sm:$0xff] }
 0xa96   : > { %3654 = vmatpush.msrb.mxu2 %v3607_v23  ;;  %v3552_v23 = vld [vmem:[#allocation4 + $0x90] sm:$0xff] }
 0xa97   : > { %3599 = vmatpush.msrb.mxu1 %v3552_v23  ;;  %v6614_v23 = vld [vmem:[#allocation6 + $0x40] sm:$0xff] }
 0xa98   : > { %3785 = vmatpush.msra.mxu2 %v3768_v25  ;;  %v3551_v25 = vld [vmem:[#allocation4 + $0x88] sm:$0xff] }
 0xa99   : > { %3600 = vmatpush.msrb.mxu1 %v3551_v25 }
 0xa9a   : > { %3786 = vmatpush.msra.mxu2 %v3767_v3  ;;  %v3550_v3 = vld [vmem:[#allocation4 + $0x80] sm:$0xff] }
 0xa9b   : > { %3601 = vmatpush.msrb.mxu1 %v3550_v3 }
 0xa9c   : > { %3787 = vmatpush.msra.mxu2 %v3766_v22  ;;  %v3711_v22 = vld [vmem:[#allocation4 + $0x2f8] sm:$0xff] }
 0xa9d   : > { %3732 = vmatpush.msra.mxu1 %v3711_v22 }
 0xa9e   : > { %3788 = vmatpush.msra.mxu2 %v3765_v0  ;;  %v3710_v0 = vld [vmem:[#allocation4 + $0x2f0] sm:$0xff] }
 0xa9f   : > { %3733 = vmatpush.msra.mxu1 %v3710_v0 }
 0xaa0   : > { %3789 = vmatpush.msra.mxu2 %v3764_v49  ;;  %v3709_v49 = vld [vmem:[#allocation4 + $0x2e8] sm:$0xff] }
 0xaa1   : > { %3734 = vmatpush.msra.mxu1 %v3709_v49 }
 0xaa2   : > { %3790 = vmatpush.msra.mxu2 %v3763_v18  ;;  %v3708_v18 = vld [vmem:[#allocation4 + $0x2e0] sm:$0xff] }
 0xaa3   : > { %3735 = vmatpush.msra.mxu1 %v3708_v18 }
 0xaa4   : > { %3791 = vmatpush.msra.mxu2 %v3762_v50  ;;  %v3625_v50 = vld [vmem:[#allocation4 + $0x190] sm:$0xff] }
 0xaa5   : > { %3736 = vmatpush.msra.mxu1 %v3707_v37 }
 0xaa6   : > { %3792 = vmatpush.msra.mxu2 %v3761_v35  ;;  %v3624_v35 = vld [vmem:[#allocation4 + $0x188] sm:$0xff] }
 0xaa7   : > { %3737 = vmatpush.msra.mxu1 %v3706_v13  ;;  %v5162_v13 = vld [vmem:[%s7093_s9 + $0x10] sm:$0xff] }
 0xaa8   : > { %3793 = vmatpush.msra.mxu2 %v3760_v61  ;;  %v3623_v61 = vld [vmem:[#allocation4 + $0x180] sm:$0xff] }
 0xaa9   : > { %3738 = vmatpush.msra.mxu1 %v3705_v42 }
 0xaaa   : > { %3794 = vmatpush.msra.mxu2 %v3759_v30  ;;  %v3784_v30 = vld [vmem:[#allocation4 + $0x3f8] sm:$0xff] }
 0xaab   : > { %3739 = vmatpush.msra.mxu1 %v3704_v12  ;;  %v6630_v12 = vld [vmem:[#allocation6 + $0xb8] sm:$0xff] }
 0xaac   : > { %3795 = vmatpush.msra.mxu2 %v3758_v36  ;;  %v3782_v36 = vld [vmem:[#allocation4 + $0x3e8] sm:$0xff] }
 0xaae   : > { %3796 = vmatpush.msra.mxu2 %v3757_v62  ;;  %v3780_v62 = vld [vmem:[#allocation4 + $0x3d8] sm:$0xff] }
 0xab0   : > { %3797 = vmatpush.msra.mxu2 %v3756_v39  ;;  %v3778_v39 = vld [vmem:[#allocation4 + $0x3c8] sm:$0xff] }
 0xab2   : > { %3798 = vmatpush.msra.mxu2 %v3755_v43  ;;  %v3703_v43 = vld [vmem:[#allocation4 + $0x2b8] sm:$0xff] }
 0xab3   : > { %3740 = vmatpush.msra.mxu1 %v3703_v43  ;;  %v3861_v43 = vld [vmem:[%s7093_s9 + $0x8] sm:$0xff] }
 0xab4   : > { %3799 = vmatpush.msra.mxu2 %v3754_v45  ;;  %v3702_v45 = vld [vmem:[#allocation4 + $0x2b0] sm:$0xff] }
 0xab5   : > { %3741 = vmatpush.msra.mxu1 %v3702_v45  ;;  %v6662_v45 = vld [vmem:[#allocation6 + $0xd8] sm:$0xff] }
 0xab6   : > { %3800 = vmatpush.msra.mxu2 %v3753_v63  ;;  %v3701_v63 = vld [vmem:[#allocation4 + $0x2a8] sm:$0xff] }
 0xab7   : > { %3742 = vmatpush.msra.mxu1 %v3701_v63  ;;  %v6670_v63 = vld [vmem:[#allocation6 + $0xd0] sm:$0xff] }
 0xab9   : > { %3743 = vmatpush.msra.mxu1 %v3700_v11  ;;  %v6676_v11 = vld [vmem:[#allocation6 + $0xc8] sm:$0xff] }
 0xabb   : > { %3744 = vmatpush.msra.mxu1 %v3699_v33  ;;  %v6682_v33 = vld [vmem:[#allocation6 + $0xc0] sm:$0xff] }
 0xabd   : > { %3745 = vmatpush.msra.mxu1 %v3698_v34 }
 0xabf   : > { %3746 = vmatpush.msra.mxu1 %v3697_v55 }
 0xad4   : > { %v3390_v27 = vpop.f32.mrf.mxu1 }
 0xad5   : > { %v6550_v41 = vadd.f32 %v3390_v27, %v6537_v10  ;;  %v3684_v10 = vld [vmem:[#allocation4 + $0x220] sm:$0xff]  ;;  %v3626_v27 = vld [vmem:[#allocation4 + $0x198] sm:$0xff] }
 0xad6   : > { %3723 = vmatpush.msra.mxu0 %v3684_v10  ;;  %v3781_v10 = vld [vmem:[#allocation4 + $0x3e0] sm:$0xff] }
 0xad8   : > { %3724 = vmatpush.msra.mxu0 %v3683_v38  ;;  %v3779_v38 = vld [vmem:[#allocation4 + $0x3d0] sm:$0xff] }
 0xada   : > { %3725 = vmatpush.msra.mxu0 %v3682_v40  ;;  %v3777_v40 = vld [vmem:[#allocation4 + $0x3c0] sm:$0xff] }
 0xadc   : > { %3726 = vmatpush.msra.mxu0 %v3681_v44  ;;  %v3776_v44 = vld [vmem:[#allocation4 + $0x3b8] sm:$0xff] }
 0xade   : > { %3727 = vmatpush.msra.mxu0 %v3680_v46  ;;  %v3775_v46 = vld [vmem:[#allocation4 + $0x3b0] sm:$0xff] }
 0xaf4   : > { %v3472_v53 = vpop.f32.mrf.mxu1 }
 0xaf5   : > { %v3473_v57 = vadd.f32 %v3472_v53, %v3452_v56  ;;  %v3770_v56 = vld [vmem:[#allocation4 + $0x388] sm:$0xff]  ;;  %v3696_v53 = vld [vmem:[#allocation4 + $0x280] sm:$0xff] }
 0xaf6   : > { %3747 = vmatpush.msra.mxu1 %v3696_v53 }
 0xaf7   : > { %3515 = vmatpush.msra.mxu3 %v3473_v57  ;;  %v3769_v57 = vld [vmem:[#allocation4 + $0x380] sm:$0xff] }
 0xaf8   : > { %5159 = vmatmul.msk.f32.vlgmr.msra.gmra.mxu3 %vm2546_vm2, %v6544_v48 }
 0xaf9   : > { %3659 = vmatpush.msrb.mxu3 %v3638_v59 }
 0xafa   : > { %v3497_v20 = vpop.f32.mrf.mxu2 }
 0xafb   : > { %v3520_v5 = vadd.f32 %v3497_v20, %v3393_v19  ;;  %3660 = vmatpush.msrb.mxu3 %v3637_v2  ;;  %v6570_v19 = vld [vmem:[#allocation6 + $0x38] sm:$0xff]  ;;  %v6576_v20 = vld [vmem:[#allocation6 + $0x30] sm:$0xff] }
 0xafd   : > { %v3528_v48 = vadd.f32 %v6556_v8, %v3520_v5  ;;  %3661 = vmatpush.msrb.mxu3 %v3636_v47  ;;  %v6578_v47 = vld [vmem:[#allocation6 + $0x70] sm:$0xff]  ;;  %v6584_v5 = vld [vmem:[#allocation6 + $0x68] sm:$0xff] }
 0xaff   : > { %v3530_v31 = vmax.f32 %v3528_v48, 0.0  ;;  %3662 = vmatpush.msrb.mxu3 %v3635_v9  ;;  %v6594_v9 = vld [vmem:[#allocation6 + $0x18] sm:$0xff] }
 0xb00   : > { %v6596_v48 = vld [vmem:[#allocation6 + $0x58] sm:$0xff] }
 0xb01   : > { %3582 = vmatmul.f32.vlgmr.msrb.gmra.mxu0 %v3530_v31  ;;  %3655 = vmatmul.f32.vlgmr.msrb.gmra.mxu2 %v3530_v31  ;;  %3532 = vst [vmem:[%s6564_s15] sm:$0xff] %v3530_v31 }
 0xb02   : > { %3663 = vmatpush.msrb.mxu3 %v3634_v15  ;;  %3848 = vmatpush.msrb.mxu0 %v6570_v19  ;;  %v6606_v15 = vld [vmem:[#allocation6 + $0x8] sm:$0xff] }
 0xb04   : > { %3664 = vmatpush.msrb.mxu3 %v3633_v17  ;;  %3849 = vmatpush.msrb.mxu0 %v6576_v20  ;;  %v6612_v17 = vld [vmem:[#allocation6] sm:$0xff] }
 0xb06   : > { %3665 = vmatpush.msrb.mxu3 %v3632_v24 }
 0xb08   : > { %3666 = vmatpush.msrb.mxu3 %v3631_v26 }
 0xb09   : > { %3728 = vmatmul.f32.vlgmr.msra.gmra.mxu0 %v3530_v31  ;;  %3801 = vmatmul.f32.vlgmr.msra.gmra.mxu2 %v3530_v31  ;;  %v6602_v31 = vld [vmem:[#allocation6 + $0x50] sm:$0xff] }
 0xb0a   : > { %3667 = vmatpush.msrb.mxu3 %v3630_v29 }
 0xb0c   : > { %3668 = vmatpush.msrb.mxu3 %v3629_v28 }
 0xb0e   : > { %3669 = vmatpush.msrb.mxu3 %v3628_v52 }
 0xb10   : > { %3670 = vmatpush.msrb.mxu3 %v3627_v32 }
 0xb12   : > { %3671 = vmatpush.msrb.mxu3 %v3626_v27 }
 0xb14   : > { %3672 = vmatpush.msrb.mxu3 %v3625_v50 }
 0xb16   : > { %3673 = vmatpush.msrb.mxu3 %v3624_v35  ;;  %v3860_v35 = vld [vmem:[%s7093_s9] sm:$0xff] }
 0xb18   : > { %3674 = vmatpush.msrb.mxu3 %v3623_v61 }
 0xb1a   : > { %3805 = vmatpush.msra.mxu3 %v3784_v30  ;;  %v6632_v30 = vld [vmem:[#allocation6 + $0xf8] sm:$0xff] }
 0xb1c   : > { %3806 = vmatpush.msra.mxu3 %v3783_v51  ;;  %v6636_v51 = vld [vmem:[#allocation6 + $0xb0] sm:$0xff] }
 0xb1e   : > { %3807 = vmatpush.msra.mxu3 %v3782_v36  ;;  %v6638_v36 = vld [vmem:[#allocation6 + $0xf0] sm:$0xff] }
 0xb20   : > { %3808 = vmatpush.msra.mxu3 %v3781_v10  ;;  %v6642_v10 = vld [vmem:[#allocation6 + $0xa8] sm:$0xff] }
 0xb22   : > { %3809 = vmatpush.msra.mxu3 %v3780_v62  ;;  %v6644_v62 = vld [vmem:[#allocation6 + $0xe8] sm:$0xff] }
 0xb24   : > { %3810 = vmatpush.msra.mxu3 %v3779_v38  ;;  %v6648_v38 = vld [vmem:[#allocation6 + $0xa0] sm:$0xff] }
 0xb26   : > { %3811 = vmatpush.msra.mxu3 %v3778_v39  ;;  %v6650_v39 = vld [vmem:[#allocation6 + $0xe0] sm:$0xff] }
 0xb28   : > { %3812 = vmatpush.msra.mxu3 %v3777_v40  ;;  %v5163_v40 = vld [vmem:[%s7093_s9 + $0x18] sm:$0xff] }
 0xb2a   : > { %3813 = vmatpush.msra.mxu3 %v3776_v44  ;;  %v6660_v44 = vld [vmem:[#allocation6 + $0x98] sm:$0xff] }
 0xb2c   : > { %3814 = vmatpush.msra.mxu3 %v3775_v46  ;;  %v6668_v46 = vld [vmem:[#allocation6 + $0x90] sm:$0xff] }
 0xb2e   : > { %3815 = vmatpush.msra.mxu3 %v3774_v60  ;;  %v6674_v60 = vld [vmem:[#allocation6 + $0x88] sm:$0xff] }
 0xb30   : > { %3816 = vmatpush.msra.mxu3 %v3773_v7  ;;  %v6680_v7 = vld [vmem:[#allocation6 + $0x80] sm:$0xff] }
 0xb32   : > { %3817 = vmatpush.msra.mxu3 %v3772_v21 }
 0xb34   : > { %3818 = vmatpush.msra.mxu3 %v3771_v54 }
 0xb36   : > { %3819 = vmatpush.msra.mxu3 %v3770_v56 }
 0xb38   : > { %3820 = vmatpush.msra.mxu3 %v3769_v57  ;;  %v5169_v57 = vld [vmem:[%s7093_s9 + $0x20] sm:$0xff] }
 0xb7b   : > { %v3517_v4 = vpop.f32.mrf.mxu3 }
 0xb7c   : > { %v3521_v59 = vadd.f32 %v3517_v4, %v6550_v41  ;;  %v6582_v41 = vld [vmem:[#allocation6 + $0x28] sm:$0xff] }
 0xb7d   : > { %3850 = vmatpush.msrb.mxu0 %v6582_v41  ;;  %v5174_v4 = vld [vmem:[%s7093_s9 + $0x30] sm:$0xff] }
 0xb7e   : > { %v3529_v1 = vadd.f32 %v6556_v8, %v3521_v59  ;;  %v6590_v8 = vld [vmem:[#allocation6 + $0x60] sm:$0xff]  ;;  %v3583_v25 = vpop.f32.mrf.mxu0 }
 0xb7f   : > { %3851 = vmatpush.msrb.mxu0 %v6586_v6 }
 0xb80   : > { %v3531_v2 = vmax.f32 %v3529_v1, 0.0 }
 0xb81   : > { %3852 = vmatpush.msrb.mxu0 %v6594_v9 }
 0xb82   : > { %3602 = vmatmul.f32.vlgmr.msrb.gmra.mxu1 %v3531_v2  ;;  %3675 = vmatmul.f32.vlgmr.msrb.gmra.mxu3 %v3531_v2  ;;  %3533 = vst [vmem:[%s6564_s15 + $0x8] sm:$0xff] %v3531_v2 }
 0xb83   : > { %3879 = vmatpush.msrb.mxu1 %v6572_v58  ;;  %3853 = vmatpush.msrb.mxu0 %v6600_v14 }
 0xb84   : > { %v3656_v26 = vpop.f32.mrf.mxu2 }
 0xb85   : > { %3880 = vmatpush.msrb.mxu1 %v6578_v47  ;;  %3854 = vmatpush.msrb.mxu0 %v6606_v15 }
 0xb86   : > { %v3729_v22 = vpop.f32.mrf.mxu0 }
 0xb87   : > { %3881 = vmatpush.msrb.mxu1 %v6584_v5  ;;  %3855 = vmatpush.msrb.mxu0 %v6612_v17 }
 0xb89   : > { %3882 = vmatpush.msrb.mxu1 %v6590_v8 }
 0xb8a   : > { %3748 = vmatmul.f32.vlgmr.msra.gmra.mxu1 %v3531_v2  ;;  %3821 = vmatmul.f32.vlgmr.msra.gmra.mxu3 %v3531_v2  ;;  %v6698_v2 = vld [vmem:[#allocation6 + $0x138] sm:$0xff] }
 0xb8b   : > { %3883 = vmatpush.msrb.mxu1 %v6596_v48 }
 0xb8c   : > { %v3802_v0 = vpop.f32.mrf.mxu2 }
 0xb8d   : > { %3884 = vmatpush.msrb.mxu1 %v6602_v31 }
 0xb8f   : > { %3885 = vmatpush.msrb.mxu1 %v6608_v16 }
 0xb91   : > { %3886 = vmatpush.msrb.mxu1 %v6614_v23 }
 0xbff   : > { %v3603_v24 = vpop.f32.mrf.mxu1 }
 0xc00   : > { %v3604_v49 = vadd.f32 %v3603_v24, %v3583_v25  ;;  %v6700_v24 = vld [vmem:[#allocation6 + $0x178] sm:$0xff]  ;;  %v6704_v25 = vld [vmem:[#allocation6 + $0x130] sm:$0xff] }
 0xc05   : > { %v3676_v3 = vpop.f32.mrf.mxu3 }
 0xc06   : > { %v3677_v28 = vadd.f32 %v3676_v3, %v3656_v26  ;;  %v6706_v26 = vld [vmem:[#allocation6 + $0x170] sm:$0xff]  ;;  %v6710_v3 = vld [vmem:[#allocation6 + $0x128] sm:$0xff] }
 0xc07   : > { %v3749_v29 = vpop.f32.mrf.mxu1 }
 0xc08   : > { %v3750_v32 = vadd.f32 %v3749_v29, %v3729_v22  ;;  %v3825_v27 = vmax.f32 %v3604_v49, %v3677_v28  ;;  %v6712_v29 = vld [vmem:[#allocation6 + $0x168] sm:$0xff]  ;;  %v6716_v22 = vld [vmem:[#allocation6 + $0x120] sm:$0xff]  ;;  %v6728_v49 = vld [vmem:[#allocation6 + $0x118] sm:$0xff] }
 0xc09   : > { %v6718_v28 = vld [vmem:[#allocation6 + $0x160] sm:$0xff] }
 0xc0d   : > { %v3822_v52 = vpop.f32.mrf.mxu3 }
 0xc0e   : > { %v3823_v18 = vadd.f32 %v3822_v52, %v3802_v0  ;;  %v5170_v0 = vld [vmem:[%s7093_s9 + $0x28] sm:$0xff]  ;;  %v5175_v52 = vld [vmem:[%s7093_s9 + $0x38] sm:$0xff] }
 0xc10   : > { %v3826_v37 = vmax.f32 %v3750_v32, %v3823_v18  ;;  %v6730_v32 = vld [vmem:[#allocation6 + $0x158] sm:$0xff]  ;;  %v6736_v18 = vld [vmem:[#allocation6 + $0x110] sm:$0xff] }
 0xc12   : > { %v6618_v50 = vmax.f32 %v3825_v27, %v3826_v37  ;;  %v6738_v27 = vld [vmem:[#allocation6 + $0x150] sm:$0xff]  ;;  %v6742_v37 = vld [vmem:[#allocation6 + $0x108] sm:$0xff] }
 0xc14   : > { %5160 = vmatmul.msk.f32.vlgmr.msrb.gmra.mxu0 %vm3836_vm3, %v6618_v50  ;;  %5161 = vmatmul.msk.f32.vlgmr.msrb.gmra.mxu1 %vm3836_vm3, %v6618_v50 }
 0xc91   : > { %v3857_v42 = vpop.f32.mrf.mxu0  ;;  %v3888_v61 = vpop.f32.mrf.mxu1 }
 0xc92   : > { %3915 = vmatpush.msrb.mxu2 %v3888_v61  ;;  %3944 = vmatpush.msrb.mxu3 %v3857_v42  ;;  %v6750_v42 = vld [vmem:[#allocation6 + $0x140] sm:$0xff] }
 0xc93   : > { %5164 = vmatmul.msk.f32.vlgmr.msrb.gmra.mxu2 %vm2546_vm2, %v5162_v13  ;;  %5166 = vmatmul.msk.f32.vlgmr.msrb.gmra.mxu3 %vm2546_vm2, %v3860_v35  ;;  %v6744_v13 = vld [vmem:[#allocation6 + $0x148] sm:$0xff]  ;;  %v6748_v35 = vld [vmem:[#allocation6 + $0x100] sm:$0xff]  ;;  %7117 = vst [vmem:[#allocation13_spill] sm:$0xff] %v6750_v42 }
 0xc94   : > { %3969 = vmatpush.msra.mxu2 %v6630_v12  ;;  %4032 = vmatpush.msra.mxu3 %v6632_v30 }
 0xc96   : > { %3970 = vmatpush.msra.mxu2 %v6636_v51  ;;  %4033 = vmatpush.msra.mxu3 %v6638_v36 }
 0xc98   : > { %3971 = vmatpush.msra.mxu2 %v6642_v10  ;;  %4034 = vmatpush.msra.mxu3 %v6644_v62 }
 0xc9a   : > { %3972 = vmatpush.msra.mxu2 %v6648_v38  ;;  %4035 = vmatpush.msra.mxu3 %v6650_v39 }
 0xc9b   : > { %5165 = vmatmul.msk.f32.gmra.mxu2 %vm2546_vm2, %v5163_v40  ;;  %5167 = vmatmul.msk.f32.gmra.mxu3 %vm2546_vm2, %v3861_v43 }
 0xc9c   : > { %3973 = vmatpush.msra.mxu2 %v6660_v44  ;;  %4036 = vmatpush.msra.mxu3 %v6662_v45 }
 0xc9e   : > { %3974 = vmatpush.msra.mxu2 %v6668_v46  ;;  %4037 = vmatpush.msra.mxu3 %v6670_v63 }
 0xca0   : > { %3975 = vmatpush.msra.mxu2 %v6674_v60  ;;  %4038 = vmatpush.msra.mxu3 %v6676_v11 }
 0xca2   : > { %3976 = vmatpush.msra.mxu2 %v6680_v7  ;;  %4039 = vmatpush.msra.mxu3 %v6682_v33 }
 0xca3   : > { %5168 = vmatmul.msk.f32.vlgmr.msra.gmra.mxu2 %vm3836_vm3, %v6618_v50  ;;  %5173 = vmatmul.msk.f32.vlgmr.msra.gmra.mxu3 %vm3836_vm3, %v6618_v50 }
 0xd16   : > { %v3917_v21 = vpop.f32.mrf.mxu2  ;;  %v3946_v34 = vpop.f32.mrf.mxu3 }
 0xd17   : > { %v3947_v54 = vadd.f32 %v3946_v34, %v3917_v21 }
 0xd1e   : > { %v3920_v55 = vpop.f32.mrf.mxu2  ;;  %v3949_v56 = vpop.f32.mrf.mxu3 }
 0xd1f   : > { %v3950_v53 = vadd.f32 %v3949_v56, %v3920_v55 }
 0xd26   : > { %v3978_v59 = vpop.f32.mrf.mxu2  ;;  %v4041_v1 = vpop.f32.mrf.mxu3 }
 0xd27   : > { %4005 = vmatpush.msra.mxu0 %v3978_v59  ;;  %4068 = vmatpush.msra.mxu1 %v4041_v1  ;;  %v5184_v59 = vld [vmem:[%s7093_s9 + $0x50] sm:$0xff] }
 0xd28   : > { %5171 = vmatmul.msk.f32.vlgmr.msra.gmra.mxu0 %vm2546_vm2, %v5169_v57  ;;  %5176 = vmatmul.msk.f32.vlgmr.msra.gmra.mxu1 %vm2546_vm2, %v5174_v4  ;;  %v5179_v4 = vld [vmem:[%s7093_s9 + $0x40] sm:$0xff] }
 0xd29   : > { %4095 = vmatpush.msrb.mxu0 %v6698_v2  ;;  %4158 = vmatpush.msrb.mxu1 %v6700_v24 }
 0xd2b   : > { %4096 = vmatpush.msrb.mxu0 %v6704_v25  ;;  %4159 = vmatpush.msrb.mxu1 %v6706_v26 }
 0xd2d   : > { %4097 = vmatpush.msrb.mxu0 %v6710_v3  ;;  %4160 = vmatpush.msrb.mxu1 %v6712_v29 }
 0xd2f   : > { %4098 = vmatpush.msrb.mxu0 %v6716_v22  ;;  %4161 = vmatpush.msrb.mxu1 %v6718_v28 }
 0xd30   : > { %5172 = vmatmul.msk.f32.gmra.mxu0 %vm2546_vm2, %v5170_v0  ;;  %5177 = vmatmul.msk.f32.gmra.mxu1 %vm2546_vm2, %v5175_v52  ;;  %v6766_v52 = vld [vmem:[#allocation6 + $0x1b8] sm:$0xff] }
 0xd31   : > { %4099 = vmatpush.msrb.mxu0 %v6728_v49  ;;  %4162 = vmatpush.msrb.mxu1 %v6730_v32 }
 0xd33   : > { %4100 = vmatpush.msrb.mxu0 %v6736_v18  ;;  %4163 = vmatpush.msrb.mxu1 %v6738_v27 }
 0xd35   : > { %4101 = vmatpush.msrb.mxu0 %v6742_v37  ;;  %4164 = vmatpush.msrb.mxu1 %v6744_v13 }
 0xd37   : > { %4102 = vmatpush.msrb.mxu0 %v6748_v35  ;;  %4165 = vmatpush.msrb.mxu1 %v6750_v42  ;;  %v6768_v42 = vld [vmem:[#allocation6 + $0x1f8] sm:$0xff] }
 0xd38   : > { %5178 = vmatmul.msk.f32.vlgmr.msrb.gmra.mxu0 %vm3836_vm3, %v6618_v50  ;;  %5183 = vmatmul.msk.f32.vlgmr.msrb.gmra.mxu1 %vm3836_vm3, %v6618_v50  ;;  %7118 = vst [vmem:[#allocation14_spill] sm:$0xff] %v6768_v42 }
 0xda5   : > { %v4007_v61 = vpop.f32.mrf.mxu0  ;;  %v4070_v40 = vpop.f32.mrf.mxu1 }
 0xda6   : > { %v4013_v43 = vadd.f32 %v4007_v61, %v3947_v54  ;;  %v6772_v54 = vld [vmem:[#allocation6 + $0x1b0] sm:$0xff]  ;;  %v6778_v61 = vld [vmem:[#allocation6 + $0x1a8] sm:$0xff] }
 0xda8   : > { %v4076_v21 = vadd.f32 %v4070_v40, %v4013_v43  ;;  %v6780_v40 = vld [vmem:[#allocation6 + $0x1e8] sm:$0xff]  ;;  %v6784_v43 = vld [vmem:[#allocation6 + $0x1a0] sm:$0xff] }
 0xda9   : > { %7120 = vst [vmem:[#allocation16_spill] sm:$0xff] %v6780_v40 }
 0xdad   : > { %v4010_v34 = vpop.f32.mrf.mxu0  ;;  %v4073_v55 = vpop.f32.mrf.mxu1 }
 0xdae   : > { %v4014_v56 = vadd.f32 %v4010_v34, %v3950_v53  ;;  %v6774_v53 = vld [vmem:[#allocation6 + $0x1f0] sm:$0xff]  ;;  %v6786_v34 = vld [vmem:[#allocation6 + $0x1e0] sm:$0xff] }
 0xdaf   : > { %7119 = vst [vmem:[#allocation15_spill] sm:$0xff] %v6774_v53 }
 0xdb0   : > { %v4077_v57 = vadd.f32 %v4073_v55, %v4014_v56  ;;  %7121 = vst [vmem:[#allocation17_spill] sm:$0xff] %v6786_v34  ;;  %v5180_v55 = vld [vmem:[%s7093_s9 + $0x48] sm:$0xff]  ;;  %v5185_v56 = vld [vmem:[%s7093_s9 + $0x58] sm:$0xff] }
 0xdb5   : > { %v4104_v1 = vpop.f32.mrf.mxu0  ;;  %v4167_v0 = vpop.f32.mrf.mxu1 }
 0xdb6   : > { %4131 = vmatpush.msrb.mxu2 %v4104_v1  ;;  %4194 = vmatpush.msrb.mxu3 %v4167_v0  ;;  %v6804_v1 = vld [vmem:[#allocation6 + $0x190] sm:$0xff] }
 0xdb7   : > { %5181 = vmatmul.msk.f32.vlgmr.msrb.gmra.mxu2 %vm2546_vm2, %v5179_v4  ;;  %5186 = vmatmul.msk.f32.vlgmr.msrb.gmra.mxu3 %vm2546_vm2, %v5184_v59  ;;  %v6796_v4 = vld [vmem:[#allocation6 + $0x198] sm:$0xff]  ;;  %v6806_v0 = vld [vmem:[#allocation6 + $0x1d0] sm:$0xff] }
 0xdb8   : > { %4221 = vmatpush.msra.mxu2 %v6766_v52  ;;  %4284 = vmatpush.msra.mxu3 %v6768_v42  ;;  %v6798_v59 = vld [vmem:[#allocation6 + $0x1d8] sm:$0xff]  ;;  %7123 = vst [vmem:[#allocation19_spill] sm:$0xff] %v6806_v0 }
 0xdb9   : > { %7122 = vst [vmem:[#allocation18_spill] sm:$0xff] %v6798_v59 }
 0xdba   : > { %4222 = vmatpush.msra.mxu2 %v6772_v54  ;;  %4285 = vmatpush.msra.mxu3 %v6774_v53  ;;  %v6812_v53 = vld [vmem:[#allocation6 + $0x1c8] sm:$0xff] }
 0xdbb   : > { %7124 = vst [vmem:[#allocation20_spill] sm:$0xff] %v6812_v53 }
 0xdbc   : > { %4223 = vmatpush.msra.mxu2 %v6778_v61  ;;  %4286 = vmatpush.msra.mxu3 %v6780_v40  ;;  %v6810_v40 = vld [vmem:[#allocation6 + $0x188] sm:$0xff] }
 0xdbe   : > { %4224 = vmatpush.msra.mxu2 %v6784_v43  ;;  %4287 = vmatpush.msra.mxu3 %v6786_v34  ;;  %v6816_v34 = vld [vmem:[#allocation6 + $0x180] sm:$0xff] }
 0xdbf   : > { %5182 = vmatmul.msk.f32.gmra.mxu2 %vm2546_vm2, %v5180_v55  ;;  %5187 = vmatmul.msk.f32.gmra.mxu3 %vm2546_vm2, %v5185_v56  ;;  %v6818_v55 = vld [vmem:[#allocation6 + $0x1c0] sm:$0xff] }
 0xdc0   : > { %4225 = vmatpush.msra.mxu2 %v6796_v4  ;;  %4288 = vmatpush.msra.mxu3 %v6798_v59  ;;  %7125 = vst [vmem:[#allocation21_spill] sm:$0xff] %v6818_v55 }
 0xdc2   : > { %4226 = vmatpush.msra.mxu2 %v6804_v1  ;;  %4289 = vmatpush.msra.mxu3 %v6806_v0 }
 0xdc4   : > { %4227 = vmatpush.msra.mxu2 %v6810_v40  ;;  %4290 = vmatpush.msra.mxu3 %v6812_v53 }
 0xdc6   : > { %4228 = vmatpush.msra.mxu2 %v6816_v34  ;;  %4291 = vmatpush.msra.mxu3 %v6818_v55 }
 0xdc7   : > { %5188 = vmatmul.msk.f32.vlgmr.msra.gmra.mxu2 %vm3836_vm3, %v6618_v50  ;;  %5193 = vmatmul.msk.f32.vlgmr.msra.gmra.mxu3 %vm3836_vm3, %v6618_v50 }
 0xdc8   : > { %4448 = vmatpush.msrb.mxu3 %v6572_v58 }
 0xdca   : > { %4449 = vmatpush.msrb.mxu3 %v6578_v47 }
 0xdcc   : > { %4450 = vmatpush.msrb.mxu3 %v6584_v5  ;;  %v5189_v5 = vld [vmem:[%s7093_s9 + $0x60] sm:$0xff] }
 0xdce   : > { %4451 = vmatpush.msrb.mxu3 %v6590_v8  ;;  %v5194_v8 = vld [vmem:[%s7093_s9 + $0x70] sm:$0xff] }
 0xdd0   : > { %4452 = vmatpush.msrb.mxu3 %v6596_v48 }
 0xdd2   : > { %4453 = vmatpush.msrb.mxu3 %v6602_v31 }
 0xdd4   : > { %4454 = vmatpush.msrb.mxu3 %v6608_v16  ;;  %v6842_v16 = vld [vmem:[#allocation6 + $0x238] sm:$0xff] }
 0xdd6   : > { %4455 = vmatpush.msrb.mxu3 %v6614_v23  ;;  %v6846_v23 = vld [vmem:[#allocation6 + $0x230] sm:$0xff] }
 0xe3a   : > { %v4133_v56 = vpop.f32.mrf.mxu2  ;;  %v4196_v55 = vpop.f32.mrf.mxu3 }
 0xe3b   : > { %v4139_v53 = vadd.f32 %v4133_v56, %v4076_v21  ;;  %v6854_v21 = vld [vmem:[#allocation6 + $0x220] sm:$0xff] }
 0xe3d   : > { %v4202_v0 = vadd.f32 %v4196_v55, %v4139_v53  ;;  %v5195_v53 = vld [vmem:[%s7093_s9 + $0x78] sm:$0xff] }
 0xe42   : > { %v4136_v59 = vpop.f32.mrf.mxu2  ;;  %v4199_v58 = vpop.f32.mrf.mxu3 }
 0xe43   : > { %v4140_v42 = vadd.f32 %v4136_v59, %v4077_v57  ;;  %v5190_v57 = vld [vmem:[%s7093_s9 + $0x68] sm:$0xff]  ;;  %v6874_v59 = vld [vmem:[#allocation6 + $0x208] sm:$0xff] }
 0xe45   : > { %v4203_v47 = vadd.f32 %v4199_v58, %v4140_v42  ;;  %v6850_v42 = vld [vmem:[#allocation6 + $0x228] sm:$0xff] }
 0xe4a   : > { %v4230_v48 = vpop.f32.mrf.mxu2  ;;  %v4293_v31 = vpop.f32.mrf.mxu3 }
 0xe4b   : > { %4257 = vmatpush.msra.mxu0 %v4230_v48  ;;  %4320 = vmatpush.msra.mxu1 %v4293_v31 }
 0xe4c   : > { %5191 = vmatmul.msk.f32.vlgmr.msra.gmra.mxu0 %vm2546_vm2, %v5189_v5  ;;  %5196 = vmatmul.msk.f32.vlgmr.msra.gmra.mxu1 %vm2546_vm2, %v5194_v8 }
 0xe4d   : > { %4347 = vmatpush.msrb.mxu0 %v6842_v16  ;;  %4423 = vmatpush.msrb.mxu1 %v6570_v19  ;;  %v6864_v19 = vld [vmem:[#allocation6 + $0x218] sm:$0xff] }
 0xe4f   : > { %4348 = vmatpush.msrb.mxu0 %v6846_v23  ;;  %4424 = vmatpush.msrb.mxu1 %v6576_v20  ;;  %v6870_v20 = vld [vmem:[#allocation6 + $0x210] sm:$0xff] }
 0xe51   : > { %4349 = vmatpush.msrb.mxu0 %v6850_v42  ;;  %4425 = vmatpush.msrb.mxu1 %v6582_v41  ;;  %v6878_v41 = vld [vmem:[#allocation6 + $0x200] sm:$0xff] }
 0xe53   : > { %4350 = vmatpush.msrb.mxu0 %v6854_v21  ;;  %4426 = vmatpush.msrb.mxu1 %v6586_v6  ;;  %v4393_v6 = vld [vmem:[%s7094_s10] sm:$0xff] }
 0xe54   : > { %5192 = vmatmul.msk.f32.gmra.mxu0 %vm2546_vm2, %v5190_v57  ;;  %5197 = vmatmul.msk.f32.gmra.mxu1 %vm2546_vm2, %v5195_v53  ;;  %v5221_v57 = vld [vmem:[%s7095_s11 + $0x30] sm:$0xff]  ;;  %v5251_v53 = vld [vmem:[%s7095_s11 + $0x80] sm:$0xff] }
 0xe55   : > { %4351 = vmatpush.msrb.mxu0 %v6864_v19  ;;  %4427 = vmatpush.msrb.mxu1 %v6594_v9 }
 0xe56   : > { %4397 = vperm.xlu1 %5315, %v4393_v6  }
 0xe57   : > { %4352 = vmatpush.msrb.mxu0 %v6870_v20  ;;  %4428 = vmatpush.msrb.mxu1 %v6600_v14  ;;  %v4394_v14 = vld [vmem:[%s7094_s10 + $0x8] sm:$0xff] }
 0xe59   : > { %4353 = vmatpush.msrb.mxu0 %v6874_v59  ;;  %4429 = vmatpush.msrb.mxu1 %v6606_v15 }
 0xe5b   : > { %4354 = vmatpush.msrb.mxu0 %v6878_v41  ;;  %4430 = vmatpush.msrb.mxu1 %v6612_v17 }
 0xe5c   : > { %5198 = vmatmul.msk.f32.vlgmr.msrb.gmra.mxu0 %vm3836_vm3, %v6618_v50 }
 0xe5d   : > { %4533 = vmatpush.msra.mxu1 %v6630_v12  ;;  %v5199_v12 = vld [vmem:[%s7093_s9 + $0x80] sm:$0xff] }
 0xe5e   : > { %4402 = vperm.xlu1 %5315, %v4394_v14   ;;  %v4925_v14 = vld [vmem:[%s7096_s12 + $0x8] sm:$0xff] }
 0xe5f   : > { %4534 = vmatpush.msra.mxu1 %v6636_v51 }
 0xe61   : > { %4535 = vmatpush.msra.mxu1 %v6642_v10  ;;  %v5200_v10 = vld [vmem:[%s7093_s9 + $0x88] sm:$0xff] }
 0xe63   : > { %4536 = vmatpush.msra.mxu1 %v6648_v38 }
 0xe65   : > { %4537 = vmatpush.msra.mxu1 %v6660_v44 }
 0xe67   : > { %4538 = vmatpush.msra.mxu1 %v6668_v46 }
 0xe69   : > { %4539 = vmatpush.msra.mxu1 %v6674_v60 }
 0xe6b   : > { %4540 = vmatpush.msra.mxu1 %v6680_v7 }
 0xec8   : > { %v4398_v46 = vpop.permute.xlu1 %4397 }
 0xec9   : > { %v4259_v9 = vpop.f32.mrf.mxu0  ;;  %v4322_v38 = vpop.f32.mrf.mxu1 }
 0xeca   : > { %v4265_v15 = vadd.f32 %v4259_v9, %v4202_v0  ;;  %v5233_v9 = vld [vmem:[%s7095_s11 + $0x50] sm:$0xff] }
 0xecc   : > { %v4328_v44 = vadd.f32 %v4322_v38, %v4265_v15 }
 0xed0   : > { %v4403_v8 = vpop.permute.xlu1 %4402 }
 0xed1   : > { %v4262_v17 = vpop.f32.mrf.mxu0  ;;  %v4325_v55 = vpop.f32.mrf.mxu1 }
 0xed2   : > { %v4266_v50 = vadd.f32 %v4262_v17, %v4203_v47  ;;  %v5234_v17 = vld [vmem:[%s7095_s11 + $0x58] sm:$0xff] }
 0xed4   : > { %v4329_v58 = vadd.f32 %v4325_v55, %v4266_v50 }
 0xed9   : > { %v4356_v51 = vpop.f32.mrf.mxu0 }
 0xeda   : > { %4383 = vmatpush.msrb.mxu2 %v4356_v51  ;;  %v5246_v51 = vld [vmem:[%s7095_s11 + $0x78] sm:$0xff] }
 0xedb   : > { %5201 = vmatmul.msk.f32.vlgmr.msrb.gmra.mxu2 %vm2546_vm2, %v5199_v12  ;;  %v5245_v12 = vld [vmem:[%s7095_s11 + $0x70] sm:$0xff] }
 0xee3   : > { %5202 = vmatmul.msk.f32.gmra.mxu2 %vm2546_vm2, %v5200_v10 }
 0xf5e   : > { %v4385_v60 = vpop.f32.mrf.mxu2 }
 0xf5f   : > { %v4391_v7 = vadd.f32 %v4385_v60, %v4328_v44 }
 0xf61   : > { %v4405_v0 = vadd.f32 %v4398_v46, %v4391_v7 }
 0xf63   : > { %v6908_v56 = vmax.f32 %v4405_v0, 0.0 }
 0xf65   : > { %5203 = vmatmul.msk.f32.vlgmr.msrb.gmra.mxu1 %vm3836_vm3, %v6908_v56  ;;  %5205 = vmatmul.msk.f32.vlgmr.msrb.gmra.mxu3 %vm3836_vm3, %v6908_v56 }
 0xf66   : > { %v4388_v47 = vpop.f32.mrf.mxu2  ;;  %4647 = vmatpush.msrb.mxu1 %v6698_v2 }
 0xf67   : > { %v4392_v5 = vadd.f32 %v4388_v47, %v4329_v58 }
 0xf68   : > { %4648 = vmatpush.msrb.mxu1 %v6704_v25 }
 0xf69   : > { %v4406_v48 = vadd.f32 %v4403_v8, %v4392_v5 }
 0xf6a   : > { %4649 = vmatpush.msrb.mxu1 %v6710_v3 }
 0xf6b   : > { %v6917_v31 = vmax.f32 %v4406_v48, 0.0 }
 0xf6c   : > { %4650 = vmatpush.msrb.mxu1 %v6716_v22  ;;  %v4438_v22 = vld [vmem:[%s7095_s11] sm:$0xff] }
 0xf6d   : > { %5204 = vmatmul.msk.f32.gmra.mxu1 %vm3836_vm3, %v6917_v31  ;;  %5206 = vmatmul.msk.f32.gmra.mxu3 %vm3836_vm3, %v6917_v31 }
 0xf6e   : > { %4651 = vmatpush.msrb.mxu1 %v6728_v49 }
 0xf70   : > { %4652 = vmatpush.msrb.mxu1 %v6736_v18  ;;  %v5207_v18 = vld [vmem:[%s7095_s11 + $0x10] sm:$0xff] }
 0xf72   : > { %4653 = vmatpush.msrb.mxu1 %v6742_v37 }
 0xf74   : > { %4654 = vmatpush.msrb.mxu1 %v6748_v35  ;;  %v4439_v35 = vld [vmem:[%s7095_s11 + $0x8] sm:$0xff] }
 0xf75   : > { %5213 = vmatmul.msk.f32.vlgmr.msra.gmra.mxu1 %vm3836_vm3, %v6908_v56 }
 0xf76   : > { %4761 = vmatpush.msra.mxu1 %v6766_v52  ;;  %v5208_v52 = vld [vmem:[%s7095_s11 + $0x18] sm:$0xff] }
 0xf78   : > { %4762 = vmatpush.msra.mxu1 %v6772_v54 }
 0xf7a   : > { %4763 = vmatpush.msra.mxu1 %v6778_v61  ;;  %v5215_v61 = vld [vmem:[%s7095_s11 + $0x20] sm:$0xff] }
 0xf7c   : > { %4764 = vmatpush.msra.mxu1 %v6784_v43 }
 0xf7d   : > { %5214 = vmatmul.msk.f32.gmra.mxu1 %vm3836_vm3, %v6917_v31 }
 0xf7e   : > { %4765 = vmatpush.msra.mxu1 %v6796_v4  ;;  %v5228_v4 = vld [vmem:[%s7095_s11 + $0x48] sm:$0xff] }
 0xf80   : > { %4766 = vmatpush.msra.mxu1 %v6804_v1 }
 0xf82   : > { %4767 = vmatpush.msra.mxu1 %v6810_v40  ;;  %v7134_v40 = vld [vmem:[#allocation21_spill] sm:$0xff] }
 0xf84   : > { %4768 = vmatpush.msra.mxu1 %v6816_v34 }
 0xf85   : > { %5225 = vmatmul.msk.f32.vlgmr.msrb.gmra.mxu1 %vm3836_vm3, %v6908_v56 }
 0xf86   : > { %4875 = vmatpush.msrb.mxu1 %v6842_v16  ;;  %v5239_v16 = vld [vmem:[%s7095_s11 + $0x60] sm:$0xff] }
 0xf88   : > { %4876 = vmatpush.msrb.mxu1 %v6846_v23 }
 0xf8a   : > { %4877 = vmatpush.msrb.mxu1 %v6850_v42  ;;  %v5240_v42 = vld [vmem:[%s7095_s11 + $0x68] sm:$0xff] }
 0xf8c   : > { %4878 = vmatpush.msrb.mxu1 %v6854_v21 }
 0xf8d   : > { %5226 = vmatmul.msk.f32.gmra.mxu1 %vm3836_vm3, %v6917_v31 }
 0xf8e   : > { %4879 = vmatpush.msrb.mxu1 %v6864_v19 }
 0xf90   : > { %4880 = vmatpush.msrb.mxu1 %v6870_v20  ;;  %v5222_v20 = vld [vmem:[%s7095_s11 + $0x38] sm:$0xff] }
 0xf92   : > { %4881 = vmatpush.msrb.mxu1 %v6874_v59  ;;  %v5252_v59 = vld [vmem:[%s7095_s11 + $0x88] sm:$0xff] }
 0xf94   : > { %4882 = vmatpush.msrb.mxu1 %v6878_v41  ;;  %v4924_v41 = vld [vmem:[%s7096_s12] sm:$0xff] }
 0xf95   : > { %5237 = vmatmul.msk.f32.vlgmr.msra.gmra.mxu1 %vm3836_vm3, %v6908_v56  ;;  %4928 = vperm.xlu2 %5316, %v4924_v41  }
 0xf9d   : > { %5238 = vmatmul.msk.f32.gmra.mxu1 %vm3836_vm3, %v6917_v31  ;;  %4933 = vperm.xlu2 %5316, %v4925_v14  }
 0xfa5   : > { %5249 = vmatmul.msk.f32.vlgmr.msrb.gmra.mxu1 %vm3836_vm3, %v6908_v56 }
 0xfad   : > { %5250 = vmatmul.msk.f32.gmra.mxu1 %vm3836_vm3, %v6917_v31 }
 0xfe2   : > { %v4432_v2 = vpop.f32.mrf.mxu1 }
 0xfe8   : > { %v4457_v25 = vpop.f32.mrf.mxu3 }
 0xfea   : > { %v4435_v3 = vpop.f32.mrf.mxu1 }
 0xfeb   : > { %4516 = vmatpush.msra.mxu2 %v4435_v3 }
 0xfed   : > { %4517 = vmatpush.msra.mxu2 %v4432_v2 }
 0xfee   : > { %5211 = vmatmul.msk.f32.vlgmr.msra.gmra.mxu2 %vm4466_vm4, %v4438_v22 }
 0xff0   : > { %v4460_v49 = vpop.f32.mrf.mxu3 }
 0xff1   : > { %4487 = vmatpush.msra.mxu0 %v4460_v49 }
 0xff2   : > { %v4542_v37 = vpop.f32.mrf.mxu1 }
 0xff3   : > { %4488 = vmatpush.msra.mxu0 %v4457_v25 }
 0xff4   : > { %5209 = vmatmul.msk.f32.vlgmr.msra.gmra.mxu0 %vm4466_vm4, %v5207_v18 }
 0xff5   : > { %4590 = vmatpush.msrb.mxu0 %v6632_v30 }
 0xff6   : > { %5212 = vmatmul.msk.f32.gmra.mxu2 %vm4466_vm4, %v4439_v35 }
 0xff7   : > { %4591 = vmatpush.msrb.mxu0 %v6638_v36  ;;  %v5216_v36 = vld [vmem:[%s7095_s11 + $0x28] sm:$0xff] }
 0xff9   : > { %4592 = vmatpush.msrb.mxu0 %v6644_v62 }
 0xffa   : > { %v4545_v54 = vpop.f32.mrf.mxu1 }
 0xffb   : > { %4571 = vmatpush.msra.mxu3 %v4545_v54  ;;  %4593 = vmatpush.msrb.mxu0 %v6650_v39  ;;  %v5227_v39 = vld [vmem:[%s7095_s11 + $0x40] sm:$0xff] }
 0xffc   : > { %5210 = vmatmul.msk.f32.gmra.mxu0 %vm4466_vm4, %v5208_v52 }
 0xffd   : > { %4572 = vmatpush.msra.mxu3 %v4542_v37  ;;  %4594 = vmatpush.msrb.mxu0 %v6662_v45 }
 0xffe   : > { %5217 = vmatmul.msk.f32.vlgmr.msra.gmra.mxu3 %vm4466_vm4, %v5215_v61  ;;  %v4929_v61 = vpop.permute.xlu2 %4928 }
 0xfff   : > { %4595 = vmatpush.msrb.mxu0 %v6670_v63  ;;  %v7126_v63 = vld [vmem:[#allocation13_spill] sm:$0xff] }
0x1001   : > { %4596 = vmatpush.msrb.mxu0 %v6676_v11  ;;  %v7127_v11 = vld [vmem:[#allocation14_spill] sm:$0xff] }
0x1002   : > { %v4656_v30 = vpop.f32.mrf.mxu1 }
0x1003   : > { %4597 = vmatpush.msrb.mxu0 %v6682_v33  ;;  %v7128_v33 = vld [vmem:[#allocation15_spill] sm:$0xff] }
0x1004   : > { %5219 = vmatmul.msk.f32.vlgmr.msrb.gmra.mxu0 %vm3836_vm3, %v6908_v56 }
0x1005   : > { %4704 = vmatpush.msra.mxu0 %v6700_v24  ;;  %v7129_v24 = vld [vmem:[#allocation16_spill] sm:$0xff] }
0x1006   : > { %5218 = vmatmul.msk.f32.gmra.mxu3 %vm4466_vm4, %v5216_v36 }
0x1007   : > { %4705 = vmatpush.msra.mxu0 %v6706_v26 }
0x1009   : > { %4706 = vmatpush.msra.mxu0 %v6712_v29  ;;  %v7130_v29 = vld [vmem:[#allocation17_spill] sm:$0xff] }
0x100a   : > { %v4659_v62 = vpop.f32.mrf.mxu1 }
0x100b   : > { %4685 = vmatpush.msrb.mxu3 %v4659_v62  ;;  %4707 = vmatpush.msra.mxu0 %v6718_v28  ;;  %v7131_v28 = vld [vmem:[#allocation18_spill] sm:$0xff] }
0x100c   : > { %5220 = vmatmul.msk.f32.gmra.mxu0 %vm3836_vm3, %v6917_v31 }
0x100d   : > { %4686 = vmatpush.msrb.mxu3 %v4656_v30  ;;  %4708 = vmatpush.msra.mxu0 %v6730_v32  ;;  %v7132_v32 = vld [vmem:[#allocation19_spill] sm:$0xff] }
0x100e   : > { %5229 = vmatmul.msk.f32.vlgmr.msrb.gmra.mxu3 %vm4466_vm4, %v5227_v39 }
0x100f   : > { %4709 = vmatpush.msra.mxu0 %v6738_v27  ;;  %v7133_v27 = vld [vmem:[#allocation20_spill] sm:$0xff] }
0x1011   : > { %4710 = vmatpush.msra.mxu0 %v6744_v13 }
0x1012   : > { %v4770_v45 = vpop.f32.mrf.mxu1 }
0x1013   : > { %4711 = vmatpush.msra.mxu0 %v7126_v63 }
0x1014   : > { %5231 = vmatmul.msk.f32.vlgmr.msra.gmra.mxu0 %vm3836_vm3, %v6908_v56 }
0x1015   : > { %4818 = vmatpush.msrb.mxu0 %v7127_v11 }
0x1016   : > { %5230 = vmatmul.msk.f32.gmra.mxu3 %vm4466_vm4, %v5228_v4 }
0x1017   : > { %4819 = vmatpush.msrb.mxu0 %v7128_v33 }
0x1019   : > { %4820 = vmatpush.msrb.mxu0 %v7129_v24 }
0x101a   : > { %v4773_v26 = vpop.f32.mrf.mxu1 }
0x101b   : > { %4799 = vmatpush.msra.mxu3 %v4773_v26  ;;  %4821 = vmatpush.msrb.mxu0 %v7130_v29  ;;  %v4934_v26 = vpop.permute.xlu2 %4933 }
0x101c   : > { %5232 = vmatmul.msk.f32.gmra.mxu0 %vm3836_vm3, %v6917_v31 }
0x101d   : > { %4800 = vmatpush.msra.mxu3 %v4770_v45  ;;  %4822 = vmatpush.msrb.mxu0 %v7131_v28 }
0x101e   : > { %5241 = vmatmul.msk.f32.vlgmr.msra.gmra.mxu3 %vm4466_vm4, %v5239_v16 }
0x101f   : > { %4823 = vmatpush.msrb.mxu0 %v7132_v32 }
0x1021   : > { %4824 = vmatpush.msrb.mxu0 %v7133_v27 }
0x1022   : > { %v4884_v13 = vpop.f32.mrf.mxu1 }
0x1023   : > { %4825 = vmatpush.msrb.mxu0 %v7134_v40 }
0x1024   : > { %5243 = vmatmul.msk.f32.vlgmr.msrb.gmra.mxu0 %vm3836_vm3, %v6908_v56 }
0x1026   : > { %5242 = vmatmul.msk.f32.gmra.mxu3 %vm4466_vm4, %v5240_v42 }
0x102a   : > { %v4887_v43 = vpop.f32.mrf.mxu1 }
0x102b   : > { %4913 = vmatpush.msrb.mxu3 %v4887_v43 }
0x102c   : > { %5244 = vmatmul.msk.f32.gmra.mxu0 %vm3836_vm3, %v6917_v31 }
0x102d   : > { %4914 = vmatpush.msrb.mxu3 %v4884_v13 }
0x102e   : > { %5253 = vmatmul.msk.f32.vlgmr.msrb.gmra.mxu3 %vm4466_vm4, %v5251_v53 }
0x1036   : > { %5254 = vmatmul.msk.f32.gmra.mxu3 %vm4466_vm4, %v5252_v59 }
0x1071   : > { %v4490_v34 = vpop.f32.mrf.mxu0  ;;  %v4519_v38 = vpop.f32.mrf.mxu2 }
0x1072   : > { %v4520_v47 = vadd.f32 %v4519_v38, %v4490_v34 }
0x1079   : > { %v4493_v1 = vpop.f32.mrf.mxu0  ;;  %v4522_v60 = vpop.f32.mrf.mxu2 }
0x107a   : > { %v4523_v2 = vadd.f32 %v4522_v60, %v4493_v1 }
0x1081   : > { %v4599_v23 = vpop.f32.mrf.mxu0  ;;  %v4574_v10 = vpop.f32.mrf.mxu3 }
0x1082   : > { %v4580_v5 = vadd.f32 %v4574_v10, %v4520_v47 }
0x1089   : > { %v4602_v21 = vpop.f32.mrf.mxu0  ;;  %v4577_v44 = vpop.f32.mrf.mxu3 }
0x108a   : > { %4628 = vmatpush.msrb.mxu2 %v4602_v21  ;;  %v4581_v3 = vadd.f32 %v4577_v44, %v4523_v2 }
0x108c   : > { %4629 = vmatpush.msrb.mxu2 %v4599_v23 }
0x108d   : > { %5223 = vmatmul.msk.f32.vlgmr.msrb.gmra.mxu2 %vm4466_vm4, %v5221_v57 }
0x1091   : > { %v4713_v19 = vpop.f32.mrf.mxu0  ;;  %v4688_v46 = vpop.f32.mrf.mxu3 }
0x1095   : > { %5224 = vmatmul.msk.f32.gmra.mxu2 %vm4466_vm4, %v5222_v20 }
0x1099   : > { %v4716_v6 = vpop.f32.mrf.mxu0  ;;  %v4691_v0 = vpop.f32.mrf.mxu3 }
0x109a   : > { %4742 = vmatpush.msra.mxu2 %v4716_v6 }
0x109c   : > { %4743 = vmatpush.msra.mxu2 %v4713_v19 }
0x109d   : > { %5235 = vmatmul.msk.f32.vlgmr.msra.gmra.mxu2 %vm4466_vm4, %v5233_v9 }
0x10a1   : > { %v4827_v15 = vpop.f32.mrf.mxu0  ;;  %v4802_v56 = vpop.f32.mrf.mxu3 }
0x10a5   : > { %5236 = vmatmul.msk.f32.gmra.mxu2 %vm4466_vm4, %v5234_v17 }
0x10a9   : > { %v4830_v50 = vpop.f32.mrf.mxu0  ;;  %v4805_v8 = vpop.f32.mrf.mxu3 }
0x10aa   : > { %4856 = vmatpush.msrb.mxu2 %v4830_v50 }
0x10ac   : > { %4857 = vmatpush.msrb.mxu2 %v4827_v15 }
0x10ad   : > { %5247 = vmatmul.msk.f32.vlgmr.msrb.gmra.mxu2 %vm4466_vm4, %v5245_v12 }
0x10b1   : > { %v4916_v18 = vpop.f32.mrf.mxu3 }
0x10b5   : > { %5248 = vmatmul.msk.f32.gmra.mxu2 %vm4466_vm4, %v5246_v51 }
0x10b9   : > { %v4919_v11 = vpop.f32.mrf.mxu3 }
0x1110   : > { %v4631_v7 = vpop.f32.mrf.mxu2 }
0x1111   : > { %v4637_v48 = vadd.f32 %v4631_v7, %v4580_v5 }
0x1113   : > { %v4694_v25 = vadd.f32 %v4688_v46, %v4637_v48 }
0x1118   : > { %v4634_v55 = vpop.f32.mrf.mxu2 }
0x1119   : > { %v4638_v49 = vadd.f32 %v4634_v55, %v4581_v3 }
0x111b   : > { %v4695_v52 = vadd.f32 %v4691_v0, %v4638_v49 }
0x1120   : > { %v4745_v58 = vpop.f32.mrf.mxu2 }
0x1121   : > { %v4751_v22 = vadd.f32 %v4745_v58, %v4694_v25 }
0x1123   : > { %v4808_v37 = vadd.f32 %v4802_v56, %v4751_v22 }
0x1128   : > { %v4748_v31 = vpop.f32.mrf.mxu2 }
0x1129   : > { %v4752_v30 = vadd.f32 %v4748_v31, %v4695_v52 }
0x112b   : > { %v4809_v39 = vadd.f32 %v4805_v8, %v4752_v30 }
0x1130   : > { %v4859_v35 = vpop.f32.mrf.mxu2 }
0x1131   : > { %v4865_v54 = vadd.f32 %v4859_v35, %v4808_v37 }
0x1133   : > { %v4922_v36 = vadd.f32 %v4916_v18, %v4865_v54 }
0x1135   : > { %v4936_v62 = vadd.f32 %v4929_v61, %v4922_v36 }
0x1137   : > { %v4938_v45 = vmax.f32 %v4936_v62, 0.0 }
0x1138   : > { %v4862_v63 = vpop.f32.mrf.mxu2 }
0x1139   : > { %4940 = vst.msk [vmem:[%s547_s30] sm:$0xff] %vm3836_vm3, %v4938_v45  ;;  %v4866_v33 = vadd.f32 %v4862_v63, %v4809_v39 }
0x113b   : > { %v4923_v24 = vadd.f32 %v4919_v11, %v4866_v33 }
0x113d   : > { %v4937_v29 = vadd.f32 %v4934_v26, %v4923_v24 }
0x113f   : > { %v4939_v28 = vmax.f32 %v4937_v29, 0.0 }
0x1141   : > { %4941 = vst.msk [vmem:[%s547_s30 + $0x8] sm:$0xff] %vm3836_vm3, %v4939_v28 }
0x1142 PF: > { %s7136_s15 = sld [smem:[#allocation12_spill]] }
0x1148   : > { %s28_s29 = sadd.s32 1, %s7136_s15  }
0x1149   : > { %p25_p7 = scmp.ge.s32.totalorder %s28_s29, 4  }
0x114b   :  { %27 = sbr.rel (!%p25_p7) target bundleno = 7 (0x7), region = 182 }
0x1150   :  { %4979 = vsyncpa [#allocation3], 1 }
0x1151   :  { %4981 = vsyncpa [#allocation3 + $0x1], 1 }
0x1152   :  { %4982 = vsyncpa [#allocation5], 1 }
0x1153   :  { %4983 = vsyncpa [#allocation8], 1 }

</bundles_post_ra>
